<compile_context>
chip_gen: v5e
topology: v5e:2x2
jax: 0.10.0
libtpu: 0.0.40
codegen_flags: <defaults>
</compile_context>

<pallas_src>
import functools

import jax
import jax.numpy as jnp
from jax.experimental import pallas as pl
from jax.experimental.pallas import tpu as pltpu


# --------------------------------------------------------------------------
# Fused kernel
# --------------------------------------------------------------------------

def _tap_conv3x3(pad_ref, w_ref, H, W, Cout, blk=None):
    """3x3 conv over a zero-padded VMEM ref as 9 whole-plane matmuls.

    pad_ref : (H+2, W+2, Cin) zero-padded activation (VMEM scratch)
    w_ref   : (3, 3, Cin, Cout) or (NB, 3, 3, Cin, Cout) (blk selects block)
    returns : (H*W, Cout) float32 accumulator (no bias / activation applied)
    """
    acc = jnp.zeros((H * W, Cout), jnp.float32)
    for kh in range(3):
        for kw in range(3):
            patch = pad_ref[pl.ds(kh, H), pl.ds(kw, W), :]     # (H, W, Cin)
            patch = patch.reshape(H * W, patch.shape[-1])       # (H*W, Cin)
            w_tap = w_ref[kh, kw] if blk is None else w_ref[blk, kh, kw]
            acc = acc + jnp.dot(patch, w_tap,
                                preferred_element_type=jnp.float32)
    return acc


def _resnet_fused_kernel(x_ref, stem_w_ref, stem_b_ref,
                         w1_ref, b1_ref, w2_ref, b2_ref,
                         ca_w1_ref, ca_w2_ref,
                         h1_w_ref, h1_b_ref, h2_w_ref, h2_b_ref,
                         o_ref,
                         pad_in, pad_act, pad_head,
                         *, H, W, Cin, C, num_blocks, n):
    f32 = jnp.float32
    HW = H * W

    # Zero the padded scratch buffers (borders must be zero; interiors are
    # fully overwritten below).  Cheap at these sizes; done per grid step so
    # it is correct regardless of how the batch axis is sharded across cores.
    pad_in[...] = jnp.zeros_like(pad_in)
    pad_act[...] = jnp.zeros_like(pad_act)
    pad_head[...] = jnp.zeros_like(pad_head)

    # ---- stem: conv3x3 (pad=1, bias) + ReLU --------------------------------
    pad_in[pl.ds(1, H), pl.ds(1, W), :] = x_ref[0].astype(f32)
    act = _tap_conv3x3(pad_in, stem_w_ref, H, W, C)
    act = jnp.maximum(act + stem_b_ref[...], 0.0)              # (HW, C)

    # ---- residual blocks (post-activation, norm=Identity) ------------------
    for blk in range(num_blocks):
        resid = act
        # conv1 + ReLU
        pad_act[pl.ds(1, H), pl.ds(1, W), :] = act.reshape(H, W, C)
        h = _tap_conv3x3(pad_act, w1_ref, H, W, C, blk=blk)
        h = jnp.maximum(h + b1_ref[blk], 0.0)
        # conv2 (no activation)
        pad_act[pl.ds(1, H), pl.ds(1, W), :] = h.reshape(H, W, C)
        h = _tap_conv3x3(pad_act, w2_ref, H, W, C, blk=blk)
        h = h + b2_ref[blk]                                    # (HW, C)

        # ChannelAttention epilogue: global avg / max pool over the plane,
        # shared bias-free 2-layer MLP, sigmoid gate, scale, residual, ReLU.
        avg = jnp.mean(h, axis=0, keepdims=True)               # (1, C)
        mx = jnp.max(h, axis=0, keepdims=True)                 # (1, C)
        w_a = ca_w1_ref[blk]                                   # (C, C//r)
        w_b = ca_w2_ref[blk]                                   # (C//r, C)

        def mlp(v):
            z = jnp.dot(v, w_a, preferred_element_type=f32)
            z = jnp.maximum(z, 0.0)
            return jnp.dot(z, w_b, preferred_element_type=f32)

        gate = jax.nn.sigmoid(mlp(avg) + mlp(mx))              # (1, C)
        act = jnp.maximum(h * gate + resid, 0.0)               # (HW, C)

    # ---- head: conv (1, 2n+1) valid + ReLU, then 1x1 conv ------------------
    # Compute the width-conv over the full width (right-padded with zeros) so
    # every tap is a whole-plane (HW, C) x (C, 32) matmul; the 2n garbage
    # columns are dropped at the final write.
    KW = 2 * n + 1
    pad_head[:, pl.ds(0, W), :] = act.reshape(H, W, C)
    acc = jnp.zeros((HW, h1_w_ref.shape[-1]), f32)
    for kw in range(KW):
        patch = pad_head[:, pl.ds(kw, W), :].reshape(HW, C)
        acc = acc + jnp.dot(patch, h1_w_ref[kw],
                            preferred_element_type=f32)
    acc = jnp.maximum(acc + h1_b_ref[...], 0.0)                # (HW, 32)

    out = jnp.dot(acc, h2_w_ref[...], preferred_element_type=f32)
    out = out + h2_b_ref[...]                                  # (HW, Cin)
    out = out.reshape(H, W, Cin)[:, : W - 2 * n, :]            # drop pad cols
    o_ref[0] = out.astype(o_ref.dtype)


# --------------------------------------------------------------------------
# Wrapper
# --------------------------------------------------------------------------

def resnet_forward(x_nchw, params, *, n):
    x = jnp.transpose(x_nchw, (0, 2, 3, 1))                    # NCHW -> NHWC
    N, H, W, Cin = x.shape
    C = params["stem_w"].shape[-1]
    num_blocks = params["w1"].shape[0]
    Wout = W - 2 * n

    kernel = functools.partial(_resnet_fused_kernel, H=H, W=W, Cin=Cin, C=C,
                               num_blocks=num_blocks, n=n)

    out = pl.pallas_call(
        kernel,
        out_shape=jax.ShapeDtypeStruct((N, H, Wout, Cin), x.dtype),
        grid_spec=pltpu.PrefetchScalarGridSpec(
            num_scalar_prefetch=0,
            grid=(N,),
            in_specs=[
                pl.BlockSpec((1, H, W, Cin), lambda b: (b, 0, 0, 0)),
                # Weights: full-array blocks with constant index maps so they
                # stay resident in VMEM across the batch grid.
                pl.BlockSpec(params["stem_w"].shape, lambda b: (0, 0, 0, 0)),
                pl.BlockSpec(params["stem_b"].shape, lambda b: (0, 0)),
                pl.BlockSpec(params["w1"].shape, lambda b: (0, 0, 0, 0, 0)),
                pl.BlockSpec(params["b1"].shape, lambda b: (0, 0, 0)),
                pl.BlockSpec(params["w2"].shape, lambda b: (0, 0, 0, 0, 0)),
                pl.BlockSpec(params["b2"].shape, lambda b: (0, 0, 0)),
                pl.BlockSpec(params["ca_w1"].shape, lambda b: (0, 0, 0)),
                pl.BlockSpec(params["ca_w2"].shape, lambda b: (0, 0, 0)),
                pl.BlockSpec(params["head1_w"].shape, lambda b: (0, 0, 0)),
                pl.BlockSpec(params["head1_b"].shape, lambda b: (0, 0)),
                pl.BlockSpec(params["head2_w"].shape, lambda b: (0, 0)),
                pl.BlockSpec(params["head2_b"].shape, lambda b: (0, 0)),
            ],
            out_specs=pl.BlockSpec((1, H, Wout, Cin), lambda b: (b, 0, 0, 0)),
            scratch_shapes=[
                pltpu.VMEM((H + 2, W + 2, Cin), jnp.float32),   # stem pad
                pltpu.VMEM((H + 2, W + 2, C), jnp.float32),     # block pad
                pltpu.VMEM((H, W + 2 * n, C), jnp.float32),     # head pad
            ],
        ),
        compiler_params=pltpu.CompilerParams(
            dimension_semantics=("parallel",),
            vmem_limit_bytes=32 * 1024 * 1024,
        ),
    )(x, params["stem_w"], params["stem_b"],
      params["w1"], params["b1"], params["w2"], params["b2"],
      params["ca_w1"], params["ca_w2"],
      params["head1_w"], params["head1_b"],
      params["head2_w"], params["head2_b"])
    return jnp.transpose(out, (0, 3, 1, 2))                    # NHWC -> NCHW


# --------------------------------------------------------------------------
# Params (pre_actv=False, norm=Identity, actv=ReLU, conv bias=True,
#          ChannelAttention MLP bias=False — matches the PyTorch module)
# --------------------------------------------------------------------------

def init_params(key, in_channels, conv_channels, num_blocks, n, ratio=4):
    def conv_w(k, kh, kw, cin, cout):
        fan_in = kh * kw * cin
        return (jax.random.normal(k, (kh, kw, cin, cout), jnp.float32)
                / jnp.sqrt(float(fan_in)))

    cr = conv_channels // ratio
    keys = jax.random.split(key, 8 + 6 * num_blocks)
    it = iter(keys)
    params = {
        "stem_w": conv_w(next(it), 3, 3, in_channels, conv_channels),
        "stem_b": 0.01 * jax.random.normal(next(it), (1, conv_channels), jnp.float32),
        "head1_w": conv_w(next(it), 1, 2 * n + 1, conv_channels, 32)[0],   # (2n+1, C, 32)
        "head1_b": 0.01 * jax.random.normal(next(it), (1, 32), jnp.float32),
        "head2_w": conv_w(next(it), 1, 1, 32, in_channels)[0, 0],          # (32, Cin)
        "head2_b": 0.01 * jax.random.normal(next(it), (1, in_channels), jnp.float32),
    }
    w1, b1, w2, b2, cw1, cw2 = [], [], [], [], [], []
    for _ in range(num_blocks):
        w1.append(conv_w(next(it), 3, 3, conv_channels, conv_channels))
        b1.append(0.01 * jax.random.normal(next(it), (1, conv_channels), jnp.float32))
        w2.append(conv_w(next(it), 3, 3, conv_channels, conv_channels))
        b2.append(0.01 * jax.random.normal(next(it), (1, conv_channels), jnp.float32))
        cw1.append(conv_w(next(it), 1, 1, conv_channels, cr)[0, 0])        # (C, C//r)
        cw2.append(conv_w(next(it), 1, 1, cr, conv_channels)[0, 0])        # (C//r, C)
    params["w1"] = jnp.stack(w1)
    params["b1"] = jnp.stack(b1)
    params["w2"] = jnp.stack(w2)
    params["b2"] = jnp.stack(b2)
    params["ca_w1"] = jnp.stack(cw1)
    params["ca_w2"] = jnp.stack(cw2)
    return params


# --------------------------------------------------------------------------
# Pure-JAX reference (for correctness checking)
# --------------------------------------------------------------------------

def _conv_ref(x, w, b, pad_h, pad_w):
    y = jax.lax.conv_general_dilated(
        x, w, window_strides=(1, 1),
        padding=((pad_h, pad_h), (pad_w, pad_w)),
        dimension_numbers=("NHWC", "HWIO", "NHWC"))
    return y + b.reshape(1, 1, 1, -1)


def resnet_reference(x_nchw, params, *, n):
    x = jnp.transpose(x_nchw, (0, 2, 3, 1))
    h = jax.nn.relu(_conv_ref(x, params["stem_w"], params["stem_b"][0], 1, 1))
    for blk in range(params["w1"].shape[0]):
        r = h
        z = jax.nn.relu(_conv_ref(h, params["w1"][blk], params["b1"][blk, 0], 1, 1))
        z = _conv_ref(z, params["w2"][blk], params["b2"][blk, 0], 1, 1)
        avg = jnp.mean(z, axis=(1, 2))
        mx = jnp.max(z, axis=(1, 2))

        def mlp(v):
            return jax.nn.relu(v @ params["ca_w1"][blk]) @ params["ca_w2"][blk]

        gate = jax.nn.sigmoid(mlp(avg) + mlp(mx))[:, None, None, :]
        h = jax.nn.relu(z * gate + r)
    z = jax.lax.conv_general_dilated(
        h, params["head1_w"][None], (1, 1), "VALID",
        dimension_numbers=("NHWC", "HWIO", "NHWC"))
    z = jax.nn.relu(z + params["head1_b"].reshape(1, 1, 1, -1))
    out = z @ params["head2_w"] + params["head2_b"].reshape(1, 1, 1, -1)
    return jnp.transpose(out, (0, 3, 1, 2))


# --------------------------------------------------------------------------

if __name__ == "__main__":
    # Small shapes consistent with the module
    N, in_channels, H, W = 2, 4, 8, 16
    conv_channels, num_blocks, n = 16, 2, 2

    key = jax.random.PRNGKey(0)
    kx, kp = jax.random.split(key)
    x = jax.random.normal(kx, (N, in_channels, H, W), jnp.float32)   # NCHW input
    params = init_params(kp, in_channels, conv_channels, num_blocks, n)

    fwd = jax.jit(functools.partial(resnet_forward, n=n))
    y = jax.block_until_ready(fwd(x, params))

    assert y.shape == (N, in_channels, H, W - 2 * n), y.shape
    assert bool(jnp.all(jnp.isfinite(y)))

    # Correctness vs pure-JAX reference (f32 precision).
    with jax.default_matmul_precision("float32"):
        y_ref = jax.block_until_ready(resnet_reference(x, params, n=n))
    err = float(jnp.max(jnp.abs(y - y_ref)))
    assert err < 2e-3, f"max abs error {err}"

    print("KERNEL_OK")
</pallas_src>

<mosaic_0001>
module attributes {stable_mosaic.version = 11 : i64} {
  func.func @_resnet_fused_kernel(%arg0: i32, %arg1: memref<1x8x16x4xf32, #tpu.memory_space<vmem>>, %arg2: memref<3x3x4x16xf32, #tpu.memory_space<vmem>>, %arg3: memref<1x16xf32, #tpu.memory_space<vmem>>, %arg4: memref<2x3x3x16x16xf32, #tpu.memory_space<vmem>>, %arg5: memref<2x1x16xf32, #tpu.memory_space<vmem>>, %arg6: memref<2x3x3x16x16xf32, #tpu.memory_space<vmem>>, %arg7: memref<2x1x16xf32, #tpu.memory_space<vmem>>, %arg8: memref<2x16x4xf32, #tpu.memory_space<vmem>>, %arg9: memref<2x4x16xf32, #tpu.memory_space<vmem>>, %arg10: memref<5x16x32xf32, #tpu.memory_space<vmem>>, %arg11: memref<1x32xf32, #tpu.memory_space<vmem>>, %arg12: memref<32x4xf32, #tpu.memory_space<vmem>>, %arg13: memref<1x4xf32, #tpu.memory_space<vmem>>, %arg14: memref<1x8x12x4xf32, #tpu.memory_space<vmem>>, %arg15: memref<10x18x4xf32, #tpu.memory_space<vmem>>, %arg16: memref<10x18x16xf32, #tpu.memory_space<vmem>>, %arg17: memref<8x20x16xf32, #tpu.memory_space<vmem>>) attributes {dimension_semantics = [#tpu.dimension_semantics<parallel>], iteration_bounds = array<i64: 2>, scalar_prefetch = 0 : i64, scratch_operands = 3 : i64, tpu.core_type = #tpu.core_type<tc>, window_params = [{transform_indices = @transform_0, window_bounds = array<i64: 1, 8, 16, 4>}, {pipeline_mode = #tpu.pipeline_mode<synchronous>, transform_indices = @transform_1, window_bounds = array<i64: 3, 3, 4, 16>}, {pipeline_mode = #tpu.pipeline_mode<synchronous>, transform_indices = @transform_2, window_bounds = array<i64: 1, 16>}, {pipeline_mode = #tpu.pipeline_mode<synchronous>, transform_indices = @transform_3, window_bounds = array<i64: 2, 3, 3, 16, 16>}, {pipeline_mode = #tpu.pipeline_mode<synchronous>, transform_indices = @transform_4, window_bounds = array<i64: 2, 1, 16>}, {pipeline_mode = #tpu.pipeline_mode<synchronous>, transform_indices = @transform_5, window_bounds = array<i64: 2, 3, 3, 16, 16>}, {pipeline_mode = #tpu.pipeline_mode<synchronous>, transform_indices = @transform_6, window_bounds = array<i64: 2, 1, 16>}, {pipeline_mode = #tpu.pipeline_mode<synchronous>, transform_indices = @transform_7, window_bounds = array<i64: 2, 16, 4>}, {pipeline_mode = #tpu.pipeline_mode<synchronous>, transform_indices = @transform_8, window_bounds = array<i64: 2, 4, 16>}, {pipeline_mode = #tpu.pipeline_mode<synchronous>, transform_indices = @transform_9, window_bounds = array<i64: 5, 16, 32>}, {pipeline_mode = #tpu.pipeline_mode<synchronous>, transform_indices = @transform_10, window_bounds = array<i64: 1, 32>}, {pipeline_mode = #tpu.pipeline_mode<synchronous>, transform_indices = @transform_11, window_bounds = array<i64: 32, 4>}, {pipeline_mode = #tpu.pipeline_mode<synchronous>, transform_indices = @transform_12, window_bounds = array<i64: 1, 4>}, {transform_indices = @transform_13, window_bounds = array<i64: 1, 8, 12, 4>}]} {
    %cst = arith.constant 0.000000e+00 : f32
    %0 = vector.broadcast %cst : f32 to vector<10x18x4xf32>
    %c0 = arith.constant 0 : index
    %c0_0 = arith.constant 0 : index
    %c0_1 = arith.constant 0 : index
    %1 = vector.load %arg15[%c0, %c0_0, %c0_1] : memref<10x18x4xf32, #tpu.memory_space<vmem>>, vector<10x18x4xf32>
    tpu.vector_store %arg15[%c0, %c0_0, %c0_1], %0 {strides = array<i32>} : memref<10x18x4xf32, #tpu.memory_space<vmem>>, vector<10x18x4xf32>,
    %cst_2 = arith.constant 0.000000e+00 : f32
    %2 = vector.broadcast %cst_2 : f32 to vector<10x18x16xf32>
    %c0_3 = arith.constant 0 : index
    %c0_4 = arith.constant 0 : index
    %c0_5 = arith.constant 0 : index
    %3 = vector.load %arg16[%c0_3, %c0_4, %c0_5] : memref<10x18x16xf32, #tpu.memory_space<vmem>>, vector<10x18x16xf32>
    tpu.vector_store %arg16[%c0_3, %c0_4, %c0_5], %2 {strides = array<i32>} : memref<10x18x16xf32, #tpu.memory_space<vmem>>, vector<10x18x16xf32>,
    %cst_6 = arith.constant 0.000000e+00 : f32
    %4 = vector.broadcast %cst_6 : f32 to vector<8x20x16xf32>
    %c0_7 = arith.constant 0 : index
    %c0_8 = arith.constant 0 : index
    %c0_9 = arith.constant 0 : index
    %5 = vector.load %arg17[%c0_7, %c0_8, %c0_9] : memref<8x20x16xf32, #tpu.memory_space<vmem>>, vector<8x20x16xf32>
    tpu.vector_store %arg17[%c0_7, %c0_8, %c0_9], %4 {strides = array<i32>} : memref<8x20x16xf32, #tpu.memory_space<vmem>>, vector<8x20x16xf32>,
    %c0_10 = arith.constant 0 : index
    %c0_11 = arith.constant 0 : index
    %c0_12 = arith.constant 0 : index
    %c0_13 = arith.constant 0 : index
    %6 = vector.load %arg1[%c0_10, %c0_11, %c0_12, %c0_13] : memref<1x8x16x4xf32, #tpu.memory_space<vmem>>, vector<1x8x16x4xf32>
    %7 = vector.shape_cast %6 : vector<1x8x16x4xf32> to vector<8x16x4xf32>
    %c1 = arith.constant 1 : index
    %c1_14 = arith.constant 1 : index
    %c0_15 = arith.constant 0 : index
    %8 = vector.load %arg15[%c1, %c1_14, %c0_15] : memref<10x18x4xf32, #tpu.memory_space<vmem>>, vector<8x16x4xf32>
    tpu.vector_store %arg15[%c1, %c1_14, %c0_15], %7 {strides = array<i32>} : memref<10x18x4xf32, #tpu.memory_space<vmem>>, vector<8x16x4xf32>,
    %cst_16 = arith.constant 0.000000e+00 : f32
    %9 = vector.broadcast %cst_16 : f32 to vector<128x16xf32>
    %c0_17 = arith.constant 0 : index
    %c0_18 = arith.constant 0 : index
    %c0_19 = arith.constant 0 : index
    %10 = vector.load %arg15[%c0_17, %c0_18, %c0_19] : memref<10x18x4xf32, #tpu.memory_space<vmem>>, vector<8x16x4xf32>
    %11 = vector.shape_cast %10 : vector<8x16x4xf32> to vector<128x4xf32>
    %c0_20 = arith.constant 0 : index
    %c0_21 = arith.constant 0 : index
    %c0_22 = arith.constant 0 : index
    %c0_23 = arith.constant 0 : index
    %12 = vector.load %arg2[%c0_20, %c0_21, %c0_22, %c0_23] : memref<3x3x4x16xf32, #tpu.memory_space<vmem>>, vector<1x1x4x16xf32>
    %13 = vector.shape_cast %12 : vector<1x1x4x16xf32> to vector<4x16xf32>
    %cst_24 = arith.constant dense<0.000000e+00> : vector<128x16xf32>
    %14 = tpu.matmul %11, %13, %cst_24 {dimension_numbers = #tpu.dot_dimension_numbers<[1], [0], [0], [1], [0, 0, 1, 1], [], []>} : vector<128x4xf32>, vector<4x16xf32>, vector<128x16xf32> -> vector<128x16xf32>
    %15 = arith.addf %9, %14 : vector<128x16xf32>
    %c0_25 = arith.constant 0 : index
    %c1_26 = arith.constant 1 : index
    %c0_27 = arith.constant 0 : index
    %16 = vector.load %arg15[%c0_25, %c1_26, %c0_27] : memref<10x18x4xf32, #tpu.memory_space<vmem>>, vector<8x16x4xf32>
    %17 = vector.shape_cast %16 : vector<8x16x4xf32> to vector<128x4xf32>
    %c0_28 = arith.constant 0 : index
    %c1_29 = arith.constant 1 : index
    %c0_30 = arith.constant 0 : index
    %c0_31 = arith.constant 0 : index
    %18 = vector.load %arg2[%c0_28, %c1_29, %c0_30, %c0_31] : memref<3x3x4x16xf32, #tpu.memory_space<vmem>>, vector<1x1x4x16xf32>
    %19 = vector.shape_cast %18 : vector<1x1x4x16xf32> to vector<4x16xf32>
    %cst_32 = arith.constant dense<0.000000e+00> : vector<128x16xf32>
    %20 = tpu.matmul %17, %19, %cst_32 {dimension_numbers = #tpu.dot_dimension_numbers<[1], [0], [0], [1], [0, 0, 1, 1], [], []>} : vector<128x4xf32>, vector<4x16xf32>, vector<128x16xf32> -> vector<128x16xf32>
    %21 = arith.addf %15, %20 : vector<128x16xf32>
    %c0_33 = arith.constant 0 : index
    %c2 = arith.constant 2 : index
    %c0_34 = arith.constant 0 : index
    %22 = vector.load %arg15[%c0_33, %c2, %c0_34] : memref<10x18x4xf32, #tpu.memory_space<vmem>>, vector<8x16x4xf32>
    %23 = vector.shape_cast %22 : vector<8x16x4xf32> to vector<128x4xf32>
    %c0_35 = arith.constant 0 : index
    %c2_36 = arith.constant 2 : index
    %c0_37 = arith.constant 0 : index
    %c0_38 = arith.constant 0 : index
    %24 = vector.load %arg2[%c0_35, %c2_36, %c0_37, %c0_38] : memref<3x3x4x16xf32, #tpu.memory_space<vmem>>, vector<1x1x4x16xf32>
    %25 = vector.shape_cast %24 : vector<1x1x4x16xf32> to vector<4x16xf32>
    %cst_39 = arith.constant dense<0.000000e+00> : vector<128x16xf32>
    %26 = tpu.matmul %23, %25, %cst_39 {dimension_numbers = #tpu.dot_dimension_numbers<[1], [0], [0], [1], [0, 0, 1, 1], [], []>} : vector<128x4xf32>, vector<4x16xf32>, vector<128x16xf32> -> vector<128x16xf32>
    %27 = arith.addf %21, %26 : vector<128x16xf32>
    %c1_40 = arith.constant 1 : index
    %c0_41 = arith.constant 0 : index
    %c0_42 = arith.constant 0 : index
    %28 = vector.load %arg15[%c1_40, %c0_41, %c0_42] : memref<10x18x4xf32, #tpu.memory_space<vmem>>, vector<8x16x4xf32>
    %29 = vector.shape_cast %28 : vector<8x16x4xf32> to vector<128x4xf32>
    %c1_43 = arith.constant 1 : index
    %c0_44 = arith.constant 0 : index
    %c0_45 = arith.constant 0 : index
    %c0_46 = arith.constant 0 : index
    %30 = vector.load %arg2[%c1_43, %c0_44, %c0_45, %c0_46] : memref<3x3x4x16xf32, #tpu.memory_space<vmem>>, vector<1x1x4x16xf32>
    %31 = vector.shape_cast %30 : vector<1x1x4x16xf32> to vector<4x16xf32>
    %cst_47 = arith.constant dense<0.000000e+00> : vector<128x16xf32>
    %32 = tpu.matmul %29, %31, %cst_47 {dimension_numbers = #tpu.dot_dimension_numbers<[1], [0], [0], [1], [0, 0, 1, 1], [], []>} : vector<128x4xf32>, vector<4x16xf32>, vector<128x16xf32> -> vector<128x16xf32>
    %33 = arith.addf %27, %32 : vector<128x16xf32>
    %c1_48 = arith.constant 1 : index
    %c1_49 = arith.constant 1 : index
    %c0_50 = arith.constant 0 : index
    %34 = vector.load %arg15[%c1_48, %c1_49, %c0_50] : memref<10x18x4xf32, #tpu.memory_space<vmem>>, vector<8x16x4xf32>
    %35 = vector.shape_cast %34 : vector<8x16x4xf32> to vector<128x4xf32>
    %c1_51 = arith.constant 1 : index
    %c1_52 = arith.constant 1 : index
    %c0_53 = arith.constant 0 : index
    %c0_54 = arith.constant 0 : index
    %36 = vector.load %arg2[%c1_51, %c1_52, %c0_53, %c0_54] : memref<3x3x4x16xf32, #tpu.memory_space<vmem>>, vector<1x1x4x16xf32>
    %37 = vector.shape_cast %36 : vector<1x1x4x16xf32> to vector<4x16xf32>
    %cst_55 = arith.constant dense<0.000000e+00> : vector<128x16xf32>
    %38 = tpu.matmul %35, %37, %cst_55 {dimension_numbers = #tpu.dot_dimension_numbers<[1], [0], [0], [1], [0, 0, 1, 1], [], []>} : vector<128x4xf32>, vector<4x16xf32>, vector<128x16xf32> -> vector<128x16xf32>
    %39 = arith.addf %33, %38 : vector<128x16xf32>
    %c1_56 = arith.constant 1 : index
    %c2_57 = arith.constant 2 : index
    %c0_58 = arith.constant 0 : index
    %40 = vector.load %arg15[%c1_56, %c2_57, %c0_58] : memref<10x18x4xf32, #tpu.memory_space<vmem>>, vector<8x16x4xf32>
    %41 = vector.shape_cast %40 : vector<8x16x4xf32> to vector<128x4xf32>
    %c1_59 = arith.constant 1 : index
    %c2_60 = arith.constant 2 : index
    %c0_61 = arith.constant 0 : index
    %c0_62 = arith.constant 0 : index
    %42 = vector.load %arg2[%c1_59, %c2_60, %c0_61, %c0_62] : memref<3x3x4x16xf32, #tpu.memory_space<vmem>>, vector<1x1x4x16xf32>
    %43 = vector.shape_cast %42 : vector<1x1x4x16xf32> to vector<4x16xf32>
    %cst_63 = arith.constant dense<0.000000e+00> : vector<128x16xf32>
    %44 = tpu.matmul %41, %43, %cst_63 {dimension_numbers = #tpu.dot_dimension_numbers<[1], [0], [0], [1], [0, 0, 1, 1], [], []>} : vector<128x4xf32>, vector<4x16xf32>, vector<128x16xf32> -> vector<128x16xf32>
    %45 = arith.addf %39, %44 : vector<128x16xf32>
    %c2_64 = arith.constant 2 : index
    %c0_65 = arith.constant 0 : index
    %c0_66 = arith.constant 0 : index
    %46 = vector.load %arg15[%c2_64, %c0_65, %c0_66] : memref<10x18x4xf32, #tpu.memory_space<vmem>>, vector<8x16x4xf32>
    %47 = vector.shape_cast %46 : vector<8x16x4xf32> to vector<128x4xf32>
    %c2_67 = arith.constant 2 : index
    %c0_68 = arith.constant 0 : index
    %c0_69 = arith.constant 0 : index
    %c0_70 = arith.constant 0 : index
    %48 = vector.load %arg2[%c2_67, %c0_68, %c0_69, %c0_70] : memref<3x3x4x16xf32, #tpu.memory_space<vmem>>, vector<1x1x4x16xf32>
    %49 = vector.shape_cast %48 : vector<1x1x4x16xf32> to vector<4x16xf32>
    %cst_71 = arith.constant dense<0.000000e+00> : vector<128x16xf32>
    %50 = tpu.matmul %47, %49, %cst_71 {dimension_numbers = #tpu.dot_dimension_numbers<[1], [0], [0], [1], [0, 0, 1, 1], [], []>} : vector<128x4xf32>, vector<4x16xf32>, vector<128x16xf32> -> vector<128x16xf32>
    %51 = arith.addf %45, %50 : vector<128x16xf32>
    %c2_72 = arith.constant 2 : index
    %c1_73 = arith.constant 1 : index
    %c0_74 = arith.constant 0 : index
    %52 = vector.load %arg15[%c2_72, %c1_73, %c0_74] : memref<10x18x4xf32, #tpu.memory_space<vmem>>, vector<8x16x4xf32>
    %53 = vector.shape_cast %52 : vector<8x16x4xf32> to vector<128x4xf32>
    %c2_75 = arith.constant 2 : index
    %c1_76 = arith.constant 1 : index
    %c0_77 = arith.constant 0 : index
    %c0_78 = arith.constant 0 : index
    %54 = vector.load %arg2[%c2_75, %c1_76, %c0_77, %c0_78] : memref<3x3x4x16xf32, #tpu.memory_space<vmem>>, vector<1x1x4x16xf32>
    %55 = vector.shape_cast %54 : vector<1x1x4x16xf32> to vector<4x16xf32>
    %cst_79 = arith.constant dense<0.000000e+00> : vector<128x16xf32>
    %56 = tpu.matmul %53, %55, %cst_79 {dimension_numbers = #tpu.dot_dimension_numbers<[1], [0], [0], [1], [0, 0, 1, 1], [], []>} : vector<128x4xf32>, vector<4x16xf32>, vector<128x16xf32> -> vector<128x16xf32>
    %57 = arith.addf %51, %56 : vector<128x16xf32>
    %c2_80 = arith.constant 2 : index
    %c2_81 = arith.constant 2 : index
    %c0_82 = arith.constant 0 : index
    %58 = vector.load %arg15[%c2_80, %c2_81, %c0_82] : memref<10x18x4xf32, #tpu.memory_space<vmem>>, vector<8x16x4xf32>
    %59 = vector.shape_cast %58 : vector<8x16x4xf32> to vector<128x4xf32>
    %c2_83 = arith.constant 2 : index
    %c2_84 = arith.constant 2 : index
    %c0_85 = arith.constant 0 : index
    %c0_86 = arith.constant 0 : index
    %60 = vector.load %arg2[%c2_83, %c2_84, %c0_85, %c0_86] : memref<3x3x4x16xf32, #tpu.memory_space<vmem>>, vector<1x1x4x16xf32>
    %61 = vector.shape_cast %60 : vector<1x1x4x16xf32> to vector<4x16xf32>
    %cst_87 = arith.constant dense<0.000000e+00> : vector<128x16xf32>
    %62 = tpu.matmul %59, %61, %cst_87 {dimension_numbers = #tpu.dot_dimension_numbers<[1], [0], [0], [1], [0, 0, 1, 1], [], []>} : vector<128x4xf32>, vector<4x16xf32>, vector<128x16xf32> -> vector<128x16xf32>
    %63 = arith.addf %57, %62 : vector<128x16xf32>
    %c0_88 = arith.constant 0 : index
    %c0_89 = arith.constant 0 : index
    %64 = vector.load %arg3[%c0_88, %c0_89] : memref<1x16xf32, #tpu.memory_space<vmem>>, vector<1x16xf32>
    %65 = vector.broadcast %64 : vector<1x16xf32> to vector<128x16xf32>
    %66 = arith.addf %63, %65 : vector<128x16xf32>
    %cst_90 = arith.constant 0.000000e+00 : f32
    %67 = vector.broadcast %cst_90 : f32 to vector<128x16xf32>
    %68 = arith.maximumf %66, %67 : vector<128x16xf32>
    %69 = vector.shape_cast %68 : vector<128x16xf32> to vector<8x16x16xf32>
    %c1_91 = arith.constant 1 : index
    %c1_92 = arith.constant 1 : index
    %c0_93 = arith.constant 0 : index
    %70 = vector.load %arg16[%c1_91, %c1_92, %c0_93] : memref<10x18x16xf32, #tpu.memory_space<vmem>>, vector<8x16x16xf32>
    tpu.vector_store %arg16[%c1_91, %c1_92, %c0_93], %69 {strides = array<i32>} : memref<10x18x16xf32, #tpu.memory_space<vmem>>, vector<8x16x16xf32>,
    %cst_94 = arith.constant 0.000000e+00 : f32
    %71 = vector.broadcast %cst_94 : f32 to vector<128x16xf32>
    %c0_95 = arith.constant 0 : index
    %c0_96 = arith.constant 0 : index
    %c0_97 = arith.constant 0 : index
    %72 = vector.load %arg16[%c0_95, %c0_96, %c0_97] : memref<10x18x16xf32, #tpu.memory_space<vmem>>, vector<8x16x16xf32>
    %73 = vector.shape_cast %72 : vector<8x16x16xf32> to vector<128x16xf32>
    %c0_98 = arith.constant 0 : index
    %c0_99 = arith.constant 0 : index
    %c0_100 = arith.constant 0 : index
    %c0_101 = arith.constant 0 : index
    %c0_102 = arith.constant 0 : index
    %74 = vector.load %arg4[%c0_98, %c0_99, %c0_100, %c0_101, %c0_102] : memref<2x3x3x16x16xf32, #tpu.memory_space<vmem>>, vector<1x1x1x16x16xf32>
    %75 = vector.shape_cast %74 : vector<1x1x1x16x16xf32> to vector<16x16xf32>
    %cst_103 = arith.constant dense<0.000000e+00> : vector<128x16xf32>
    %76 = tpu.matmul %73, %75, %cst_103 {dimension_numbers = #tpu.dot_dimension_numbers<[1], [0], [0], [1], [0, 0, 1, 1], [], []>} : vector<128x16xf32>, vector<16x16xf32>, vector<128x16xf32> -> vector<128x16xf32>
    %77 = arith.addf %71, %76 : vector<128x16xf32>
    %c0_104 = arith.constant 0 : index
    %c1_105 = arith.constant 1 : index
    %c0_106 = arith.constant 0 : index
    %78 = vector.load %arg16[%c0_104, %c1_105, %c0_106] : memref<10x18x16xf32, #tpu.memory_space<vmem>>, vector<8x16x16xf32>
    %79 = vector.shape_cast %78 : vector<8x16x16xf32> to vector<128x16xf32>
    %c0_107 = arith.constant 0 : index
    %c0_108 = arith.constant 0 : index
    %c1_109 = arith.constant 1 : index
    %c0_110 = arith.constant 0 : index
    %c0_111 = arith.constant 0 : index
    %80 = vector.load %arg4[%c0_107, %c0_108, %c1_109, %c0_110, %c0_111] : memref<2x3x3x16x16xf32, #tpu.memory_space<vmem>>, vector<1x1x1x16x16xf32>
    %81 = vector.shape_cast %80 : vector<1x1x1x16x16xf32> to vector<16x16xf32>
    %cst_112 = arith.constant dense<0.000000e+00> : vector<128x16xf32>
    %82 = tpu.matmul %79, %81, %cst_112 {dimension_numbers = #tpu.dot_dimension_numbers<[1], [0], [0], [1], [0, 0, 1, 1], [], []>} : vector<128x16xf32>, vector<16x16xf32>, vector<128x16xf32> -> vector<128x16xf32>
    %83 = arith.addf %77, %82 : vector<128x16xf32>
    %c0_113 = arith.constant 0 : index
    %c2_114 = arith.constant 2 : index
    %c0_115 = arith.constant 0 : index
    %84 = vector.load %arg16[%c0_113, %c2_114, %c0_115] : memref<10x18x16xf32, #tpu.memory_space<vmem>>, vector<8x16x16xf32>
    %85 = vector.shape_cast %84 : vector<8x16x16xf32> to vector<128x16xf32>
    %c0_116 = arith.constant 0 : index
    %c0_117 = arith.constant 0 : index
    %c2_118 = arith.constant 2 : index
    %c0_119 = arith.constant 0 : index
    %c0_120 = arith.constant 0 : index
    %86 = vector.load %arg4[%c0_116, %c0_117, %c2_118, %c0_119, %c0_120] : memref<2x3x3x16x16xf32, #tpu.memory_space<vmem>>, vector<1x1x1x16x16xf32>
    %87 = vector.shape_cast %86 : vector<1x1x1x16x16xf32> to vector<16x16xf32>
    %cst_121 = arith.constant dense<0.000000e+00> : vector<128x16xf32>
    %88 = tpu.matmul %85, %87, %cst_121 {dimension_numbers = #tpu.dot_dimension_numbers<[1], [0], [0], [1], [0, 0, 1, 1], [], []>} : vector<128x16xf32>, vector<16x16xf32>, vector<128x16xf32> -> vector<128x16xf32>
    %89 = arith.addf %83, %88 : vector<128x16xf32>
    %c1_122 = arith.constant 1 : index
    %c0_123 = arith.constant 0 : index
    %c0_124 = arith.constant 0 : index
    %90 = vector.load %arg16[%c1_122, %c0_123, %c0_124] : memref<10x18x16xf32, #tpu.memory_space<vmem>>, vector<8x16x16xf32>
    %91 = vector.shape_cast %90 : vector<8x16x16xf32> to vector<128x16xf32>
    %c0_125 = arith.constant 0 : index
    %c1_126 = arith.constant 1 : index
    %c0_127 = arith.constant 0 : index
    %c0_128 = arith.constant 0 : index
    %c0_129 = arith.constant 0 : index
    %92 = vector.load %arg4[%c0_125, %c1_126, %c0_127, %c0_128, %c0_129] : memref<2x3x3x16x16xf32, #tpu.memory_space<vmem>>, vector<1x1x1x16x16xf32>
    %93 = vector.shape_cast %92 : vector<1x1x1x16x16xf32> to vector<16x16xf32>
    %cst_130 = arith.constant dense<0.000000e+00> : vector<128x16xf32>
    %94 = tpu.matmul %91, %93, %cst_130 {dimension_numbers = #tpu.dot_dimension_numbers<[1], [0], [0], [1], [0, 0, 1, 1], [], []>} : vector<128x16xf32>, vector<16x16xf32>, vector<128x16xf32> -> vector<128x16xf32>
    %95 = arith.addf %89, %94 : vector<128x16xf32>
    %c1_131 = arith.constant 1 : index
    %c1_132 = arith.constant 1 : index
    %c0_133 = arith.constant 0 : index
    %96 = vector.load %arg16[%c1_131, %c1_132, %c0_133] : memref<10x18x16xf32, #tpu.memory_space<vmem>>, vector<8x16x16xf32>
    %97 = vector.shape_cast %96 : vector<8x16x16xf32> to vector<128x16xf32>
    %c0_134 = arith.constant 0 : index
    %c1_135 = arith.constant 1 : index
    %c1_136 = arith.constant 1 : index
    %c0_137 = arith.constant 0 : index
    %c0_138 = arith.constant 0 : index
    %98 = vector.load %arg4[%c0_134, %c1_135, %c1_136, %c0_137, %c0_138] : memref<2x3x3x16x16xf32, #tpu.memory_space<vmem>>, vector<1x1x1x16x16xf32>
    %99 = vector.shape_cast %98 : vector<1x1x1x16x16xf32> to vector<16x16xf32>
    %cst_139 = arith.constant dense<0.000000e+00> : vector<128x16xf32>
    %100 = tpu.matmul %97, %99, %cst_139 {dimension_numbers = #tpu.dot_dimension_numbers<[1], [0], [0], [1], [0, 0, 1, 1], [], []>} : vector<128x16xf32>, vector<16x16xf32>, vector<128x16xf32> -> vector<128x16xf32>
    %101 = arith.addf %95, %100 : vector<128x16xf32>
    %c1_140 = arith.constant 1 : index
    %c2_141 = arith.constant 2 : index
    %c0_142 = arith.constant 0 : index
    %102 = vector.load %arg16[%c1_140, %c2_141, %c0_142] : memref<10x18x16xf32, #tpu.memory_space<vmem>>, vector<8x16x16xf32>
    %103 = vector.shape_cast %102 : vector<8x16x16xf32> to vector<128x16xf32>
    %c0_143 = arith.constant 0 : index
    %c1_144 = arith.constant 1 : index
    %c2_145 = arith.constant 2 : index
    %c0_146 = arith.constant 0 : index
    %c0_147 = arith.constant 0 : index
    %104 = vector.load %arg4[%c0_143, %c1_144, %c2_145, %c0_146, %c0_147] : memref<2x3x3x16x16xf32, #tpu.memory_space<vmem>>, vector<1x1x1x16x16xf32>
    %105 = vector.shape_cast %104 : vector<1x1x1x16x16xf32> to vector<16x16xf32>
    %cst_148 = arith.constant dense<0.000000e+00> : vector<128x16xf32>
    %106 = tpu.matmul %103, %105, %cst_148 {dimension_numbers = #tpu.dot_dimension_numbers<[1], [0], [0], [1], [0, 0, 1, 1], [], []>} : vector<128x16xf32>, vector<16x16xf32>, vector<128x16xf32> -> vector<128x16xf32>
    %107 = arith.addf %101, %106 : vector<128x16xf32>
    %c2_149 = arith.constant 2 : index
    %c0_150 = arith.constant 0 : index
    %c0_151 = arith.constant 0 : index
    %108 = vector.load %arg16[%c2_149, %c0_150, %c0_151] : memref<10x18x16xf32, #tpu.memory_space<vmem>>, vector<8x16x16xf32>
    %109 = vector.shape_cast %108 : vector<8x16x16xf32> to vector<128x16xf32>
    %c0_152 = arith.constant 0 : index
    %c2_153 = arith.constant 2 : index
    %c0_154 = arith.constant 0 : index
    %c0_155 = arith.constant 0 : index
    %c0_156 = arith.constant 0 : index
    %110 = vector.load %arg4[%c0_152, %c2_153, %c0_154, %c0_155, %c0_156] : memref<2x3x3x16x16xf32, #tpu.memory_space<vmem>>, vector<1x1x1x16x16xf32>
    %111 = vector.shape_cast %110 : vector<1x1x1x16x16xf32> to vector<16x16xf32>
    %cst_157 = arith.constant dense<0.000000e+00> : vector<128x16xf32>
    %112 = tpu.matmul %109, %111, %cst_157 {dimension_numbers = #tpu.dot_dimension_numbers<[1], [0], [0], [1], [0, 0, 1, 1], [], []>} : vector<128x16xf32>, vector<16x16xf32>, vector<128x16xf32> -> vector<128x16xf32>
    %113 = arith.addf %107, %112 : vector<128x16xf32>
    %c2_158 = arith.constant 2 : index
    %c1_159 = arith.constant 1 : index
    %c0_160 = arith.constant 0 : index
    %114 = vector.load %arg16[%c2_158, %c1_159, %c0_160] : memref<10x18x16xf32, #tpu.memory_space<vmem>>, vector<8x16x16xf32>
    %115 = vector.shape_cast %114 : vector<8x16x16xf32> to vector<128x16xf32>
    %c0_161 = arith.constant 0 : index
    %c2_162 = arith.constant 2 : index
    %c1_163 = arith.constant 1 : index
    %c0_164 = arith.constant 0 : index
    %c0_165 = arith.constant 0 : index
    %116 = vector.load %arg4[%c0_161, %c2_162, %c1_163, %c0_164, %c0_165] : memref<2x3x3x16x16xf32, #tpu.memory_space<vmem>>, vector<1x1x1x16x16xf32>
    %117 = vector.shape_cast %116 : vector<1x1x1x16x16xf32> to vector<16x16xf32>
    %cst_166 = arith.constant dense<0.000000e+00> : vector<128x16xf32>
    %118 = tpu.matmul %115, %117, %cst_166 {dimension_numbers = #tpu.dot_dimension_numbers<[1], [0], [0], [1], [0, 0, 1, 1], [], []>} : vector<128x16xf32>, vector<16x16xf32>, vector<128x16xf32> -> vector<128x16xf32>
    %119 = arith.addf %113, %118 : vector<128x16xf32>
    %c2_167 = arith.constant 2 : index
    %c2_168 = arith.constant 2 : index
    %c0_169 = arith.constant 0 : index
    %120 = vector.load %arg16[%c2_167, %c2_168, %c0_169] : memref<10x18x16xf32, #tpu.memory_space<vmem>>, vector<8x16x16xf32>
    %121 = vector.shape_cast %120 : vector<8x16x16xf32> to vector<128x16xf32>
    %c0_170 = arith.constant 0 : index
    %c2_171 = arith.constant 2 : index
    %c2_172 = arith.constant 2 : index
    %c0_173 = arith.constant 0 : index
    %c0_174 = arith.constant 0 : index
    %122 = vector.load %arg4[%c0_170, %c2_171, %c2_172, %c0_173, %c0_174] : memref<2x3x3x16x16xf32, #tpu.memory_space<vmem>>, vector<1x1x1x16x16xf32>
    %123 = vector.shape_cast %122 : vector<1x1x1x16x16xf32> to vector<16x16xf32>
    %cst_175 = arith.constant dense<0.000000e+00> : vector<128x16xf32>
    %124 = tpu.matmul %121, %123, %cst_175 {dimension_numbers = #tpu.dot_dimension_numbers<[1], [0], [0], [1], [0, 0, 1, 1], [], []>} : vector<128x16xf32>, vector<16x16xf32>, vector<128x16xf32> -> vector<128x16xf32>
    %125 = arith.addf %119, %124 : vector<128x16xf32>
    %c0_176 = arith.constant 0 : index
    %c0_177 = arith.constant 0 : index
    %c0_178 = arith.constant 0 : index
    %126 = vector.load %arg5[%c0_176, %c0_177, %c0_178] : memref<2x1x16xf32, #tpu.memory_space<vmem>>, vector<1x1x16xf32>
    %127 = vector.shape_cast %126 : vector<1x1x16xf32> to vector<1x16xf32>
    %128 = vector.broadcast %127 : vector<1x16xf32> to vector<128x16xf32>
    %129 = arith.addf %125, %128 : vector<128x16xf32>
    %cst_179 = arith.constant 0.000000e+00 : f32
    %130 = vector.broadcast %cst_179 : f32 to vector<128x16xf32>
    %131 = arith.maximumf %129, %130 : vector<128x16xf32>
    %132 = vector.shape_cast %131 : vector<128x16xf32> to vector<8x16x16xf32>
    %c1_180 = arith.constant 1 : index
    %c1_181 = arith.constant 1 : index
    %c0_182 = arith.constant 0 : index
    %133 = vector.load %arg16[%c1_180, %c1_181, %c0_182] : memref<10x18x16xf32, #tpu.memory_space<vmem>>, vector<8x16x16xf32>
    tpu.vector_store %arg16[%c1_180, %c1_181, %c0_182], %132 {strides = array<i32>} : memref<10x18x16xf32, #tpu.memory_space<vmem>>, vector<8x16x16xf32>,
    %cst_183 = arith.constant 0.000000e+00 : f32
    %134 = vector.broadcast %cst_183 : f32 to vector<128x16xf32>
    %c0_184 = arith.constant 0 : index
    %c0_185 = arith.constant 0 : index
    %c0_186 = arith.constant 0 : index
    %135 = vector.load %arg16[%c0_184, %c0_185, %c0_186] : memref<10x18x16xf32, #tpu.memory_space<vmem>>, vector<8x16x16xf32>
    %136 = vector.shape_cast %135 : vector<8x16x16xf32> to vector<128x16xf32>
    %c0_187 = arith.constant 0 : index
    %c0_188 = arith.constant 0 : index
    %c0_189 = arith.constant 0 : index
    %c0_190 = arith.constant 0 : index
    %c0_191 = arith.constant 0 : index
    %137 = vector.load %arg6[%c0_187, %c0_188, %c0_189, %c0_190, %c0_191] : memref<2x3x3x16x16xf32, #tpu.memory_space<vmem>>, vector<1x1x1x16x16xf32>
    %138 = vector.shape_cast %137 : vector<1x1x1x16x16xf32> to vector<16x16xf32>
    %cst_192 = arith.constant dense<0.000000e+00> : vector<128x16xf32>
    %139 = tpu.matmul %136, %138, %cst_192 {dimension_numbers = #tpu.dot_dimension_numbers<[1], [0], [0], [1], [0, 0, 1, 1], [], []>} : vector<128x16xf32>, vector<16x16xf32>, vector<128x16xf32> -> vector<128x16xf32>
    %140 = arith.addf %134, %139 : vector<128x16xf32>
    %c0_193 = arith.constant 0 : index
    %c1_194 = arith.constant 1 : index
    %c0_195 = arith.constant 0 : index
    %141 = vector.load %arg16[%c0_193, %c1_194, %c0_195] : memref<10x18x16xf32, #tpu.memory_space<vmem>>, vector<8x16x16xf32>
    %142 = vector.shape_cast %141 : vector<8x16x16xf32> to vector<128x16xf32>
    %c0_196 = arith.constant 0 : index
    %c0_197 = arith.constant 0 : index
    %c1_198 = arith.constant 1 : index
    %c0_199 = arith.constant 0 : index
    %c0_200 = arith.constant 0 : index
    %143 = vector.load %arg6[%c0_196, %c0_197, %c1_198, %c0_199, %c0_200] : memref<2x3x3x16x16xf32, #tpu.memory_space<vmem>>, vector<1x1x1x16x16xf32>
    %144 = vector.shape_cast %143 : vector<1x1x1x16x16xf32> to vector<16x16xf32>
    %cst_201 = arith.constant dense<0.000000e+00> : vector<128x16xf32>
    %145 = tpu.matmul %142, %144, %cst_201 {dimension_numbers = #tpu.dot_dimension_numbers<[1], [0], [0], [1], [0, 0, 1, 1], [], []>} : vector<128x16xf32>, vector<16x16xf32>, vector<128x16xf32> -> vector<128x16xf32>
    %146 = arith.addf %140, %145 : vector<128x16xf32>
    %c0_202 = arith.constant 0 : index
    %c2_203 = arith.constant 2 : index
    %c0_204 = arith.constant 0 : index
    %147 = vector.load %arg16[%c0_202, %c2_203, %c0_204] : memref<10x18x16xf32, #tpu.memory_space<vmem>>, vector<8x16x16xf32>
    %148 = vector.shape_cast %147 : vector<8x16x16xf32> to vector<128x16xf32>
    %c0_205 = arith.constant 0 : index
    %c0_206 = arith.constant 0 : index
    %c2_207 = arith.constant 2 : index
    %c0_208 = arith.constant 0 : index
    %c0_209 = arith.constant 0 : index
    %149 = vector.load %arg6[%c0_205, %c0_206, %c2_207, %c0_208, %c0_209] : memref<2x3x3x16x16xf32, #tpu.memory_space<vmem>>, vector<1x1x1x16x16xf32>
    %150 = vector.shape_cast %149 : vector<1x1x1x16x16xf32> to vector<16x16xf32>
    %cst_210 = arith.constant dense<0.000000e+00> : vector<128x16xf32>
    %151 = tpu.matmul %148, %150, %cst_210 {dimension_numbers = #tpu.dot_dimension_numbers<[1], [0], [0], [1], [0, 0, 1, 1], [], []>} : vector<128x16xf32>, vector<16x16xf32>, vector<128x16xf32> -> vector<128x16xf32>
    %152 = arith.addf %146, %151 : vector<128x16xf32>
    %c1_211 = arith.constant 1 : index
    %c0_212 = arith.constant 0 : index
    %c0_213 = arith.constant 0 : index
    %153 = vector.load %arg16[%c1_211, %c0_212, %c0_213] : memref<10x18x16xf32, #tpu.memory_space<vmem>>, vector<8x16x16xf32>
    %154 = vector.shape_cast %153 : vector<8x16x16xf32> to vector<128x16xf32>
    %c0_214 = arith.constant 0 : index
    %c1_215 = arith.constant 1 : index
    %c0_216 = arith.constant 0 : index
    %c0_217 = arith.constant 0 : index
    %c0_218 = arith.constant 0 : index
    %155 = vector.load %arg6[%c0_214, %c1_215, %c0_216, %c0_217, %c0_218] : memref<2x3x3x16x16xf32, #tpu.memory_space<vmem>>, vector<1x1x1x16x16xf32>
    %156 = vector.shape_cast %155 : vector<1x1x1x16x16xf32> to vector<16x16xf32>
    %cst_219 = arith.constant dense<0.000000e+00> : vector<128x16xf32>
    %157 = tpu.matmul %154, %156, %cst_219 {dimension_numbers = #tpu.dot_dimension_numbers<[1], [0], [0], [1], [0, 0, 1, 1], [], []>} : vector<128x16xf32>, vector<16x16xf32>, vector<128x16xf32> -> vector<128x16xf32>
    %158 = arith.addf %152, %157 : vector<128x16xf32>
    %c1_220 = arith.constant 1 : index
    %c1_221 = arith.constant 1 : index
    %c0_222 = arith.constant 0 : index
    %159 = vector.load %arg16[%c1_220, %c1_221, %c0_222] : memref<10x18x16xf32, #tpu.memory_space<vmem>>, vector<8x16x16xf32>
    %160 = vector.shape_cast %159 : vector<8x16x16xf32> to vector<128x16xf32>
    %c0_223 = arith.constant 0 : index
    %c1_224 = arith.constant 1 : index
    %c1_225 = arith.constant 1 : index
    %c0_226 = arith.constant 0 : index
    %c0_227 = arith.constant 0 : index
    %161 = vector.load %arg6[%c0_223, %c1_224, %c1_225, %c0_226, %c0_227] : memref<2x3x3x16x16xf32, #tpu.memory_space<vmem>>, vector<1x1x1x16x16xf32>
    %162 = vector.shape_cast %161 : vector<1x1x1x16x16xf32> to vector<16x16xf32>
    %cst_228 = arith.constant dense<0.000000e+00> : vector<128x16xf32>
    %163 = tpu.matmul %160, %162, %cst_228 {dimension_numbers = #tpu.dot_dimension_numbers<[1], [0], [0], [1], [0, 0, 1, 1], [], []>} : vector<128x16xf32>, vector<16x16xf32>, vector<128x16xf32> -> vector<128x16xf32>
    %164 = arith.addf %158, %163 : vector<128x16xf32>
    %c1_229 = arith.constant 1 : index
    %c2_230 = arith.constant 2 : index
    %c0_231 = arith.constant 0 : index
    %165 = vector.load %arg16[%c1_229, %c2_230, %c0_231] : memref<10x18x16xf32, #tpu.memory_space<vmem>>, vector<8x16x16xf32>
    %166 = vector.shape_cast %165 : vector<8x16x16xf32> to vector<128x16xf32>
    %c0_232 = arith.constant 0 : index
    %c1_233 = arith.constant 1 : index
    %c2_234 = arith.constant 2 : index
    %c0_235 = arith.constant 0 : index
    %c0_236 = arith.constant 0 : index
    %167 = vector.load %arg6[%c0_232, %c1_233, %c2_234, %c0_235, %c0_236] : memref<2x3x3x16x16xf32, #tpu.memory_space<vmem>>, vector<1x1x1x16x16xf32>
    %168 = vector.shape_cast %167 : vector<1x1x1x16x16xf32> to vector<16x16xf32>
    %cst_237 = arith.constant dense<0.000000e+00> : vector<128x16xf32>
    %169 = tpu.matmul %166, %168, %cst_237 {dimension_numbers = #tpu.dot_dimension_numbers<[1], [0], [0], [1], [0, 0, 1, 1], [], []>} : vector<128x16xf32>, vector<16x16xf32>, vector<128x16xf32> -> vector<128x16xf32>
    %170 = arith.addf %164, %169 : vector<128x16xf32>
    %c2_238 = arith.constant 2 : index
    %c0_239 = arith.constant 0 : index
    %c0_240 = arith.constant 0 : index
    %171 = vector.load %arg16[%c2_238, %c0_239, %c0_240] : memref<10x18x16xf32, #tpu.memory_space<vmem>>, vector<8x16x16xf32>
    %172 = vector.shape_cast %171 : vector<8x16x16xf32> to vector<128x16xf32>
    %c0_241 = arith.constant 0 : index
    %c2_242 = arith.constant 2 : index
    %c0_243 = arith.constant 0 : index
    %c0_244 = arith.constant 0 : index
    %c0_245 = arith.constant 0 : index
    %173 = vector.load %arg6[%c0_241, %c2_242, %c0_243, %c0_244, %c0_245] : memref<2x3x3x16x16xf32, #tpu.memory_space<vmem>>, vector<1x1x1x16x16xf32>
    %174 = vector.shape_cast %173 : vector<1x1x1x16x16xf32> to vector<16x16xf32>
    %cst_246 = arith.constant dense<0.000000e+00> : vector<128x16xf32>
    %175 = tpu.matmul %172, %174, %cst_246 {dimension_numbers = #tpu.dot_dimension_numbers<[1], [0], [0], [1], [0, 0, 1, 1], [], []>} : vector<128x16xf32>, vector<16x16xf32>, vector<128x16xf32> -> vector<128x16xf32>
    %176 = arith.addf %170, %175 : vector<128x16xf32>
    %c2_247 = arith.constant 2 : index
    %c1_248 = arith.constant 1 : index
    %c0_249 = arith.constant 0 : index
    %177 = vector.load %arg16[%c2_247, %c1_248, %c0_249] : memref<10x18x16xf32, #tpu.memory_space<vmem>>, vector<8x16x16xf32>
    %178 = vector.shape_cast %177 : vector<8x16x16xf32> to vector<128x16xf32>
    %c0_250 = arith.constant 0 : index
    %c2_251 = arith.constant 2 : index
    %c1_252 = arith.constant 1 : index
    %c0_253 = arith.constant 0 : index
    %c0_254 = arith.constant 0 : index
    %179 = vector.load %arg6[%c0_250, %c2_251, %c1_252, %c0_253, %c0_254] : memref<2x3x3x16x16xf32, #tpu.memory_space<vmem>>, vector<1x1x1x16x16xf32>
    %180 = vector.shape_cast %179 : vector<1x1x1x16x16xf32> to vector<16x16xf32>
    %cst_255 = arith.constant dense<0.000000e+00> : vector<128x16xf32>
    %181 = tpu.matmul %178, %180, %cst_255 {dimension_numbers = #tpu.dot_dimension_numbers<[1], [0], [0], [1], [0, 0, 1, 1], [], []>} : vector<128x16xf32>, vector<16x16xf32>, vector<128x16xf32> -> vector<128x16xf32>
    %182 = arith.addf %176, %181 : vector<128x16xf32>
    %c2_256 = arith.constant 2 : index
    %c2_257 = arith.constant 2 : index
    %c0_258 = arith.constant 0 : index
    %183 = vector.load %arg16[%c2_256, %c2_257, %c0_258] : memref<10x18x16xf32, #tpu.memory_space<vmem>>, vector<8x16x16xf32>
    %184 = vector.shape_cast %183 : vector<8x16x16xf32> to vector<128x16xf32>
    %c0_259 = arith.constant 0 : index
    %c2_260 = arith.constant 2 : index
    %c2_261 = arith.constant 2 : index
    %c0_262 = arith.constant 0 : index
    %c0_263 = arith.constant 0 : index
    %185 = vector.load %arg6[%c0_259, %c2_260, %c2_261, %c0_262, %c0_263] : memref<2x3x3x16x16xf32, #tpu.memory_space<vmem>>, vector<1x1x1x16x16xf32>
    %186 = vector.shape_cast %185 : vector<1x1x1x16x16xf32> to vector<16x16xf32>
    %cst_264 = arith.constant dense<0.000000e+00> : vector<128x16xf32>
    %187 = tpu.matmul %184, %186, %cst_264 {dimension_numbers = #tpu.dot_dimension_numbers<[1], [0], [0], [1], [0, 0, 1, 1], [], []>} : vector<128x16xf32>, vector<16x16xf32>, vector<128x16xf32> -> vector<128x16xf32>
    %188 = arith.addf %182, %187 : vector<128x16xf32>
    %c0_265 = arith.constant 0 : index
    %c0_266 = arith.constant 0 : index
    %c0_267 = arith.constant 0 : index
    %189 = vector.load %arg7[%c0_265, %c0_266, %c0_267] : memref<2x1x16xf32, #tpu.memory_space<vmem>>, vector<1x1x16xf32>
    %190 = vector.shape_cast %189 : vector<1x1x16xf32> to vector<1x16xf32>
    %191 = vector.broadcast %190 : vector<1x16xf32> to vector<128x16xf32>
    %192 = arith.addf %188, %191 : vector<128x16xf32>
    %cst_268 = arith.constant dense<0.000000e+00> : vector<16xf32>
    %193 = vector.multi_reduction <add>, %192, %cst_268 [0] : vector<128x16xf32> to vector<16xf32>
    %194 = vector.shape_cast %193 : vector<16xf32> to vector<1x16xf32>
    %cst_269 = arith.constant 1.280000e+02 : f32
    %195 = vector.broadcast %cst_269 : f32 to vector<1x16xf32>
    %196 = arith.divf %194, %195 : vector<1x16xf32>
    %cst_270 = arith.constant dense<0xFF800000> : vector<16xf32>
    %197 = vector.multi_reduction <maximumf>, %192, %cst_270 [0] : vector<128x16xf32> to vector<16xf32>
    %198 = vector.shape_cast %197 : vector<16xf32> to vector<1x16xf32>
    %c0_271 = arith.constant 0 : index
    %c0_272 = arith.constant 0 : index
    %c0_273 = arith.constant 0 : index
    %199 = vector.load %arg8[%c0_271, %c0_272, %c0_273] : memref<2x16x4xf32, #tpu.memory_space<vmem>>, vector<1x16x4xf32>
    %200 = vector.shape_cast %199 : vector<1x16x4xf32> to vector<16x4xf32>
    %c0_274 = arith.constant 0 : index
    %c0_275 = arith.constant 0 : index
    %c0_276 = arith.constant 0 : index
    %201 = vector.load %arg9[%c0_274, %c0_275, %c0_276] : memref<2x4x16xf32, #tpu.memory_space<vmem>>, vector<1x4x16xf32>
    %202 = vector.shape_cast %201 : vector<1x4x16xf32> to vector<4x16xf32>
    %cst_277 = arith.constant dense<0.000000e+00> : vector<1x4xf32>
    %203 = tpu.matmul %196, %200, %cst_277 {dimension_numbers = #tpu.dot_dimension_numbers<[1], [0], [0], [1], [0, 0, 1, 1], [], []>} : vector<1x16xf32>, vector<16x4xf32>, vector<1x4xf32> -> vector<1x4xf32>
    %cst_278 = arith.constant 0.000000e+00 : f32
    %204 = vector.broadcast %cst_278 : f32 to vector<1x4xf32>
    %205 = arith.maximumf %203, %204 : vector<1x4xf32>
    %cst_279 = arith.constant dense<0.000000e+00> : vector<1x16xf32>
    %206 = tpu.matmul %205, %202, %cst_279 {dimension_numbers = #tpu.dot_dimension_numbers<[1], [0], [0], [1], [0, 0, 1, 1], [], []>} : vector<1x4xf32>, vector<4x16xf32>, vector<1x16xf32> -> vector<1x16xf32>
    %cst_280 = arith.constant dense<0.000000e+00> : vector<1x4xf32>
    %207 = tpu.matmul %198, %200, %cst_280 {dimension_numbers = #tpu.dot_dimension_numbers<[1], [0], [0], [1], [0, 0, 1, 1], [], []>} : vector<1x16xf32>, vector<16x4xf32>, vector<1x4xf32> -> vector<1x4xf32>
    %cst_281 = arith.constant 0.000000e+00 : f32
    %208 = vector.broadcast %cst_281 : f32 to vector<1x4xf32>
    %209 = arith.maximumf %207, %208 : vector<1x4xf32>
    %cst_282 = arith.constant dense<0.000000e+00> : vector<1x16xf32>
    %210 = tpu.matmul %209, %202, %cst_282 {dimension_numbers = #tpu.dot_dimension_numbers<[1], [0], [0], [1], [0, 0, 1, 1], [], []>} : vector<1x4xf32>, vector<4x16xf32>, vector<1x16xf32> -> vector<1x16xf32>
    %211 = arith.addf %206, %210 : vector<1x16xf32>
    %212 = arith.negf %211 : vector<1x16xf32>
    %213 = math.exp %212 : vector<1x16xf32>
    %cst_283 = arith.constant 1.000000e+00 : f32
    %214 = vector.broadcast %cst_283 : f32 to vector<1x16xf32>
    %215 = arith.addf %214, %213 : vector<1x16xf32>
    %216 = arith.divf %214, %215 : vector<1x16xf32>
    %217 = vector.broadcast %216 : vector<1x16xf32> to vector<128x16xf32>
    %218 = arith.mulf %192, %217 : vector<128x16xf32>
    %219 = arith.addf %218, %68 : vector<128x16xf32>
    %cst_284 = arith.constant 0.000000e+00 : f32
    %220 = vector.broadcast %cst_284 : f32 to vector<128x16xf32>
    %221 = arith.maximumf %219, %220 : vector<128x16xf32>
    %222 = vector.shape_cast %221 : vector<128x16xf32> to vector<8x16x16xf32>
    %c1_285 = arith.constant 1 : index
    %c1_286 = arith.constant 1 : index
    %c0_287 = arith.constant 0 : index
    %223 = vector.load %arg16[%c1_285, %c1_286, %c0_287] : memref<10x18x16xf32, #tpu.memory_space<vmem>>, vector<8x16x16xf32>
    tpu.vector_store %arg16[%c1_285, %c1_286, %c0_287], %222 {strides = array<i32>} : memref<10x18x16xf32, #tpu.memory_space<vmem>>, vector<8x16x16xf32>,
    %cst_288 = arith.constant 0.000000e+00 : f32
    %224 = vector.broadcast %cst_288 : f32 to vector<128x16xf32>
    %c0_289 = arith.constant 0 : index
    %c0_290 = arith.constant 0 : index
    %c0_291 = arith.constant 0 : index
    %225 = vector.load %arg16[%c0_289, %c0_290, %c0_291] : memref<10x18x16xf32, #tpu.memory_space<vmem>>, vector<8x16x16xf32>
    %226 = vector.shape_cast %225 : vector<8x16x16xf32> to vector<128x16xf32>
    %c1_292 = arith.constant 1 : index
    %c0_293 = arith.constant 0 : index
    %c0_294 = arith.constant 0 : index
    %c0_295 = arith.constant 0 : index
    %c0_296 = arith.constant 0 : index
    %227 = vector.load %arg4[%c1_292, %c0_293, %c0_294, %c0_295, %c0_296] : memref<2x3x3x16x16xf32, #tpu.memory_space<vmem>>, vector<1x1x1x16x16xf32>
    %228 = vector.shape_cast %227 : vector<1x1x1x16x16xf32> to vector<16x16xf32>
    %cst_297 = arith.constant dense<0.000000e+00> : vector<128x16xf32>
    %229 = tpu.matmul %226, %228, %cst_297 {dimension_numbers = #tpu.dot_dimension_numbers<[1], [0], [0], [1], [0, 0, 1, 1], [], []>} : vector<128x16xf32>, vector<16x16xf32>, vector<128x16xf32> -> vector<128x16xf32>
    %230 = arith.addf %224, %229 : vector<128x16xf32>
    %c0_298 = arith.constant 0 : index
    %c1_299 = arith.constant 1 : index
    %c0_300 = arith.constant 0 : index
    %231 = vector.load %arg16[%c0_298, %c1_299, %c0_300] : memref<10x18x16xf32, #tpu.memory_space<vmem>>, vector<8x16x16xf32>
    %232 = vector.shape_cast %231 : vector<8x16x16xf32> to vector<128x16xf32>
    %c1_301 = arith.constant 1 : index
    %c0_302 = arith.constant 0 : index
    %c1_303 = arith.constant 1 : index
    %c0_304 = arith.constant 0 : index
    %c0_305 = arith.constant 0 : index
    %233 = vector.load %arg4[%c1_301, %c0_302, %c1_303, %c0_304, %c0_305] : memref<2x3x3x16x16xf32, #tpu.memory_space<vmem>>, vector<1x1x1x16x16xf32>
    %234 = vector.shape_cast %233 : vector<1x1x1x16x16xf32> to vector<16x16xf32>
    %cst_306 = arith.constant dense<0.000000e+00> : vector<128x16xf32>
    %235 = tpu.matmul %232, %234, %cst_306 {dimension_numbers = #tpu.dot_dimension_numbers<[1], [0], [0], [1], [0, 0, 1, 1], [], []>} : vector<128x16xf32>, vector<16x16xf32>, vector<128x16xf32> -> vector<128x16xf32>
    %236 = arith.addf %230, %235 : vector<128x16xf32>
    %c0_307 = arith.constant 0 : index
    %c2_308 = arith.constant 2 : index
    %c0_309 = arith.constant 0 : index
    %237 = vector.load %arg16[%c0_307, %c2_308, %c0_309] : memref<10x18x16xf32, #tpu.memory_space<vmem>>, vector<8x16x16xf32>
    %238 = vector.shape_cast %237 : vector<8x16x16xf32> to vector<128x16xf32>
    %c1_310 = arith.constant 1 : index
    %c0_311 = arith.constant 0 : index
    %c2_312 = arith.constant 2 : index
    %c0_313 = arith.constant 0 : index
    %c0_314 = arith.constant 0 : index
    %239 = vector.load %arg4[%c1_310, %c0_311, %c2_312, %c0_313, %c0_314] : memref<2x3x3x16x16xf32, #tpu.memory_space<vmem>>, vector<1x1x1x16x16xf32>
    %240 = vector.shape_cast %239 : vector<1x1x1x16x16xf32> to vector<16x16xf32>
    %cst_315 = arith.constant dense<0.000000e+00> : vector<128x16xf32>
    %241 = tpu.matmul %238, %240, %cst_315 {dimension_numbers = #tpu.dot_dimension_numbers<[1], [0], [0], [1], [0, 0, 1, 1], [], []>} : vector<128x16xf32>, vector<16x16xf32>, vector<128x16xf32> -> vector<128x16xf32>
    %242 = arith.addf %236, %241 : vector<128x16xf32>
    %c1_316 = arith.constant 1 : index
    %c0_317 = arith.constant 0 : index
    %c0_318 = arith.constant 0 : index
    %243 = vector.load %arg16[%c1_316, %c0_317, %c0_318] : memref<10x18x16xf32, #tpu.memory_space<vmem>>, vector<8x16x16xf32>
    %244 = vector.shape_cast %243 : vector<8x16x16xf32> to vector<128x16xf32>
    %c1_319 = arith.constant 1 : index
    %c1_320 = arith.constant 1 : index
    %c0_321 = arith.constant 0 : index
    %c0_322 = arith.constant 0 : index
    %c0_323 = arith.constant 0 : index
    %245 = vector.load %arg4[%c1_319, %c1_320, %c0_321, %c0_322, %c0_323] : memref<2x3x3x16x16xf32, #tpu.memory_space<vmem>>, vector<1x1x1x16x16xf32>
    %246 = vector.shape_cast %245 : vector<1x1x1x16x16xf32> to vector<16x16xf32>
    %cst_324 = arith.constant dense<0.000000e+00> : vector<128x16xf32>
    %247 = tpu.matmul %244, %246, %cst_324 {dimension_numbers = #tpu.dot_dimension_numbers<[1], [0], [0], [1], [0, 0, 1, 1], [], []>} : vector<128x16xf32>, vector<16x16xf32>, vector<128x16xf32> -> vector<128x16xf32>
    %248 = arith.addf %242, %247 : vector<128x16xf32>
    %c1_325 = arith.constant 1 : index
    %c1_326 = arith.constant 1 : index
    %c0_327 = arith.constant 0 : index
    %249 = vector.load %arg16[%c1_325, %c1_326, %c0_327] : memref<10x18x16xf32, #tpu.memory_space<vmem>>, vector<8x16x16xf32>
    %250 = vector.shape_cast %249 : vector<8x16x16xf32> to vector<128x16xf32>
    %c1_328 = arith.constant 1 : index
    %c1_329 = arith.constant 1 : index
    %c1_330 = arith.constant 1 : index
    %c0_331 = arith.constant 0 : index
    %c0_332 = arith.constant 0 : index
    %251 = vector.load %arg4[%c1_328, %c1_329, %c1_330, %c0_331, %c0_332] : memref<2x3x3x16x16xf32, #tpu.memory_space<vmem>>, vector<1x1x1x16x16xf32>
    %252 = vector.shape_cast %251 : vector<1x1x1x16x16xf32> to vector<16x16xf32>
    %cst_333 = arith.constant dense<0.000000e+00> : vector<128x16xf32>
    %253 = tpu.matmul %250, %252, %cst_333 {dimension_numbers = #tpu.dot_dimension_numbers<[1], [0], [0], [1], [0, 0, 1, 1], [], []>} : vector<128x16xf32>, vector<16x16xf32>, vector<128x16xf32> -> vector<128x16xf32>
    %254 = arith.addf %248, %253 : vector<128x16xf32>
    %c1_334 = arith.constant 1 : index
    %c2_335 = arith.constant 2 : index
    %c0_336 = arith.constant 0 : index
    %255 = vector.load %arg16[%c1_334, %c2_335, %c0_336] : memref<10x18x16xf32, #tpu.memory_space<vmem>>, vector<8x16x16xf32>
    %256 = vector.shape_cast %255 : vector<8x16x16xf32> to vector<128x16xf32>
    %c1_337 = arith.constant 1 : index
    %c1_338 = arith.constant 1 : index
    %c2_339 = arith.constant 2 : index
    %c0_340 = arith.constant 0 : index
    %c0_341 = arith.constant 0 : index
    %257 = vector.load %arg4[%c1_337, %c1_338, %c2_339, %c0_340, %c0_341] : memref<2x3x3x16x16xf32, #tpu.memory_space<vmem>>, vector<1x1x1x16x16xf32>
    %258 = vector.shape_cast %257 : vector<1x1x1x16x16xf32> to vector<16x16xf32>
    %cst_342 = arith.constant dense<0.000000e+00> : vector<128x16xf32>
    %259 = tpu.matmul %256, %258, %cst_342 {dimension_numbers = #tpu.dot_dimension_numbers<[1], [0], [0], [1], [0, 0, 1, 1], [], []>} : vector<128x16xf32>, vector<16x16xf32>, vector<128x16xf32> -> vector<128x16xf32>
    %260 = arith.addf %254, %259 : vector<128x16xf32>
    %c2_343 = arith.constant 2 : index
    %c0_344 = arith.constant 0 : index
    %c0_345 = arith.constant 0 : index
    %261 = vector.load %arg16[%c2_343, %c0_344, %c0_345] : memref<10x18x16xf32, #tpu.memory_space<vmem>>, vector<8x16x16xf32>
    %262 = vector.shape_cast %261 : vector<8x16x16xf32> to vector<128x16xf32>
    %c1_346 = arith.constant 1 : index
    %c2_347 = arith.constant 2 : index
    %c0_348 = arith.constant 0 : index
    %c0_349 = arith.constant 0 : index
    %c0_350 = arith.constant 0 : index
    %263 = vector.load %arg4[%c1_346, %c2_347, %c0_348, %c0_349, %c0_350] : memref<2x3x3x16x16xf32, #tpu.memory_space<vmem>>, vector<1x1x1x16x16xf32>
    %264 = vector.shape_cast %263 : vector<1x1x1x16x16xf32> to vector<16x16xf32>
    %cst_351 = arith.constant dense<0.000000e+00> : vector<128x16xf32>
    %265 = tpu.matmul %262, %264, %cst_351 {dimension_numbers = #tpu.dot_dimension_numbers<[1], [0], [0], [1], [0, 0, 1, 1], [], []>} : vector<128x16xf32>, vector<16x16xf32>, vector<128x16xf32> -> vector<128x16xf32>
    %266 = arith.addf %260, %265 : vector<128x16xf32>
    %c2_352 = arith.constant 2 : index
    %c1_353 = arith.constant 1 : index
    %c0_354 = arith.constant 0 : index
    %267 = vector.load %arg16[%c2_352, %c1_353, %c0_354] : memref<10x18x16xf32, #tpu.memory_space<vmem>>, vector<8x16x16xf32>
    %268 = vector.shape_cast %267 : vector<8x16x16xf32> to vector<128x16xf32>
    %c1_355 = arith.constant 1 : index
    %c2_356 = arith.constant 2 : index
    %c1_357 = arith.constant 1 : index
    %c0_358 = arith.constant 0 : index
    %c0_359 = arith.constant 0 : index
    %269 = vector.load %arg4[%c1_355, %c2_356, %c1_357, %c0_358, %c0_359] : memref<2x3x3x16x16xf32, #tpu.memory_space<vmem>>, vector<1x1x1x16x16xf32>
    %270 = vector.shape_cast %269 : vector<1x1x1x16x16xf32> to vector<16x16xf32>
    %cst_360 = arith.constant dense<0.000000e+00> : vector<128x16xf32>
    %271 = tpu.matmul %268, %270, %cst_360 {dimension_numbers = #tpu.dot_dimension_numbers<[1], [0], [0], [1], [0, 0, 1, 1], [], []>} : vector<128x16xf32>, vector<16x16xf32>, vector<128x16xf32> -> vector<128x16xf32>
    %272 = arith.addf %266, %271 : vector<128x16xf32>
    %c2_361 = arith.constant 2 : index
    %c2_362 = arith.constant 2 : index
    %c0_363 = arith.constant 0 : index
    %273 = vector.load %arg16[%c2_361, %c2_362, %c0_363] : memref<10x18x16xf32, #tpu.memory_space<vmem>>, vector<8x16x16xf32>
    %274 = vector.shape_cast %273 : vector<8x16x16xf32> to vector<128x16xf32>
    %c1_364 = arith.constant 1 : index
    %c2_365 = arith.constant 2 : index
    %c2_366 = arith.constant 2 : index
    %c0_367 = arith.constant 0 : index
    %c0_368 = arith.constant 0 : index
    %275 = vector.load %arg4[%c1_364, %c2_365, %c2_366, %c0_367, %c0_368] : memref<2x3x3x16x16xf32, #tpu.memory_space<vmem>>, vector<1x1x1x16x16xf32>
    %276 = vector.shape_cast %275 : vector<1x1x1x16x16xf32> to vector<16x16xf32>
    %cst_369 = arith.constant dense<0.000000e+00> : vector<128x16xf32>
    %277 = tpu.matmul %274, %276, %cst_369 {dimension_numbers = #tpu.dot_dimension_numbers<[1], [0], [0], [1], [0, 0, 1, 1], [], []>} : vector<128x16xf32>, vector<16x16xf32>, vector<128x16xf32> -> vector<128x16xf32>
    %278 = arith.addf %272, %277 : vector<128x16xf32>
    %c1_370 = arith.constant 1 : index
    %c0_371 = arith.constant 0 : index
    %c0_372 = arith.constant 0 : index
    %279 = vector.load %arg5[%c1_370, %c0_371, %c0_372] : memref<2x1x16xf32, #tpu.memory_space<vmem>>, vector<1x1x16xf32>
    %280 = vector.shape_cast %279 : vector<1x1x16xf32> to vector<1x16xf32>
    %281 = vector.broadcast %280 : vector<1x16xf32> to vector<128x16xf32>
    %282 = arith.addf %278, %281 : vector<128x16xf32>
    %cst_373 = arith.constant 0.000000e+00 : f32
    %283 = vector.broadcast %cst_373 : f32 to vector<128x16xf32>
    %284 = arith.maximumf %282, %283 : vector<128x16xf32>
    %285 = vector.shape_cast %284 : vector<128x16xf32> to vector<8x16x16xf32>
    %c1_374 = arith.constant 1 : index
    %c1_375 = arith.constant 1 : index
    %c0_376 = arith.constant 0 : index
    %286 = vector.load %arg16[%c1_374, %c1_375, %c0_376] : memref<10x18x16xf32, #tpu.memory_space<vmem>>, vector<8x16x16xf32>
    tpu.vector_store %arg16[%c1_374, %c1_375, %c0_376], %285 {strides = array<i32>} : memref<10x18x16xf32, #tpu.memory_space<vmem>>, vector<8x16x16xf32>,
    %cst_377 = arith.constant 0.000000e+00 : f32
    %287 = vector.broadcast %cst_377 : f32 to vector<128x16xf32>
    %c0_378 = arith.constant 0 : index
    %c0_379 = arith.constant 0 : index
    %c0_380 = arith.constant 0 : index
    %288 = vector.load %arg16[%c0_378, %c0_379, %c0_380] : memref<10x18x16xf32, #tpu.memory_space<vmem>>, vector<8x16x16xf32>
    %289 = vector.shape_cast %288 : vector<8x16x16xf32> to vector<128x16xf32>
    %c1_381 = arith.constant 1 : index
    %c0_382 = arith.constant 0 : index
    %c0_383 = arith.constant 0 : index
    %c0_384 = arith.constant 0 : index
    %c0_385 = arith.constant 0 : index
    %290 = vector.load %arg6[%c1_381, %c0_382, %c0_383, %c0_384, %c0_385] : memref<2x3x3x16x16xf32, #tpu.memory_space<vmem>>, vector<1x1x1x16x16xf32>
    %291 = vector.shape_cast %290 : vector<1x1x1x16x16xf32> to vector<16x16xf32>
    %cst_386 = arith.constant dense<0.000000e+00> : vector<128x16xf32>
    %292 = tpu.matmul %289, %291, %cst_386 {dimension_numbers = #tpu.dot_dimension_numbers<[1], [0], [0], [1], [0, 0, 1, 1], [], []>} : vector<128x16xf32>, vector<16x16xf32>, vector<128x16xf32> -> vector<128x16xf32>
    %293 = arith.addf %287, %292 : vector<128x16xf32>
    %c0_387 = arith.constant 0 : index
    %c1_388 = arith.constant 1 : index
    %c0_389 = arith.constant 0 : index
    %294 = vector.load %arg16[%c0_387, %c1_388, %c0_389] : memref<10x18x16xf32, #tpu.memory_space<vmem>>, vector<8x16x16xf32>
    %295 = vector.shape_cast %294 : vector<8x16x16xf32> to vector<128x16xf32>
    %c1_390 = arith.constant 1 : index
    %c0_391 = arith.constant 0 : index
    %c1_392 = arith.constant 1 : index
    %c0_393 = arith.constant 0 : index
    %c0_394 = arith.constant 0 : index
    %296 = vector.load %arg6[%c1_390, %c0_391, %c1_392, %c0_393, %c0_394] : memref<2x3x3x16x16xf32, #tpu.memory_space<vmem>>, vector<1x1x1x16x16xf32>
    %297 = vector.shape_cast %296 : vector<1x1x1x16x16xf32> to vector<16x16xf32>
    %cst_395 = arith.constant dense<0.000000e+00> : vector<128x16xf32>
    %298 = tpu.matmul %295, %297, %cst_395 {dimension_numbers = #tpu.dot_dimension_numbers<[1], [0], [0], [1], [0, 0, 1, 1], [], []>} : vector<128x16xf32>, vector<16x16xf32>, vector<128x16xf32> -> vector<128x16xf32>
    %299 = arith.addf %293, %298 : vector<128x16xf32>
    %c0_396 = arith.constant 0 : index
    %c2_397 = arith.constant 2 : index
    %c0_398 = arith.constant 0 : index
    %300 = vector.load %arg16[%c0_396, %c2_397, %c0_398] : memref<10x18x16xf32, #tpu.memory_space<vmem>>, vector<8x16x16xf32>
    %301 = vector.shape_cast %300 : vector<8x16x16xf32> to vector<128x16xf32>
    %c1_399 = arith.constant 1 : index
    %c0_400 = arith.constant 0 : index
    %c2_401 = arith.constant 2 : index
    %c0_402 = arith.constant 0 : index
    %c0_403 = arith.constant 0 : index
    %302 = vector.load %arg6[%c1_399, %c0_400, %c2_401, %c0_402, %c0_403] : memref<2x3x3x16x16xf32, #tpu.memory_space<vmem>>, vector<1x1x1x16x16xf32>
    %303 = vector.shape_cast %302 : vector<1x1x1x16x16xf32> to vector<16x16xf32>
    %cst_404 = arith.constant dense<0.000000e+00> : vector<128x16xf32>
    %304 = tpu.matmul %301, %303, %cst_404 {dimension_numbers = #tpu.dot_dimension_numbers<[1], [0], [0], [1], [0, 0, 1, 1], [], []>} : vector<128x16xf32>, vector<16x16xf32>, vector<128x16xf32> -> vector<128x16xf32>
    %305 = arith.addf %299, %304 : vector<128x16xf32>
    %c1_405 = arith.constant 1 : index
    %c0_406 = arith.constant 0 : index
    %c0_407 = arith.constant 0 : index
    %306 = vector.load %arg16[%c1_405, %c0_406, %c0_407] : memref<10x18x16xf32, #tpu.memory_space<vmem>>, vector<8x16x16xf32>
    %307 = vector.shape_cast %306 : vector<8x16x16xf32> to vector<128x16xf32>
    %c1_408 = arith.constant 1 : index
    %c1_409 = arith.constant 1 : index
    %c0_410 = arith.constant 0 : index
    %c0_411 = arith.constant 0 : index
    %c0_412 = arith.constant 0 : index
    %308 = vector.load %arg6[%c1_408, %c1_409, %c0_410, %c0_411, %c0_412] : memref<2x3x3x16x16xf32, #tpu.memory_space<vmem>>, vector<1x1x1x16x16xf32>
    %309 = vector.shape_cast %308 : vector<1x1x1x16x16xf32> to vector<16x16xf32>
    %cst_413 = arith.constant dense<0.000000e+00> : vector<128x16xf32>
    %310 = tpu.matmul %307, %309, %cst_413 {dimension_numbers = #tpu.dot_dimension_numbers<[1], [0], [0], [1], [0, 0, 1, 1], [], []>} : vector<128x16xf32>, vector<16x16xf32>, vector<128x16xf32> -> vector<128x16xf32>
    %311 = arith.addf %305, %310 : vector<128x16xf32>
    %c1_414 = arith.constant 1 : index
    %c1_415 = arith.constant 1 : index
    %c0_416 = arith.constant 0 : index
    %312 = vector.load %arg16[%c1_414, %c1_415, %c0_416] : memref<10x18x16xf32, #tpu.memory_space<vmem>>, vector<8x16x16xf32>
    %313 = vector.shape_cast %312 : vector<8x16x16xf32> to vector<128x16xf32>
    %c1_417 = arith.constant 1 : index
    %c1_418 = arith.constant 1 : index
    %c1_419 = arith.constant 1 : index
    %c0_420 = arith.constant 0 : index
    %c0_421 = arith.constant 0 : index
    %314 = vector.load %arg6[%c1_417, %c1_418, %c1_419, %c0_420, %c0_421] : memref<2x3x3x16x16xf32, #tpu.memory_space<vmem>>, vector<1x1x1x16x16xf32>
    %315 = vector.shape_cast %314 : vector<1x1x1x16x16xf32> to vector<16x16xf32>
    %cst_422 = arith.constant dense<0.000000e+00> : vector<128x16xf32>
    %316 = tpu.matmul %313, %315, %cst_422 {dimension_numbers = #tpu.dot_dimension_numbers<[1], [0], [0], [1], [0, 0, 1, 1], [], []>} : vector<128x16xf32>, vector<16x16xf32>, vector<128x16xf32> -> vector<128x16xf32>
    %317 = arith.addf %311, %316 : vector<128x16xf32>
    %c1_423 = arith.constant 1 : index
    %c2_424 = arith.constant 2 : index
    %c0_425 = arith.constant 0 : index
    %318 = vector.load %arg16[%c1_423, %c2_424, %c0_425] : memref<10x18x16xf32, #tpu.memory_space<vmem>>, vector<8x16x16xf32>
    %319 = vector.shape_cast %318 : vector<8x16x16xf32> to vector<128x16xf32>
    %c1_426 = arith.constant 1 : index
    %c1_427 = arith.constant 1 : index
    %c2_428 = arith.constant 2 : index
    %c0_429 = arith.constant 0 : index
    %c0_430 = arith.constant 0 : index
    %320 = vector.load %arg6[%c1_426, %c1_427, %c2_428, %c0_429, %c0_430] : memref<2x3x3x16x16xf32, #tpu.memory_space<vmem>>, vector<1x1x1x16x16xf32>
    %321 = vector.shape_cast %320 : vector<1x1x1x16x16xf32> to vector<16x16xf32>
    %cst_431 = arith.constant dense<0.000000e+00> : vector<128x16xf32>
    %322 = tpu.matmul %319, %321, %cst_431 {dimension_numbers = #tpu.dot_dimension_numbers<[1], [0], [0], [1], [0, 0, 1, 1], [], []>} : vector<128x16xf32>, vector<16x16xf32>, vector<128x16xf32> -> vector<128x16xf32>
    %323 = arith.addf %317, %322 : vector<128x16xf32>
    %c2_432 = arith.constant 2 : index
    %c0_433 = arith.constant 0 : index
    %c0_434 = arith.constant 0 : index
    %324 = vector.load %arg16[%c2_432, %c0_433, %c0_434] : memref<10x18x16xf32, #tpu.memory_space<vmem>>, vector<8x16x16xf32>
    %325 = vector.shape_cast %324 : vector<8x16x16xf32> to vector<128x16xf32>
    %c1_435 = arith.constant 1 : index
    %c2_436 = arith.constant 2 : index
    %c0_437 = arith.constant 0 : index
    %c0_438 = arith.constant 0 : index
    %c0_439 = arith.constant 0 : index
    %326 = vector.load %arg6[%c1_435, %c2_436, %c0_437, %c0_438, %c0_439] : memref<2x3x3x16x16xf32, #tpu.memory_space<vmem>>, vector<1x1x1x16x16xf32>
    %327 = vector.shape_cast %326 : vector<1x1x1x16x16xf32> to vector<16x16xf32>
    %cst_440 = arith.constant dense<0.000000e+00> : vector<128x16xf32>
    %328 = tpu.matmul %325, %327, %cst_440 {dimension_numbers = #tpu.dot_dimension_numbers<[1], [0], [0], [1], [0, 0, 1, 1], [], []>} : vector<128x16xf32>, vector<16x16xf32>, vector<128x16xf32> -> vector<128x16xf32>
    %329 = arith.addf %323, %328 : vector<128x16xf32>
    %c2_441 = arith.constant 2 : index
    %c1_442 = arith.constant 1 : index
    %c0_443 = arith.constant 0 : index
    %330 = vector.load %arg16[%c2_441, %c1_442, %c0_443] : memref<10x18x16xf32, #tpu.memory_space<vmem>>, vector<8x16x16xf32>
    %331 = vector.shape_cast %330 : vector<8x16x16xf32> to vector<128x16xf32>
    %c1_444 = arith.constant 1 : index
    %c2_445 = arith.constant 2 : index
    %c1_446 = arith.constant 1 : index
    %c0_447 = arith.constant 0 : index
    %c0_448 = arith.constant 0 : index
    %332 = vector.load %arg6[%c1_444, %c2_445, %c1_446, %c0_447, %c0_448] : memref<2x3x3x16x16xf32, #tpu.memory_space<vmem>>, vector<1x1x1x16x16xf32>
    %333 = vector.shape_cast %332 : vector<1x1x1x16x16xf32> to vector<16x16xf32>
    %cst_449 = arith.constant dense<0.000000e+00> : vector<128x16xf32>
    %334 = tpu.matmul %331, %333, %cst_449 {dimension_numbers = #tpu.dot_dimension_numbers<[1], [0], [0], [1], [0, 0, 1, 1], [], []>} : vector<128x16xf32>, vector<16x16xf32>, vector<128x16xf32> -> vector<128x16xf32>
    %335 = arith.addf %329, %334 : vector<128x16xf32>
    %c2_450 = arith.constant 2 : index
    %c2_451 = arith.constant 2 : index
    %c0_452 = arith.constant 0 : index
    %336 = vector.load %arg16[%c2_450, %c2_451, %c0_452] : memref<10x18x16xf32, #tpu.memory_space<vmem>>, vector<8x16x16xf32>
    %337 = vector.shape_cast %336 : vector<8x16x16xf32> to vector<128x16xf32>
    %c1_453 = arith.constant 1 : index
    %c2_454 = arith.constant 2 : index
    %c2_455 = arith.constant 2 : index
    %c0_456 = arith.constant 0 : index
    %c0_457 = arith.constant 0 : index
    %338 = vector.load %arg6[%c1_453, %c2_454, %c2_455, %c0_456, %c0_457] : memref<2x3x3x16x16xf32, #tpu.memory_space<vmem>>, vector<1x1x1x16x16xf32>
    %339 = vector.shape_cast %338 : vector<1x1x1x16x16xf32> to vector<16x16xf32>
    %cst_458 = arith.constant dense<0.000000e+00> : vector<128x16xf32>
    %340 = tpu.matmul %337, %339, %cst_458 {dimension_numbers = #tpu.dot_dimension_numbers<[1], [0], [0], [1], [0, 0, 1, 1], [], []>} : vector<128x16xf32>, vector<16x16xf32>, vector<128x16xf32> -> vector<128x16xf32>
    %341 = arith.addf %335, %340 : vector<128x16xf32>
    %c1_459 = arith.constant 1 : index
    %c0_460 = arith.constant 0 : index
    %c0_461 = arith.constant 0 : index
    %342 = vector.load %arg7[%c1_459, %c0_460, %c0_461] : memref<2x1x16xf32, #tpu.memory_space<vmem>>, vector<1x1x16xf32>
    %343 = vector.shape_cast %342 : vector<1x1x16xf32> to vector<1x16xf32>
    %344 = vector.broadcast %343 : vector<1x16xf32> to vector<128x16xf32>
    %345 = arith.addf %341, %344 : vector<128x16xf32>
    %cst_462 = arith.constant dense<0.000000e+00> : vector<16xf32>
    %346 = vector.multi_reduction <add>, %345, %cst_462 [0] : vector<128x16xf32> to vector<16xf32>
    %347 = vector.shape_cast %346 : vector<16xf32> to vector<1x16xf32>
    %cst_463 = arith.constant 1.280000e+02 : f32
    %348 = vector.broadcast %cst_463 : f32 to vector<1x16xf32>
    %349 = arith.divf %347, %348 : vector<1x16xf32>
    %cst_464 = arith.constant dense<0xFF800000> : vector<16xf32>
    %350 = vector.multi_reduction <maximumf>, %345, %cst_464 [0] : vector<128x16xf32> to vector<16xf32>
    %351 = vector.shape_cast %350 : vector<16xf32> to vector<1x16xf32>
    %c1_465 = arith.constant 1 : index
    %c0_466 = arith.constant 0 : index
    %c0_467 = arith.constant 0 : index
    %352 = vector.load %arg8[%c1_465, %c0_466, %c0_467] : memref<2x16x4xf32, #tpu.memory_space<vmem>>, vector<1x16x4xf32>
    %353 = vector.shape_cast %352 : vector<1x16x4xf32> to vector<16x4xf32>
    %c1_468 = arith.constant 1 : index
    %c0_469 = arith.constant 0 : index
    %c0_470 = arith.constant 0 : index
    %354 = vector.load %arg9[%c1_468, %c0_469, %c0_470] : memref<2x4x16xf32, #tpu.memory_space<vmem>>, vector<1x4x16xf32>
    %355 = vector.shape_cast %354 : vector<1x4x16xf32> to vector<4x16xf32>
    %cst_471 = arith.constant dense<0.000000e+00> : vector<1x4xf32>
    %356 = tpu.matmul %349, %353, %cst_471 {dimension_numbers = #tpu.dot_dimension_numbers<[1], [0], [0], [1], [0, 0, 1, 1], [], []>} : vector<1x16xf32>, vector<16x4xf32>, vector<1x4xf32> -> vector<1x4xf32>
    %cst_472 = arith.constant 0.000000e+00 : f32
    %357 = vector.broadcast %cst_472 : f32 to vector<1x4xf32>
    %358 = arith.maximumf %356, %357 : vector<1x4xf32>
    %cst_473 = arith.constant dense<0.000000e+00> : vector<1x16xf32>
    %359 = tpu.matmul %358, %355, %cst_473 {dimension_numbers = #tpu.dot_dimension_numbers<[1], [0], [0], [1], [0, 0, 1, 1], [], []>} : vector<1x4xf32>, vector<4x16xf32>, vector<1x16xf32> -> vector<1x16xf32>
    %cst_474 = arith.constant dense<0.000000e+00> : vector<1x4xf32>
    %360 = tpu.matmul %351, %353, %cst_474 {dimension_numbers = #tpu.dot_dimension_numbers<[1], [0], [0], [1], [0, 0, 1, 1], [], []>} : vector<1x16xf32>, vector<16x4xf32>, vector<1x4xf32> -> vector<1x4xf32>
    %cst_475 = arith.constant 0.000000e+00 : f32
    %361 = vector.broadcast %cst_475 : f32 to vector<1x4xf32>
    %362 = arith.maximumf %360, %361 : vector<1x4xf32>
    %cst_476 = arith.constant dense<0.000000e+00> : vector<1x16xf32>
    %363 = tpu.matmul %362, %355, %cst_476 {dimension_numbers = #tpu.dot_dimension_numbers<[1], [0], [0], [1], [0, 0, 1, 1], [], []>} : vector<1x4xf32>, vector<4x16xf32>, vector<1x16xf32> -> vector<1x16xf32>
    %364 = arith.addf %359, %363 : vector<1x16xf32>
    %365 = arith.negf %364 : vector<1x16xf32>
    %366 = math.exp %365 : vector<1x16xf32>
    %cst_477 = arith.constant 1.000000e+00 : f32
    %367 = vector.broadcast %cst_477 : f32 to vector<1x16xf32>
    %368 = arith.addf %367, %366 : vector<1x16xf32>
    %369 = arith.divf %367, %368 : vector<1x16xf32>
    %370 = vector.broadcast %369 : vector<1x16xf32> to vector<128x16xf32>
    %371 = arith.mulf %345, %370 : vector<128x16xf32>
    %372 = arith.addf %371, %221 : vector<128x16xf32>
    %cst_478 = arith.constant 0.000000e+00 : f32
    %373 = vector.broadcast %cst_478 : f32 to vector<128x16xf32>
    %374 = arith.maximumf %372, %373 : vector<128x16xf32>
    %375 = vector.shape_cast %374 : vector<128x16xf32> to vector<8x16x16xf32>
    %c0_479 = arith.constant 0 : index
    %c0_480 = arith.constant 0 : index
    %c0_481 = arith.constant 0 : index
    %376 = vector.load %arg17[%c0_479, %c0_480, %c0_481] : memref<8x20x16xf32, #tpu.memory_space<vmem>>, vector<8x16x16xf32>
    tpu.vector_store %arg17[%c0_479, %c0_480, %c0_481], %375 {strides = array<i32>} : memref<8x20x16xf32, #tpu.memory_space<vmem>>, vector<8x16x16xf32>,
    %cst_482 = arith.constant 0.000000e+00 : f32
    %377 = vector.broadcast %cst_482 : f32 to vector<128x32xf32>
    %c0_483 = arith.constant 0 : index
    %c0_484 = arith.constant 0 : index
    %c0_485 = arith.constant 0 : index
    %378 = vector.load %arg17[%c0_483, %c0_484, %c0_485] : memref<8x20x16xf32, #tpu.memory_space<vmem>>, vector<8x16x16xf32>
    %379 = vector.shape_cast %378 : vector<8x16x16xf32> to vector<128x16xf32>
    %c0_486 = arith.constant 0 : index
    %c0_487 = arith.constant 0 : index
    %c0_488 = arith.constant 0 : index
    %380 = vector.load %arg10[%c0_486, %c0_487, %c0_488] : memref<5x16x32xf32, #tpu.memory_space<vmem>>, vector<1x16x32xf32>
    %381 = vector.shape_cast %380 : vector<1x16x32xf32> to vector<16x32xf32>
    %cst_489 = arith.constant dense<0.000000e+00> : vector<128x32xf32>
    %382 = tpu.matmul %379, %381, %cst_489 {dimension_numbers = #tpu.dot_dimension_numbers<[1], [0], [0], [1], [0, 0, 1, 1], [], []>} : vector<128x16xf32>, vector<16x32xf32>, vector<128x32xf32> -> vector<128x32xf32>
    %383 = arith.addf %377, %382 : vector<128x32xf32>
    %c0_490 = arith.constant 0 : index
    %c1_491 = arith.constant 1 : index
    %c0_492 = arith.constant 0 : index
    %384 = vector.load %arg17[%c0_490, %c1_491, %c0_492] : memref<8x20x16xf32, #tpu.memory_space<vmem>>, vector<8x16x16xf32>
    %385 = vector.shape_cast %384 : vector<8x16x16xf32> to vector<128x16xf32>
    %c1_493 = arith.constant 1 : index
    %c0_494 = arith.constant 0 : index
    %c0_495 = arith.constant 0 : index
    %386 = vector.load %arg10[%c1_493, %c0_494, %c0_495] : memref<5x16x32xf32, #tpu.memory_space<vmem>>, vector<1x16x32xf32>
    %387 = vector.shape_cast %386 : vector<1x16x32xf32> to vector<16x32xf32>
    %cst_496 = arith.constant dense<0.000000e+00> : vector<128x32xf32>
    %388 = tpu.matmul %385, %387, %cst_496 {dimension_numbers = #tpu.dot_dimension_numbers<[1], [0], [0], [1], [0, 0, 1, 1], [], []>} : vector<128x16xf32>, vector<16x32xf32>, vector<128x32xf32> -> vector<128x32xf32>
    %389 = arith.addf %383, %388 : vector<128x32xf32>
    %c0_497 = arith.constant 0 : index
    %c2_498 = arith.constant 2 : index
    %c0_499 = arith.constant 0 : index
    %390 = vector.load %arg17[%c0_497, %c2_498, %c0_499] : memref<8x20x16xf32, #tpu.memory_space<vmem>>, vector<8x16x16xf32>
    %391 = vector.shape_cast %390 : vector<8x16x16xf32> to vector<128x16xf32>
    %c2_500 = arith.constant 2 : index
    %c0_501 = arith.constant 0 : index
    %c0_502 = arith.constant 0 : index
    %392 = vector.load %arg10[%c2_500, %c0_501, %c0_502] : memref<5x16x32xf32, #tpu.memory_space<vmem>>, vector<1x16x32xf32>
    %393 = vector.shape_cast %392 : vector<1x16x32xf32> to vector<16x32xf32>
    %cst_503 = arith.constant dense<0.000000e+00> : vector<128x32xf32>
    %394 = tpu.matmul %391, %393, %cst_503 {dimension_numbers = #tpu.dot_dimension_numbers<[1], [0], [0], [1], [0, 0, 1, 1], [], []>} : vector<128x16xf32>, vector<16x32xf32>, vector<128x32xf32> -> vector<128x32xf32>
    %395 = arith.addf %389, %394 : vector<128x32xf32>
    %c0_504 = arith.constant 0 : index
    %c3 = arith.constant 3 : index
    %c0_505 = arith.constant 0 : index
    %396 = vector.load %arg17[%c0_504, %c3, %c0_505] : memref<8x20x16xf32, #tpu.memory_space<vmem>>, vector<8x16x16xf32>
    %397 = vector.shape_cast %396 : vector<8x16x16xf32> to vector<128x16xf32>
    %c3_506 = arith.constant 3 : index
    %c0_507 = arith.constant 0 : index
    %c0_508 = arith.constant 0 : index
    %398 = vector.load %arg10[%c3_506, %c0_507, %c0_508] : memref<5x16x32xf32, #tpu.memory_space<vmem>>, vector<1x16x32xf32>
    %399 = vector.shape_cast %398 : vector<1x16x32xf32> to vector<16x32xf32>
    %cst_509 = arith.constant dense<0.000000e+00> : vector<128x32xf32>
    %400 = tpu.matmul %397, %399, %cst_509 {dimension_numbers = #tpu.dot_dimension_numbers<[1], [0], [0], [1], [0, 0, 1, 1], [], []>} : vector<128x16xf32>, vector<16x32xf32>, vector<128x32xf32> -> vector<128x32xf32>
    %401 = arith.addf %395, %400 : vector<128x32xf32>
    %c0_510 = arith.constant 0 : index
    %c4 = arith.constant 4 : index
    %c0_511 = arith.constant 0 : index
    %402 = vector.load %arg17[%c0_510, %c4, %c0_511] : memref<8x20x16xf32, #tpu.memory_space<vmem>>, vector<8x16x16xf32>
    %403 = vector.shape_cast %402 : vector<8x16x16xf32> to vector<128x16xf32>
    %c4_512 = arith.constant 4 : index
    %c0_513 = arith.constant 0 : index
    %c0_514 = arith.constant 0 : index
    %404 = vector.load %arg10[%c4_512, %c0_513, %c0_514] : memref<5x16x32xf32, #tpu.memory_space<vmem>>, vector<1x16x32xf32>
    %405 = vector.shape_cast %404 : vector<1x16x32xf32> to vector<16x32xf32>
    %cst_515 = arith.constant dense<0.000000e+00> : vector<128x32xf32>
    %406 = tpu.matmul %403, %405, %cst_515 {dimension_numbers = #tpu.dot_dimension_numbers<[1], [0], [0], [1], [0, 0, 1, 1], [], []>} : vector<128x16xf32>, vector<16x32xf32>, vector<128x32xf32> -> vector<128x32xf32>
    %407 = arith.addf %401, %406 : vector<128x32xf32>
    %c0_516 = arith.constant 0 : index
    %c0_517 = arith.constant 0 : index
    %408 = vector.load %arg11[%c0_516, %c0_517] : memref<1x32xf32, #tpu.memory_space<vmem>>, vector<1x32xf32>
    %409 = vector.broadcast %408 : vector<1x32xf32> to vector<128x32xf32>
    %410 = arith.addf %407, %409 : vector<128x32xf32>
    %cst_518 = arith.constant 0.000000e+00 : f32
    %411 = vector.broadcast %cst_518 : f32 to vector<128x32xf32>
    %412 = arith.maximumf %410, %411 : vector<128x32xf32>
    %c0_519 = arith.constant 0 : index
    %c0_520 = arith.constant 0 : index
    %413 = vector.load %arg12[%c0_519, %c0_520] : memref<32x4xf32, #tpu.memory_space<vmem>>, vector<32x4xf32>
    %cst_521 = arith.constant dense<0.000000e+00> : vector<128x4xf32>
    %414 = tpu.matmul %412, %413, %cst_521 {dimension_numbers = #tpu.dot_dimension_numbers<[1], [0], [0], [1], [0, 0, 1, 1], [], []>} : vector<128x32xf32>, vector<32x4xf32>, vector<128x4xf32> -> vector<128x4xf32>
    %c0_522 = arith.constant 0 : index
    %c0_523 = arith.constant 0 : index
    %415 = vector.load %arg13[%c0_522, %c0_523] : memref<1x4xf32, #tpu.memory_space<vmem>>, vector<1x4xf32>
    %416 = vector.broadcast %415 : vector<1x4xf32> to vector<128x4xf32>
    %417 = arith.addf %414, %416 : vector<128x4xf32>
    %418 = vector.shape_cast %417 : vector<128x4xf32> to vector<8x16x4xf32>
    %419 = vector.extract_strided_slice %418 {offsets = [0, 0, 0], sizes = [8, 12, 4], strides = [1, 1, 1]} : vector<8x16x4xf32> to vector<8x12x4xf32>
    %c0_524 = arith.constant 0 : index
    %c0_525 = arith.constant 0 : index
    %c0_526 = arith.constant 0 : index
    %c0_527 = arith.constant 0 : index
    %420 = vector.load %arg14[%c0_524, %c0_525, %c0_526, %c0_527] : memref<1x8x12x4xf32, #tpu.memory_space<vmem>>, vector<1x8x12x4xf32>
    %421 = vector.shape_cast %420 : vector<1x8x12x4xf32> to vector<8x12x4xf32>
    %422 = vector.shape_cast %419 : vector<8x12x4xf32> to vector<1x8x12x4xf32>
    tpu.vector_store %arg14[%c0_524, %c0_525, %c0_526, %c0_527], %422 {strides = array<i32>} : memref<1x8x12x4xf32, #tpu.memory_space<vmem>>, vector<1x8x12x4xf32>,
    return
  }
  func.func @transform_0(%arg0: i32) -> (i32, i32, i32, i32) {
    %c0_i32 = arith.constant 0 : i32
    %c0_i32_0 = arith.constant 0 : i32
    %c0_i32_1 = arith.constant 0 : i32
    %c0_i32_2 = arith.constant 0 : i32
    return %arg0, %c0_i32, %c0_i32_0, %c0_i32_1 : i32, i32, i32, i32
  }
  func.func @transform_1(%arg0: i32) -> (i32, i32, i32, i32) {
    %c0_i32 = arith.constant 0 : i32
    %c0_i32_0 = arith.constant 0 : i32
    %c0_i32_1 = arith.constant 0 : i32
    %c0_i32_2 = arith.constant 0 : i32
    %c0_i32_3 = arith.constant 0 : i32
    return %c0_i32, %c0_i32_0, %c0_i32_1, %c0_i32_2 : i32, i32, i32, i32
  }
  func.func @transform_2(%arg0: i32) -> (i32, i32) {
    %c0_i32 = arith.constant 0 : i32
    %c0_i32_0 = arith.constant 0 : i32
    %c0_i32_1 = arith.constant 0 : i32
    return %c0_i32, %c0_i32_0 : i32, i32
  }
  func.func @transform_3(%arg0: i32) -> (i32, i32, i32, i32, i32) {
    %c0_i32 = arith.constant 0 : i32
    %c0_i32_0 = arith.constant 0 : i32
    %c0_i32_1 = arith.constant 0 : i32
    %c0_i32_2 = arith.constant 0 : i32
    %c0_i32_3 = arith.constant 0 : i32
    %c0_i32_4 = arith.constant 0 : i32
    return %c0_i32, %c0_i32_0, %c0_i32_1, %c0_i32_2, %c0_i32_3 : i32, i32, i32, i32, i32
  }
  func.func @transform_4(%arg0: i32) -> (i32, i32, i32) {
    %c0_i32 = arith.constant 0 : i32
    %c0_i32_0 = arith.constant 0 : i32
    %c0_i32_1 = arith.constant 0 : i32
    %c0_i32_2 = arith.constant 0 : i32
    return %c0_i32, %c0_i32_0, %c0_i32_1 : i32, i32, i32
  }
  func.func @transform_5(%arg0: i32) -> (i32, i32, i32, i32, i32) {
    %c0_i32 = arith.constant 0 : i32
    %c0_i32_0 = arith.constant 0 : i32
    %c0_i32_1 = arith.constant 0 : i32
    %c0_i32_2 = arith.constant 0 : i32
    %c0_i32_3 = arith.constant 0 : i32
    %c0_i32_4 = arith.constant 0 : i32
    return %c0_i32, %c0_i32_0, %c0_i32_1, %c0_i32_2, %c0_i32_3 : i32, i32, i32, i32, i32
  }
  func.func @transform_6(%arg0: i32) -> (i32, i32, i32) {
    %c0_i32 = arith.constant 0 : i32
    %c0_i32_0 = arith.constant 0 : i32
    %c0_i32_1 = arith.constant 0 : i32
    %c0_i32_2 = arith.constant 0 : i32
    return %c0_i32, %c0_i32_0, %c0_i32_1 : i32, i32, i32
  }
  func.func @transform_7(%arg0: i32) -> (i32, i32, i32) {
    %c0_i32 = arith.constant 0 : i32
    %c0_i32_0 = arith.constant 0 : i32
    %c0_i32_1 = arith.constant 0 : i32
    %c0_i32_2 = arith.constant 0 : i32
    return %c0_i32, %c0_i32_0, %c0_i32_1 : i32, i32, i32
  }
  func.func @transform_8(%arg0: i32) -> (i32, i32, i32) {
    %c0_i32 = arith.constant 0 : i32
    %c0_i32_0 = arith.constant 0 : i32
    %c0_i32_1 = arith.constant 0 : i32
    %c0_i32_2 = arith.constant 0 : i32
    return %c0_i32, %c0_i32_0, %c0_i32_1 : i32, i32, i32
  }
  func.func @transform_9(%arg0: i32) -> (i32, i32, i32) {
    %c0_i32 = arith.constant 0 : i32
    %c0_i32_0 = arith.constant 0 : i32
    %c0_i32_1 = arith.constant 0 : i32
    %c0_i32_2 = arith.constant 0 : i32
    return %c0_i32, %c0_i32_0, %c0_i32_1 : i32, i32, i32
  }
  func.func @transform_10(%arg0: i32) -> (i32, i32) {
    %c0_i32 = arith.constant 0 : i32
    %c0_i32_0 = arith.constant 0 : i32
    %c0_i32_1 = arith.constant 0 : i32
    return %c0_i32, %c0_i32_0 : i32, i32
  }
  func.func @transform_11(%arg0: i32) -> (i32, i32) {
    %c0_i32 = arith.constant 0 : i32
    %c0_i32_0 = arith.constant 0 : i32
    %c0_i32_1 = arith.constant 0 : i32
    return %c0_i32, %c0_i32_0 : i32, i32
  }
  func.func @transform_12(%arg0: i32) -> (i32, i32) {
    %c0_i32 = arith.constant 0 : i32
    %c0_i32_0 = arith.constant 0 : i32
    %c0_i32_1 = arith.constant 0 : i32
    return %c0_i32, %c0_i32_0 : i32, i32
  }
  func.func @transform_13(%arg0: i32) -> (i32, i32, i32, i32) {
    %c0_i32 = arith.constant 0 : i32
    %c0_i32_0 = arith.constant 0 : i32
    %c0_i32_1 = arith.constant 0 : i32
    %c0_i32_2 = arith.constant 0 : i32
    return %arg0, %c0_i32, %c0_i32_0, %c0_i32_1 : i32, i32, i32, i32
  }
}

</mosaic_0001>

<bundles_post_ra>
// kernel: resnet_forward.1
= control target key start
LH: loop header
LB: loop body
LE: loop exit
PB: predicated region body
PF: predicated region fallthrough
CT: control target
= control target key end

     0   :  { %s14326_s0 = inlined_call_operand.vmem [shape: f32[2,8,16,4], index: 0, kind: input, shape index: {}]   ;;  %s14327_s1 = inlined_call_operand.vmem [shape: f32[3,3,4,16], index: 1, kind: input, shape index: {}]   ;;  %s14328_s2 = inlined_call_operand.vmem [shape: f32[1,16], index: 2, kind: input, shape index: {}]   ;;  %s14329_s3 = inlined_call_operand.vmem [shape: f32[2,3,3,16,16], index: 3, kind: input, shape index: {}]   ;;  %s14330_s4 = inlined_call_operand.vmem [shape: f32[2,1,16], index: 4, kind: input, shape index: {}]   ;;  %s14331_s5 = inlined_call_operand.hbm [shape: f32[2,3,3,16,16], index: 5, kind: input, shape index: {}]   ;;  %s14332_s6 = inlined_call_operand.vmem [shape: f32[2,1,16], index: 6, kind: input, shape index: {}]   ;;  %s14333_s7 = inlined_call_operand.vmem [shape: f32[2,16,4], index: 7, kind: input, shape index: {}]   ;;  %s14334_s8 = inlined_call_operand.hbm [shape: f32[2,4,16], index: 8, kind: input, shape index: {}]   ;;  %s14335_s9 = inlined_call_operand.hbm [shape: f32[5,16,32], index: 9, kind: input, shape index: {}]   ;;  %s14336_s10 = inlined_call_operand.vmem [shape: f32[1,32], index: 10, kind: input, shape index: {}]   ;;  %s14337_s11 = inlined_call_operand.vmem [shape: f32[32,4], index: 11, kind: input, shape index: {}]   ;;  %s14338_s12 = inlined_call_operand.vmem [shape: f32[1,4], index: 12, kind: input, shape index: {}]   ;;  %s14339_s13 = inlined_call_operand.vmem [shape: f32[2,8,12,4], index: 13, kind: output, shape index: {}]  }
   0x1   :  { %14407 = sst [smem:[#allocation79_spill]] %s14331_s5 }
   0x2   :  { %18 = vsyncpa [#allocation6], 0 }
   0x3   :  { %19 = vsyncpa [#allocation8], 0  ;;  %s9979_s25 = smov 0  }
   0x4 LB: > { %s377_s28 = sshll.u32 %s14334_s8, 4  ;;  %s9988_s29 = sadd.s32 4294967295, %s9898_s25   ;;  %s9898_s25 = sphi %s9979_s25, %s25_s25   ;;  %s378_s28 = int_to_ptr.hbm [resolvable:$true] %s377_s28 }
   0x5   : > { %p8827_p0 = scmp.ge.s32.totalorder %s9898_s25, 1  ;;  %p334_p1 = scmp.lt.s32.totalorder %s9898_s25, 3 }
   0x6   : > { %p9754_p2 = scmp.eq.s32.totalorder %s9988_s29, 0  ;;  %s9900_s14 = smov [#allocation7]  }
   0x7   : > { %p9993_p3 = pnand %p8827_p0, %p334_p1  ;;  %s379_s15 = sshll.u32 %s9900_s14, 4  ;;  %s380_s15 = int_to_ptr.vmem [resolvable:$true] %s379_s15 }
   0x8   : > { %s14409_s5 = sld [smem:[#allocation79_spill]]  ;;  %s9901_s20 = smov [#allocation5]  }
   0x9   : > { %p9744_p4 = pneg %p9993_p3  ;;  %s359_s21 = sshll.u32 %s9901_s20, 4  ;;  %s360_s21 = int_to_ptr.vmem [resolvable:$true] %s359_s21 }
   0xa   : > { %s9902_s22 = smov 64   ;;  %s9903_s23 = smov 4  }
   0xb   : > { %p10004_p5 = pnand %p9754_p2, %p9744_p4  ;;  %s391_s27 = sshll.u32 %s14335_s9, 4  ;;  %s392_s27 = int_to_ptr.hbm [resolvable:$true] %s391_s27 }
   0xc   : > { %s9904_s14 = smov 128   ;;  %s9905_s16 = smov 8  }
   0xd   : > { %9750 = dma.hbm_to_vmem [thread:$0]  (!%p10004_p5), %s378_s28, 128, %s380_s15, [#allocation8], %s9902_s22, %s9902_s22, %s9903_s23  }
   0xe   : > { %s357_s18 = sshll.u32 %s14409_s5, 4  ;;  %s9906_s17 = smov [#allocation9]   ;;  %s358_s18 = int_to_ptr.hbm [resolvable:$true] %s357_s18 }
   0xf   : > { %9747 = dma.hbm_to_vmem [thread:$0]  (!%p10004_p5), %s358_s18, 4608, %s360_s21, [#allocation6], %s9904_s14, %s9904_s14, %s9905_s16  }
  0x10   : > { %s393_s5 = sshll.u32 %s9906_s17, 4  ;;  %426 = sbr.rel (%p9993_p3) target bundleno = 3374 (0xd2e), region = 72  ;;  %s394_s5 = int_to_ptr.vmem [resolvable:$true] %s393_s5 }
  0x11   : > { %9753 = dma.hbm_to_vmem [thread:$0]  (!%p10004_p5), %s392_s27, 1280, %s394_s5, [#allocation8], %s9904_s14, %s9904_s14, %s9905_s16  }
  0x15   : > { %9889 = dma.done.wait (%p9754_p2), [#allocation6], 4608  }
  0x16   : > { %9891 = vsyncadd (%p9754_p2), [#allocation6], 4294962688 }
  0x17   : > { %9893 = dma.done.wait (%p9754_p2), [#allocation8], 1408  }
  0x18   : > { %9895 = vsyncadd (%p9754_p2), [#allocation8], 4294965888  ;;  %vm491_vm0 = vcmask 31744   ;;  %v14340_v0 = vmov 0.0   ;;  %vm696_vm1 = vcmask 1043456   ;;  %p481_p6 = scmp.lt.s32.totalorder %s9988_s29, 1 }
  0x19   : > { %492 = vst.msk [vmem:[#allocation2] sm:$0xff] %vm491_vm0, %v14340_v0  ;;  %v8840_v1 = vld [vmem:[%s14327_s1 + $0x4] sm:$0xf]  ;;  %v629_v2 = vld [vmem:[%s14327_s1] sm:$0xf]  ;;  %vm494_vm2 = vcmask 25600  }
  0x1a   : > { %493 = vst.msk [vmem:[#allocation2 + $0x8] sm:$0xff] %vm491_vm0, %v14340_v0  ;;  %v8875_v3 = vld [vmem:[%s14327_s1 + $0x8] sm:$0xf]  ;;  %8841 = vmatpush.msk.msra.mxu0 %vm696_vm1, %v8840_v1  ;;  %8858 = vmatpush.msk.msra.mxu1 %vm696_vm1, %v629_v2  ;;  %v8911_v5 = vld [vmem:[%s14327_s1 + $0x10] sm:$0xf]  ;;  %s14795_s29 = smov (!%p481_p6, %s9988_s29), 1 }
  0x1b   : > { %496 = vst.msk [vmem:[#allocation2 + $0x18] sm:$0xff] %vm491_vm0, %v14340_v0  ;;  %8876 = vmatpush.msk.msra.mxu2 %vm696_vm1, %v8875_v3  ;;  %9729 = vmatpush.msk.msra.mxu3 %vm696_vm1, %v8840_v1  ;;  %s9727_s22 = sshll.u32 %s14795_s29, 7  ;;  %v8893_v41 = vld [vmem:[%s14327_s1 + $0xc] sm:$0xf]  ;;  %v8965_v59 = vld [vmem:[%s14327_s1 + $0x1c] sm:$0xf] }
  0x1c   : > { %497 = vst.msk [vmem:[#allocation2 + $0x20] sm:$0xff] %vm491_vm0, %v14340_v0  ;;  %8912 = vmatpush.msk.msrb.mxu0 %vm696_vm1, %v8911_v5  ;;  %s10090_s26 = scalar_lea.vmem %s14326_s0, %s9727_s22  ;;  %v8947_v60 = vld [vmem:[%s14327_s1 + $0x18] sm:$0xf]  ;;  %vm523_vm3 = vcmask 130048   ;;  %vm526_vm4 = vcmask 123904   ;;  %vm557_vm10 = vcmask 125952   ;;  %s14289_s19 = scalar_lea.vmem %s14339_s13, %s9727_s22 }
  0x1d   : > { %499 = vst.msk [vmem:[#allocation2 + $0x30] sm:$0xff] %vm491_vm0, %v14340_v0  ;;  %9730 = vmatpush.msk.msrb.mxu3 %vm696_vm1, %v629_v2  ;;  %v592_v9 = vld [vmem:[%s10090_s26 + $0x60] sm:$0xff]  ;;  %v593_v13 = vld [vmem:[%s10090_s26 + $0x68] sm:$0xff]  ;;  %v590_v16 = vld [vmem:[%s10090_s26 + $0x50] sm:$0xff]  ;;  %8948 = vmatpush.msk.msrb.mxu2 %vm696_vm1, %v8947_v60  ;;  %vm8608_vm15 = vcmask 261120  }
  0x1e   : > { %500 = vst.msk [vmem:[#allocation2 + $0x38] sm:$0xff] %vm491_vm0, %v14340_v0  ;;  %v580_v14 = vld [vmem:[%s10090_s26] sm:$0xff]  ;;  %v581_v15 = vld [vmem:[%s10090_s26 + $0x8] sm:$0xff]  ;;  %v591_v17 = vld [vmem:[%s10090_s26 + $0x58] sm:$0xff] }
  0x1f   : > { %502 = vst.msk [vmem:[#allocation2 + $0x48] sm:$0xff] %vm491_vm0, %v14340_v0  ;;  %v582_v18 = vld [vmem:[%s10090_s26 + $0x10] sm:$0xff]  ;;  %v583_v19 = vld [vmem:[%s10090_s26 + $0x18] sm:$0xff]  ;;  %v584_v20 = vld [vmem:[%s10090_s26 + $0x20] sm:$0xff] }
  0x20   : > { %v613_v4 = vld [vmem:[#allocation2] sm:$0xff]  ;;  %503 = vst.msk [vmem:[#allocation2 + $0x50] sm:$0xff] %vm491_vm0, %v14340_v0  ;;  %v585_v21 = vld [vmem:[%s10090_s26 + $0x28] sm:$0xff]  ;;  %v586_v30 = vld [vmem:[%s10090_s26 + $0x30] sm:$0xff] }
  0x21   : > { %v630_v6 = vld [vmem:[#allocation2 + $0x1] sm:$0xff]  ;;  %8859 = vmatmul.msk.f32.vlgmr.msra.gmra.mxu1 %vm491_vm0, %v613_v4  ;;  %505 = vst.msk [vmem:[#allocation2 + $0x60] sm:$0xff] %vm491_vm0, %v14340_v0  ;;  %v587_v31 = vld [vmem:[%s10090_s26 + $0x38] sm:$0xff] }
  0x22   : > { %v881_v7 = vld [vmem:[#allocation2 + $0x2] sm:$0xff]  ;;  %8842 = vmatmul.msk.f32.vlgmr.msra.gmra.mxu0 %vm491_vm0, %v630_v6  ;;  %506 = vst.msk [vmem:[#allocation2 + $0x68] sm:$0xff] %vm491_vm0, %v14340_v0 }
  0x23   : > { %8877 = vmatmul.msk.f32.vlgmr.msra.gmra.mxu2 %vm491_vm0, %v881_v7  ;;  %508 = vst.msk [vmem:[#allocation2 + $0x78] sm:$0xff] %vm491_vm0, %v14340_v0  ;;  %v614_v8 = vld [vmem:[#allocation2 + $0x8] sm:$0xff]  ;;  %v588_v40 = vld [vmem:[%s10090_s26 + $0x40] sm:$0xff] }
  0x24   : > { %509 = vst.msk [vmem:[#allocation2 + $0x80] sm:$0xff] %vm491_vm0, %v14340_v0  ;;  %v589_v42 = vld [vmem:[%s10090_s26 + $0x48] sm:$0xff]  ;;  %v8983_v2 = vld [vmem:[%s14327_s1 + $0x20] sm:$0xf] }
  0x25   : > { %511 = vst.msk [vmem:[#allocation2 + $0x90] sm:$0xff] %vm491_vm0, %v14340_v0  ;;  %8984 = vmatpush.msk.msra.mxu0 %vm696_vm1, %v8983_v2 }
  0x26   : > { %512 = vst.msk [vmem:[#allocation2 + $0x98] sm:$0xff] %vm491_vm0, %v14340_v0 }
  0x27   : > { %514 = vst.msk [vmem:[#allocation2 + $0xa8] sm:$0xff] %vm491_vm0, %v14340_v0 }
  0x28   : > { %515 = vst.msk [vmem:[#allocation2 + $0xb0] sm:$0xff] %vm491_vm0, %v14340_v0 }
  0x29   : > { %8860 = vmatmul.msk.f32.gmra.mxu1 %vm491_vm0, %v614_v8  ;;  %517 = vst.msk [vmem:[#allocation2 + $0xc0] sm:$0xff] %vm491_vm0, %v14340_v0 }
  0x2a   : > { %518 = vst.msk [vmem:[#allocation2 + $0xc8] sm:$0xff] %vm491_vm0, %v14340_v0 }
  0x2b   : > { %520 = vst.msk [vmem:[#allocation2 + $0xd8] sm:$0xff] %vm491_vm0, %v14340_v0 }
  0x2c   : > { %521 = vst.msk [vmem:[#allocation2 + $0xe0] sm:$0xff] %vm491_vm0, %v14340_v0 }
  0x2d   : > { %609 = vst.msk [vmem:[#allocation2 + $0xa9] sm:$0xff] %vm491_vm0, %v592_v9 }
  0x2e   : > { %495 = vst.msk [vmem:[#allocation2 + $0x10] sm:$0x3] %vm494_vm2, %v14340_v0 }
  0x2f   : > { %498 = vst.msk [vmem:[#allocation2 + $0x28] sm:$0x3] %vm494_vm2, %v14340_v0 }
  0x30   : > { %501 = vst.msk [vmem:[#allocation2 + $0x40] sm:$0x3] %vm494_vm2, %v14340_v0 }
  0x31   : > { %504 = vst.msk [vmem:[#allocation2 + $0x58] sm:$0x3] %vm494_vm2, %v14340_v0 }
  0x32   : > { %507 = vst.msk [vmem:[#allocation2 + $0x70] sm:$0x3] %vm494_vm2, %v14340_v0  ;;  %v1496_v60 = vld [vmem:[#allocation2 + $0xd8] sm:$0xff] }
  0x33   : > { %510 = vst.msk [vmem:[#allocation2 + $0x88] sm:$0x3] %vm494_vm2, %v14340_v0 }
  0x34   : > { %v10117_v10 = vld [vmem:[#allocation2 + $0xa9] sm:$0xff]  ;;  %513 = vst.msk [vmem:[#allocation2 + $0xa0] sm:$0x3] %vm494_vm2, %v14340_v0 }
  0x35   : > { %8856 = vmatmul.msk.f32.vlgmr.msra.gmra.mxu3 %vm491_vm0, %v10117_v10  ;;  %v631_v11 = vld [vmem:[#allocation2 + $0x9] sm:$0xff]  ;;  %516 = vst.msk [vmem:[#allocation2 + $0xb8] sm:$0x3] %vm494_vm2, %v14340_v0 }
  0x36   : > { %v882_v12 = vld [vmem:[#allocation2 + $0xa] sm:$0xff]  ;;  %8843 = vmatmul.msk.f32.gmra.mxu0 %vm491_vm0, %v631_v11  ;;  %519 = vst.msk [vmem:[#allocation2 + $0xd0] sm:$0x3] %vm494_vm2, %v14340_v0  ;;  %9731 = vmatpush.msk.msra.mxu3 %vm696_vm1, %v8875_v3  ;;  %v8929_v3 = vld [vmem:[%s14327_s1 + $0x14] sm:$0xf] }
  0x37   : > { %8878 = vmatmul.msk.f32.gmra.mxu2 %vm491_vm0, %v882_v12  ;;  %522 = vst.msk [vmem:[#allocation2 + $0xe8] sm:$0x3] %vm494_vm2, %v14340_v0  ;;  %v10202_v36 = vld [vmem:[#allocation2 + $0xa8] sm:$0xff]  ;;  %8930 = vmatpush.msk.msrb.mxu1 %vm696_vm1, %v8929_v3 }
  0x38   : > { %610 = vst.msk [vmem:[#allocation2 + $0xb1] sm:$0xff] %vm491_vm0, %v593_v13 }
  0x39   : > { %597 = vst.msk [vmem:[#allocation2 + $0x19] sm:$0xff] %vm491_vm0, %v580_v14 }
  0x3a   : > { %598 = vst.msk [vmem:[#allocation2 + $0x21] sm:$0xff] %vm491_vm0, %v581_v15 }
  0x3b   : > { %607 = vst.msk [vmem:[#allocation2 + $0x91] sm:$0xff] %vm491_vm0, %v590_v16 }
  0x3c   : > { %608 = vst.msk [vmem:[#allocation2 + $0x99] sm:$0xff] %vm491_vm0, %v591_v17 }
  0x3d   : > { %599 = vst.msk [vmem:[#allocation2 + $0x31] sm:$0xff] %vm491_vm0, %v582_v18  ;;  %v594_v18 = vld [vmem:[%s10090_s26 + $0x70] sm:$0xff] }
  0x3e   : > { %600 = vst.msk [vmem:[#allocation2 + $0x39] sm:$0xff] %vm491_vm0, %v583_v19 }
  0x3f   : > { %v10148_v22 = vld [vmem:[#allocation2 + $0xb1] sm:$0xff]  ;;  %601 = vst.msk [vmem:[#allocation2 + $0x49] sm:$0xff] %vm491_vm0, %v584_v20 }
  0x40   : > { %8857 = vmatmul.msk.f32.gmra.mxu3 %vm491_vm0, %v10148_v22  ;;  %v10153_v23 = vld [vmem:[#allocation2 + $0x19] sm:$0xff]  ;;  %602 = vst.msk [vmem:[#allocation2 + $0x51] sm:$0xff] %vm491_vm0, %v585_v21  ;;  %v10226_v43 = vld [vmem:[#allocation2 + $0xb0] sm:$0xff] }
  0x41   : > { %v10155_v24 = vld [vmem:[#allocation2 + $0x18] sm:$0xff]  ;;  %8844 = vmatmul.msk.f32.gmra.mxu0 %vm491_vm0, %v10153_v23  ;;  %v10168_v27 = vld [vmem:[#allocation2 + $0x21] sm:$0xff]  ;;  %603 = vst.msk [vmem:[#allocation2 + $0x61] sm:$0xff] %vm491_vm0, %v586_v30  ;;  %v10271_v55 = vld [vmem:[#allocation2 + $0xaa] sm:$0xff] }
  0x42   : > { %8861 = vmatmul.msk.f32.gmra.mxu1 %vm491_vm0, %v10155_v24  ;;  %v10162_v25 = vld [vmem:[#allocation2 + $0x1a] sm:$0xff]  ;;  %v10166_v26 = vld [vmem:[#allocation2 + $0x90] sm:$0xff]  ;;  %v10172_v29 = vld [vmem:[#allocation2 + $0x22] sm:$0xff]  ;;  %604 = vst.msk [vmem:[#allocation2 + $0x69] sm:$0xff] %vm491_vm0, %v587_v31 }
  0x43   : > { %8879 = vmatmul.msk.f32.gmra.mxu2 %vm491_vm0, %v10162_v25  ;;  %v10170_v28 = vld [vmem:[#allocation2 + $0x20] sm:$0xff]  ;;  %v10186_v32 = vld [vmem:[#allocation2 + $0x98] sm:$0xff]  ;;  %605 = vst.msk [vmem:[#allocation2 + $0x79] sm:$0xff] %vm491_vm0, %v588_v40 }
  0x44   : > { %v10188_v33 = vld [vmem:[#allocation2 + $0x31] sm:$0xff]  ;;  %606 = vst.msk [vmem:[#allocation2 + $0x81] sm:$0xff] %vm491_vm0, %v589_v42  ;;  %v10258_v51 = vld [vmem:[#allocation2 + $0x9a] sm:$0xff] }
  0x45   : > { %v10190_v34 = vld [vmem:[#allocation2 + $0x30] sm:$0xff]  ;;  %v10204_v37 = vld [vmem:[#allocation2 + $0x39] sm:$0xff]  ;;  %611 = vst.msk [vmem:[#allocation2 + $0xc1] sm:$0xff] %vm491_vm0, %v594_v18 }
  0x46   : > { %v10192_v35 = vld [vmem:[#allocation2 + $0x32] sm:$0xff]  ;;  %v10208_v39 = vld [vmem:[#allocation2 + $0x3a] sm:$0xff]  ;;  %v10228_v44 = vld [vmem:[#allocation2 + $0x49] sm:$0xff]  ;;  %524 = vst.msk [vmem:[#allocation3] sm:$0xff] %vm523_vm3, %v14340_v0 }
  0x47   : > { %v10206_v38 = vld [vmem:[#allocation2 + $0x38] sm:$0xff]  ;;  %v10230_v45 = vld [vmem:[#allocation2 + $0x48] sm:$0xff]  ;;  %v10246_v49 = vld [vmem:[#allocation2 + $0x50] sm:$0xff]  ;;  %525 = vst.msk [vmem:[#allocation3 + $0x8] sm:$0xff] %vm523_vm3, %v14340_v0 }
  0x48   : > { %8871 = vmatmul.msk.f32.vlgmr.msrb.gmra.mxu3 %vm491_vm0, %v10166_v26  ;;  %v10232_v46 = vld [vmem:[#allocation2 + $0x4a] sm:$0xff]  ;;  %v10242_v47 = vld [vmem:[#allocation2 + $0x92] sm:$0xff]  ;;  %v10260_v52 = vld [vmem:[#allocation2 + $0x61] sm:$0xff]  ;;  %528 = vst.msk [vmem:[#allocation3 + $0x18] sm:$0xff] %vm523_vm3, %v14340_v0 }
  0x49   : > { %8845 = vmatmul.msk.f32.gmra.mxu0 %vm491_vm0, %v10168_v27  ;;  %8894 = vmatpush.msk.msrb.mxu3 %vm696_vm1, %v8893_v41  ;;  %v10244_v48 = vld [vmem:[#allocation2 + $0x51] sm:$0xff]  ;;  %v621_v53 = vld [vmem:[#allocation2 + $0x60] sm:$0xff]  ;;  %v10273_v56 = vld [vmem:[#allocation2 + $0x69] sm:$0xff]  ;;  %529 = vst.msk [vmem:[#allocation3 + $0x20] sm:$0xff] %vm523_vm3, %v14340_v0 }
  0x4a   : > { %8862 = vmatmul.msk.f32.gmra.mxu1 %vm491_vm0, %v10170_v28  ;;  %v10248_v50 = vld [vmem:[#allocation2 + $0x52] sm:$0xff]  ;;  %v10262_v54 = vld [vmem:[#allocation2 + $0x62] sm:$0xff]  ;;  %v10275_v58 = vld [vmem:[#allocation2 + $0x6a] sm:$0xff]  ;;  %531 = vst.msk [vmem:[#allocation3 + $0x30] sm:$0xff] %vm523_vm3, %v14340_v0 }
  0x4b   : > { %8880 = vmatmul.msk.f32.gmra.mxu2 %vm491_vm0, %v10172_v29  ;;  %v622_v57 = vld [vmem:[#allocation2 + $0x68] sm:$0xff]  ;;  %v10292_v61 = vld [vmem:[#allocation2 + $0xb2] sm:$0xff]  ;;  %v10296_v1 = vld [vmem:[#allocation2 + $0x7a] sm:$0xff]  ;;  %532 = vst.msk [vmem:[#allocation3 + $0x38] sm:$0xff] %vm523_vm3, %v14340_v0 }
  0x4c   : > { %v10294_v62 = vld [vmem:[#allocation2 + $0x79] sm:$0xff]  ;;  %v10313_v4 = vld [vmem:[#allocation2 + $0x81] sm:$0xff]  ;;  %v10324_v7 = vld [vmem:[#allocation2 + $0x91] sm:$0xff]  ;;  %534 = vst.msk [vmem:[#allocation3 + $0x48] sm:$0xff] %vm523_vm3, %v14340_v0 }
  0x4d   : > { %v623_v63 = vld [vmem:[#allocation2 + $0x78] sm:$0xff]  ;;  %v624_v5 = vld [vmem:[#allocation2 + $0x80] sm:$0xff]  ;;  %535 = vst.msk [vmem:[#allocation3 + $0x50] sm:$0xff] %vm523_vm3, %v14340_v0 }
  0x4e   : > { %v10315_v6 = vld [vmem:[#allocation2 + $0x82] sm:$0xff]  ;;  %v10334_v8 = vld [vmem:[#allocation2 + $0x99] sm:$0xff]  ;;  %537 = vst.msk [vmem:[#allocation3 + $0x60] sm:$0xff] %vm523_vm3, %v14340_v0 }
  0x4f   : > { %v595_v21 = vld [vmem:[%s10090_s26 + $0x78] sm:$0xff]  ;;  %538 = vst.msk [vmem:[#allocation3 + $0x68] sm:$0xff] %vm523_vm3, %v14340_v0 }
  0x50   : > { %8872 = vmatmul.msk.f32.gmra.mxu3 %vm491_vm0, %v10186_v32  ;;  %612 = vst.msk [vmem:[#allocation2 + $0xc9] sm:$0xff] %vm491_vm0, %v595_v21 }
  0x51   : > { %8846 = vmatmul.msk.f32.gmra.mxu0 %vm491_vm0, %v10188_v33  ;;  %540 = vst.msk [vmem:[#allocation3 + $0x78] sm:$0xff] %vm523_vm3, %v14340_v0 }
  0x52   : > { %8863 = vmatmul.msk.f32.gmra.mxu1 %vm491_vm0, %v10190_v34  ;;  %541 = vst.msk [vmem:[#allocation3 + $0x80] sm:$0xff] %vm523_vm3, %v14340_v0 }
  0x53   : > { %8881 = vmatmul.msk.f32.gmra.mxu2 %vm491_vm0, %v10192_v35  ;;  %543 = vst.msk [vmem:[#allocation3 + $0x90] sm:$0xff] %vm523_vm3, %v14340_v0 }
  0x54   : > { %544 = vst.msk [vmem:[#allocation3 + $0x98] sm:$0xff] %vm523_vm3, %v14340_v0 }
  0x55   : > { %546 = vst.msk [vmem:[#allocation3 + $0xa8] sm:$0xff] %vm523_vm3, %v14340_v0 }
  0x56   : > { %547 = vst.msk [vmem:[#allocation3 + $0xb0] sm:$0xff] %vm523_vm3, %v14340_v0 }
  0x57   : > { %v1046_v42 = vld [vmem:[#allocation2 + $0xc8] sm:$0xff]  ;;  %549 = vst.msk [vmem:[#allocation3 + $0xc0] sm:$0xff] %vm523_vm3, %v14340_v0 }
  0x58   : > { %8873 = vmatmul.msk.f32.gmra.mxu3 %vm491_vm0, %v10202_v36  ;;  %550 = vst.msk [vmem:[#allocation3 + $0xc8] sm:$0xff] %vm523_vm3, %v14340_v0 }
  0x59   : > { %8847 = vmatmul.msk.f32.gmra.mxu0 %vm491_vm0, %v10204_v37  ;;  %552 = vst.msk [vmem:[#allocation3 + $0xd8] sm:$0xff] %vm523_vm3, %v14340_v0 }
  0x5a   : > { %8864 = vmatmul.msk.f32.gmra.mxu1 %vm491_vm0, %v10206_v38  ;;  %553 = vst.msk [vmem:[#allocation3 + $0xe0] sm:$0xff] %vm523_vm3, %v14340_v0 }
  0x5b   : > { %8882 = vmatmul.msk.f32.gmra.mxu2 %vm491_vm0, %v10208_v39  ;;  %555 = vst.msk [vmem:[#allocation4] sm:$0xff] %vm523_vm3, %v14340_v0 }
  0x5c   : > { %556 = vst.msk [vmem:[#allocation4 + $0x8] sm:$0xff] %vm523_vm3, %v14340_v0 }
  0x5d   : > { %559 = vst.msk [vmem:[#allocation4 + $0x18] sm:$0xff] %vm523_vm3, %v14340_v0 }
  0x5e   : > { %560 = vst.msk [vmem:[#allocation4 + $0x20] sm:$0xff] %vm523_vm3, %v14340_v0 }
  0x5f   : > { %562 = vst.msk [vmem:[#allocation4 + $0x30] sm:$0xff] %vm523_vm3, %v14340_v0 }
  0x60   : > { %8874 = vmatmul.msk.f32.gmra.mxu3 %vm491_vm0, %v10226_v43  ;;  %563 = vst.msk [vmem:[#allocation4 + $0x38] sm:$0xff] %vm523_vm3, %v14340_v0 }
  0x61   : > { %8848 = vmatmul.msk.f32.gmra.mxu0 %vm491_vm0, %v10228_v44  ;;  %565 = vst.msk [vmem:[#allocation4 + $0x48] sm:$0xff] %vm523_vm3, %v14340_v0 }
  0x62   : > { %8865 = vmatmul.msk.f32.gmra.mxu1 %vm491_vm0, %v10230_v45  ;;  %566 = vst.msk [vmem:[#allocation4 + $0x50] sm:$0xff] %vm523_vm3, %v14340_v0 }
  0x63   : > { %8883 = vmatmul.msk.f32.gmra.mxu2 %vm491_vm0, %v10232_v46  ;;  %568 = vst.msk [vmem:[#allocation4 + $0x60] sm:$0xff] %vm523_vm3, %v14340_v0 }
  0x64   : > { %569 = vst.msk [vmem:[#allocation4 + $0x68] sm:$0xff] %vm523_vm3, %v14340_v0 }
  0x65   : > { %571 = vst.msk [vmem:[#allocation4 + $0x78] sm:$0xff] %vm523_vm3, %v14340_v0 }
  0x66   : > { %572 = vst.msk [vmem:[#allocation4 + $0x80] sm:$0xff] %vm523_vm3, %v14340_v0 }
  0x67   : > { %574 = vst.msk [vmem:[#allocation4 + $0x90] sm:$0xff] %vm523_vm3, %v14340_v0 }
  0x68   : > { %8889 = vmatmul.msk.f32.vlgmr.msra.gmra.mxu3 %vm491_vm0, %v10242_v47  ;;  %575 = vst.msk [vmem:[#allocation4 + $0x98] sm:$0xff] %vm523_vm3, %v14340_v0 }
  0x69   : > { %8849 = vmatmul.msk.f32.gmra.mxu0 %vm491_vm0, %v10244_v48  ;;  %8966 = vmatpush.msk.msra.mxu3 %vm696_vm1, %v8965_v59  ;;  %577 = vst.msk [vmem:[#allocation4 + $0xa8] sm:$0xff] %vm523_vm3, %v14340_v0 }
  0x6a   : > { %8866 = vmatmul.msk.f32.gmra.mxu1 %vm491_vm0, %v10246_v49  ;;  %578 = vst.msk [vmem:[#allocation4 + $0xb0] sm:$0xff] %vm523_vm3, %v14340_v0 }
  0x6b   : > { %8884 = vmatmul.msk.f32.gmra.mxu2 %vm491_vm0, %v10248_v50  ;;  %527 = vst.msk [vmem:[#allocation3 + $0x10] sm:$0x3] %vm526_vm4, %v14340_v0 }
  0x6c   : > { %530 = vst.msk [vmem:[#allocation3 + $0x28] sm:$0x3] %vm526_vm4, %v14340_v0 }
  0x6d   : > { %533 = vst.msk [vmem:[#allocation3 + $0x40] sm:$0x3] %vm526_vm4, %v14340_v0 }
  0x6e   : > { %536 = vst.msk [vmem:[#allocation3 + $0x58] sm:$0x3] %vm526_vm4, %v14340_v0 }
  0x6f   : > { %539 = vst.msk [vmem:[#allocation3 + $0x70] sm:$0x3] %vm526_vm4, %v14340_v0 }
  0x70   : > { %8890 = vmatmul.msk.f32.gmra.mxu3 %vm491_vm0, %v10258_v51  ;;  %542 = vst.msk [vmem:[#allocation3 + $0x88] sm:$0x3] %vm526_vm4, %v14340_v0 }
  0x71   : > { %8850 = vmatmul.msk.f32.gmra.mxu0 %vm491_vm0, %v10260_v52  ;;  %545 = vst.msk [vmem:[#allocation3 + $0xa0] sm:$0x3] %vm526_vm4, %v14340_v0 }
  0x72   : > { %8867 = vmatmul.msk.f32.gmra.mxu1 %vm491_vm0, %v621_v53  ;;  %548 = vst.msk [vmem:[#allocation3 + $0xb8] sm:$0x3] %vm526_vm4, %v14340_v0 }
  0x73   : > { %8885 = vmatmul.msk.f32.gmra.mxu2 %vm491_vm0, %v10262_v54  ;;  %551 = vst.msk [vmem:[#allocation3 + $0xd0] sm:$0x3] %vm526_vm4, %v14340_v0 }
  0x74   : > { %554 = vst.msk [vmem:[#allocation3 + $0xe8] sm:$0x3] %vm526_vm4, %v14340_v0 }
  0x78   : > { %8891 = vmatmul.msk.f32.gmra.mxu3 %vm491_vm0, %v10271_v55 }
  0x79   : > { %8851 = vmatmul.msk.f32.gmra.mxu0 %vm491_vm0, %v10273_v56 }
  0x7a   : > { %8868 = vmatmul.msk.f32.gmra.mxu1 %vm491_vm0, %v622_v57 }
  0x7b   : > { %8886 = vmatmul.msk.f32.gmra.mxu2 %vm491_vm0, %v10275_v58 }
  0x80   : > { %8892 = vmatmul.msk.f32.gmra.mxu3 %vm491_vm0, %v10292_v61 }
  0x81   : > { %8852 = vmatmul.msk.f32.gmra.mxu0 %vm491_vm0, %v10294_v62 }
  0x82   : > { %8869 = vmatmul.msk.f32.gmra.mxu1 %vm491_vm0, %v623_v63 }
  0x83   : > { %8887 = vmatmul.msk.f32.gmra.mxu2 %vm491_vm0, %v10296_v1 }
  0x88   : > { %8895 = vmatmul.msk.f32.vlgmr.msrb.gmra.mxu3 %vm491_vm0, %v10155_v24 }
  0x89   : > { %8853 = vmatmul.msk.f32.gmra.mxu0 %vm491_vm0, %v10313_v4 }
  0x8a   : > { %8870 = vmatmul.msk.f32.gmra.mxu1 %vm491_vm0, %v624_v5 }
  0x8b   : > { %8888 = vmatmul.msk.f32.gmra.mxu2 %vm491_vm0, %v10315_v6 }
  0x90   : > { %8896 = vmatmul.msk.f32.gmra.mxu3 %vm491_vm0, %v10170_v28 }
  0x91   : > { %8854 = vmatmul.msk.f32.gmra.mxu0 %vm491_vm0, %v10324_v7 }
  0x92   : > { %8931 = vmatmul.msk.f32.vlgmr.msrb.gmra.mxu1 %vm491_vm0, %v10162_v25 }
  0x93   : > { %8949 = vmatmul.msk.f32.vlgmr.msrb.gmra.mxu2 %vm491_vm0, %v10190_v34 }
  0x98   : > { %8897 = vmatmul.msk.f32.gmra.mxu3 %vm491_vm0, %v10190_v34  ;;  %v1045_v34 = vld [vmem:[#allocation2 + $0xc0] sm:$0xff] }
  0x99   : > { %8855 = vmatmul.msk.f32.gmra.mxu0 %vm491_vm0, %v10334_v8 }
  0x9a   : > { %8932 = vmatmul.msk.f32.gmra.mxu1 %vm491_vm0, %v10172_v29 }
  0x9b   : > { %8950 = vmatmul.msk.f32.gmra.mxu2 %vm491_vm0, %v10206_v38 }
  0x9e   : > { %v10440_v29 = vpop.f32.mrf.mxu1 }
  0x9f   : > { %v10358_v9 = vpop.f32.mrf.mxu0 }
  0xa0   : > { %8898 = vmatmul.msk.f32.gmra.mxu3 %vm491_vm0, %v10206_v38 }
  0xa1   : > { %8913 = vmatmul.msk.f32.vlgmr.msrb.gmra.mxu0 %vm491_vm0, %v10153_v23 }
  0xa2   : > { %8933 = vmatmul.msk.f32.gmra.mxu1 %vm491_vm0, %v10192_v35 }
  0xa3   : > { %8951 = vmatmul.msk.f32.gmra.mxu2 %vm491_vm0, %v10230_v45 }
  0xa6   : > { %v10442_v31 = vpop.f32.mrf.mxu2  ;;  %v836_v38 = vpop.f32.mrf.mxu1 }
  0xa8   : > { %8899 = vmatmul.msk.f32.gmra.mxu3 %vm491_vm0, %v10230_v45 }
  0xa9   : > { %8914 = vmatmul.msk.f32.gmra.mxu0 %vm491_vm0, %v10168_v27 }
  0xaa   : > { %8934 = vmatmul.msk.f32.gmra.mxu1 %vm491_vm0, %v10208_v39 }
  0xab   : > { %8952 = vmatmul.msk.f32.gmra.mxu2 %vm491_vm0, %v10246_v49 }
  0xb0   : > { %8900 = vmatmul.msk.f32.gmra.mxu3 %vm491_vm0, %v10246_v49  ;;  %v9002_v49 = vld [vmem:[%s14329_s3 + $0x18] sm:$0xff] }
  0xb1   : > { %8915 = vmatmul.msk.f32.gmra.mxu0 %vm491_vm0, %v10188_v33  ;;  %2084 = vmatpush.msra.mxu1 %v9002_v49 }
  0xb2   : > { %8935 = vmatmul.msk.f32.gmra.mxu1 %vm491_vm0, %v10232_v46 }
  0xb3   : > { %8953 = vmatmul.msk.f32.gmra.mxu2 %vm491_vm0, %v621_v53  ;;  %v10369_v11 = vpop.f32.mrf.mxu0 }
  0xb8   : > { %8901 = vmatmul.msk.f32.gmra.mxu3 %vm491_vm0, %v621_v53  ;;  %v759_v12 = vpop.f32.mrf.mxu3 }
  0xb9   : > { %8916 = vmatmul.msk.f32.gmra.mxu0 %vm491_vm0, %v10204_v37 }
  0xba   : > { %8936 = vmatmul.msk.f32.gmra.mxu1 %vm491_vm0, %v10248_v50  ;;  %v970_v40 = vpop.f32.mrf.mxu2 }
  0xbb   : > { %8954 = vmatmul.msk.f32.gmra.mxu2 %vm491_vm0, %v622_v57 }
  0xbe   : > { %v10377_v13 = vpop.f32.mrf.mxu0 }
  0xbf   : > { %v839_v59 = vpop.f32.mrf.mxu1 }
  0xc0   : > { %8902 = vmatmul.msk.f32.gmra.mxu3 %vm491_vm0, %v622_v57  ;;  %v10468_v57 = vld [vmem:[#allocation2 + $0xc2] sm:$0xff] }
  0xc1   : > { %8917 = vmatmul.msk.f32.gmra.mxu0 %vm491_vm0, %v10228_v44 }
  0xc2   : > { %8937 = vmatmul.msk.f32.gmra.mxu1 %vm491_vm0, %v10262_v54 }
  0xc3   : > { %8955 = vmatmul.msk.f32.gmra.mxu2 %vm491_vm0, %v623_v63  ;;  %v762_v14 = vpop.f32.mrf.mxu3 }
  0xc6   : > { %v10385_v15 = vpop.f32.mrf.mxu0 }
  0xc7   : > { %v842_v18 = vpop.f32.mrf.mxu1 }
  0xc8   : > { %8903 = vmatmul.msk.f32.gmra.mxu3 %vm491_vm0, %v623_v63  ;;  %v973_v63 = vpop.f32.mrf.mxu2 }
  0xc9   : > { %8918 = vmatmul.msk.f32.gmra.mxu0 %vm491_vm0, %v10244_v48 }
  0xca   : > { %8938 = vmatmul.msk.f32.gmra.mxu1 %vm491_vm0, %v10275_v58 }
  0xcb   : > { %8956 = vmatmul.msk.f32.gmra.mxu2 %vm491_vm0, %v624_v5  ;;  %v10393_v16 = vpop.f32.mrf.mxu3 }
  0xce   : > { %v10395_v17 = vpop.f32.mrf.mxu0 }
  0xd0   : > { %8904 = vmatmul.msk.f32.gmra.mxu3 %vm491_vm0, %v624_v5  ;;  %v976_v21 = vpop.f32.mrf.mxu2 }
  0xd1   : > { %8919 = vmatmul.msk.f32.gmra.mxu0 %vm491_vm0, %v10260_v52 }
  0xd2   : > { %8939 = vmatmul.msk.f32.gmra.mxu1 %vm491_vm0, %v10296_v1 }
  0xd3   : > { %8957 = vmatmul.msk.f32.gmra.mxu2 %vm491_vm0, %v10166_v26  ;;  %v10406_v19 = vpop.f32.mrf.mxu3 }
  0xd6   : > { %v10408_v20 = vpop.f32.mrf.mxu0 }
  0xd8   : > { %8905 = vmatmul.msk.f32.gmra.mxu3 %vm491_vm0, %v10166_v26 }
  0xd9   : > { %8920 = vmatmul.msk.f32.gmra.mxu0 %vm491_vm0, %v10273_v56 }
  0xda   : > { %8940 = vmatmul.msk.f32.gmra.mxu1 %vm491_vm0, %v10315_v6 }
  0xdb   : > { %8958 = vmatmul.msk.f32.gmra.mxu2 %vm491_vm0, %v10186_v32  ;;  %v875_v23 = vpop.f32.mrf.mxu3 }
  0xdc   : > { %v876_v24 = vadd.f32 %v875_v23, %v759_v12  ;;  %v10480_v12 = vld [vmem:[#allocation2 + $0xca] sm:$0xff] }
  0xde   : > { %v10420_v25 = vpop.f32.mrf.mxu0 }
  0xe0   : > { %8906 = vmatmul.msk.f32.gmra.mxu3 %vm491_vm0, %v10186_v32 }
  0xe1   : > { %8921 = vmatmul.msk.f32.gmra.mxu0 %vm491_vm0, %v10294_v62 }
  0xe2   : > { %8941 = vmatmul.msk.f32.gmra.mxu1 %vm491_vm0, %v10242_v47 }
  0xe3   : > { %8959 = vmatmul.msk.f32.gmra.mxu2 %vm491_vm0, %v10202_v36  ;;  %v878_v26 = vpop.f32.mrf.mxu3 }
  0xe4   : > { %v879_v27 = vadd.f32 %v878_v26, %v762_v14  ;;  %v1497_v14 = vld [vmem:[#allocation2 + $0xe0] sm:$0xff] }
  0xe5   : > { %v10491_v26 = vld [vmem:[#allocation2 + $0xc1] sm:$0xff] }
  0xe6   : > { %v10430_v28 = vpop.f32.mrf.mxu0 }
  0xe8   : > { %8907 = vmatmul.msk.f32.gmra.mxu3 %vm491_vm0, %v10202_v36 }
  0xe9   : > { %8922 = vmatmul.msk.f32.gmra.mxu0 %vm491_vm0, %v10313_v4 }
  0xea   : > { %8942 = vmatmul.msk.f32.gmra.mxu1 %vm491_vm0, %v10258_v51 }
  0xeb   : > { %8960 = vmatmul.msk.f32.gmra.mxu2 %vm491_vm0, %v10226_v43  ;;  %v1003_v30 = vpop.f32.mrf.mxu3 }
  0xee   : > { %v10444_v32 = vpop.f32.mrf.mxu0 }
  0xf0   : > { %8908 = vmatmul.msk.f32.gmra.mxu3 %vm491_vm0, %v10226_v43 }
  0xf1   : > { %8923 = vmatmul.msk.f32.gmra.mxu0 %vm491_vm0, %v10324_v7 }
  0xf2   : > { %8943 = vmatmul.msk.f32.gmra.mxu1 %vm491_vm0, %v10271_v55 }
  0xf3   : > { %8961 = vmatmul.msk.f32.gmra.mxu2 %vm491_vm0, %v1045_v34  ;;  %v1006_v36 = vpop.f32.mrf.mxu3 }
  0xf6   : > { %v10453_v41 = vpop.f32.mrf.mxu0 }
  0xf8   : > { %8909 = vmatmul.msk.f32.gmra.mxu3 %vm491_vm0, %v1045_v34  ;;  %v837_v34 = vadd.f32 %v836_v38, %v10369_v11 }
  0xf9   : > { %8924 = vmatmul.msk.f32.gmra.mxu0 %vm491_vm0, %v10334_v8 }
  0xfa   : > { %8944 = vmatmul.msk.f32.gmra.mxu1 %vm491_vm0, %v10292_v61 }
  0xfb   : > { %8962 = vmatmul.msk.f32.gmra.mxu2 %vm491_vm0, %v1046_v42  ;;  %v1009_v43 = vpop.f32.mrf.mxu3 }
  0xfc   : > { %v10461_v45 = vadd.f32 %v1009_v43, %v876_v24 }
  0xfe   : > { %14411 = vst [vmem:[#allocation12_spill] sm:$0xff] %v10461_v45  ;;  %v10466_v53 = vpop.f32.mrf.mxu0  ;;  %v1985_v45 = vld [vmem:[#allocation3] sm:$0xff] }
 0x100   : > { %8910 = vmatmul.msk.f32.gmra.mxu3 %vm491_vm0, %v1046_v42  ;;  %v1016_v42 = vadd.f32 %v970_v40, %v837_v34 }
 0x101   : > { %8925 = vmatmul.msk.f32.gmra.mxu0 %vm491_vm0, %v10117_v10 }
 0x102   : > { %8945 = vmatmul.msk.f32.gmra.mxu1 %vm491_vm0, %v10468_v57 }
 0x103   : > { %8963 = vmatmul.msk.f32.gmra.mxu2 %vm491_vm0, %v1496_v60  ;;  %v1012_v2 = vpop.f32.mrf.mxu3 }
 0x104   : > { %v10476_v3 = vadd.f32 %v1012_v2, %v879_v27  ;;  %v10503_v2 = vld [vmem:[#allocation2 + $0xc9] sm:$0xff] }
 0x106   : > { %14412 = vst [vmem:[#allocation13_spill] sm:$0xff] %v10476_v3  ;;  %v10478_v5 = vpop.f32.mrf.mxu0  ;;  %v2001_v3 = vld [vmem:[%s14329_s3] sm:$0xff] }
 0x108   : > { %8967 = vmatmul.msk.f32.vlgmr.msra.gmra.mxu3 %vm491_vm0, %v10188_v33 }
 0x109   : > { %8926 = vmatmul.msk.f32.gmra.mxu0 %vm491_vm0, %v10148_v22 }
 0x10a   : > { %8946 = vmatmul.msk.f32.gmra.mxu1 %vm491_vm0, %v10480_v12 }
 0x10b   : > { %8964 = vmatmul.msk.f32.gmra.mxu2 %vm491_vm0, %v1497_v14  ;;  %v10489_v23 = vpop.f32.mrf.mxu3 }
 0x10e   : > { %v753_v24 = vpop.f32.mrf.mxu0 }
 0x10f   : > { %v870_v27 = vadd.f32 %v10393_v16, %v753_v24  ;;  %v840_v16 = vadd.f32 %v839_v59, %v10377_v13  ;;  %v843_v24 = vadd.f32 %v842_v18, %v10385_v15  ;;  %v10526_v59 = vpop.f32.mrf.mxu1 }
 0x110   : > { %8968 = vmatmul.msk.f32.gmra.mxu3 %vm491_vm0, %v10204_v37 }
 0x111   : > { %8927 = vmatmul.msk.f32.gmra.mxu0 %vm491_vm0, %v10491_v26  ;;  %v10499_v33 = vadd.f32 %v1003_v30, %v870_v27  ;;  %v1017_v11 = vadd.f32 %v973_v63, %v840_v16 }
 0x113   : > { %14413 = vst [vmem:[#allocation14_spill] sm:$0xff] %v10499_v33  ;;  %v1120_v43 = vpop.f32.mrf.mxu3 }
 0x114   : > { %v10501_v49 = vadd.f32 %v1120_v43, %v1016_v42 }
 0x116   : > { %v756_v60 = vpop.f32.mrf.mxu0 }
 0x117   : > { %v873_v14 = vadd.f32 %v10406_v19, %v756_v60 }
 0x118   : > { %8969 = vmatmul.msk.f32.gmra.mxu3 %vm491_vm0, %v10228_v44  ;;  %v1018_v44 = vadd.f32 %v976_v21, %v843_v24 }
 0x119   : > { %8928 = vmatmul.msk.f32.gmra.mxu0 %vm491_vm0, %v10503_v2  ;;  %v10511_v37 = vadd.f32 %v1006_v36, %v873_v14 }
 0x11b   : > { %14414 = vst [vmem:[#allocation15_spill] sm:$0xff] %v10511_v37  ;;  %v1123_v30 = vpop.f32.mrf.mxu3  ;;  %v1986_v37 = vld [vmem:[#allocation3 + $0x8] sm:$0xff] }
 0x11c   : > { %v10513_v38 = vadd.f32 %v1123_v30, %v1017_v11 }
 0x11e   : > { %v10515_v40 = vpop.f32.mrf.mxu0 }
 0x120   : > { %8970 = vmatmul.msk.f32.gmra.mxu3 %vm491_vm0, %v10244_v48  ;;  %v10534_v48 = vpop.f32.mrf.mxu2 }
 0x121   : > { %8985 = vmatmul.msk.f32.vlgmr.msra.gmra.mxu0 %vm491_vm0, %v10192_v35  ;;  %v10542_v35 = vpop.f32.mrf.mxu1 }
 0x123   : > { %v1126_v13 = vpop.f32.mrf.mxu3 }
 0x124   : > { %v10522_v19 = vadd.f32 %v1126_v13, %v1018_v44 }
 0x126   : > { %v10524_v36 = vpop.f32.mrf.mxu0 }
 0x128   : > { %8971 = vmatmul.msk.f32.gmra.mxu3 %vm491_vm0, %v10260_v52  ;;  %v10546_v52 = vpop.f32.mrf.mxu2 }
 0x129   : > { %8986 = vmatmul.msk.f32.gmra.mxu0 %vm491_vm0, %v10208_v39 }
 0x12b   : > { %v10532_v15 = vpop.f32.mrf.mxu3 }
 0x12e   : > { %v10536_v63 = vpop.f32.mrf.mxu0 }
 0x130   : > { %8972 = vmatmul.msk.f32.gmra.mxu3 %vm491_vm0, %v10273_v56  ;;  %v10556_v56 = vpop.f32.mrf.mxu1  ;;  %v10563_v34 = vpop.f32.mrf.mxu2 }
 0x131   : > { %8987 = vmatmul.msk.f32.gmra.mxu0 %vm491_vm0, %v10232_v46  ;;  %v9001_v46 = vld [vmem:[%s14329_s3 + $0x10] sm:$0xff] }
 0x132   : > { %2085 = vmatpush.msra.mxu1 %v9001_v46 }
 0x133   : > { %v10544_v18 = vpop.f32.mrf.mxu3 }
 0x136   : > { %v10548_v21 = vpop.f32.mrf.mxu0 }
 0x138   : > { %8973 = vmatmul.msk.f32.gmra.mxu3 %vm491_vm0, %v10294_v62  ;;  %v10571_v62 = vpop.f32.mrf.mxu1  ;;  %v10579_v43 = vpop.f32.mrf.mxu2 }
 0x139   : > { %8988 = vmatmul.msk.f32.gmra.mxu0 %vm491_vm0, %v10248_v50 }
 0x13b   : > { %v10554_v39 = vpop.f32.mrf.mxu3 }
 0x13e   : > { %v10561_v27 = vpop.f32.mrf.mxu0 }
 0x140   : > { %8974 = vmatmul.msk.f32.gmra.mxu3 %vm491_vm0, %v10313_v4  ;;  %v10585_v14 = vpop.f32.mrf.mxu1 }
 0x141   : > { %8989 = vmatmul.msk.f32.gmra.mxu0 %vm491_vm0, %v10262_v54 }
 0x143   : > { %v10569_v50 = vpop.f32.mrf.mxu3 }
 0x146   : > { %v10573_v42 = vpop.f32.mrf.mxu0 }
 0x148   : > { %8975 = vmatmul.msk.f32.gmra.mxu3 %vm491_vm0, %v10324_v7  ;;  %v10593_v7 = vpop.f32.mrf.mxu2 }
 0x149   : > { %8990 = vmatmul.msk.f32.gmra.mxu0 %vm491_vm0, %v10275_v58  ;;  %v10601_v58 = vpop.f32.mrf.mxu1 }
 0x14b   : > { %v10581_v60 = vpop.f32.mrf.mxu3 }
 0x14e   : > { %v10583_v4 = vpop.f32.mrf.mxu0 }
 0x150   : > { %8976 = vmatmul.msk.f32.gmra.mxu3 %vm491_vm0, %v10334_v8  ;;  %v10605_v8 = vpop.f32.mrf.mxu2 }
 0x151   : > { %8991 = vmatmul.msk.f32.gmra.mxu0 %vm491_vm0, %v10296_v1 }
 0x153   : > { %v10591_v54 = vpop.f32.mrf.mxu3 }
 0x156   : > { %v10595_v16 = vpop.f32.mrf.mxu0 }
 0x158   : > { %8977 = vmatmul.msk.f32.gmra.mxu3 %vm491_vm0, %v10117_v10  ;;  %v10615_v10 = vpop.f32.mrf.mxu1 }
 0x159   : > { %8992 = vmatmul.msk.f32.gmra.mxu0 %vm491_vm0, %v10315_v6  ;;  %v10619_v6 = vpop.f32.mrf.mxu2 }
 0x15b   : > { %v10603_v11 = vpop.f32.mrf.mxu3 }
 0x15e   : > { %v10607_v30 = vpop.f32.mrf.mxu0 }
 0x160   : > { %8978 = vmatmul.msk.f32.gmra.mxu3 %vm491_vm0, %v10148_v22  ;;  %v10627_v22 = vpop.f32.mrf.mxu1 }
 0x161   : > { %8993 = vmatmul.msk.f32.gmra.mxu0 %vm491_vm0, %v10242_v47  ;;  %v2002_v47 = vld [vmem:[%s14329_s3 + $0x8] sm:$0xff] }
 0x162   : > { %2197 = vmatpush.msra.mxu2 %v2002_v47 }
 0x163   : > { %v10613_v1 = vpop.f32.mrf.mxu3 }
 0x164   : > { %14415 = vst [vmem:[#allocation16_spill] sm:$0xff] %v10613_v1  ;;  %2198 = vmatpush.msra.mxu2 %v2001_v3 }
 0x165   : > { %9019 = vmatmul.msk.f32.vlgmr.msra.gmra.mxu2 %vm523_vm3, %v1985_v45 }
 0x166   : > { %v10617_v24 = vpop.f32.mrf.mxu0 }
 0x168   : > { %8979 = vmatmul.msk.f32.gmra.mxu3 %vm491_vm0, %v10491_v26  ;;  %v10657_v46 = vpop.f32.mrf.mxu1 }
 0x169   : > { %8994 = vmatmul.msk.f32.gmra.mxu0 %vm491_vm0, %v10258_v51  ;;  %v10642_v51 = vpop.f32.mrf.mxu2 }
 0x16a   : > { %14417 = vst [vmem:[#allocation18_spill] sm:$0xff] %v10642_v51 }
 0x16b   : > { %v10625_v44 = vpop.f32.mrf.mxu3 }
 0x16c   : > { %14416 = vst [vmem:[#allocation17_spill] sm:$0xff] %v10625_v44 }
 0x16d   : > { %9020 = vmatmul.msk.f32.gmra.mxu2 %vm523_vm3, %v1986_v37 }
 0x16e   : > { %v10629_v13 = vpop.f32.mrf.mxu0 }
 0x170   : > { %8980 = vmatmul.msk.f32.gmra.mxu3 %vm491_vm0, %v10503_v2  ;;  %v1646_v2 = vld [vmem:[#allocation2 + $0xd9] sm:$0xff]  ;;  %v10704_v44 = vpop.f32.mrf.mxu1 }
 0x171   : > { %8995 = vmatmul.msk.f32.gmra.mxu0 %vm491_vm0, %v10271_v55  ;;  %v9036_v55 = vld [vmem:[%s14329_s3 + $0x28] sm:$0xff]  ;;  %v10679_v3 = vpop.f32.mrf.mxu2 }
 0x172   : > { %2329 = vmatpush.msrb.mxu3 %v9036_v55  ;;  %v9035_v55 = vld [vmem:[%s14329_s3 + $0x20] sm:$0xff] }
 0x173   : > { %v10646_v26 = vpop.f32.mrf.mxu3 }
 0x174   : > { %14418 = vst [vmem:[#allocation19_spill] sm:$0xff] %v10646_v26  ;;  %2330 = vmatpush.msrb.mxu3 %v9035_v55  ;;  %v9072_v55 = vld [vmem:[%s14329_s3 + $0x48] sm:$0xff] }
 0x175   : > { %v1647_v26 = vld [vmem:[#allocation2 + $0xe1] sm:$0xff]  ;;  %2625 = vmatpush.msrb.mxu1 %v9072_v55 }
 0x176   : > { %v10659_v47 = vpop.f32.mrf.mxu0 }
 0x177   : > { %14419 = vst [vmem:[#allocation20_spill] sm:$0xff] %v10659_v47 }
 0x178   : > { %8981 = vmatmul.msk.f32.gmra.mxu3 %vm491_vm0, %v1646_v2  ;;  %v2003_v2 = vld [vmem:[#allocation3 + $0x1] sm:$0xff] }
 0x179   : > { %8996 = vmatmul.msk.f32.gmra.mxu0 %vm491_vm0, %v10292_v61  ;;  %v9054_v61 = vld [vmem:[%s14329_s3 + $0x38] sm:$0xff]  ;;  %9003 = vmatmul.msk.f32.vlgmr.msra.gmra.mxu1 %vm523_vm3, %v2003_v2  ;;  %v1423_v2 = vpop.f32.mrf.mxu1 }
 0x17a   : > { %2477 = vmatpush.msrb.mxu0 %v9054_v61 }
 0x17b   : > { %v10683_v45 = vpop.f32.mrf.mxu3 }
 0x17c   : > { %14420 = vst [vmem:[#allocation21_spill] sm:$0xff] %v10683_v45 }
 0x17e   : > { %v10698_v45 = vpop.f32.mrf.mxu0 }
 0x17f   : > { %14421 = vst [vmem:[#allocation22_spill] sm:$0xff] %v10698_v45  ;;  %v1796_v45 = vld [vmem:[#allocation2 + $0xda] sm:$0xff] }
 0x180   : > { %8982 = vmatmul.msk.f32.gmra.mxu3 %vm491_vm0, %v1647_v26  ;;  %v10720_v26 = vpop.f32.mrf.mxu2 }
 0x181   : > { %8997 = vmatmul.msk.f32.gmra.mxu0 %vm491_vm0, %v10468_v57  ;;  %v2248_v57 = vld [vmem:[#allocation3 + $0x2] sm:$0xff] }
 0x183   : > { %v10716_v61 = vpop.f32.mrf.mxu3 }
 0x184   : > { %14422 = vst [vmem:[#allocation23_spill] sm:$0xff] %v10716_v61 }
 0x186   : > { %v10726_v37 = vpop.f32.mrf.mxu0 }
 0x187   : > { %14423 = vst [vmem:[#allocation24_spill] sm:$0xff] %v10726_v37 }
 0x188   : > { %9037 = vmatmul.msk.f32.vlgmr.msrb.gmra.mxu3 %vm523_vm3, %v2248_v57  ;;  %v9053_v57 = vld [vmem:[%s14329_s3 + $0x30] sm:$0xff]  ;;  %v1574_v61 = vpop.f32.mrf.mxu2 }
 0x189   : > { %8998 = vmatmul.msk.f32.gmra.mxu0 %vm491_vm0, %v10480_v12  ;;  %v834_v12 = vadd.f32 %v10440_v29, %v10358_v9 }
 0x18a   : > { %2478 = vmatpush.msrb.mxu0 %v9053_v57  ;;  %v1426_v57 = vpop.f32.mrf.mxu1 }
 0x18b   : > { %v1718_v55 = vpop.f32.mrf.mxu3  ;;  %v1015_v33 = vadd.f32 %v10442_v31, %v834_v12 }
 0x18d   : > { %v1165_v9 = vadd.f32 %v10489_v23, %v1015_v33  ;;  %v1797_v33 = vld [vmem:[#allocation2 + $0xe2] sm:$0xff] }
 0x18e   : > { %v10752_v37 = vpop.f32.mrf.mxu0 }
 0x18f   : > { %14424 = vst [vmem:[#allocation25_spill] sm:$0xff] %v10752_v37  ;;  %v1315_v29 = vadd.f32 %v10515_v40, %v1165_v9 }
 0x190   : > { %v1577_v40 = vpop.f32.mrf.mxu2 }
 0x191   : > { %8999 = vmatmul.msk.f32.gmra.mxu0 %vm491_vm0, %v1796_v45  ;;  %v1465_v45 = vadd.f32 %v10657_v46, %v1315_v29  ;;  %v1316_v46 = vadd.f32 %v10524_v36, %v10501_v49  ;;  %v2249_v29 = vld [vmem:[#allocation3 + $0xa] sm:$0xff] }
 0x192   : > { %9038 = vmatmul.msk.f32.gmra.mxu3 %vm523_vm3, %v2249_v29  ;;  %v1429_v49 = vpop.f32.mrf.mxu1 }
 0x193   : > { %v1721_v31 = vpop.f32.mrf.mxu3  ;;  %v1616_v12 = vadd.f32 %v10679_v3, %v1465_v45  ;;  %v10800_v3 = vld [vmem:[%s14328_s2] ss:$0 sm:$0xff]  ;;  %v1466_v45 = vadd.f32 %v10704_v44, %v1316_v46 }
 0x196   : > { %v10774_v23 = vpop.f32.mrf.mxu0 }
 0x197   : > { %14425 = vst [vmem:[#allocation26_spill] sm:$0xff] %v10774_v23  ;;  %v2004_v23 = vld [vmem:[#allocation3 + $0x9] sm:$0xff] }
 0x198   : > { %9004 = vmatmul.msk.f32.gmra.mxu1 %vm523_vm3, %v2004_v23  ;;  %v1580_v47 = vpop.f32.mrf.mxu2  ;;  %v1617_v23 = vadd.f32 %v10720_v26, %v1466_v45  ;;  %v1318_v26 = vadd.f32 %v10548_v21, %v10522_v19 }
 0x199   : > { %9000 = vmatmul.msk.f32.gmra.mxu0 %vm491_vm0, %v1797_v33  ;;  %v1766_v33 = vadd.f32 %v1718_v55, %v1616_v12  ;;  %v1317_v55 = vadd.f32 %v10536_v63, %v10513_v38 }
 0x19a   : > { %v1767_v51 = vadd.f32 %v1721_v31, %v1617_v23  ;;  %v1468_v21 = vadd.f32 %v1426_v57, %v1318_v26 }
 0x19b   : > { %v1724_v9 = vpop.f32.mrf.mxu3  ;;  %v1467_v44 = vadd.f32 %v1423_v2, %v1317_v55 }
 0x19e   : > { %v1868_v36 = vpop.f32.mrf.mxu0 }
 0x19f   : > { %v1916_v37 = vadd.f32 %v1868_v36, %v1766_v33  ;;  %v1432_v33 = vpop.f32.mrf.mxu1  ;;  %v1618_v36 = vadd.f32 %v1574_v61, %v1467_v44 }
 0x1a0   : > { %v1583_v45 = vpop.f32.mrf.mxu2 }
 0x1a1   : > { %v10806_v29 = vadd.f32 %v10800_v3, %v1916_v37  ;;  %v1768_v2 = vadd.f32 %v1724_v9, %v1618_v36  ;;  %v1619_v9 = vadd.f32 %v1577_v40, %v1468_v21 }
 0x1a3   : > { %14426 = vst [vmem:[#allocation27_spill] sm:$0xff] %v10806_v29  ;;  %v14342_v12 = vmax.f32 %v10806_v29, 0.0  ;;  %v1727_v1 = vpop.f32.mrf.mxu3 }
 0x1a5   : > { %1969 = vst.msk [vmem:[#allocation3 + $0x19] sm:$0xff] %vm523_vm3, %v14342_v12  ;;  %v846_v12 = vadd.f32 %v10526_v59, %v10395_v17 }
 0x1a6   : > { %v1871_v0 = vpop.f32.mrf.mxu0 }
 0x1a7   : > { %v1917_v46 = vadd.f32 %v1871_v0, %v1767_v51  ;;  %v1019_v19 = vadd.f32 %v10534_v48, %v846_v12  ;;  %v10837_v59 = vpop.f32.mrf.mxu1  ;;  %v849_v48 = vadd.f32 %v10542_v35, %v10408_v20 }
 0x1a9   : > { %v10816_v37 = vadd.f32 %v10800_v3, %v1917_v46  ;;  %v1169_v61 = vadd.f32 %v10532_v15, %v1019_v19  ;;  %v1769_v15 = vadd.f32 %v1727_v1, %v1619_v9  ;;  %v1020_v40 = vadd.f32 %v10546_v52, %v849_v48 }
 0x1aa   : > { %v852_v52 = vadd.f32 %v10556_v56, %v10420_v25  ;;  %v9071_v56 = vld [vmem:[%s14329_s3 + $0x40] sm:$0xff] }
 0x1ab   : > { %14427 = vst [vmem:[#allocation28_spill] sm:$0xff] %v10816_v37  ;;  %v14343_v38 = vmax.f32 %v10816_v37, 0.0  ;;  %v1730_v63 = vpop.f32.mrf.mxu3  ;;  %v1319_v55 = vadd.f32 %v10561_v27, %v1169_v61  ;;  %v1586_v27 = vpop.f32.mrf.mxu2  ;;  %v1170_v1 = vadd.f32 %v10544_v18, %v1020_v40  ;;  %2626 = vmatpush.msrb.mxu1 %v9071_v56 }
 0x1ac   : > { %v10821_v31 = vld [vmem:[#allocation3 + $0x19] sm:$0xff] }
 0x1ad   : > { %v1987_v23 = vld [vmem:[#allocation3 + $0x18] sm:$0xff]  ;;  %1970 = vst.msk [vmem:[#allocation3 + $0x21] sm:$0xff] %vm523_vm3, %v14343_v38  ;;  %9005 = vmatmul.msk.f32.gmra.mxu1 %vm523_vm3, %v10821_v31  ;;  %v1469_v20 = vadd.f32 %v1429_v49, %v1319_v55 }
 0x1ae   : > { %9021 = vmatmul.msk.f32.gmra.mxu2 %vm523_vm3, %v1987_v23  ;;  %9055 = vmatmul.msk.f32.vlgmr.msrb.gmra.mxu0 %vm523_vm3, %v1987_v23  ;;  %v1874_v0 = vpop.f32.mrf.mxu0 }
 0x1af   : > { %v1918_v51 = vadd.f32 %v1874_v0, %v1768_v2  ;;  %v1620_v26 = vadd.f32 %v1580_v47, %v1469_v20  ;;  %v1320_v2 = vadd.f32 %v10573_v42, %v1170_v1  ;;  %v1438_v21 = vpop.f32.mrf.mxu1  ;;  %v1021_v42 = vadd.f32 %v10563_v34, %v852_v52 }
 0x1b1   : > { %v10835_v17 = vadd.f32 %v10800_v3, %v1918_v51  ;;  %v1770_v49 = vadd.f32 %v1730_v63, %v1620_v26  ;;  %v1470_v47 = vadd.f32 %v1432_v33, %v1320_v2  ;;  %v1171_v55 = vadd.f32 %v10554_v39, %v1021_v42 }
 0x1b2   : > { %v855_v33 = vadd.f32 %v10571_v62, %v10430_v28 }
 0x1b3   : > { %14428 = vst [vmem:[#allocation29_spill] sm:$0xff] %v10835_v17  ;;  %v14354_v44 = vmax.f32 %v10835_v17, 0.0  ;;  %v1733_v46 = vpop.f32.mrf.mxu3  ;;  %v1589_v9 = vpop.f32.mrf.mxu2  ;;  %v1621_v48 = vadd.f32 %v1583_v45, %v1470_v47 }
 0x1b4   : > { %v10841_v36 = vld [vmem:[#allocation3 + $0x21] sm:$0xff]  ;;  %v1022_v28 = vadd.f32 %v10579_v43, %v855_v33  ;;  %v858_v43 = vadd.f32 %v10585_v14, %v10444_v32 }
 0x1b5   : > { %v1988_v23 = vld [vmem:[#allocation3 + $0x20] sm:$0xff]  ;;  %1971 = vst.msk [vmem:[#allocation3 + $0x31] sm:$0xff] %vm523_vm3, %v14354_v44  ;;  %9006 = vmatmul.msk.f32.gmra.mxu1 %vm523_vm3, %v10841_v36  ;;  %v1771_v1 = vadd.f32 %v1733_v46, %v1621_v48 }
 0x1b6   : > { %v10843_v38 = vld [vmem:[#allocation3 + $0x1a] sm:$0xff]  ;;  %9022 = vmatmul.msk.f32.gmra.mxu2 %vm523_vm3, %v1988_v23  ;;  %9056 = vmatmul.msk.f32.gmra.mxu0 %vm523_vm3, %v1988_v23  ;;  %v1877_v57 = vpop.f32.mrf.mxu0  ;;  %v10876_v18 = vld [vmem:[#allocation3 + $0x22] sm:$0xff]  ;;  %v1172_v46 = vadd.f32 %v10569_v50, %v1022_v28  ;;  %v1023_v14 = vadd.f32 %v10593_v7, %v858_v43  ;;  %v861_v7 = vadd.f32 %v10601_v58, %v10453_v41 }
 0x1b7   : > { %9039 = vmatmul.msk.f32.gmra.mxu3 %vm523_vm3, %v10843_v38  ;;  %v1919_v35 = vadd.f32 %v1877_v57, %v1769_v15  ;;  %v1321_v15 = vadd.f32 %v10583_v4, %v1171_v55  ;;  %v1441_v39 = vpop.f32.mrf.mxu1 }
 0x1b8   : > { %v1024_v41 = vadd.f32 %v10605_v8, %v861_v7  ;;  %v864_v8 = vadd.f32 %v10615_v10, %v10466_v53 }
 0x1b9   : > { %v10859_v12 = vadd.f32 %v10800_v3, %v1919_v35  ;;  %v1471_v62 = vadd.f32 %v10837_v59, %v1321_v15 }
 0x1ba   : > { %v1025_v10 = vadd.f32 %v10619_v6, %v864_v8  ;;  %v867_v6 = vadd.f32 %v10627_v22, %v10478_v5  ;;  %v14438_v8 = vld [vmem:[#allocation20_spill] sm:$0xff] }
 0x1bb   : > { %14429 = vst [vmem:[#allocation30_spill] sm:$0xff] %v10859_v12  ;;  %v14352_v0 = vmax.f32 %v10859_v12, 0.0  ;;  %v1736_v19 = vpop.f32.mrf.mxu3  ;;  %v1592_v2 = vpop.f32.mrf.mxu2  ;;  %v1622_v52 = vadd.f32 %v1586_v27, %v1471_v62 }
 0x1bc   : > { %v10863_v51 = vld [vmem:[#allocation3 + $0x31] sm:$0xff] }
 0x1bd   : > { %v10865_v61 = vld [vmem:[#allocation3 + $0x30] sm:$0xff]  ;;  %1972 = vst.msk [vmem:[#allocation3 + $0x39] sm:$0xff] %vm523_vm3, %v14352_v0  ;;  %9007 = vmatmul.msk.f32.gmra.mxu1 %vm523_vm3, %v10863_v51  ;;  %v1772_v59 = vadd.f32 %v1736_v19, %v1622_v52 }
 0x1be   : > { %9023 = vmatmul.msk.f32.gmra.mxu2 %vm523_vm3, %v10865_v61  ;;  %9057 = vmatmul.msk.f32.gmra.mxu0 %vm523_vm3, %v10865_v61  ;;  %v1880_v25 = vpop.f32.mrf.mxu0 }
 0x1bf   : > { %9040 = vmatmul.msk.f32.gmra.mxu3 %vm523_vm3, %v10876_v18  ;;  %v1920_v63 = vadd.f32 %v1880_v25, %v1770_v49  ;;  %v1322_v49 = vadd.f32 %v10595_v16, %v1172_v46  ;;  %v1444_v19 = vpop.f32.mrf.mxu1 }
 0x1c1   : > { %v10888_v23 = vadd.f32 %v10800_v3, %v1920_v63  ;;  %v1472_v16 = vadd.f32 %v1438_v21, %v1322_v49  ;;  %v1173_v63 = vadd.f32 %v10581_v60, %v1023_v14 }
 0x1c3   : > { %14430 = vst [vmem:[#allocation31_spill] sm:$0xff] %v10888_v23  ;;  %v14351_v57 = vmax.f32 %v10888_v23, 0.0  ;;  %v1739_v40 = vpop.f32.mrf.mxu3  ;;  %v1623_v48 = vadd.f32 %v1589_v9, %v1472_v16  ;;  %v1323_v15 = vadd.f32 %v10607_v30, %v1173_v63  ;;  %v1175_v16 = vadd.f32 %v10603_v11, %v1025_v10 }
 0x1c4   : > { %v10892_v20 = vld [vmem:[#allocation3 + $0x39] sm:$0xff] }
 0x1c5   : > { %v10894_v35 = vld [vmem:[#allocation3 + $0x38] sm:$0xff]  ;;  %1973 = vst.msk [vmem:[#allocation3 + $0x49] sm:$0xff] %vm523_vm3, %v14351_v57  ;;  %9008 = vmatmul.msk.f32.gmra.mxu1 %vm523_vm3, %v10892_v20  ;;  %v1773_v21 = vadd.f32 %v1739_v40, %v1623_v48  ;;  %v1473_v58 = vadd.f32 %v1441_v39, %v1323_v15  ;;  %v1174_v40 = vadd.f32 %v10591_v54, %v1024_v41  ;;  %v14450_v57 = vld [vmem:[#allocation25_spill] sm:$0xff] }
 0x1c6   : > { %v10896_v34 = vld [vmem:[#allocation3 + $0x32] sm:$0xff]  ;;  %9024 = vmatmul.msk.f32.gmra.mxu2 %vm523_vm3, %v10894_v35  ;;  %9058 = vmatmul.msk.f32.gmra.mxu0 %vm523_vm3, %v10894_v35  ;;  %v1883_v4 = vpop.f32.mrf.mxu0  ;;  %v10932_v50 = vld [vmem:[#allocation3 + $0x3a] sm:$0xff]  ;;  %v1325_v48 = vadd.f32 %v10629_v13, %v1175_v16 }
 0x1c7   : > { %9041 = vmatmul.msk.f32.gmra.mxu3 %vm523_vm3, %v10896_v34  ;;  %v1921_v45 = vadd.f32 %v1883_v4, %v1771_v1  ;;  %v1595_v1 = vpop.f32.mrf.mxu2  ;;  %v1447_v46 = vpop.f32.mrf.mxu1  ;;  %v1624_v52 = vadd.f32 %v1592_v2, %v1473_v58  ;;  %v1324_v49 = vadd.f32 %v10617_v24, %v1174_v40  ;;  %v14435_v13 = vld [vmem:[#allocation18_spill] sm:$0xff]  ;;  %v14436_v58 = vld [vmem:[#allocation16_spill] sm:$0xff] }
 0x1c8   : > { %v1026_v5 = vadd.f32 %v14435_v13, %v867_v6  ;;  %v1475_v22 = vadd.f32 %v1447_v46, %v1325_v48  ;;  %v14439_v48 = vld [vmem:[#allocation14_spill] sm:$0xff]  ;;  %v14440_v6 = vld [vmem:[#allocation17_spill] sm:$0xff] }
 0x1c9   : > { %v10915_v26 = vadd.f32 %v10800_v3, %v1921_v45  ;;  %v1474_v2 = vadd.f32 %v1444_v19, %v1324_v49 }
 0x1cb   : > { %14431 = vst [vmem:[#allocation32_spill] sm:$0xff] %v10915_v26  ;;  %v14349_v25 = vmax.f32 %v10915_v26, 0.0  ;;  %v1742_v56 = vpop.f32.mrf.mxu3  ;;  %v1625_v63 = vadd.f32 %v1595_v1, %v1474_v2 }
 0x1cc   : > { %v10919_v42 = vld [vmem:[#allocation3 + $0x49] sm:$0xff]  ;;  %v1774_v39 = vadd.f32 %v1742_v56, %v1624_v52 }
 0x1cd   : > { %v10921_v47 = vld [vmem:[#allocation3 + $0x48] sm:$0xff]  ;;  %1974 = vst.msk [vmem:[#allocation3 + $0x51] sm:$0xff] %vm523_vm3, %v14349_v25  ;;  %9009 = vmatmul.msk.f32.gmra.mxu1 %vm523_vm3, %v10919_v42 }
 0x1ce   : > { %9025 = vmatmul.msk.f32.gmra.mxu2 %vm523_vm3, %v10921_v47  ;;  %9059 = vmatmul.msk.f32.gmra.mxu0 %vm523_vm3, %v10921_v47  ;;  %v1886_v32 = vpop.f32.mrf.mxu0 }
 0x1cf   : > { %9042 = vmatmul.msk.f32.gmra.mxu3 %vm523_vm3, %v10932_v50  ;;  %v1922_v27 = vadd.f32 %v1886_v32, %v1772_v59  ;;  %v1598_v24 = vpop.f32.mrf.mxu2  ;;  %v1450_v7 = vpop.f32.mrf.mxu1 }
 0x1d0   : > { %v1626_v49 = vadd.f32 %v1598_v24, %v1475_v22  ;;  %v14442_v22 = vld [vmem:[#allocation22_spill] sm:$0xff] }
 0x1d1   : > { %v10941_v55 = vadd.f32 %v10800_v3, %v1922_v27 }
 0x1d3   : > { %14432 = vst [vmem:[#allocation33_spill] sm:$0xff] %v10941_v55  ;;  %v14348_v33 = vmax.f32 %v10941_v55, 0.0  ;;  %v1745_v60 = vpop.f32.mrf.mxu3 }
 0x1d4   : > { %v10945_v4 = vld [vmem:[#allocation3 + $0x51] sm:$0xff]  ;;  %v1775_v19 = vadd.f32 %v1745_v60, %v1625_v63 }
 0x1d5   : > { %v10947_v28 = vld [vmem:[#allocation3 + $0x50] sm:$0xff]  ;;  %1975 = vst.msk [vmem:[#allocation3 + $0x61] sm:$0xff] %vm523_vm3, %v14348_v33  ;;  %9010 = vmatmul.msk.f32.gmra.mxu1 %vm523_vm3, %v10945_v4 }
 0x1d6   : > { %v10949_v62 = vld [vmem:[#allocation3 + $0x4a] sm:$0xff]  ;;  %9026 = vmatmul.msk.f32.gmra.mxu2 %vm523_vm3, %v10947_v28  ;;  %9060 = vmatmul.msk.f32.gmra.mxu0 %vm523_vm3, %v10947_v28  ;;  %v1889_v30 = vpop.f32.mrf.mxu0  ;;  %v10984_v54 = vld [vmem:[#allocation3 + $0x52] sm:$0xff] }
 0x1d7   : > { %9043 = vmatmul.msk.f32.gmra.mxu3 %vm523_vm3, %v10949_v62  ;;  %v1923_v9 = vadd.f32 %v1889_v30, %v1773_v21  ;;  %v1601_v60 = vpop.f32.mrf.mxu2  ;;  %v1453_v24 = vpop.f32.mrf.mxu1 }
 0x1d9   : > { %v10967_v45 = vadd.f32 %v10800_v3, %v1923_v9  ;;  %v1176_v9 = vadd.f32 %v14436_v58, %v1026_v5 }
 0x1db   : > { %14433 = vst [vmem:[#allocation34_spill] sm:$0xff] %v10967_v45  ;;  %v14347_v43 = vmax.f32 %v10967_v45, 0.0  ;;  %v1748_v14 = vpop.f32.mrf.mxu3 }
 0x1dc   : > { %v10971_v59 = vld [vmem:[#allocation3 + $0x61] sm:$0xff] }
 0x1dd   : > { %v10973_v32 = vld [vmem:[#allocation3 + $0x60] sm:$0xff]  ;;  %1976 = vst.msk [vmem:[#allocation3 + $0x69] sm:$0xff] %vm523_vm3, %v14347_v43  ;;  %9011 = vmatmul.msk.f32.gmra.mxu1 %vm523_vm3, %v10971_v59 }
 0x1de   : > { %9027 = vmatmul.msk.f32.gmra.mxu2 %vm523_vm3, %v10973_v32  ;;  %9061 = vmatmul.msk.f32.gmra.mxu0 %vm523_vm3, %v10973_v32  ;;  %v1892_v53 = vpop.f32.mrf.mxu0 }
 0x1df   : > { %9044 = vmatmul.msk.f32.gmra.mxu3 %vm523_vm3, %v10984_v54  ;;  %v1924_v56 = vadd.f32 %v1892_v53, %v1774_v39  ;;  %v1326_v39 = vadd.f32 %v14438_v8, %v1176_v9  ;;  %v1604_v13 = vpop.f32.mrf.mxu2 }
 0x1e1   : > { %v10993_v27 = vadd.f32 %v10800_v3, %v1924_v56  ;;  %v1776_v56 = vadd.f32 %v1748_v14, %v1626_v49  ;;  %v1476_v16 = vadd.f32 %v1450_v7, %v1326_v39  ;;  %v9108_v39 = vld [vmem:[%s14329_s3 + $0x68] sm:$0xff] }
 0x1e2   : > { %2922 = vmatpush.msra.mxu3 %v9108_v39  ;;  %v9144_v39 = vld [vmem:[%s14329_s3 + $0x88] sm:$0xff] }
 0x1e3   : > { %14434 = vst [vmem:[#allocation35_spill] sm:$0xff] %v10993_v27  ;;  %v14346_v15 = vmax.f32 %v10993_v27, 0.0  ;;  %v1751_v52 = vpop.f32.mrf.mxu3  ;;  %v1627_v5 = vadd.f32 %v1601_v60, %v1476_v16  ;;  %v9090_v60 = vld [vmem:[%s14329_s3 + $0x58] sm:$0xff]  ;;  %v1456_v16 = vpop.f32.mrf.mxu1  ;;  %3218 = vmatpush.msra.mxu1 %v9144_v39  ;;  %v14451_v39 = vld [vmem:[#allocation13_spill] sm:$0xff] }
 0x1e4   : > { %v10997_v21 = vld [vmem:[#allocation3 + $0x69] sm:$0xff]  ;;  %2773 = vmatpush.msrb.mxu2 %v9090_v60 }
 0x1e5   : > { %v10999_v30 = vld [vmem:[#allocation3 + $0x68] sm:$0xff]  ;;  %1977 = vst.msk [vmem:[#allocation3 + $0x79] sm:$0xff] %vm523_vm3, %v14346_v15  ;;  %9012 = vmatmul.msk.f32.gmra.mxu1 %vm523_vm3, %v10997_v21  ;;  %v1777_v7 = vadd.f32 %v1751_v52, %v1627_v5 }
 0x1e6   : > { %v11001_v41 = vld [vmem:[#allocation3 + $0x62] sm:$0xff]  ;;  %9028 = vmatmul.msk.f32.gmra.mxu2 %vm523_vm3, %v10999_v30  ;;  %9062 = vmatmul.msk.f32.gmra.mxu0 %vm523_vm3, %v10999_v30  ;;  %v1895_v11 = vpop.f32.mrf.mxu0  ;;  %v11034_v46 = vld [vmem:[#allocation3 + $0x6a] sm:$0xff] }
 0x1e7   : > { %9045 = vmatmul.msk.f32.gmra.mxu3 %vm523_vm3, %v11001_v41  ;;  %v1925_v1 = vadd.f32 %v1895_v11, %v1775_v19  ;;  %v1177_v19 = vadd.f32 %v14440_v6, %v14439_v48  ;;  %v14444_v48 = vld [vmem:[#allocation19_spill] sm:$0xff]  ;;  %v1607_v43 = vpop.f32.mrf.mxu2 }
 0x1e9   : > { %v11019_v40 = vadd.f32 %v10800_v3, %v1925_v1  ;;  %v1327_v1 = vadd.f32 %v14442_v22, %v1177_v19  ;;  %v14446_v22 = vld [vmem:[#allocation24_spill] sm:$0xff] }
 0x1eb   : > { %14437 = vst [vmem:[#allocation18_spill] sm:$0xff] %v11019_v40  ;;  %v14344_v53 = vmax.f32 %v11019_v40, 0.0  ;;  %v1754_v9 = vpop.f32.mrf.mxu3 }
 0x1ec   : > { %v11023_v10 = vld [vmem:[#allocation3 + $0x79] sm:$0xff] }
 0x1ed   : > { %v11025_v2 = vld [vmem:[#allocation3 + $0x78] sm:$0xff]  ;;  %1978 = vst.msk [vmem:[#allocation3 + $0x81] sm:$0xff] %vm523_vm3, %v14344_v53  ;;  %9013 = vmatmul.msk.f32.gmra.mxu1 %vm523_vm3, %v11023_v10 }
 0x1ee   : > { %9029 = vmatmul.msk.f32.gmra.mxu2 %vm523_vm3, %v11025_v2  ;;  %9063 = vmatmul.msk.f32.gmra.mxu0 %vm523_vm3, %v11025_v2  ;;  %v1898_v14 = vpop.f32.mrf.mxu0 }
 0x1ef   : > { %9046 = vmatmul.msk.f32.gmra.mxu3 %vm523_vm3, %v11034_v46  ;;  %v1926_v63 = vadd.f32 %v1898_v14, %v1776_v56  ;;  %v1477_v56 = vadd.f32 %v1453_v24, %v1327_v1  ;;  %v9089_v24 = vld [vmem:[%s14329_s3 + $0x50] sm:$0xff] }
 0x1f0   : > { %2774 = vmatpush.msrb.mxu2 %v9089_v24 }
 0x1f1   : > { %v11043_v11 = vadd.f32 %v10800_v3, %v1926_v63  ;;  %v14443_v63 = vld [vmem:[#allocation15_spill] sm:$0xff]  ;;  %v1628_v5 = vadd.f32 %v1604_v13, %v1477_v56 }
 0x1f2   : > { %v1178_v6 = vadd.f32 %v14444_v48, %v14443_v63  ;;  %v14447_v63 = vld [vmem:[#allocation12_spill] sm:$0xff]  ;;  %v14448_v48 = vld [vmem:[#allocation21_spill] sm:$0xff] }
 0x1f3   : > { %14441 = vst [vmem:[#allocation16_spill] sm:$0xff] %v11043_v11  ;;  %v14345_v58 = vmax.f32 %v11043_v11, 0.0  ;;  %v1778_v1 = vadd.f32 %v1754_v9, %v1628_v5  ;;  %v1757_v60 = vpop.f32.mrf.mxu3  ;;  %v3372_v11 = vld [vmem:[#allocation5 + $0x10] sm:$0xff] }
 0x1f4   : > { %v11047_v49 = vld [vmem:[#allocation3 + $0x81] sm:$0xff] }
 0x1f5   : > { %v11049_v8 = vld [vmem:[#allocation3 + $0x80] sm:$0xff]  ;;  %1979 = vst.msk [vmem:[#allocation3 + $0x91] sm:$0xff] %vm523_vm3, %v14345_v58  ;;  %9014 = vmatmul.msk.f32.gmra.mxu1 %vm523_vm3, %v11047_v49  ;;  %v1328_v58 = vadd.f32 %v14446_v22, %v1178_v6  ;;  %v1179_v6 = vadd.f32 %v14448_v48, %v14447_v63  ;;  %v1459_v22 = vpop.f32.mrf.mxu1  ;;  %v14454_v48 = vld [vmem:[#allocation26_spill] sm:$0xff] }
 0x1f6   : > { %v11051_v53 = vld [vmem:[#allocation3 + $0x7a] sm:$0xff]  ;;  %9030 = vmatmul.msk.f32.gmra.mxu2 %vm523_vm3, %v11049_v8  ;;  %9064 = vmatmul.msk.f32.gmra.mxu0 %vm523_vm3, %v11049_v8  ;;  %v1901_v52 = vpop.f32.mrf.mxu0  ;;  %v11091_v13 = vld [vmem:[#allocation3 + $0x82] sm:$0xff] }
 0x1f7   : > { %9047 = vmatmul.msk.f32.gmra.mxu3 %vm523_vm3, %v11051_v53  ;;  %v1927_v14 = vadd.f32 %v1901_v52, %v1777_v7  ;;  %v9126_v7 = vld [vmem:[%s14329_s3 + $0x78] sm:$0xff]  ;;  %v1478_v52 = vadd.f32 %v1456_v16, %v1328_v58  ;;  %v1329_v0 = vadd.f32 %v14450_v57, %v1179_v6  ;;  %v1610_v57 = vpop.f32.mrf.mxu2 }
 0x1f8   : > { %3070 = vmatpush.msra.mxu0 %v9126_v7 }
 0x1f9   : > { %v11073_v19 = vadd.f32 %v10800_v3, %v1927_v14  ;;  %v9107_v14 = vld [vmem:[%s14329_s3 + $0x60] sm:$0xff] }
 0x1fa   : > { %2923 = vmatpush.msra.mxu3 %v9107_v14 }
 0x1fb   : > { %14445 = vst [vmem:[#allocation20_spill] sm:$0xff] %v11073_v19  ;;  %v14350_v15 = vmax.f32 %v11073_v19, 0.0 }
 0x1fc   : > { %v11077_v33 = vld [vmem:[#allocation3 + $0x91] sm:$0xff] }
 0x1fd   : > { %v11079_v25 = vld [vmem:[#allocation3 + $0x90] sm:$0xff]  ;;  %1980 = vst.msk [vmem:[#allocation3 + $0x99] sm:$0xff] %vm523_vm3, %v14350_v15  ;;  %9015 = vmatmul.msk.f32.gmra.mxu1 %vm523_vm3, %v11077_v33  ;;  %v1629_v15 = vadd.f32 %v1607_v43, %v1478_v52  ;;  %v14452_v52 = vld [vmem:[#allocation23_spill] sm:$0xff]  ;;  %v1462_v44 = vpop.f32.mrf.mxu1 }
 0x1fe   : > { %9031 = vmatmul.msk.f32.gmra.mxu2 %vm523_vm3, %v11079_v25  ;;  %9065 = vmatmul.msk.f32.gmra.mxu0 %vm523_vm3, %v11079_v25  ;;  %v1904_v9 = vpop.f32.mrf.mxu0 }
 0x1ff   : > { %9048 = vmatmul.msk.f32.gmra.mxu3 %vm523_vm3, %v11091_v13  ;;  %v1928_v56 = vadd.f32 %v1904_v9, %v1778_v1  ;;  %v1779_v7 = vadd.f32 %v1757_v60, %v1629_v15  ;;  %v1479_v9 = vadd.f32 %v1459_v22, %v1329_v0  ;;  %v1760_v60 = vpop.f32.mrf.mxu3  ;;  %v9125_v0 = vld [vmem:[%s14329_s3 + $0x70] sm:$0xff] }
 0x200   : > { %3071 = vmatpush.msra.mxu0 %v9125_v0 }
 0x201   : > { %v11109_v5 = vadd.f32 %v10800_v3, %v1928_v56  ;;  %v1180_v56 = vadd.f32 %v14452_v52, %v14451_v39  ;;  %v1630_v63 = vadd.f32 %v1610_v57, %v1479_v9 }
 0x203   : > { %14449 = vst [vmem:[#allocation14_spill] sm:$0xff] %v11109_v5  ;;  %v14353_v58 = vmax.f32 %v11109_v5, 0.0  ;;  %v1330_v6 = vadd.f32 %v14454_v48, %v1180_v56  ;;  %v1780_v22 = vadd.f32 %v1760_v60, %v1630_v63 }
 0x204   : > { %v11113_v16 = vld [vmem:[#allocation3 + $0x99] sm:$0xff] }
 0x205   : > { %v11115_v24 = vld [vmem:[#allocation3 + $0x98] sm:$0xff]  ;;  %1981 = vst.msk [vmem:[#allocation3 + $0xa9] sm:$0xff] %vm523_vm3, %v14353_v58  ;;  %9016 = vmatmul.msk.f32.gmra.mxu1 %vm523_vm3, %v11113_v16 }
 0x206   : > { %v11117_v1 = vld [vmem:[#allocation3 + $0x92] sm:$0xff]  ;;  %9032 = vmatmul.msk.f32.gmra.mxu2 %vm523_vm3, %v11115_v24  ;;  %9066 = vmatmul.msk.f32.gmra.mxu0 %vm523_vm3, %v11115_v24  ;;  %v1907_v43 = vpop.f32.mrf.mxu0 }
 0x207   : > { %9049 = vmatmul.msk.f32.gmra.mxu3 %vm523_vm3, %v11117_v1  ;;  %v1929_v15 = vadd.f32 %v1907_v43, %v1779_v7  ;;  %v11151_v7 = vld [vmem:[#allocation3 + $0x9a] sm:$0xff]  ;;  %v1480_v43 = vadd.f32 %v1462_v44, %v1330_v6  ;;  %v1763_v39 = vpop.f32.mrf.mxu3  ;;  %v11178_v6 = vpop.f32.mrf.mxu1 }
 0x209   : > { %v11133_v14 = vadd.f32 %v10800_v3, %v1929_v15  ;;  %v1613_v15 = vpop.f32.mrf.mxu2 }
 0x20a   : > { %v1631_v52 = vadd.f32 %v1613_v15, %v1480_v43 }
 0x20b   : > { %14453 = vst [vmem:[#allocation17_spill] sm:$0xff] %v11133_v14  ;;  %v14357_v58 = vmax.f32 %v11133_v14, 0.0 }
 0x20c   : > { %v11137_v5 = vld [vmem:[#allocation3 + $0xa9] sm:$0xff]  ;;  %v1781_v14 = vadd.f32 %v1763_v39, %v1631_v52 }
 0x20d   : > { %v11139_v19 = vld [vmem:[#allocation3 + $0xa8] sm:$0xff]  ;;  %1982 = vst.msk [vmem:[#allocation3 + $0xb1] sm:$0xff] %vm523_vm3, %v14357_v58  ;;  %9017 = vmatmul.msk.f32.gmra.mxu1 %vm523_vm3, %v11137_v5 }
 0x20e   : > { %9033 = vmatmul.msk.f32.gmra.mxu2 %vm523_vm3, %v11139_v19  ;;  %9067 = vmatmul.msk.f32.gmra.mxu0 %vm523_vm3, %v11139_v19  ;;  %v1910_v57 = vpop.f32.mrf.mxu0 }
 0x20f   : > { %9050 = vmatmul.msk.f32.gmra.mxu3 %vm523_vm3, %v11151_v7  ;;  %v1930_v9 = vadd.f32 %v1910_v57, %v1780_v22 }
 0x211   : > { %v11158_v60 = vadd.f32 %v10800_v3, %v1930_v9 }
 0x213   : > { %14455 = vst [vmem:[#allocation22_spill] sm:$0xff] %v11158_v60  ;;  %v14360_v56 = vmax.f32 %v11158_v60, 0.0 }
 0x214   : > { %v11161_v63 = vld [vmem:[#allocation3 + $0xb1] sm:$0xff] }
 0x215   : > { %v11163_v48 = vld [vmem:[#allocation3 + $0xb0] sm:$0xff]  ;;  %1983 = vst.msk [vmem:[#allocation3 + $0xc1] sm:$0xff] %vm523_vm3, %v14360_v56  ;;  %9018 = vmatmul.msk.f32.gmra.mxu1 %vm523_vm3, %v11161_v63 }
 0x216   : > { %v11165_v58 = vld [vmem:[#allocation3 + $0xaa] sm:$0xff]  ;;  %9034 = vmatmul.msk.f32.gmra.mxu2 %vm523_vm3, %v11163_v48  ;;  %9068 = vmatmul.msk.f32.gmra.mxu0 %vm523_vm3, %v11163_v48  ;;  %v1913_v44 = vpop.f32.mrf.mxu0  ;;  %v11189_v9 = vld [vmem:[#allocation3 + $0xb2] sm:$0xff] }
 0x217   : > { %9051 = vmatmul.msk.f32.gmra.mxu3 %vm523_vm3, %v11165_v58  ;;  %v1931_v0 = vadd.f32 %v1913_v44, %v1781_v14  ;;  %v11195_v14 = vpop.f32.mrf.mxu2 }
 0x219   : > { %v11181_v22 = vadd.f32 %v10800_v3, %v1931_v0  ;;  %v11201_v3 = vpop.f32.mrf.mxu1 }
 0x21b   : > { %14456 = vst [vmem:[#allocation15_spill] sm:$0xff] %v11181_v22  ;;  %v14359_v57 = vmax.f32 %v11181_v22, 0.0 }
 0x21c   : > { %v11184_v43 = vld [vmem:[#allocation3 + $0xc0] sm:$0xff] }
 0x21d   : > { %1984 = vst.msk [vmem:[#allocation3 + $0xc9] sm:$0xff] %vm523_vm3, %v14359_v57  ;;  %9073 = vmatmul.msk.f32.vlgmr.msrb.gmra.mxu1 %vm523_vm3, %v10821_v31 }
 0x21e   : > { %9091 = vmatmul.msk.f32.vlgmr.msrb.gmra.mxu2 %vm523_vm3, %v10843_v38  ;;  %9069 = vmatmul.msk.f32.gmra.mxu0 %vm523_vm3, %v11184_v43  ;;  %v11213_v38 = vpop.f32.mrf.mxu3 }
 0x21f   : > { %9052 = vmatmul.msk.f32.gmra.mxu3 %vm523_vm3, %v11189_v9  ;;  %v11215_v31 = vpop.f32.mrf.mxu2 }
 0x224   : > { %v11203_v15 = vld [vmem:[#allocation3 + $0xc8] sm:$0xff] }
 0x225   : > { %9074 = vmatmul.msk.f32.gmra.mxu1 %vm523_vm3, %v10841_v36 }
 0x226   : > { %9092 = vmatmul.msk.f32.gmra.mxu2 %vm523_vm3, %v10876_v18  ;;  %9070 = vmatmul.msk.f32.gmra.mxu0 %vm523_vm3, %v11203_v15  ;;  %v11225_v18 = vpop.f32.mrf.mxu3 }
 0x227   : > { %9109 = vmatmul.msk.f32.vlgmr.msra.gmra.mxu3 %vm523_vm3, %v10865_v61 }
 0x22a   : > { %v2093_v39 = vpop.f32.mrf.mxu1 }
 0x22d   : > { %9075 = vmatmul.msk.f32.gmra.mxu1 %vm523_vm3, %v10863_v51 }
 0x22e   : > { %9093 = vmatmul.msk.f32.gmra.mxu2 %vm523_vm3, %v10896_v34  ;;  %9127 = vmatmul.msk.f32.vlgmr.msra.gmra.mxu0 %vm523_vm3, %v10863_v51 }
 0x22f   : > { %9110 = vmatmul.msk.f32.gmra.mxu3 %vm523_vm3, %v10894_v35 }
 0x231   : > { %v2206_v36 = vpop.f32.mrf.mxu2 }
 0x232   : > { %v2207_v61 = vadd.f32 %v2206_v36, %v2093_v39  ;;  %v2096_v52 = vpop.f32.mrf.mxu1 }
 0x235   : > { %9076 = vmatmul.msk.f32.gmra.mxu1 %vm523_vm3, %v10892_v20 }
 0x236   : > { %9094 = vmatmul.msk.f32.gmra.mxu2 %vm523_vm3, %v10932_v50  ;;  %9128 = vmatmul.msk.f32.gmra.mxu0 %vm523_vm3, %v10892_v20  ;;  %v9143_v20 = vld [vmem:[%s14329_s3 + $0x80] sm:$0xff] }
 0x237   : > { %9111 = vmatmul.msk.f32.gmra.mxu3 %vm523_vm3, %v10921_v47  ;;  %3219 = vmatpush.msra.mxu1 %v9143_v20 }
 0x239   : > { %v2209_v35 = vpop.f32.mrf.mxu2 }
 0x23a   : > { %v2210_v44 = vadd.f32 %v2209_v35, %v2096_v52  ;;  %v2338_v51 = vpop.f32.mrf.mxu3  ;;  %v2099_v57 = vpop.f32.mrf.mxu1 }
 0x23b   : > { %v11235_v0 = vadd.f32 %v2338_v51, %v2207_v61 }
 0x23d   : > { %9077 = vmatmul.msk.f32.gmra.mxu1 %vm523_vm3, %v10919_v42 }
 0x23e   : > { %9095 = vmatmul.msk.f32.gmra.mxu2 %vm523_vm3, %v10949_v62  ;;  %9129 = vmatmul.msk.f32.gmra.mxu0 %vm523_vm3, %v10919_v42 }
 0x23f   : > { %9112 = vmatmul.msk.f32.gmra.mxu3 %vm523_vm3, %v10947_v28 }
 0x241   : > { %v2212_v47 = vpop.f32.mrf.mxu2 }
 0x242   : > { %v2213_v39 = vadd.f32 %v2212_v47, %v2099_v57  ;;  %v2341_v36 = vpop.f32.mrf.mxu3  ;;  %v2102_v52 = vpop.f32.mrf.mxu1 }
 0x243   : > { %v11248_v61 = vadd.f32 %v2341_v36, %v2210_v44 }
 0x245   : > { %9078 = vmatmul.msk.f32.gmra.mxu1 %vm523_vm3, %v10945_v4 }
 0x246   : > { %9096 = vmatmul.msk.f32.gmra.mxu2 %vm523_vm3, %v10984_v54  ;;  %9130 = vmatmul.msk.f32.gmra.mxu0 %vm523_vm3, %v10945_v4 }
 0x247   : > { %9113 = vmatmul.msk.f32.gmra.mxu3 %vm523_vm3, %v10973_v32 }
 0x249   : > { %v2215_v42 = vpop.f32.mrf.mxu2 }
 0x24a   : > { %v2216_v28 = vadd.f32 %v2215_v42, %v2102_v52  ;;  %v2344_v35 = vpop.f32.mrf.mxu3  ;;  %v2105_v44 = vpop.f32.mrf.mxu1 }
 0x24b   : > { %v11258_v57 = vadd.f32 %v2344_v35, %v2213_v39 }
 0x24d   : > { %9079 = vmatmul.msk.f32.gmra.mxu1 %vm523_vm3, %v10971_v59 }
 0x24e   : > { %9097 = vmatmul.msk.f32.gmra.mxu2 %vm523_vm3, %v11001_v41  ;;  %9131 = vmatmul.msk.f32.gmra.mxu0 %vm523_vm3, %v10971_v59 }
 0x24f   : > { %9114 = vmatmul.msk.f32.gmra.mxu3 %vm523_vm3, %v10999_v30  ;;  %v11278_v30 = vpop.f32.mrf.mxu0 }
 0x251   : > { %v2218_v32 = vpop.f32.mrf.mxu2 }
 0x252   : > { %v2219_v4 = vadd.f32 %v2218_v32, %v2105_v44  ;;  %v2347_v51 = vpop.f32.mrf.mxu3  ;;  %v2108_v47 = vpop.f32.mrf.mxu1  ;;  %v3373_v44 = vld [vmem:[#allocation5 + $0x18] sm:$0xff] }
 0x253   : > { %v11268_v20 = vadd.f32 %v2347_v51, %v2216_v28  ;;  %3436 = vmatpush.msra.mxu2 %v3373_v44  ;;  %v11356_v32 = vld [vmem:[#allocation3 + $0xc2] sm:$0xff] }
 0x254   : > { %v2559_v51 = vld [vmem:[#allocation3 + $0xc9] sm:$0xff] }
 0x255   : > { %9080 = vmatmul.msk.f32.gmra.mxu1 %vm523_vm3, %v10997_v21  ;;  %3437 = vmatpush.msra.mxu2 %v3372_v11 }
 0x256   : > { %9098 = vmatmul.msk.f32.gmra.mxu2 %vm523_vm3, %v11034_v46  ;;  %9132 = vmatmul.msk.f32.gmra.mxu0 %vm523_vm3, %v10997_v21 }
 0x257   : > { %9115 = vmatmul.msk.f32.gmra.mxu3 %vm523_vm3, %v11025_v2  ;;  %v11292_v2 = vpop.f32.mrf.mxu0 }
 0x259   : > { %v2221_v59 = vpop.f32.mrf.mxu2 }
 0x25a   : > { %v2222_v39 = vadd.f32 %v2221_v59, %v2108_v47  ;;  %v2350_v36 = vpop.f32.mrf.mxu3  ;;  %v11282_v42 = vpop.f32.mrf.mxu1  ;;  %v11368_v47 = vld [vmem:[#allocation3 + $0xca] sm:$0xff]  ;;  %v2856_v59 = vld [vmem:[#allocation3 + $0xe0] sm:$0xff] }
 0x25b   : > { %v11280_v52 = vadd.f32 %v2350_v36, %v2219_v4 }
 0x25d   : > { %9081 = vmatmul.msk.f32.gmra.mxu1 %vm523_vm3, %v11023_v10 }
 0x25e   : > { %9099 = vmatmul.msk.f32.gmra.mxu2 %vm523_vm3, %v11051_v53  ;;  %9133 = vmatmul.msk.f32.gmra.mxu0 %vm523_vm3, %v11023_v10 }
 0x25f   : > { %9116 = vmatmul.msk.f32.gmra.mxu3 %vm523_vm3, %v11049_v8  ;;  %v11308_v8 = vpop.f32.mrf.mxu0 }
 0x262   : > { %v2353_v21 = vpop.f32.mrf.mxu3  ;;  %v11296_v35 = vpop.f32.mrf.mxu1 }
 0x263   : > { %v11294_v28 = vadd.f32 %v2353_v21, %v2222_v39  ;;  %v3003_v39 = vld [vmem:[#allocation3 + $0xd9] sm:$0xff]  ;;  %v11383_v21 = vpop.f32.mrf.mxu2 }
 0x265   : > { %9082 = vmatmul.msk.f32.gmra.mxu1 %vm523_vm3, %v11047_v49 }
 0x266   : > { %9100 = vmatmul.msk.f32.gmra.mxu2 %vm523_vm3, %v11091_v13  ;;  %9134 = vmatmul.msk.f32.gmra.mxu0 %vm523_vm3, %v11047_v49 }
 0x267   : > { %9117 = vmatmul.msk.f32.gmra.mxu3 %vm523_vm3, %v11079_v25  ;;  %v11324_v49 = vpop.f32.mrf.mxu0 }
 0x26a   : > { %v11306_v10 = vpop.f32.mrf.mxu1 }
 0x26b   : > { %v11396_v56 = vpop.f32.mrf.mxu2 }
 0x26d   : > { %9083 = vmatmul.msk.f32.gmra.mxu1 %vm523_vm3, %v11077_v33 }
 0x26e   : > { %9101 = vmatmul.msk.f32.gmra.mxu2 %vm523_vm3, %v11117_v1  ;;  %9135 = vmatmul.msk.f32.gmra.mxu0 %vm523_vm3, %v11077_v33 }
 0x26f   : > { %9118 = vmatmul.msk.f32.gmra.mxu3 %vm523_vm3, %v11115_v24  ;;  %v11340_v33 = vpop.f32.mrf.mxu0 }
 0x272   : > { %v11318_v25 = vpop.f32.mrf.mxu1 }
 0x275   : > { %9084 = vmatmul.msk.f32.gmra.mxu1 %vm523_vm3, %v11113_v16 }
 0x276   : > { %9102 = vmatmul.msk.f32.gmra.mxu2 %vm523_vm3, %v11151_v7  ;;  %9136 = vmatmul.msk.f32.gmra.mxu0 %vm523_vm3, %v11113_v16 }
 0x277   : > { %9119 = vmatmul.msk.f32.gmra.mxu3 %vm523_vm3, %v11139_v19  ;;  %v11352_v16 = vpop.f32.mrf.mxu0 }
 0x27a   : > { %v11330_v24 = vpop.f32.mrf.mxu1 }
 0x27b   : > { %14457 = vst [vmem:[#allocation19_spill] sm:$0xff] %v11330_v24 }
 0x27d   : > { %9085 = vmatmul.msk.f32.gmra.mxu1 %vm523_vm3, %v11137_v5 }
 0x27e   : > { %9103 = vmatmul.msk.f32.gmra.mxu2 %vm523_vm3, %v11165_v58  ;;  %9137 = vmatmul.msk.f32.gmra.mxu0 %vm523_vm3, %v11137_v5  ;;  %v2558_v5 = vld [vmem:[#allocation3 + $0xc1] sm:$0xff] }
 0x27f   : > { %9120 = vmatmul.msk.f32.gmra.mxu3 %vm523_vm3, %v11163_v48  ;;  %v11366_v4 = vpop.f32.mrf.mxu0 }
 0x282   : > { %v11342_v19 = vpop.f32.mrf.mxu1 }
 0x283   : > { %14458 = vst [vmem:[#allocation24_spill] sm:$0xff] %v11342_v19  ;;  %v3354_v19 = vld [vmem:[#allocation5 + $0x8] sm:$0xff] }
 0x284   : > { %3549 = vmatpush.msrb.mxu3 %v3354_v19  ;;  %v3617_v19 = vld [vmem:[#allocation5 + $0x20] sm:$0xff] }
 0x285   : > { %9086 = vmatmul.msk.f32.gmra.mxu1 %vm523_vm3, %v11161_v63 }
 0x286   : > { %9104 = vmatmul.msk.f32.gmra.mxu2 %vm523_vm3, %v11189_v9  ;;  %9138 = vmatmul.msk.f32.gmra.mxu0 %vm523_vm3, %v11161_v63  ;;  %v2855_v63 = vld [vmem:[#allocation3 + $0xd8] sm:$0xff] }
 0x287   : > { %9121 = vmatmul.msk.f32.gmra.mxu3 %vm523_vm3, %v11184_v43  ;;  %v11379_v36 = vpop.f32.mrf.mxu0 }
 0x28a   : > { %v11354_v48 = vpop.f32.mrf.mxu1 }
 0x28b   : > { %14459 = vst [vmem:[#allocation12_spill] sm:$0xff] %v11354_v48 }
 0x28d   : > { %9087 = vmatmul.msk.f32.gmra.mxu1 %vm523_vm3, %v2558_v5 }
 0x28e   : > { %9105 = vmatmul.msk.f32.gmra.mxu2 %vm523_vm3, %v11356_v32  ;;  %9139 = vmatmul.msk.f32.gmra.mxu0 %vm523_vm3, %v2558_v5  ;;  %v3004_v5 = vld [vmem:[#allocation3 + $0xe1] sm:$0xff] }
 0x28f   : > { %9122 = vmatmul.msk.f32.gmra.mxu3 %vm523_vm3, %v11203_v15 }
 0x292   : > { %v11364_v43 = vpop.f32.mrf.mxu1 }
 0x293   : > { %14460 = vst [vmem:[#allocation21_spill] sm:$0xff] %v11364_v43 }
 0x295   : > { %9088 = vmatmul.msk.f32.gmra.mxu1 %vm523_vm3, %v2559_v51 }
 0x296   : > { %9106 = vmatmul.msk.f32.gmra.mxu2 %vm523_vm3, %v11368_v47  ;;  %9140 = vmatmul.msk.f32.gmra.mxu0 %vm523_vm3, %v2559_v51  ;;  %v11392_v51 = vpop.f32.mrf.mxu0 }
 0x297   : > { %9123 = vmatmul.msk.f32.gmra.mxu3 %vm523_vm3, %v2855_v63  ;;  %v11387_v63 = vpop.f32.mrf.mxu3 }
 0x29a   : > { %v11375_v15 = vpop.f32.mrf.mxu1 }
 0x29d   : > { %9145 = vmatmul.msk.f32.vlgmr.msra.gmra.mxu1 %vm523_vm3, %v10896_v34 }
 0x29e   : > { %9141 = vmatmul.msk.f32.gmra.mxu0 %vm523_vm3, %v3003_v39  ;;  %v11402_v39 = vpop.f32.mrf.mxu0 }
 0x29f   : > { %9124 = vmatmul.msk.f32.gmra.mxu3 %vm523_vm3, %v2856_v59  ;;  %v11400_v59 = vpop.f32.mrf.mxu3 }
 0x2a2   : > { %v11385_v44 = vpop.f32.mrf.mxu1 }
 0x2a5   : > { %9146 = vmatmul.msk.f32.gmra.mxu1 %vm523_vm3, %v10932_v50  ;;  %v11408_v50 = vpop.f32.mrf.mxu2 }
 0x2a6   : > { %9142 = vmatmul.msk.f32.gmra.mxu0 %vm523_vm3, %v3004_v5  ;;  %v11414_v40 = vpop.f32.mrf.mxu0 }
 0x2a7   : > { %v11410_v5 = vpop.f32.mrf.mxu3 }
 0x2aa   : > { %v11394_v34 = vpop.f32.mrf.mxu1 }
 0x2ad   : > { %9147 = vmatmul.msk.f32.gmra.mxu1 %vm523_vm3, %v10949_v62  ;;  %v11418_v62 = vpop.f32.mrf.mxu2 }
 0x2af   : > { %v11420_v27 = vpop.f32.mrf.mxu3 }
 0x2b0   : > { %14461 = vst [vmem:[#allocation25_spill] sm:$0xff] %v11420_v27 }
 0x2b2   : > { %v11404_v22 = vpop.f32.mrf.mxu1 }
 0x2b5   : > { %9148 = vmatmul.msk.f32.gmra.mxu1 %vm523_vm3, %v10984_v54  ;;  %v11426_v54 = vpop.f32.mrf.mxu0  ;;  %v11428_v55 = vpop.f32.mrf.mxu2 }
 0x2b6   : > { %14462 = vst [vmem:[#allocation13_spill] sm:$0xff] %v11426_v54  ;;  %v2204_v54 = vadd.f32 %v11215_v31, %v11201_v3  ;;  %v11509_v3 = vld [vmem:[%s14330_s4] ss:$0 sm:$0xff] }
 0x2b7   : > { %14463 = vst [vmem:[#allocation23_spill] sm:$0xff] %v11428_v55  ;;  %v11432_v11 = vpop.f32.mrf.mxu3  ;;  %v3338_v55 = vld [vmem:[#allocation3 + $0x8] sm:$0xff] }
 0x2b8   : > { %14464 = vst [vmem:[#allocation26_spill] sm:$0xff] %v11432_v11 }
 0x2ba   : > { %v11412_v60 = vpop.f32.mrf.mxu1 }
 0x2bd   : > { %9149 = vmatmul.msk.f32.gmra.mxu1 %vm523_vm3, %v11001_v41  ;;  %v11436_v41 = vpop.f32.mrf.mxu0  ;;  %v11440_v12 = vpop.f32.mrf.mxu2 }
 0x2be   : > { %14465 = vst [vmem:[#allocation36_spill] sm:$0xff] %v11436_v41 }
 0x2bf   : > { %14466 = vst [vmem:[#allocation37_spill] sm:$0xff] %v11440_v12 }
 0x2c2   : > { %v11422_v45 = vpop.f32.mrf.mxu1 }
 0x2c5   : > { %9150 = vmatmul.msk.f32.gmra.mxu1 %vm523_vm3, %v11034_v46  ;;  %v11444_v46 = vpop.f32.mrf.mxu3  ;;  %v11446_v17 = vpop.f32.mrf.mxu0 }
 0x2c6   : > { %14467 = vst [vmem:[#allocation38_spill] sm:$0xff] %v11444_v46  ;;  %v11452_v29 = vpop.f32.mrf.mxu2 }
 0x2c7   : > { %14468 = vst [vmem:[#allocation39_spill] sm:$0xff] %v11446_v17 }
 0x2c8   : > { %14469 = vst [vmem:[#allocation40_spill] sm:$0xff] %v11452_v29 }
 0x2ca   : > { %v11430_v26 = vpop.f32.mrf.mxu1 }
 0x2cd   : > { %9151 = vmatmul.msk.f32.gmra.mxu1 %vm523_vm3, %v11051_v53  ;;  %v11454_v53 = vpop.f32.mrf.mxu3  ;;  %v11458_v48 = vpop.f32.mrf.mxu0 }
 0x2ce   : > { %14470 = vst [vmem:[#allocation41_spill] sm:$0xff] %v11454_v53 }
 0x2cf   : > { %14471 = vst [vmem:[#allocation42_spill] sm:$0xff] %v11458_v48  ;;  %v3337_v48 = vld [vmem:[#allocation3] sm:$0xff] }
 0x2d2   : > { %v11438_v23 = vpop.f32.mrf.mxu1 }
 0x2d5   : > { %9152 = vmatmul.msk.f32.gmra.mxu1 %vm523_vm3, %v11091_v13  ;;  %v11462_v13 = vpop.f32.mrf.mxu2  ;;  %v11464_v46 = vpop.f32.mrf.mxu3 }
 0x2d6   : > { %14472 = vst [vmem:[#allocation43_spill] sm:$0xff] %v11462_v13  ;;  %v3353_v13 = vld [vmem:[#allocation5] sm:$0xff] }
 0x2d7   : > { %14473 = vst [vmem:[#allocation44_spill] sm:$0xff] %v11464_v46  ;;  %3550 = vmatpush.msrb.mxu3 %v3353_v13  ;;  %v3355_v46 = vld [vmem:[#allocation3 + $0x1] sm:$0xff]  ;;  %v3356_v13 = vld [vmem:[#allocation3 + $0x9] sm:$0xff] }
 0x2d8   : > { %9161 = vmatmul.msk.f32.vlgmr.msra.gmra.mxu2 %vm523_vm3, %v3355_v46  ;;  %9177 = vmatmul.msk.f32.vlgmr.msrb.gmra.mxu3 %vm523_vm3, %v3337_v48  ;;  %v3600_v48 = vld [vmem:[#allocation3 + $0x2] sm:$0xff] }
 0x2da   : > { %v11448_v37 = vpop.f32.mrf.mxu1 }
 0x2dd   : > { %9153 = vmatmul.msk.f32.gmra.mxu1 %vm523_vm3, %v11117_v1  ;;  %v11470_v1 = vpop.f32.mrf.mxu0  ;;  %v2776_v29 = vpop.f32.mrf.mxu2 }
 0x2de   : > { %14475 = vst [vmem:[#allocation46_spill] sm:$0xff] %v11470_v1  ;;  %v2925_v12 = vpop.f32.mrf.mxu3 }
 0x2e0   : > { %9162 = vmatmul.msk.f32.gmra.mxu2 %vm523_vm3, %v3356_v13  ;;  %9178 = vmatmul.msk.f32.gmra.mxu3 %vm523_vm3, %v3338_v55 }
 0x2e2   : > { %v11456_v43 = vpop.f32.mrf.mxu1 }
 0x2e5   : > { %9154 = vmatmul.msk.f32.gmra.mxu1 %vm523_vm3, %v11151_v7  ;;  %v3073_v7 = vpop.f32.mrf.mxu0  ;;  %v2779_v1 = vpop.f32.mrf.mxu2 }
 0x2e6   : > { %v2928_v11 = vpop.f32.mrf.mxu3 }
 0x2ea   : > { %v11466_v17 = vpop.f32.mrf.mxu1 }
 0x2eb   : > { %14474 = vst [vmem:[#allocation45_spill] sm:$0xff] %v11466_v17 }
 0x2ed   : > { %9155 = vmatmul.msk.f32.gmra.mxu1 %vm523_vm3, %v11165_v58  ;;  %v3914_v58 = vld [vmem:[#allocation5 + $0x48] sm:$0xff]  ;;  %v3076_v24 = vpop.f32.mrf.mxu0 }
 0x2ee   : > { %3977 = vmatpush.msrb.mxu2 %v3914_v58  ;;  %v2931_v46 = vpop.f32.mrf.mxu3  ;;  %v3765_v58 = vld [vmem:[#allocation5 + $0x30] sm:$0xff] }
 0x2f2   : > { %v11472_v53 = vpop.f32.mrf.mxu1 }
 0x2f3   : > { %14476 = vst [vmem:[#allocation47_spill] sm:$0xff] %v11472_v53  ;;  %v3766_v53 = vld [vmem:[#allocation5 + $0x38] sm:$0xff] }
 0x2f4   : > { %3829 = vmatpush.msrb.mxu1 %v3766_v53  ;;  %v3151_v53 = vld [vmem:[#allocation3 + $0xda] sm:$0xff] }
 0x2f5   : > { %9156 = vmatmul.msk.f32.gmra.mxu1 %vm523_vm3, %v11189_v9  ;;  %v3618_v9 = vld [vmem:[#allocation5 + $0x28] sm:$0xff]  ;;  %v3079_v13 = vpop.f32.mrf.mxu0 }
 0x2f6   : > { %3681 = vmatpush.msrb.mxu0 %v3618_v9  ;;  %v2201_v9 = vadd.f32 %v11195_v14, %v11178_v6  ;;  %3830 = vmatpush.msrb.mxu1 %v3765_v58  ;;  %v2934_v14 = vpop.f32.mrf.mxu3 }
 0x2f8   : > { %3682 = vmatpush.msrb.mxu0 %v3617_v19  ;;  %v3601_v19 = vld [vmem:[#allocation3 + $0xa] sm:$0xff]  ;;  %v2380_v55 = vadd.f32 %v11213_v38, %v2201_v9 }
 0x2f9   : > { %9193 = vmatmul.msk.f32.vlgmr.msrb.gmra.mxu0 %vm523_vm3, %v3600_v48 }
 0x2fa   : > { %v11476_v41 = vpop.f32.mrf.mxu1 }
 0x2fb   : > { %14477 = vst [vmem:[#allocation48_spill] sm:$0xff] %v11476_v41 }
 0x2fd   : > { %9157 = vmatmul.msk.f32.gmra.mxu1 %vm523_vm3, %v11356_v32  ;;  %v2782_v32 = vpop.f32.mrf.mxu2  ;;  %v3082_v38 = vpop.f32.mrf.mxu0 }
 0x301   : > { %9194 = vmatmul.msk.f32.gmra.mxu0 %vm523_vm3, %v3601_v19  ;;  %v2381_v19 = vadd.f32 %v11225_v18, %v2204_v54 }
 0x302   : > { %v11482_v41 = vpop.f32.mrf.mxu1 }
 0x303   : > { %14478 = vst [vmem:[#allocation49_spill] sm:$0xff] %v11482_v41  ;;  %v2529_v9 = vadd.f32 %v11292_v2, %v2381_v19 }
 0x305   : > { %9158 = vmatmul.msk.f32.gmra.mxu1 %vm523_vm3, %v11368_v47  ;;  %v2528_v47 = vadd.f32 %v11278_v30, %v2380_v55  ;;  %v2785_v48 = vpop.f32.mrf.mxu2  ;;  %v2677_v30 = vadd.f32 %v11385_v44, %v2529_v9  ;;  %v3085_v54 = vpop.f32.mrf.mxu0 }
 0x307   : > { %v2676_v6 = vadd.f32 %v11375_v15, %v2528_v47  ;;  %v2825_v55 = vadd.f32 %v2779_v1, %v2677_v30  ;;  %v2937_v47 = vpop.f32.mrf.mxu3  ;;  %v2531_v30 = vadd.f32 %v11324_v49, %v11248_v61 }
 0x309   : > { %v2824_v27 = vadd.f32 %v2776_v29, %v2676_v6  ;;  %v2974_v18 = vadd.f32 %v2928_v11, %v2825_v55 }
 0x30a   : > { %v11491_v41 = vpop.f32.mrf.mxu1 }
 0x30b   : > { %14479 = vst [vmem:[#allocation50_spill] sm:$0xff] %v11491_v41  ;;  %v3152_v41 = vld [vmem:[#allocation3 + $0xe2] sm:$0xff]  ;;  %v2973_v17 = vadd.f32 %v2925_v12, %v2824_v27  ;;  %v2530_v27 = vadd.f32 %v11308_v8, %v11235_v0  ;;  %v3122_v44 = vadd.f32 %v3076_v24, %v2974_v18 }
 0x30d   : > { %9159 = vmatmul.msk.f32.gmra.mxu1 %vm523_vm3, %v3151_v53  ;;  %v3121_v53 = vadd.f32 %v3073_v7, %v2973_v17  ;;  %v2788_v31 = vpop.f32.mrf.mxu2  ;;  %v2678_v17 = vadd.f32 %v11394_v34, %v2530_v27  ;;  %v2679_v34 = vadd.f32 %v11404_v22, %v2531_v30  ;;  %v2532_v22 = vadd.f32 %v11340_v33, %v11258_v57 }
 0x30f   : > { %v2826_v7 = vadd.f32 %v2782_v32, %v2678_v17  ;;  %v2940_v11 = vpop.f32.mrf.mxu3  ;;  %v3088_v32 = vpop.f32.mrf.mxu0  ;;  %v2680_v17 = vadd.f32 %v11412_v60, %v2532_v22 }
 0x311   : > { %v2975_v1 = vadd.f32 %v2931_v46, %v2826_v7  ;;  %v2828_v33 = vadd.f32 %v2788_v31, %v2680_v17  ;;  %v2535_v17 = vadd.f32 %v11379_v36, %v11294_v28 }
 0x312   : > { %v11500_v58 = vpop.f32.mrf.mxu1 }
 0x313   : > { %v3123_v24 = vadd.f32 %v3079_v13, %v2975_v1 }
 0x315   : > { %9160 = vmatmul.msk.f32.gmra.mxu1 %vm523_vm3, %v3152_v41  ;;  %v2791_v19 = vpop.f32.mrf.mxu2 }
 0x317   : > { %v2943_v18 = vpop.f32.mrf.mxu3 }
 0x31a   : > { %v3221_v15 = vpop.f32.mrf.mxu1 }
 0x31b   : > { %v3269_v29 = vadd.f32 %v3221_v15, %v3121_v53  ;;  %v2827_v15 = vadd.f32 %v2785_v48, %v2679_v34 }
 0x31d   : > { %v3289_v12 = vadd.f32 %v11509_v3, %v3269_v29  ;;  %v2976_v49 = vadd.f32 %v2934_v14, %v2827_v15  ;;  %v2794_v29 = vpop.f32.mrf.mxu2  ;;  %v3091_v14 = vpop.f32.mrf.mxu0 }
 0x31f   : > { %v3305_v2 = vmax.f32 %v3289_v12, 0.0 }
 0x321   : > { %3321 = vst.msk [vmem:[#allocation3 + $0x19] sm:$0xff] %vm523_vm3, %v3305_v2 }
 0x322   : > { %v3224_v41 = vpop.f32.mrf.mxu1 }
 0x323   : > { %v3270_v6 = vadd.f32 %v3224_v41, %v3122_v44  ;;  %v3124_v44 = vadd.f32 %v3082_v38, %v2976_v49  ;;  %v2977_v41 = vadd.f32 %v2937_v47, %v2828_v33  ;;  %v2533_v38 = vadd.f32 %v11352_v16, %v11268_v20  ;;  %v2946_v20 = vpop.f32.mrf.mxu3 }
 0x325   : > { %v3290_v9 = vadd.f32 %v11509_v3, %v3270_v6  ;;  %v2797_v6 = vpop.f32.mrf.mxu2  ;;  %v2681_v30 = vadd.f32 %v11422_v45, %v2533_v38  ;;  %v3913_v45 = vld [vmem:[#allocation5 + $0x40] sm:$0xff] }
 0x326   : > { %3978 = vmatpush.msrb.mxu2 %v3913_v45 }
 0x327   : > { %v3306_v53 = vmax.f32 %v3290_v9, 0.0  ;;  %v2829_v47 = vadd.f32 %v2791_v19, %v2681_v30 }
 0x328   : > { %v11519_v0 = vld [vmem:[#allocation3 + $0x19] sm:$0xff] }
 0x329   : > { %v3339_v8 = vld [vmem:[#allocation3 + $0x18] sm:$0xff]  ;;  %3322 = vst.msk [vmem:[#allocation3 + $0x21] sm:$0xff] %vm523_vm3, %v3306_v53  ;;  %9163 = vmatmul.msk.f32.gmra.mxu2 %vm523_vm3, %v11519_v0  ;;  %v3125_v53 = vadd.f32 %v3085_v54, %v2977_v41  ;;  %v2225_v41 = vadd.f32 %v11383_v21, %v11282_v42 }
 0x32a   : > { %9179 = vmatmul.msk.f32.gmra.mxu3 %vm523_vm3, %v3339_v8  ;;  %9209 = vmatmul.msk.f32.vlgmr.msrb.gmra.mxu1 %vm523_vm3, %v3339_v8  ;;  %v3227_v46 = vpop.f32.mrf.mxu1  ;;  %v2978_v8 = vadd.f32 %v2940_v11, %v2829_v47 }
 0x32b   : > { %v3271_v61 = vadd.f32 %v3227_v46, %v3123_v24  ;;  %v3094_v24 = vpop.f32.mrf.mxu0  ;;  %v2534_v46 = vadd.f32 %v11366_v4, %v11280_v52 }
 0x32d   : > { %v3291_v55 = vadd.f32 %v11509_v3, %v3271_v61  ;;  %v2682_v22 = vadd.f32 %v11430_v26, %v2534_v46  ;;  %v2800_v19 = vpop.f32.mrf.mxu2  ;;  %v2949_v26 = vpop.f32.mrf.mxu3 }
 0x32f   : > { %v3307_v13 = vmax.f32 %v3291_v55, 0.0  ;;  %v2830_v4 = vadd.f32 %v2794_v29, %v2682_v22 }
 0x330   : > { %v11530_v12 = vld [vmem:[#allocation3 + $0x21] sm:$0xff] }
 0x331   : > { %v3340_v27 = vld [vmem:[#allocation3 + $0x20] sm:$0xff]  ;;  %3323 = vst.msk [vmem:[#allocation3 + $0x31] sm:$0xff] %vm523_vm3, %v3307_v13  ;;  %9164 = vmatmul.msk.f32.gmra.mxu2 %vm523_vm3, %v11530_v12  ;;  %v3126_v13 = vadd.f32 %v3088_v32, %v2978_v8  ;;  %v2979_v32 = vadd.f32 %v2943_v18, %v2830_v4  ;;  %v2231_v4 = vadd.f32 %v11408_v50, %v11306_v10 }
 0x332   : > { %v11532_v2 = vld [vmem:[#allocation3 + $0x1a] sm:$0xff]  ;;  %9180 = vmatmul.msk.f32.gmra.mxu3 %vm523_vm3, %v3340_v27  ;;  %9210 = vmatmul.msk.f32.gmra.mxu1 %vm523_vm3, %v3340_v27  ;;  %v3230_v57 = vpop.f32.mrf.mxu1  ;;  %v11555_v31 = vld [vmem:[#allocation3 + $0x22] sm:$0xff] }
 0x333   : > { %9195 = vmatmul.msk.f32.gmra.mxu0 %vm523_vm3, %v11532_v2  ;;  %v3272_v48 = vadd.f32 %v3230_v57, %v3124_v44  ;;  %v3097_v57 = vpop.f32.mrf.mxu0  ;;  %v3127_v29 = vadd.f32 %v3091_v14, %v2979_v32 }
 0x335   : > { %v3292_v60 = vadd.f32 %v11509_v3, %v3272_v48  ;;  %v2803_v18 = vpop.f32.mrf.mxu2 }
 0x337   : > { %v3308_v7 = vmax.f32 %v3292_v60, 0.0  ;;  %v2683_v60 = vadd.f32 %v11438_v23, %v2535_v17  ;;  %v2388_v23 = vadd.f32 %v11387_v63, %v2225_v41 }
 0x338   : > { %v11545_v1 = vld [vmem:[#allocation3 + $0x31] sm:$0xff] }
 0x339   : > { %v11547_v9 = vld [vmem:[#allocation3 + $0x30] sm:$0xff]  ;;  %3324 = vst.msk [vmem:[#allocation3 + $0x39] sm:$0xff] %vm523_vm3, %v3308_v7  ;;  %9165 = vmatmul.msk.f32.gmra.mxu2 %vm523_vm3, %v11545_v1  ;;  %v2831_v36 = vadd.f32 %v2797_v6, %v2683_v60  ;;  %v2952_v7 = vpop.f32.mrf.mxu3  ;;  %v2536_v30 = vadd.f32 %v11392_v51, %v2388_v23 }
 0x33a   : > { %9181 = vmatmul.msk.f32.gmra.mxu3 %vm523_vm3, %v11547_v9  ;;  %9211 = vmatmul.msk.f32.gmra.mxu1 %vm523_vm3, %v11547_v9  ;;  %v3233_v16 = vpop.f32.mrf.mxu1 }
 0x33b   : > { %9196 = vmatmul.msk.f32.gmra.mxu0 %vm523_vm3, %v11555_v31  ;;  %v3273_v54 = vadd.f32 %v3233_v16, %v3125_v53  ;;  %v2980_v14 = vadd.f32 %v2946_v20, %v2831_v36  ;;  %v2684_v63 = vadd.f32 %v11448_v37, %v2536_v30  ;;  %v3100_v51 = vpop.f32.mrf.mxu0 }
 0x33d   : > { %v3293_v34 = vadd.f32 %v11509_v3, %v3273_v54  ;;  %v2228_v54 = vadd.f32 %v11396_v56, %v11296_v35  ;;  %v3128_v6 = vadd.f32 %v3094_v24, %v2980_v14  ;;  %v2832_v37 = vadd.f32 %v2800_v19, %v2684_v63  ;;  %v2806_v24 = vpop.f32.mrf.mxu2 }
 0x33f   : > { %v3309_v15 = vmax.f32 %v3293_v34, 0.0  ;;  %v2389_v56 = vadd.f32 %v11400_v59, %v2228_v54  ;;  %v2981_v8 = vadd.f32 %v2949_v26, %v2832_v37 }
 0x340   : > { %v11564_v61 = vld [vmem:[#allocation3 + $0x39] sm:$0xff] }
 0x341   : > { %v11566_v49 = vld [vmem:[#allocation3 + $0x38] sm:$0xff]  ;;  %3325 = vst.msk [vmem:[#allocation3 + $0x49] sm:$0xff] %vm523_vm3, %v3309_v15  ;;  %9166 = vmatmul.msk.f32.gmra.mxu2 %vm523_vm3, %v11564_v61  ;;  %v2537_v46 = vadd.f32 %v11402_v39, %v2389_v56  ;;  %v2955_v22 = vpop.f32.mrf.mxu3  ;;  %v3129_v59 = vadd.f32 %v3097_v57, %v2981_v8  ;;  %v14484_v56 = vld [vmem:[#allocation23_spill] sm:$0xff] }
 0x342   : > { %v11568_v55 = vld [vmem:[#allocation3 + $0x32] sm:$0xff]  ;;  %9182 = vmatmul.msk.f32.gmra.mxu3 %vm523_vm3, %v11566_v49  ;;  %9212 = vmatmul.msk.f32.gmra.mxu1 %vm523_vm3, %v11566_v49  ;;  %v3236_v52 = vpop.f32.mrf.mxu1  ;;  %v11595_v28 = vld [vmem:[#allocation3 + $0x3a] sm:$0xff] }
 0x343   : > { %9197 = vmatmul.msk.f32.gmra.mxu0 %vm523_vm3, %v11568_v55  ;;  %v3274_v11 = vadd.f32 %v3236_v52, %v3126_v13  ;;  %v3103_v26 = vpop.f32.mrf.mxu0 }
 0x345   : > { %v3294_v27 = vadd.f32 %v11509_v3, %v3274_v11  ;;  %v2685_v11 = vadd.f32 %v11456_v43, %v2537_v46  ;;  %v2390_v43 = vadd.f32 %v11410_v5, %v2231_v4  ;;  %v2809_v57 = vpop.f32.mrf.mxu2  ;;  %v14480_v5 = vld [vmem:[#allocation45_spill] sm:$0xff] }
 0x347   : > { %v3310_v44 = vmax.f32 %v3294_v27, 0.0  ;;  %v2833_v50 = vadd.f32 %v2803_v18, %v2685_v11  ;;  %v2538_v17 = vadd.f32 %v11414_v40, %v2390_v43 }
 0x348   : > { %v11583_v33 = vld [vmem:[#allocation3 + $0x49] sm:$0xff] }
 0x349   : > { %v11585_v48 = vld [vmem:[#allocation3 + $0x48] sm:$0xff]  ;;  %3326 = vst.msk [vmem:[#allocation3 + $0x51] sm:$0xff] %vm523_vm3, %v3310_v44  ;;  %9167 = vmatmul.msk.f32.gmra.mxu2 %vm523_vm3, %v11583_v33  ;;  %v2982_v32 = vadd.f32 %v2952_v7, %v2833_v50  ;;  %v2686_v23 = vadd.f32 %v14480_v5, %v2538_v17  ;;  %v2958_v40 = vpop.f32.mrf.mxu3 }
 0x34a   : > { %9183 = vmatmul.msk.f32.gmra.mxu3 %vm523_vm3, %v11585_v48  ;;  %9213 = vmatmul.msk.f32.gmra.mxu1 %vm523_vm3, %v11585_v48  ;;  %v3239_v42 = vpop.f32.mrf.mxu1  ;;  %v14488_v5 = vld [vmem:[#allocation24_spill] sm:$0xff] }
 0x34b   : > { %9198 = vmatmul.msk.f32.gmra.mxu0 %vm523_vm3, %v11595_v28  ;;  %v3275_v21 = vadd.f32 %v3239_v42, %v3127_v29  ;;  %v2234_v42 = vadd.f32 %v11418_v62, %v11318_v25  ;;  %v3130_v36 = vadd.f32 %v3100_v51, %v2982_v32  ;;  %v14481_v25 = vld [vmem:[#allocation25_spill] sm:$0xff]  ;;  %v2834_v18 = vadd.f32 %v2806_v24, %v2686_v23  ;;  %v3106_v30 = vpop.f32.mrf.mxu0 }
 0x34c   : > { %v14489_v23 = vld [vmem:[#allocation37_spill] sm:$0xff] }
 0x34d   : > { %v3295_v38 = vadd.f32 %v11509_v3, %v3275_v21  ;;  %v2391_v62 = vadd.f32 %v14481_v25, %v2234_v42  ;;  %v2812_v46 = vpop.f32.mrf.mxu2 }
 0x34f   : > { %v3311_v53 = vmax.f32 %v3295_v38, 0.0  ;;  %v2983_v38 = vadd.f32 %v2955_v22, %v2834_v18  ;;  %v14486_v22 = vld [vmem:[#allocation26_spill] sm:$0xff] }
 0x350   : > { %v11604_v16 = vld [vmem:[#allocation3 + $0x51] sm:$0xff] }
 0x351   : > { %v11606_v45 = vld [vmem:[#allocation3 + $0x50] sm:$0xff]  ;;  %3327 = vst.msk [vmem:[#allocation3 + $0x61] sm:$0xff] %vm523_vm3, %v3311_v53  ;;  %9168 = vmatmul.msk.f32.gmra.mxu2 %vm523_vm3, %v11604_v16 }
 0x352   : > { %v11608_v47 = vld [vmem:[#allocation3 + $0x4a] sm:$0xff]  ;;  %9184 = vmatmul.msk.f32.gmra.mxu3 %vm523_vm3, %v11606_v45  ;;  %9214 = vmatmul.msk.f32.gmra.mxu1 %vm523_vm3, %v11606_v45  ;;  %v3242_v20 = vpop.f32.mrf.mxu1  ;;  %v11637_v39 = vld [vmem:[#allocation3 + $0x52] sm:$0xff] }
 0x353   : > { %9199 = vmatmul.msk.f32.gmra.mxu0 %vm523_vm3, %v11608_v47  ;;  %v3276_v35 = vadd.f32 %v3242_v20, %v3128_v6  ;;  %v14482_v53 = vld [vmem:[#allocation13_spill] sm:$0xff]  ;;  %v14483_v20 = vld [vmem:[#allocation19_spill] sm:$0xff] }
 0x354   : > { %v2539_v54 = vadd.f32 %v14482_v53, %v2391_v62  ;;  %v2237_v37 = vadd.f32 %v14484_v56, %v14483_v20  ;;  %v14491_v62 = vld [vmem:[#allocation38_spill] sm:$0xff]  ;;  %v14492_v20 = vld [vmem:[#allocation39_spill] sm:$0xff] }
 0x355   : > { %v3296_v34 = vadd.f32 %v11509_v3, %v3276_v35  ;;  %v14485_v35 = vld [vmem:[#allocation47_spill] sm:$0xff] }
 0x356   : > { %v2687_v8 = vadd.f32 %v14485_v35, %v2539_v54  ;;  %v2392_v4 = vadd.f32 %v14486_v22, %v2237_v37  ;;  %v14494_v22 = vld [vmem:[#allocation40_spill] sm:$0xff] }
 0x357   : > { %v3312_v15 = vmax.f32 %v3296_v34, 0.0  ;;  %v3131_v34 = vadd.f32 %v3103_v26, %v2983_v38 }
 0x358   : > { %v11625_v13 = vld [vmem:[#allocation3 + $0x61] sm:$0xff]  ;;  %v2835_v11 = vadd.f32 %v2809_v57, %v2687_v8 }
 0x359   : > { %v11627_v52 = vld [vmem:[#allocation3 + $0x60] sm:$0xff]  ;;  %3328 = vst.msk [vmem:[#allocation3 + $0x69] sm:$0xff] %vm523_vm3, %v3312_v15  ;;  %9169 = vmatmul.msk.f32.gmra.mxu2 %vm523_vm3, %v11625_v13 }
 0x35a   : > { %9185 = vmatmul.msk.f32.gmra.mxu3 %vm523_vm3, %v11627_v52  ;;  %9215 = vmatmul.msk.f32.gmra.mxu1 %vm523_vm3, %v11627_v52  ;;  %v3245_v10 = vpop.f32.mrf.mxu1  ;;  %v2984_v43 = vadd.f32 %v2958_v40, %v2835_v11 }
 0x35b   : > { %9200 = vmatmul.msk.f32.gmra.mxu0 %vm523_vm3, %v11637_v39  ;;  %v3277_v19 = vadd.f32 %v3245_v10, %v3129_v59  ;;  %v2961_v10 = vpop.f32.mrf.mxu3 }
 0x35c   : > { %v3132_v25 = vadd.f32 %v3106_v30, %v2984_v43 }
 0x35d   : > { %v3297_v27 = vadd.f32 %v11509_v3, %v3277_v19  ;;  %v14487_v19 = vld [vmem:[#allocation36_spill] sm:$0xff] }
 0x35e   : > { %v2540_v26 = vadd.f32 %v14487_v19, %v2392_v4  ;;  %v4506_v19 = vld [vmem:[#allocation5 + $0x88] sm:$0xff] }
 0x35f   : > { %v3313_v44 = vmax.f32 %v3297_v27, 0.0  ;;  %v3109_v27 = vpop.f32.mrf.mxu0  ;;  %4569 = vmatpush.msra.mxu2 %v4506_v19  ;;  %v14502_v19 = vld [vmem:[#allocation46_spill] sm:$0xff] }
 0x360   : > { %v11646_v41 = vld [vmem:[#allocation3 + $0x69] sm:$0xff] }
 0x361   : > { %v11648_v60 = vld [vmem:[#allocation3 + $0x68] sm:$0xff]  ;;  %3329 = vst.msk [vmem:[#allocation3 + $0x79] sm:$0xff] %vm523_vm3, %v3313_v44  ;;  %9170 = vmatmul.msk.f32.gmra.mxu2 %vm523_vm3, %v11646_v41 }
 0x362   : > { %v11650_v29 = vld [vmem:[#allocation3 + $0x62] sm:$0xff]  ;;  %9186 = vmatmul.msk.f32.gmra.mxu3 %vm523_vm3, %v11648_v60  ;;  %9216 = vmatmul.msk.f32.gmra.mxu1 %vm523_vm3, %v11648_v60  ;;  %v3248_v21 = vpop.f32.mrf.mxu1  ;;  %v11679_v24 = vld [vmem:[#allocation3 + $0x6a] sm:$0xff] }
 0x363   : > { %9201 = vmatmul.msk.f32.gmra.mxu0 %vm523_vm3, %v11650_v29  ;;  %v3278_v14 = vadd.f32 %v3248_v21, %v3130_v36  ;;  %v2240_v36 = vadd.f32 %v14489_v23, %v14488_v5  ;;  %v14490_v21 = vld [vmem:[#allocation48_spill] sm:$0xff]  ;;  %v2964_v54 = vpop.f32.mrf.mxu3 }
 0x364   : > { %v2688_v57 = vadd.f32 %v14490_v21, %v2540_v26  ;;  %v4210_v26 = vld [vmem:[#allocation5 + $0x68] sm:$0xff]  ;;  %v4209_v21 = vld [vmem:[#allocation5 + $0x60] sm:$0xff] }
 0x365   : > { %v3298_v7 = vadd.f32 %v11509_v3, %v3278_v14  ;;  %v2393_v18 = vadd.f32 %v14491_v62, %v2240_v36  ;;  %4273 = vmatpush.msra.mxu0 %v4210_v26  ;;  %v14497_v62 = vld [vmem:[#allocation42_spill] sm:$0xff] }
 0x366   : > { %v2836_v14 = vadd.f32 %v2812_v46, %v2688_v57  ;;  %v14495_v46 = vld [vmem:[#allocation49_spill] sm:$0xff] }
 0x367   : > { %v3314_v63 = vmax.f32 %v3298_v7, 0.0  ;;  %v2815_v7 = vpop.f32.mrf.mxu2  ;;  %v2541_v56 = vadd.f32 %v14492_v20, %v2393_v18  ;;  %v3112_v43 = vpop.f32.mrf.mxu0  ;;  %4274 = vmatpush.msra.mxu0 %v4209_v21  ;;  %v14499_v20 = vld [vmem:[#allocation43_spill] sm:$0xff] }
 0x368   : > { %v11667_v6 = vld [vmem:[#allocation3 + $0x79] sm:$0xff]  ;;  %v2985_v30 = vadd.f32 %v2961_v10, %v2836_v14 }
 0x369   : > { %v11669_v51 = vld [vmem:[#allocation3 + $0x78] sm:$0xff]  ;;  %3330 = vst.msk [vmem:[#allocation3 + $0x81] sm:$0xff] %vm523_vm3, %v3314_v63  ;;  %9171 = vmatmul.msk.f32.gmra.mxu2 %vm523_vm3, %v11667_v6  ;;  %v4062_v63 = vld [vmem:[#allocation5 + $0x58] sm:$0xff]  ;;  %v2689_v11 = vadd.f32 %v14495_v46, %v2541_v56 }
 0x36a   : > { %9187 = vmatmul.msk.f32.gmra.mxu3 %vm523_vm3, %v11669_v51  ;;  %9217 = vmatmul.msk.f32.gmra.mxu1 %vm523_vm3, %v11669_v51  ;;  %v3251_v15 = vpop.f32.mrf.mxu1 }
 0x36b   : > { %9202 = vmatmul.msk.f32.gmra.mxu0 %vm523_vm3, %v11679_v24  ;;  %v3279_v59 = vadd.f32 %v3251_v15, %v3131_v34  ;;  %4125 = vmatpush.msra.mxu3 %v4062_v63  ;;  %v4061_v34 = vld [vmem:[#allocation5 + $0x50] sm:$0xff]  ;;  %v14493_v15 = vld [vmem:[#allocation12_spill] sm:$0xff]  ;;  %v2837_v23 = vadd.f32 %v2815_v7, %v2689_v11  ;;  %v14498_v63 = vld [vmem:[#allocation21_spill] sm:$0xff] }
 0x36c   : > { %v2243_v4 = vadd.f32 %v14494_v22, %v14493_v15  ;;  %v2246_v56 = vadd.f32 %v14499_v20, %v14498_v63  ;;  %v14501_v22 = vld [vmem:[#allocation44_spill] sm:$0xff] }
 0x36d   : > { %v3299_v50 = vadd.f32 %v11509_v3, %v3279_v59  ;;  %v3133_v59 = vadd.f32 %v3109_v27, %v2985_v30  ;;  %v14496_v27 = vld [vmem:[#allocation41_spill] sm:$0xff]  ;;  %4126 = vmatpush.msra.mxu3 %v4061_v34  ;;  %v2986_v57 = vadd.f32 %v2964_v54, %v2837_v23 }
 0x36e   : > { %v2394_v5 = vadd.f32 %v14496_v27, %v2243_v4  ;;  %v2395_v4 = vadd.f32 %v14501_v22, %v2246_v56 }
 0x36f   : > { %v3315_v32 = vmax.f32 %v3299_v50, 0.0  ;;  %v3134_v54 = vadd.f32 %v3112_v43, %v2986_v57 }
 0x370   : > { %v11688_v17 = vld [vmem:[#allocation3 + $0x81] sm:$0xff]  ;;  %v2542_v18 = vadd.f32 %v14497_v62, %v2394_v5  ;;  %v2543_v26 = vadd.f32 %v14502_v19, %v2395_v4 }
 0x371   : > { %v11690_v44 = vld [vmem:[#allocation3 + $0x80] sm:$0xff]  ;;  %3331 = vst.msk [vmem:[#allocation3 + $0x91] sm:$0xff] %vm523_vm3, %v3315_v32  ;;  %9172 = vmatmul.msk.f32.gmra.mxu2 %vm523_vm3, %v11688_v17  ;;  %v4358_v32 = vld [vmem:[#allocation5 + $0x78] sm:$0xff] }
 0x372   : > { %v11692_v42 = vld [vmem:[#allocation3 + $0x7a] sm:$0xff]  ;;  %9188 = vmatmul.msk.f32.gmra.mxu3 %vm523_vm3, %v11690_v44  ;;  %9218 = vmatmul.msk.f32.gmra.mxu1 %vm523_vm3, %v11690_v44  ;;  %v3254_v40 = vpop.f32.mrf.mxu1  ;;  %v11721_v10 = vld [vmem:[#allocation3 + $0x82] sm:$0xff]  ;;  %v2691_v21 = vadd.f32 %v11500_v58, %v2543_v26 }
 0x373   : > { %9203 = vmatmul.msk.f32.gmra.mxu0 %vm523_vm3, %v11692_v42  ;;  %v3280_v38 = vadd.f32 %v3254_v40, %v3132_v25  ;;  %4421 = vmatpush.msra.mxu1 %v4358_v32  ;;  %v2818_v40 = vpop.f32.mrf.mxu2 }
 0x375   : > { %v3300_v53 = vadd.f32 %v11509_v3, %v3280_v38  ;;  %v2967_v38 = vpop.f32.mrf.mxu3 }
 0x377   : > { %v3316_v37 = vmax.f32 %v3300_v53, 0.0 }
 0x378   : > { %v11709_v35 = vld [vmem:[#allocation3 + $0x91] sm:$0xff] }
 0x379   : > { %v11711_v8 = vld [vmem:[#allocation3 + $0x90] sm:$0xff]  ;;  %3332 = vst.msk [vmem:[#allocation3 + $0x99] sm:$0xff] %vm523_vm3, %v3316_v37  ;;  %9173 = vmatmul.msk.f32.gmra.mxu2 %vm523_vm3, %v11709_v35  ;;  %v14500_v37 = vld [vmem:[#allocation50_spill] sm:$0xff] }
 0x37a   : > { %9189 = vmatmul.msk.f32.gmra.mxu3 %vm523_vm3, %v11711_v8  ;;  %9219 = vmatmul.msk.f32.gmra.mxu1 %vm523_vm3, %v11711_v8  ;;  %v3257_v50 = vpop.f32.mrf.mxu1  ;;  %v2690_v34 = vadd.f32 %v14500_v37, %v2542_v18 }
 0x37b   : > { %9204 = vmatmul.msk.f32.gmra.mxu0 %vm523_vm3, %v11721_v10  ;;  %v3281_v36 = vadd.f32 %v3257_v50, %v3133_v59  ;;  %v3115_v59 = vpop.f32.mrf.mxu0  ;;  %v2821_v27 = vpop.f32.mrf.mxu2 }
 0x37c   : > { %v2838_v46 = vadd.f32 %v2818_v40, %v2690_v34  ;;  %v2839_v58 = vadd.f32 %v2821_v27, %v2691_v21 }
 0x37d   : > { %v3301_v25 = vadd.f32 %v11509_v3, %v3281_v36  ;;  %v4357_v36 = vld [vmem:[#allocation5 + $0x70] sm:$0xff]  ;;  %v2970_v40 = vpop.f32.mrf.mxu3 }
 0x37e   : > { %v2987_v43 = vadd.f32 %v2967_v38, %v2838_v46  ;;  %4422 = vmatpush.msra.mxu1 %v4357_v36 }
 0x37f   : > { %v3317_v14 = vmax.f32 %v3301_v25, 0.0 }
 0x380   : > { %v11730_v30 = vld [vmem:[#allocation3 + $0x99] sm:$0xff]  ;;  %v3135_v57 = vadd.f32 %v3115_v59, %v2987_v43 }
 0x381   : > { %v11732_v53 = vld [vmem:[#allocation3 + $0x98] sm:$0xff]  ;;  %3333 = vst.msk [vmem:[#allocation3 + $0xa9] sm:$0xff] %vm523_vm3, %v3317_v14  ;;  %9174 = vmatmul.msk.f32.gmra.mxu2 %vm523_vm3, %v11730_v30  ;;  %v2988_v14 = vadd.f32 %v2970_v40, %v2839_v58 }
 0x382   : > { %v11734_v7 = vld [vmem:[#allocation3 + $0x92] sm:$0xff]  ;;  %9190 = vmatmul.msk.f32.gmra.mxu3 %vm523_vm3, %v11732_v53  ;;  %9220 = vmatmul.msk.f32.gmra.mxu1 %vm523_vm3, %v11732_v53  ;;  %v3260_v15 = vpop.f32.mrf.mxu1  ;;  %v11761_v25 = vld [vmem:[#allocation3 + $0x9a] sm:$0xff] }
 0x383   : > { %9205 = vmatmul.msk.f32.gmra.mxu0 %vm523_vm3, %v11734_v7  ;;  %v3282_v11 = vadd.f32 %v3260_v15, %v3134_v54  ;;  %v3118_v63 = vpop.f32.mrf.mxu0  ;;  %v11786_v59 = vpop.f32.mrf.mxu2 }
 0x384   : > { %v3136_v54 = vadd.f32 %v3118_v63, %v2988_v14 }
 0x385   : > { %v3302_v50 = vadd.f32 %v11509_v3, %v3282_v11  ;;  %v11788_v43 = vpop.f32.mrf.mxu3 }
 0x387   : > { %v3318_v32 = vmax.f32 %v3302_v50, 0.0 }
 0x388   : > { %v11751_v5 = vld [vmem:[#allocation3 + $0xa9] sm:$0xff] }
 0x389   : > { %v11753_v23 = vld [vmem:[#allocation3 + $0xa8] sm:$0xff]  ;;  %3334 = vst.msk [vmem:[#allocation3 + $0xb1] sm:$0xff] %vm523_vm3, %v3318_v32  ;;  %9175 = vmatmul.msk.f32.gmra.mxu2 %vm523_vm3, %v11751_v5 }
 0x38a   : > { %9191 = vmatmul.msk.f32.gmra.mxu3 %vm523_vm3, %v11753_v23  ;;  %9221 = vmatmul.msk.f32.gmra.mxu1 %vm523_vm3, %v11753_v23  ;;  %v3263_v62 = vpop.f32.mrf.mxu1 }
 0x38b   : > { %9206 = vmatmul.msk.f32.gmra.mxu0 %vm523_vm3, %v11761_v25  ;;  %v3283_v18 = vadd.f32 %v3263_v62, %v3135_v57 }
 0x38d   : > { %v3303_v38 = vadd.f32 %v11509_v3, %v3283_v18 }
 0x38f   : > { %v3319_v20 = vmax.f32 %v3303_v38, 0.0 }
 0x390   : > { %v11768_v56 = vld [vmem:[#allocation3 + $0xb1] sm:$0xff] }
 0x391   : > { %v11770_v37 = vld [vmem:[#allocation3 + $0xb0] sm:$0xff]  ;;  %3335 = vst.msk [vmem:[#allocation3 + $0xc1] sm:$0xff] %vm523_vm3, %v3319_v20  ;;  %9176 = vmatmul.msk.f32.gmra.mxu2 %vm523_vm3, %v11768_v56 }
 0x392   : > { %v11772_v34 = vld [vmem:[#allocation3 + $0xaa] sm:$0xff]  ;;  %9192 = vmatmul.msk.f32.gmra.mxu3 %vm523_vm3, %v11770_v37  ;;  %9222 = vmatmul.msk.f32.gmra.mxu1 %vm523_vm3, %v11770_v37  ;;  %v3266_v15 = vpop.f32.mrf.mxu1  ;;  %v11791_v50 = vld [vmem:[#allocation3 + $0xb2] sm:$0xff] }
 0x393   : > { %9207 = vmatmul.msk.f32.gmra.mxu0 %vm523_vm3, %v11772_v34  ;;  %v3284_v22 = vadd.f32 %v3266_v15, %v3136_v54 }
 0x395   : > { %v3304_v4 = vadd.f32 %v11509_v3, %v3284_v22 }
 0x397   : > { %v3320_v46 = vmax.f32 %v3304_v4, 0.0 }
 0x398   : > { %v11784_v11 = vld [vmem:[#allocation3 + $0xc0] sm:$0xff] }
 0x399   : > { %3336 = vst.msk [vmem:[#allocation3 + $0xc9] sm:$0xff] %vm523_vm3, %v3320_v46  ;;  %9225 = vmatmul.msk.f32.vlgmr.msrb.gmra.mxu2 %vm523_vm3, %v11519_v0  ;;  %v11811_v0 = vpop.f32.mrf.mxu2 }
 0x39a   : > { %9241 = vmatmul.msk.f32.vlgmr.msra.gmra.mxu3 %vm523_vm3, %v11532_v2  ;;  %9223 = vmatmul.msk.f32.gmra.mxu1 %vm523_vm3, %v11784_v11  ;;  %v11813_v2 = vpop.f32.mrf.mxu3 }
 0x39b   : > { %9208 = vmatmul.msk.f32.gmra.mxu0 %vm523_vm3, %v11791_v50 }
 0x3a0   : > { %v11801_v3 = vld [vmem:[#allocation3 + $0xc8] sm:$0xff] }
 0x3a1   : > { %9226 = vmatmul.msk.f32.gmra.mxu2 %vm523_vm3, %v11530_v12  ;;  %v11943_v63 = vld [vmem:[#allocation3 + $0xc2] sm:$0xff]  ;;  %v11953_v22 = vld [vmem:[#allocation3 + $0xca] sm:$0xff] }
 0x3a2   : > { %9242 = vmatmul.msk.f32.gmra.mxu3 %vm523_vm3, %v11555_v31  ;;  %9224 = vmatmul.msk.f32.gmra.mxu1 %vm523_vm3, %v11801_v3  ;;  %v3911_v15 = vld [vmem:[#allocation3 + $0xc9] sm:$0xff] }
 0x3a3   : > { %9257 = vmatmul.msk.f32.vlgmr.msra.gmra.mxu0 %vm523_vm3, %v11547_v9 }
 0x3a7   : > { %v11877_v40 = vpop.f32.mrf.mxu1 }
 0x3a9   : > { %9227 = vmatmul.msk.f32.gmra.mxu2 %vm523_vm3, %v11545_v1 }
 0x3aa   : > { %9243 = vmatmul.msk.f32.gmra.mxu3 %vm523_vm3, %v11568_v55  ;;  %9273 = vmatmul.msk.f32.vlgmr.msra.gmra.mxu1 %vm523_vm3, %v11545_v1  ;;  %v4505_v1 = vld [vmem:[#allocation5 + $0x80] sm:$0xff] }
 0x3ab   : > { %9258 = vmatmul.msk.f32.gmra.mxu0 %vm523_vm3, %v11566_v49  ;;  %4570 = vmatpush.msra.mxu2 %v4505_v1 }
 0x3ac   : > { %v3445_v12 = vpop.f32.mrf.mxu2 }
 0x3ad   : > { %v3558_v31 = vpop.f32.mrf.mxu3 }
 0x3ae   : > { %v11823_v19 = vadd.f32 %v3558_v31, %v3445_v12 }
 0x3af   : > { %v11891_v62 = vpop.f32.mrf.mxu1 }
 0x3b1   : > { %9228 = vmatmul.msk.f32.gmra.mxu2 %vm523_vm3, %v11564_v61 }
 0x3b2   : > { %9244 = vmatmul.msk.f32.gmra.mxu3 %vm523_vm3, %v11595_v28  ;;  %9274 = vmatmul.msk.f32.gmra.mxu1 %vm523_vm3, %v11564_v61 }
 0x3b3   : > { %9259 = vmatmul.msk.f32.gmra.mxu0 %vm523_vm3, %v11585_v48 }
 0x3b4   : > { %v3448_v9 = vpop.f32.mrf.mxu2 }
 0x3b5   : > { %v3561_v49 = vpop.f32.mrf.mxu3 }
 0x3b6   : > { %v11833_v26 = vadd.f32 %v3561_v49, %v3448_v9  ;;  %v4355_v49 = vld [vmem:[#allocation3 + $0xe1] sm:$0xff] }
 0x3b7   : > { %v3838_v58 = vpop.f32.mrf.mxu1 }
 0x3b9   : > { %9229 = vmatmul.msk.f32.gmra.mxu2 %vm523_vm3, %v11583_v33 }
 0x3ba   : > { %9245 = vmatmul.msk.f32.gmra.mxu3 %vm523_vm3, %v11608_v47  ;;  %9275 = vmatmul.msk.f32.gmra.mxu1 %vm523_vm3, %v11583_v33 }
 0x3bb   : > { %9260 = vmatmul.msk.f32.gmra.mxu0 %vm523_vm3, %v11606_v45 }
 0x3bc   : > { %v3451_v48 = vpop.f32.mrf.mxu2 }
 0x3bd   : > { %v3564_v61 = vpop.f32.mrf.mxu3 }
 0x3be   : > { %v11843_v32 = vadd.f32 %v3564_v61, %v3451_v48 }
 0x3bf   : > { %v3841_v18 = vpop.f32.mrf.mxu1 }
 0x3c1   : > { %9230 = vmatmul.msk.f32.gmra.mxu2 %vm523_vm3, %v11604_v16 }
 0x3c2   : > { %9246 = vmatmul.msk.f32.gmra.mxu3 %vm523_vm3, %v11637_v39  ;;  %9276 = vmatmul.msk.f32.gmra.mxu1 %vm523_vm3, %v11604_v16  ;;  %v11873_v16 = vpop.f32.mrf.mxu0 }
 0x3c3   : > { %9261 = vmatmul.msk.f32.gmra.mxu0 %vm523_vm3, %v11627_v52 }
 0x3c4   : > { %v3454_v45 = vpop.f32.mrf.mxu2 }
 0x3c5   : > { %v3567_v33 = vpop.f32.mrf.mxu3 }
 0x3c6   : > { %v11853_v27 = vadd.f32 %v3567_v33, %v3454_v45 }
 0x3c7   : > { %v3844_v14 = vpop.f32.mrf.mxu1 }
 0x3c9   : > { %9231 = vmatmul.msk.f32.gmra.mxu2 %vm523_vm3, %v11625_v13 }
 0x3ca   : > { %9247 = vmatmul.msk.f32.gmra.mxu3 %vm523_vm3, %v11650_v29  ;;  %9277 = vmatmul.msk.f32.gmra.mxu1 %vm523_vm3, %v11625_v13 }
 0x3cb   : > { %9262 = vmatmul.msk.f32.gmra.mxu0 %vm523_vm3, %v11648_v60 }
 0x3cc   : > { %v3457_v52 = vpop.f32.mrf.mxu2 }
 0x3cd   : > { %v3570_v36 = vpop.f32.mrf.mxu3 }
 0x3ce   : > { %v11863_v21 = vadd.f32 %v3570_v36, %v3457_v52 }
 0x3cf   : > { %v3847_v20 = vpop.f32.mrf.mxu1 }
 0x3d1   : > { %9232 = vmatmul.msk.f32.gmra.mxu2 %vm523_vm3, %v11646_v41 }
 0x3d2   : > { %9248 = vmatmul.msk.f32.gmra.mxu3 %vm523_vm3, %v11679_v24  ;;  %9278 = vmatmul.msk.f32.gmra.mxu1 %vm523_vm3, %v11646_v41 }
 0x3d3   : > { %9263 = vmatmul.msk.f32.gmra.mxu0 %vm523_vm3, %v11669_v51  ;;  %v11889_v51 = vpop.f32.mrf.mxu0 }
 0x3d4   : > { %v3460_v60 = vpop.f32.mrf.mxu2 }
 0x3d5   : > { %v3573_v13 = vpop.f32.mrf.mxu3 }
 0x3d6   : > { %v11875_v57 = vadd.f32 %v3573_v13, %v3460_v60 }
 0x3d7   : > { %v3850_v4 = vpop.f32.mrf.mxu1 }
 0x3d9   : > { %9233 = vmatmul.msk.f32.gmra.mxu2 %vm523_vm3, %v11667_v6 }
 0x3da   : > { %9249 = vmatmul.msk.f32.gmra.mxu3 %vm523_vm3, %v11692_v42  ;;  %9279 = vmatmul.msk.f32.gmra.mxu1 %vm523_vm3, %v11667_v6 }
 0x3db   : > { %9264 = vmatmul.msk.f32.gmra.mxu0 %vm523_vm3, %v11690_v44  ;;  %v3690_v6 = vpop.f32.mrf.mxu0 }
 0x3dc   : > { %v11887_v41 = vpop.f32.mrf.mxu2  ;;  %v3734_v45 = vadd.f32 %v3690_v6, %v11823_v19 }
 0x3dd   : > { %v11971_v1 = vpop.f32.mrf.mxu3 }
 0x3de   : > { %v3882_v33 = vadd.f32 %v3838_v58, %v3734_v45 }
 0x3df   : > { %v3853_v9 = vpop.f32.mrf.mxu1 }
 0x3e1   : > { %9234 = vmatmul.msk.f32.gmra.mxu2 %vm523_vm3, %v11688_v17 }
 0x3e2   : > { %9250 = vmatmul.msk.f32.gmra.mxu3 %vm523_vm3, %v11721_v10  ;;  %9280 = vmatmul.msk.f32.gmra.mxu1 %vm523_vm3, %v11688_v17 }
 0x3e3   : > { %9265 = vmatmul.msk.f32.gmra.mxu0 %vm523_vm3, %v11711_v8  ;;  %v3693_v17 = vpop.f32.mrf.mxu0 }
 0x3e4   : > { %v11901_v44 = vpop.f32.mrf.mxu2  ;;  %v3735_v60 = vadd.f32 %v3693_v17, %v11833_v26 }
 0x3e5   : > { %v11982_v36 = vpop.f32.mrf.mxu3 }
 0x3e9   : > { %9235 = vmatmul.msk.f32.gmra.mxu2 %vm523_vm3, %v11709_v35 }
 0x3ea   : > { %9251 = vmatmul.msk.f32.gmra.mxu3 %vm523_vm3, %v11734_v7  ;;  %9281 = vmatmul.msk.f32.gmra.mxu1 %vm523_vm3, %v11709_v35 }
 0x3eb   : > { %9266 = vmatmul.msk.f32.gmra.mxu0 %vm523_vm3, %v11732_v53  ;;  %v3696_v35 = vpop.f32.mrf.mxu0 }
 0x3ec   : > { %v11911_v8 = vpop.f32.mrf.mxu2  ;;  %v3736_v58 = vadd.f32 %v3696_v35, %v11843_v32 }
 0x3f1   : > { %9236 = vmatmul.msk.f32.gmra.mxu2 %vm523_vm3, %v11730_v30 }
 0x3f2   : > { %9252 = vmatmul.msk.f32.gmra.mxu3 %vm523_vm3, %v11761_v25  ;;  %9282 = vmatmul.msk.f32.gmra.mxu1 %vm523_vm3, %v11730_v30 }
 0x3f3   : > { %9267 = vmatmul.msk.f32.gmra.mxu0 %vm523_vm3, %v11753_v23  ;;  %v3699_v38 = vpop.f32.mrf.mxu0 }
 0x3f4   : > { %v11921_v53 = vpop.f32.mrf.mxu2 }
 0x3f9   : > { %9237 = vmatmul.msk.f32.gmra.mxu2 %vm523_vm3, %v11751_v5 }
 0x3fa   : > { %9253 = vmatmul.msk.f32.gmra.mxu3 %vm523_vm3, %v11772_v34  ;;  %9283 = vmatmul.msk.f32.gmra.mxu1 %vm523_vm3, %v11751_v5  ;;  %v3910_v5 = vld [vmem:[#allocation3 + $0xc1] sm:$0xff] }
 0x3fb   : > { %9268 = vmatmul.msk.f32.gmra.mxu0 %vm523_vm3, %v11770_v37  ;;  %v3702_v54 = vpop.f32.mrf.mxu0 }
 0x3fc   : > { %v11931_v23 = vpop.f32.mrf.mxu2  ;;  %v3738_v45 = vadd.f32 %v3702_v54, %v11863_v21 }
 0x401   : > { %9238 = vmatmul.msk.f32.gmra.mxu2 %vm523_vm3, %v11768_v56 }
 0x402   : > { %9254 = vmatmul.msk.f32.gmra.mxu3 %vm523_vm3, %v11791_v50  ;;  %9284 = vmatmul.msk.f32.gmra.mxu1 %vm523_vm3, %v11768_v56  ;;  %v4206_v56 = vld [vmem:[#allocation3 + $0xd8] sm:$0xff] }
 0x403   : > { %9269 = vmatmul.msk.f32.gmra.mxu0 %vm523_vm3, %v11784_v11  ;;  %v4354_v11 = vld [vmem:[#allocation3 + $0xd9] sm:$0xff]  ;;  %v3705_v12 = vpop.f32.mrf.mxu0 }
 0x404   : > { %v11941_v30 = vpop.f32.mrf.mxu2 }
 0x409   : > { %9239 = vmatmul.msk.f32.gmra.mxu2 %vm523_vm3, %v3910_v5 }
 0x40a   : > { %9255 = vmatmul.msk.f32.gmra.mxu3 %vm523_vm3, %v11943_v63  ;;  %9285 = vmatmul.msk.f32.gmra.mxu1 %vm523_vm3, %v3910_v5 }
 0x40b   : > { %9270 = vmatmul.msk.f32.gmra.mxu0 %vm523_vm3, %v11801_v3  ;;  %v4207_v3 = vld [vmem:[#allocation3 + $0xe0] sm:$0xff]  ;;  %v11975_v61 = vpop.f32.mrf.mxu0 }
 0x40c   : > { %v11951_v37 = vpop.f32.mrf.mxu2 }
 0x411   : > { %9240 = vmatmul.msk.f32.gmra.mxu2 %vm523_vm3, %v3911_v15 }
 0x412   : > { %9256 = vmatmul.msk.f32.gmra.mxu3 %vm523_vm3, %v11953_v22  ;;  %9286 = vmatmul.msk.f32.gmra.mxu1 %vm523_vm3, %v3911_v15  ;;  %v3884_v15 = vadd.f32 %v3844_v14, %v3736_v58 }
 0x413   : > { %9271 = vmatmul.msk.f32.gmra.mxu0 %vm523_vm3, %v4206_v56  ;;  %v11987_v13 = vpop.f32.mrf.mxu0  ;;  %v3883_v56 = vadd.f32 %v3841_v18, %v3735_v60  ;;  %v3739_v60 = vadd.f32 %v3705_v12, %v11875_v57 }
 0x414   : > { %v11960_v46 = vpop.f32.mrf.mxu2 }
 0x415   : > { %14503 = vst [vmem:[#allocation45_spill] sm:$0xff] %v11960_v46 }
 0x419   : > { %9289 = vmatmul.msk.f32.vlgmr.msra.gmra.mxu2 %vm523_vm3, %v11568_v55  ;;  %v11977_v55 = vpop.f32.mrf.mxu1 }
 0x41a   : > { %9287 = vmatmul.msk.f32.gmra.mxu1 %vm523_vm3, %v4354_v11 }
 0x41b   : > { %9272 = vmatmul.msk.f32.gmra.mxu0 %vm523_vm3, %v4207_v3  ;;  %v12000_v26 = vpop.f32.mrf.mxu0 }
 0x41c   : > { %v11966_v31 = vpop.f32.mrf.mxu2 }
 0x421   : > { %9290 = vmatmul.msk.f32.gmra.mxu2 %vm523_vm3, %v11595_v28  ;;  %v11989_v5 = vpop.f32.mrf.mxu1 }
 0x422   : > { %9288 = vmatmul.msk.f32.gmra.mxu1 %vm523_vm3, %v4355_v49 }
 0x423   : > { %v12011_v35 = vpop.f32.mrf.mxu0 }
 0x424   : > { %v11973_v48 = vpop.f32.mrf.mxu2 }
 0x429   : > { %9291 = vmatmul.msk.f32.gmra.mxu2 %vm523_vm3, %v11608_v47  ;;  %v11995_v47 = vpop.f32.mrf.mxu3  ;;  %v12002_v17 = vpop.f32.mrf.mxu1 }
 0x42c   : > { %v3986_v52 = vpop.f32.mrf.mxu2 }
 0x42d   : > { %v11984_v28 = vadd.f32 %v3986_v52, %v3882_v33  ;;  %v3886_v33 = vadd.f32 %v3850_v4, %v3738_v45 }
 0x431   : > { %9292 = vmatmul.msk.f32.gmra.mxu2 %vm523_vm3, %v11637_v39  ;;  %v3737_v39 = vadd.f32 %v3699_v38, %v11853_v27  ;;  %v12007_v18 = vpop.f32.mrf.mxu3 }
 0x433   : > { %v3885_v49 = vadd.f32 %v3847_v20, %v3737_v39 }
 0x434   : > { %v3989_v19 = vpop.f32.mrf.mxu2 }
 0x435   : > { %v11993_v6 = vadd.f32 %v3989_v19, %v3883_v56  ;;  %v3887_v56 = vadd.f32 %v3853_v9, %v3739_v60 }
 0x439   : > { %9293 = vmatmul.msk.f32.gmra.mxu2 %vm523_vm3, %v11650_v29  ;;  %v12013_v29 = vpop.f32.mrf.mxu1  ;;  %v12020_v27 = vpop.f32.mrf.mxu3 }
 0x43c   : > { %v3992_v11 = vpop.f32.mrf.mxu2 }
 0x43d   : > { %v12004_v3 = vadd.f32 %v3992_v11, %v3884_v15 }
 0x441   : > { %9294 = vmatmul.msk.f32.gmra.mxu2 %vm523_vm3, %v11679_v24  ;;  %v12024_v24 = vpop.f32.mrf.mxu0  ;;  %v12026_v20 = vpop.f32.mrf.mxu1 }
 0x442   : > { %14505 = vst [vmem:[#allocation13_spill] sm:$0xff] %v12026_v20  ;;  %v12031_v54 = vpop.f32.mrf.mxu3 }
 0x444   : > { %v3995_v32 = vpop.f32.mrf.mxu2 }
 0x445   : > { %v12015_v14 = vadd.f32 %v3995_v32, %v3885_v49 }
 0x449   : > { %9295 = vmatmul.msk.f32.gmra.mxu2 %vm523_vm3, %v11692_v42  ;;  %v12035_v4 = vpop.f32.mrf.mxu0  ;;  %v12037_v19 = vpop.f32.mrf.mxu1 }
 0x44a   : > { %14507 = vst [vmem:[#allocation23_spill] sm:$0xff] %v12037_v19  ;;  %v12043_v15 = vpop.f32.mrf.mxu3 }
 0x44c   : > { %v3998_v38 = vpop.f32.mrf.mxu2 }
 0x44d   : > { %v12022_v52 = vadd.f32 %v3998_v38, %v3886_v33 }
 0x44f   : > { %14504 = vst [vmem:[#allocation25_spill] sm:$0xff] %v12022_v52 }
 0x451   : > { %9296 = vmatmul.msk.f32.gmra.mxu2 %vm523_vm3, %v11721_v10  ;;  %v12047_v10 = vpop.f32.mrf.mxu0  ;;  %v12049_v57 = vpop.f32.mrf.mxu1 }
 0x452   : > { %14509 = vst [vmem:[#allocation26_spill] sm:$0xff] %v12047_v10  ;;  %v12053_v9 = vpop.f32.mrf.mxu3 }
 0x453   : > { %14510 = vst [vmem:[#allocation36_spill] sm:$0xff] %v12049_v57 }
 0x454   : > { %v4001_v21 = vpop.f32.mrf.mxu2  ;;  %14512 = vst [vmem:[#allocation37_spill] sm:$0xff] %v12053_v9 }
 0x455   : > { %v12033_v42 = vadd.f32 %v4001_v21, %v3887_v56  ;;  %v4502_v56 = vld [vmem:[#allocation3 + $0xda] sm:$0xff] }
 0x457   : > { %14506 = vst [vmem:[#allocation19_spill] sm:$0xff] %v12033_v42 }
 0x459   : > { %9297 = vmatmul.msk.f32.gmra.mxu2 %vm523_vm3, %v11734_v7  ;;  %v12059_v7 = vpop.f32.mrf.mxu0  ;;  %v12061_v39 = vpop.f32.mrf.mxu1 }
 0x45a   : > { %14514 = vst [vmem:[#allocation38_spill] sm:$0xff] %v12059_v7 }
 0x45b   : > { %14515 = vst [vmem:[#allocation39_spill] sm:$0xff] %v12061_v39 }
 0x45c   : > { %v12041_v58 = vpop.f32.mrf.mxu2 }
 0x45d   : > { %14508 = vst [vmem:[#allocation47_spill] sm:$0xff] %v12041_v58 }
 0x461   : > { %9298 = vmatmul.msk.f32.gmra.mxu2 %vm523_vm3, %v11761_v25  ;;  %v12065_v25 = vpop.f32.mrf.mxu3  ;;  %v12069_v32 = vpop.f32.mrf.mxu0 }
 0x462   : > { %v12071_v45 = vpop.f32.mrf.mxu1 }
 0x464   : > { %v12051_v12 = vpop.f32.mrf.mxu2 }
 0x465   : > { %14511 = vst [vmem:[#allocation24_spill] sm:$0xff] %v12051_v12 }
 0x469   : > { %9299 = vmatmul.msk.f32.gmra.mxu2 %vm523_vm3, %v11772_v34  ;;  %v12077_v33 = vpop.f32.mrf.mxu3  ;;  %v12079_v38 = vpop.f32.mrf.mxu0 }
 0x46a   : > { %v12081_v60 = vpop.f32.mrf.mxu1 }
 0x46c   : > { %v12057_v11 = vpop.f32.mrf.mxu2 }
 0x46d   : > { %14513 = vst [vmem:[#allocation48_spill] sm:$0xff] %v12057_v11 }
 0x471   : > { %9300 = vmatmul.msk.f32.gmra.mxu2 %vm523_vm3, %v11791_v50  ;;  %v12087_v21 = vpop.f32.mrf.mxu3  ;;  %v12093_v39 = vpop.f32.mrf.mxu0 }
 0x472   : > { %v12095_v7 = vpop.f32.mrf.mxu1 }
 0x474   : > { %v12067_v49 = vpop.f32.mrf.mxu2 }
 0x475   : > { %14516 = vst [vmem:[#allocation12_spill] sm:$0xff] %v12067_v49  ;;  %v4503_v49 = vld [vmem:[#allocation3 + $0xe2] sm:$0xff] }
 0x479   : > { %9301 = vmatmul.msk.f32.gmra.mxu2 %vm523_vm3, %v11943_v63  ;;  %v4739_v63 = vld [vmem:[%s14333_s7 + $0x8] sm:$0xff]  ;;  %v12104_v57 = vpop.f32.mrf.mxu0 }
 0x47a   : > { %4758 = vmatpush.msrb.mxu3 %v4739_v63 }
 0x47c   : > { %v12075_v34 = vpop.f32.mrf.mxu2 }
 0x47d   : > { %14517 = vst [vmem:[#allocation40_spill] sm:$0xff] %v12075_v34 }
 0x481   : > { %9302 = vmatmul.msk.f32.gmra.mxu2 %vm523_vm3, %v11953_v22  ;;  %v12099_v22 = vpop.f32.mrf.mxu3  ;;  %v12112_v46 = vpop.f32.mrf.mxu0 }
 0x482   : > { %14523 = vst [vmem:[#allocation50_spill] sm:$0xff] %v12112_v46 }
 0x484   : > { %v12085_v50 = vpop.f32.mrf.mxu2 }
 0x485   : > { %14518 = vst [vmem:[#allocation49_spill] sm:$0xff] %v12085_v50 }
 0x489   : > { %9303 = vmatmul.msk.f32.gmra.mxu2 %vm523_vm3, %v4502_v56  ;;  %v12106_v56 = vpop.f32.mrf.mxu1  ;;  %v12108_v11 = vpop.f32.mrf.mxu3 }
 0x48a   : > { %14521 = vst [vmem:[#allocation21_spill] sm:$0xff] %v12106_v56  ;;  %v12120_v42 = vpop.f32.mrf.mxu0 }
 0x48b   : > { %14525 = vst [vmem:[#allocation46_spill] sm:$0xff] %v12120_v42 }
 0x48c   : > { %v12097_v34 = vpop.f32.mrf.mxu2 }
 0x48d   : > { %14519 = vst [vmem:[#allocation41_spill] sm:$0xff] %v12097_v34 }
 0x491   : > { %9304 = vmatmul.msk.f32.gmra.mxu2 %vm523_vm3, %v4503_v49  ;;  %v12114_v19 = vpop.f32.mrf.mxu1  ;;  %v12118_v12 = vpop.f32.mrf.mxu3 }
 0x492   : > { %14524 = vst [vmem:[#allocation44_spill] sm:$0xff] %v12114_v19  ;;  %v12128_v52 = vpop.f32.mrf.mxu0 }
 0x493   : > { %14529 = vst [vmem:[#allocation54_spill] sm:$0xff] %v12128_v52 }
 0x494   : > { %v12102_v50 = vpop.f32.mrf.mxu2 }
 0x495   : > { %14520 = vst [vmem:[#allocation42_spill] sm:$0xff] %v12102_v50 }
 0x499   : > { %v12122_v49 = vpop.f32.mrf.mxu1  ;;  %v12126_v10 = vpop.f32.mrf.mxu3 }
 0x49a   : > { %14526 = vst [vmem:[#allocation51_spill] sm:$0xff] %v12122_v49  ;;  %v12138_v56 = vpop.f32.mrf.mxu0 }
 0x49b   : > { %14528 = vst [vmem:[#allocation53_spill] sm:$0xff] %v12126_v10 }
 0x49c   : > { %v12110_v9 = vpop.f32.mrf.mxu2  ;;  %14533 = vst [vmem:[#allocation58_spill] sm:$0xff] %v12138_v56 }
 0x49d   : > { %14522 = vst [vmem:[#allocation43_spill] sm:$0xff] %v12110_v9 }
 0x4a1   : > { %v12130_v58 = vpop.f32.mrf.mxu1  ;;  %v12134_v46 = vpop.f32.mrf.mxu3 }
 0x4a2   : > { %14530 = vst [vmem:[#allocation55_spill] sm:$0xff] %v12130_v58  ;;  %v4738_v58 = vld [vmem:[%s14333_s7] sm:$0xff] }
 0x4a3   : > { %4759 = vmatpush.msrb.mxu3 %v4738_v58 }
 0x4a4   : > { %v12116_v34 = vpop.f32.mrf.mxu2 }
 0x4a5   : > { %4782 = vmatpush.msra.mxu3 %v4739_v63  ;;  %v3556_v63 = vadd.f32 %v11813_v2, %v11811_v0  ;;  %v3580_v2 = vadd.f32 %v11982_v36, %v11901_v44  ;;  %v4179_v36 = vadd.f32 %v12099_v22, %v11993_v6 }
 0x4a7   : > { %4783 = vmatpush.msra.mxu3 %v4738_v58  ;;  %v3553_v58 = vadd.f32 %v11788_v43, %v11786_v59  ;;  %v3577_v59 = vadd.f32 %v11971_v1, %v11887_v41  ;;  %v3741_v44 = vadd.f32 %v11987_v13, %v3580_v2  ;;  %v3589_v1 = vadd.f32 %v12020_v27, %v11931_v23  ;;  %v14558_v2 = vld [vmem:[#allocation24_spill] sm:$0xff] }
 0x4a8   : > { %v3592_v23 = vadd.f32 %v12031_v54, %v11941_v30 }
 0x4a9   : > { %v12140_v20 = vpop.f32.mrf.mxu1  ;;  %v12142_v42 = vpop.f32.mrf.mxu3 }
 0x4aa   : > { %14534 = vst [vmem:[#allocation59_spill] sm:$0xff] %v12140_v20 }
 0x4ab   : > { %14535 = vst [vmem:[#allocation60_spill] sm:$0xff] %v12142_v42 }
 0x4ac   : > { %v12124_v50 = vpop.f32.mrf.mxu2 }
 0x4ad   : > { %14527 = vst [vmem:[#allocation52_spill] sm:$0xff] %v12124_v50  ;;  %v12146_v50 = vpop.f32.mrf.mxu0 }
 0x4ae   : > { %14537 = vst [vmem:[#allocation62_spill] sm:$0xff] %v12146_v50 }
 0x4b1   : > { %v12148_v10 = vpop.f32.mrf.mxu1 }
 0x4b2   : > { %14538 = vst [vmem:[#allocation63_spill] sm:$0xff] %v12148_v10 }
 0x4b4   : > { %v12132_v9 = vpop.f32.mrf.mxu2 }
 0x4b5   : > { %14531 = vst [vmem:[#allocation56_spill] sm:$0xff] %v12132_v9  ;;  %v12157_v20 = vpop.f32.mrf.mxu0 }
 0x4b6   : > { %14540 = vst [vmem:[#allocation65_spill] sm:$0xff] %v12157_v20 }
 0x4b9   : > { %v12159_v56 = vpop.f32.mrf.mxu1 }
 0x4ba   : > { %14541 = vst [vmem:[#allocation66_spill] sm:$0xff] %v12159_v56  ;;  %v3733_v56 = vadd.f32 %v11889_v51, %v3556_v63 }
 0x4bc   : > { %v12136_v19 = vpop.f32.mrf.mxu2 }
 0x4bd   : > { %14532 = vst [vmem:[#allocation57_spill] sm:$0xff] %v12136_v19  ;;  %v12155_v19 = vpop.f32.mrf.mxu3  ;;  %v12165_v10 = vpop.f32.mrf.mxu0 }
 0x4be   : > { %14544 = vst [vmem:[#allocation69_spill] sm:$0xff] %v12165_v10  ;;  %v3881_v10 = vadd.f32 %v11891_v62, %v3733_v56 }
 0x4c0   : > { %v4029_v0 = vadd.f32 %v11973_v48, %v3881_v10  ;;  %v3740_v48 = vadd.f32 %v11975_v61, %v3577_v59  ;;  %v4180_v10 = vadd.f32 %v12108_v11, %v12004_v3  ;;  %v3745_v3 = vadd.f32 %v12035_v4, %v3592_v23  ;;  %v14547_v11 = vld [vmem:[#allocation13_spill] sm:$0xff]  ;;  %v14557_v59 = vld [vmem:[#allocation19_spill] sm:$0xff]  ;;  %v14565_v23 = vld [vmem:[#allocation60_spill] sm:$0xff] }
 0x4c1   : > { %v12167_v42 = vpop.f32.mrf.mxu1  ;;  %v12251_v4 = vld [vmem:[%s14332_s6] ss:$0 sm:$0xff] }
 0x4c2   : > { %14545 = vst [vmem:[#allocation70_spill] sm:$0xff] %v12167_v42  ;;  %v4177_v51 = vadd.f32 %v12077_v33, %v4029_v0 }
 0x4c4   : > { %v12144_v49 = vpop.f32.mrf.mxu2 }
 0x4c5   : > { %14536 = vst [vmem:[#allocation61_spill] sm:$0xff] %v12144_v49  ;;  %v12163_v50 = vpop.f32.mrf.mxu3 }
 0x4c6   : > { %14543 = vst [vmem:[#allocation68_spill] sm:$0xff] %v12163_v50  ;;  %v12182_v50 = vpop.f32.mrf.mxu0 }
 0x4c9   : > { %v12184_v42 = vpop.f32.mrf.mxu1 }
 0x4cc   : > { %v12153_v52 = vpop.f32.mrf.mxu2 }
 0x4cd   : > { %14539 = vst [vmem:[#allocation64_spill] sm:$0xff] %v12153_v52  ;;  %v12175_v52 = vpop.f32.mrf.mxu3 }
 0x4ce   : > { %v12214_v61 = vpop.f32.mrf.mxu0 }
 0x4d4   : > { %v12161_v49 = vpop.f32.mrf.mxu2 }
 0x4d5   : > { %14542 = vst [vmem:[#allocation67_spill] sm:$0xff] %v12161_v49  ;;  %v3732_v49 = vadd.f32 %v11873_v16, %v3553_v58  ;;  %v3583_v16 = vadd.f32 %v11995_v47, %v11911_v8  ;;  %v12196_v62 = vpop.f32.mrf.mxu3  ;;  %v4325_v47 = vadd.f32 %v12079_v38, %v4177_v51  ;;  %v14550_v38 = vld [vmem:[#allocation50_spill] sm:$0xff]  ;;  %v14559_v51 = vld [vmem:[#allocation23_spill] sm:$0xff] }
 0x4d6   : > { %v14556_v58 = vld [vmem:[#allocation46_spill] sm:$0xff] }
 0x4d7   : > { %v3742_v8 = vadd.f32 %v12000_v26, %v3583_v16 }
 0x4d9   : > { %v3890_v26 = vadd.f32 %v12002_v17, %v3742_v8  ;;  %v4181_v17 = vadd.f32 %v12118_v12, %v12015_v14  ;;  %v4328_v14 = vadd.f32 %v14550_v38, %v4180_v10  ;;  %v14551_v12 = vld [vmem:[#allocation25_spill] sm:$0xff]  ;;  %v4315_v10 = vpop.f32.mrf.mxu0 }
 0x4db   : > { %v4329_v0 = vadd.f32 %v14556_v58, %v4181_v17  ;;  %v14568_v17 = vld [vmem:[#allocation57_spill] sm:$0xff] }
 0x4dc   : > { %v12169_v9 = vpop.f32.mrf.mxu2 }
 0x4dd   : > { %14546 = vst [vmem:[#allocation71_spill] sm:$0xff] %v12169_v9  ;;  %v3880_v9 = vadd.f32 %v11877_v40, %v3732_v49  ;;  %v3586_v40 = vadd.f32 %v12007_v18, %v11921_v53  ;;  %v3888_v53 = vadd.f32 %v11977_v55, %v3740_v48  ;;  %v12216_v18 = vpop.f32.mrf.mxu1  ;;  %v4473_v55 = vadd.f32 %v12081_v60, %v4325_v47  ;;  %v14555_v49 = vld [vmem:[#allocation26_spill] sm:$0xff]  ;;  %v14560_v48 = vld [vmem:[#allocation44_spill] sm:$0xff]  ;;  %v14564_v47 = vld [vmem:[#allocation51_spill] sm:$0xff] }
 0x4df   : > { %v4028_v43 = vadd.f32 %v11966_v31, %v3880_v9  ;;  %v4178_v31 = vadd.f32 %v12087_v21, %v11984_v28  ;;  %v3889_v28 = vadd.f32 %v11989_v5, %v3741_v44  ;;  %v3743_v13 = vadd.f32 %v12011_v35, %v3586_v40  ;;  %v14553_v21 = vld [vmem:[#allocation43_spill] sm:$0xff]  ;;  %v14561_v44 = vld [vmem:[#allocation56_spill] sm:$0xff] }
 0x4e0   : > { %v3744_v9 = vadd.f32 %v12024_v24, %v3589_v1  ;;  %v3595_v5 = vadd.f32 %v12043_v15, %v11951_v37  ;;  %v4327_v35 = vadd.f32 %v12104_v57, %v4179_v36  ;;  %v14549_v37 = vld [vmem:[#allocation47_spill] sm:$0xff]  ;;  %v3893_v40 = vadd.f32 %v14559_v51, %v3745_v3  ;;  %v14562_v1 = vld [vmem:[#allocation45_spill] sm:$0xff]  ;;  %v14570_v3 = vld [vmem:[#allocation58_spill] sm:$0xff] }
 0x4e1   : > { %v4176_v41 = vadd.f32 %v12065_v25, %v4028_v43  ;;  %v4326_v6 = vadd.f32 %v12093_v39, %v4178_v31  ;;  %v3891_v30 = vadd.f32 %v12013_v29, %v3743_v13  ;;  %v4621_v25 = vadd.f32 %v12116_v34, %v4473_v55  ;;  %v14552_v29 = vld [vmem:[#allocation53_spill] sm:$0xff]  ;;  %v14554_v34 = vld [vmem:[#allocation52_spill] sm:$0xff]  ;;  %v14567_v55 = vld [vmem:[#allocation54_spill] sm:$0xff] }
 0x4e2   : > { %v3892_v24 = vadd.f32 %v14547_v11, %v3744_v9  ;;  %v4036_v15 = vadd.f32 %v14549_v37, %v3888_v53  ;;  %v4182_v60 = vadd.f32 %v14552_v29, %v14551_v12  ;;  %v3746_v63 = vadd.f32 %v14555_v49, %v3595_v5  ;;  %v14563_v36 = vld [vmem:[#allocation37_spill] sm:$0xff]  ;;  %v14572_v37 = vld [vmem:[#allocation55_spill] sm:$0xff] }
 0x4e3   : > { %v4324_v27 = vadd.f32 %v12069_v32, %v4176_v41  ;;  %v4474_v39 = vadd.f32 %v12095_v7, %v4326_v6  ;;  %v14548_v32 = vld [vmem:[#allocation21_spill] sm:$0xff]  ;;  %v4183_v43 = vadd.f32 %v12134_v46, %v14557_v59  ;;  %v4037_v16 = vadd.f32 %v14558_v2, %v3889_v28  ;;  %v14566_v6 = vld [vmem:[#allocation48_spill] sm:$0xff] }
 0x4e4   : > { %v12178_v20 = vpop.f32.mrf.mxu2  ;;  %v4475_v33 = vadd.f32 %v14548_v32, %v4327_v35  ;;  %v4476_v41 = vadd.f32 %v14560_v48, %v4328_v14  ;;  %v12262_v31 = vadd.f32 %v12251_v4, %v4621_v25  ;;  %v3598_v53 = vadd.f32 %v14563_v36, %v14562_v1  ;;  %v14573_v12 = vld [vmem:[#allocation61_spill] sm:$0xff] }
 0x4e5   : > { %v4472_v54 = vadd.f32 %v12071_v45, %v4324_v27  ;;  %v4167_v45 = vpop.f32.mrf.mxu3  ;;  %v4622_v22 = vadd.f32 %v14554_v34, %v4474_v39  ;;  %v4477_v13 = vadd.f32 %v14564_v47, %v4329_v0  ;;  %v4184_v27 = vadd.f32 %v14565_v23, %v4036_v15  ;;  %v12271_v9 = vpop.f32.mrf.mxu1  ;;  %v14569_v39 = vld [vmem:[#allocation36_spill] sm:$0xff]  ;;  %v14582_v23 = vld [vmem:[#allocation67_spill] sm:$0xff] }
 0x4e6   : > { %v4623_v8 = vadd.f32 %v14561_v44, %v4475_v33  ;;  %v4038_v46 = vadd.f32 %v14566_v6, %v3890_v26  ;;  %v4330_v28 = vadd.f32 %v14567_v55, %v4182_v60  ;;  %v3894_v25 = vadd.f32 %v14569_v39, %v3746_v63  ;;  %v14571_v26 = vld [vmem:[#allocation12_spill] sm:$0xff]  ;;  %v14574_v60 = vld [vmem:[#allocation62_spill] sm:$0xff]  ;;  %v14583_v6 = vld [vmem:[#allocation69_spill] sm:$0xff]  ;;  %v4318_v39 = vpop.f32.mrf.mxu0 }
 0x4e7   : > { %v4620_v7 = vadd.f32 %v14553_v21, %v4472_v54  ;;  %v12277_v35 = vadd.f32 %v12251_v4, %v4622_v22  ;;  %v4624_v54 = vadd.f32 %v14568_v17, %v4476_v41  ;;  %v4331_v11 = vadd.f32 %v14570_v3, %v4183_v43  ;;  %v14576_v22 = vld [vmem:[#allocation68_spill] sm:$0xff]  ;;  %v14580_v41 = vld [vmem:[#allocation49_spill] sm:$0xff]  ;;  %v14584_v55 = vld [vmem:[#allocation66_spill] sm:$0xff] }
 0x4e8   : > { %v4185_v32 = vadd.f32 %v12155_v19, %v4037_v16  ;;  %v4039_v33 = vadd.f32 %v14571_v26, %v3891_v30  ;;  %v4478_v15 = vadd.f32 %v14572_v37, %v4330_v28  ;;  %v4657_v38 = vsel %vm523_vm3, %v12262_v31, 0.0  ;;  %v14577_v63 = vld [vmem:[#allocation40_spill] sm:$0xff]  ;;  %v14579_v16 = vld [vmem:[#allocation65_spill] sm:$0xff] }
 0x4e9   : > { %v12274_v5 = vadd.f32 %v12251_v4, %v4620_v7  ;;  %v12288_v14 = vadd.f32 %v12251_v4, %v4623_v8  ;;  %v4625_v29 = vadd.f32 %v14573_v12, %v4477_v13  ;;  %v4332_v21 = vadd.f32 %v14574_v60, %v4184_v27  ;;  %v14575_v7 = vld [vmem:[#allocation59_spill] sm:$0xff]  ;;  %v14578_v43 = vld [vmem:[#allocation64_spill] sm:$0xff]  ;;  %v14585_v17 = vld [vmem:[#allocation41_spill] sm:$0xff] }
 0x4ea   : > { %v4479_v34 = vadd.f32 %v14575_v7, %v4331_v11  ;;  %v4186_v49 = vadd.f32 %v14576_v22, %v4038_v46  ;;  %v4040_v19 = vadd.f32 %v14577_v63, %v3892_v24  ;;  %v4659_v0 = vsel %vm523_vm3, %v12277_v35, 0.0  ;;  %v14581_v24 = vld [vmem:[#allocation63_spill] sm:$0xff] }
 0x4eb   : > { %v4656_v30 = vsel %vm523_vm3, %v12274_v5, 0.0  ;;  %v12300_v59 = vadd.f32 %v12251_v4, %v4624_v54  ;;  %v4626_v2 = vadd.f32 %v14578_v43, %v4478_v15  ;;  %v4333_v51 = vadd.f32 %v14579_v16, %v4185_v32  ;;  %v14586_v32 = vld [vmem:[#allocation71_spill] sm:$0xff] }
 0x4ec   : > { %v12200_v56 = vpop.f32.mrf.mxu2  ;;  %v4187_v48 = vadd.f32 %v12175_v52, %v4039_v33  ;;  %v4041_v44 = vadd.f32 %v14580_v41, %v3893_v40  ;;  %v4658_v8 = vadd.f32 %v4657_v38, %v4656_v30  ;;  %v4480_v1 = vadd.f32 %v14581_v24, %v4332_v21  ;;  %v14587_v33 = vld [vmem:[#allocation38_spill] sm:$0xff] }
 0x4ed   : > { %v4170_v36 = vpop.f32.mrf.mxu3  ;;  %v4661_v47 = vsel %vm523_vm3, %v12288_v14, 0.0  ;;  %v12310_v13 = vadd.f32 %v12251_v4, %v4625_v29  ;;  %v4627_v27 = vadd.f32 %v14582_v23, %v4479_v34  ;;  %v4334_v46 = vadd.f32 %v14583_v6, %v4186_v49  ;;  %v14588_v29 = vld [vmem:[#allocation70_spill] sm:$0xff]  ;;  %v4466_v60 = vpop.f32.mrf.mxu1  ;;  %v14589_v34 = vld [vmem:[#allocation39_spill] sm:$0xff] }
 0x4ee   : > { %v4481_v28 = vadd.f32 %v14584_v55, %v4333_v51  ;;  %v4042_v52 = vadd.f32 %v14585_v17, %v3894_v25  ;;  %v4660_v54 = vadd.f32 %v4659_v0, %v4658_v8  ;;  %v4188_v40 = vadd.f32 %v12196_v62, %v4040_v19  ;;  %v4321_v23 = vpop.f32.mrf.mxu0 }
 0x4ef   : > { %v4663_v3 = vsel %vm523_vm3, %v12300_v59, 0.0  ;;  %v12320_v11 = vadd.f32 %v12251_v4, %v4626_v2  ;;  %v4628_v26 = vadd.f32 %v14586_v32, %v4480_v1  ;;  %v3747_v37 = vadd.f32 %v14587_v33, %v3598_v53  ;;  %v14590_v2 = vld [vmem:[#allocation42_spill] sm:$0xff] }
 0x4f0   : > { %v4335_v15 = vadd.f32 %v12182_v50, %v4187_v48  ;;  %v4189_v38 = vadd.f32 %v4167_v45, %v4041_v44  ;;  %v4662_v12 = vadd.f32 %v4661_v47, %v4660_v54  ;;  %v4482_v25 = vadd.f32 %v14588_v29, %v4334_v46 }
 0x4f1   : > { %v4665_v62 = vsel %vm523_vm3, %v12310_v13, 0.0  ;;  %v12329_v21 = vadd.f32 %v12251_v4, %v4627_v27  ;;  %v4629_v7 = vadd.f32 %v12178_v20, %v4481_v28  ;;  %v3895_v22 = vadd.f32 %v14589_v34, %v3747_v37 }
 0x4f2   : > { %v4483_v49 = vadd.f32 %v12184_v42, %v4335_v15  ;;  %v4190_v53 = vadd.f32 %v4170_v36, %v4042_v52  ;;  %v4664_v63 = vadd.f32 %v4663_v3, %v4662_v12  ;;  %v4336_v45 = vadd.f32 %v12214_v61, %v4188_v40 }
 0x4f3   : > { %v4667_v19 = vsel %vm523_vm3, %v12320_v11, 0.0  ;;  %v12338_v30 = vadd.f32 %v12251_v4, %v4628_v26  ;;  %v4630_v0 = vadd.f32 %v12200_v56, %v4482_v25  ;;  %v4337_v43 = vadd.f32 %v4315_v10, %v4189_v38 }
 0x4f4   : > { %v12242_v57 = vpop.f32.mrf.mxu2  ;;  %v4043_v20 = vadd.f32 %v14590_v2, %v3895_v22  ;;  %v4666_v16 = vadd.f32 %v4665_v62, %v4664_v63  ;;  %v4484_v51 = vadd.f32 %v12216_v18, %v4336_v45  ;;  %v4669_v42 = vsel %vm523_vm3, %v12329_v21, 0.0 }
 0x4f5   : > { %v12346_v48 = vadd.f32 %v12251_v4, %v4629_v7  ;;  %v4631_v61 = vadd.f32 %v12242_v57, %v4483_v49  ;;  %v4485_v41 = vadd.f32 %v12271_v9, %v4337_v43  ;;  %v4338_v44 = vadd.f32 %v4318_v39, %v4190_v53  ;;  %v4173_v24 = vpop.f32.mrf.mxu3  ;;  %v4469_v28 = vpop.f32.mrf.mxu1 }
 0x4f6   : > { %v4668_v8 = vadd.f32 %v4667_v19, %v4666_v16  ;;  %v4671_v56 = vsel %vm523_vm3, %v12338_v30, 0.0  ;;  %v12353_v10 = vadd.f32 %v12251_v4, %v4630_v0  ;;  %v4191_v1 = vadd.f32 %v4173_v24, %v4043_v20 }
 0x4f7   : > { %v4486_v47 = vadd.f32 %v4466_v60, %v4338_v44  ;;  %v4673_v27 = vsel %vm523_vm3, %v12346_v48, 0.0  ;;  %v12358_v57 = vadd.f32 %v12251_v4, %v4631_v61  ;;  %v9908_v55 = vmov 128.0  }
 0x4f8   : > { %v4670_v36 = vadd.f32 %v4669_v42, %v4668_v8  ;;  %9784 = vrcp.f32 %v9908_v55  ;;  %v4675_v17 = vsel %vm523_vm3, %v12353_v10, 0.0  ;;  %v4339_v54 = vadd.f32 %v4321_v23, %v4191_v1 }
 0x4f9   : > { %v4705_v39 = vsel %vm523_vm3, %v12300_v59, -inf  ;;  %v4707_v3 = vsel %vm523_vm3, %v12310_v13, -inf  ;;  %v4677_v32 = vsel %vm523_vm3, %v12358_v57, 0.0  ;;  %v4701_v33 = vsel %vm523_vm3, %v12274_v5, -inf }
 0x4fa   : > { %v4672_v6 = vadd.f32 %v4671_v56, %v4670_v36  ;;  %v4487_v37 = vadd.f32 %v4469_v28, %v4339_v54  ;;  %v4702_v38 = vsel %vm523_vm3, %v12262_v31, -inf  ;;  %v4703_v12 = vsel %vm523_vm3, %v12277_v35, -inf }
 0x4fb   : > { %v4704_v62 = vsel %vm523_vm3, %v12288_v14, -inf  ;;  %v4706_v7 = vmax.f32 %v4701_v33, %v4705_v39  ;;  %v4708_v34 = vmax.f32 %v4702_v38, %v4707_v3  ;;  %v4709_v49 = vsel %vm523_vm3, %v12320_v11, -inf }
 0x4fc   : > { %v4608_v58 = vpop.f32.mrf.mxu2  ;;  %v4674_v40 = vadd.f32 %v4673_v27, %v4672_v6  ;;  %v4711_v53 = vsel %vm523_vm3, %v12329_v21, -inf  ;;  %v4715_v63 = vsel %vm523_vm3, %v12346_v48, -inf  ;;  %v4713_v45 = vsel %vm523_vm3, %v12338_v30, -inf }
 0x4fd   : > { %v4632_v18 = vadd.f32 %v4608_v58, %v4484_v51  ;;  %v4717_v19 = vsel %vm523_vm3, %v12353_v10, -inf  ;;  %v4719_v0 = vsel %vm523_vm3, %v12358_v57, -inf  ;;  %v4710_v61 = vmax.f32 %v4703_v12, %v4709_v49 }
 0x4fe   : > { %v4676_v15 = vadd.f32 %v4675_v17, %v4674_v40  ;;  %v9785_v60 = vpop.eup %9784  ;;  %v4716_v44 = vmax.f32 %v4708_v34, %v4715_v63  ;;  %v4714_v24 = vmax.f32 %v4706_v7, %v4713_v45 }
 0x4ff   : > { %v12363_v58 = vadd.f32 %v12251_v4, %v4632_v18  ;;  %v4694_v42 = vmul.f32 128.0, %v9785_v60  ;;  %v4718_v36 = vmax.f32 %v4710_v61, %v4717_v19  ;;  %vm4698_vm5 = vweird.f32 %v9785_v60  ;;  %v9315_v61 = vld [vmem:[%s14329_s3 + $0xa8] sm:$0xff] }
 0x500   : > { %v4678_v22 = vadd.f32 %v4677_v32, %v4676_v15 }
 0x501   : > { %v4679_v29 = vsel %vm523_vm3, %v12363_v58, 0.0  ;;  %v4721_v56 = vsel %vm523_vm3, %v12363_v58, -inf  ;;  %v4695_v6 = vsub.f32 1.0, %v4694_v42 }
 0x502   : > { %v4680_v43 = vadd.f32 %v4679_v29, %v4678_v22  ;;  %v4722_v55 = vmax.f32 %v4714_v24, %v4721_v56  ;;  %v9312_v24 = vld [vmem:[%s14329_s3 + $0x90] sm:$0xff] }
 0x503   : > { %v9348_v56 = vld [vmem:[%s14329_s3 + $0xb0] sm:$0xff] }
 0x504   : > { %v4611_v50 = vpop.f32.mrf.mxu2 }
 0x505   : > { %v4633_v9 = vadd.f32 %v4611_v50, %v4485_v41  ;;  %v4712_v41 = vmax.f32 %v4704_v62, %v4711_v53 }
 0x507   : > { %v12372_v26 = vadd.f32 %v12251_v4, %v4633_v9 }
 0x509   : > { %v4681_v50 = vsel %vm523_vm3, %v12372_v26, 0.0  ;;  %v4723_v20 = vsel %vm523_vm3, %v12372_v26, -inf }
 0x50a   : > { %v4682_v8 = vadd.f32 %v4681_v50, %v4680_v43  ;;  %v4724_v23 = vmax.f32 %v4716_v44, %v4723_v20  ;;  %v4740_v50 = vld [vmem:[#allocation7] sm:$0xf]  ;;  %v9349_v44 = vld [vmem:[%s14329_s3 + $0xb8] sm:$0xff] }
 0x50b   : > { %5267 = vmatpush.msrb.mxu1 %v9349_v44 }
 0x50c   : > { %v4614_v46 = vpop.f32.mrf.mxu2  ;;  %v4729_v54 = vmax.f32 %v4722_v55, %v4724_v23 }
 0x50d   : > { %v4634_v52 = vadd.f32 %v4614_v46, %v4486_v47  ;;  %v4720_v47 = vmax.f32 %v4712_v41, %v4719_v0  ;;  %v9313_v41 = vld [vmem:[%s14329_s3 + $0x98] sm:$0xff]  ;;  %5268 = vmatpush.msrb.mxu1 %v9348_v56 }
 0x50e   : > { %5135 = vmatpush.msrb.mxu0 %v9313_v41  ;;  %v14610_v41 = vld [vmem:[#allocation33_spill] sm:$0xff] }
 0x50f   : > { %v12383_v25 = vadd.f32 %v12251_v4, %v4634_v52 }
 0x510   : > { %5136 = vmatpush.msrb.mxu0 %v9312_v24 }
 0x511   : > { %v4683_v16 = vsel %vm523_vm3, %v12383_v25, 0.0  ;;  %v4725_v18 = vsel %vm523_vm3, %v12383_v25, -inf }
 0x512   : > { %v4684_v27 = vadd.f32 %v4683_v16, %v4682_v8  ;;  %v4726_v28 = vmax.f32 %v4718_v36, %v4725_v18  ;;  %v9314_v8 = vld [vmem:[%s14329_s3 + $0xa0] sm:$0xff]  ;;  %v4941_v18 = vld [vmem:[#allocation3 + $0x1] sm:$0xff] }
 0x513   : > { %v4922_v36 = vld [vmem:[#allocation3] sm:$0xff] }
 0x514   : > { %v4617_v2 = vpop.f32.mrf.mxu2  ;;  %9332 = vmatmul.msk.f32.vlgmr.msrb.gmra.mxu0 %vm523_vm3, %v4922_v36 }
 0x515   : > { %v4635_v51 = vadd.f32 %v4617_v2, %v4487_v37 }
 0x517   : > { %v12410_v1 = vadd.f32 %v12251_v4, %v4635_v51  ;;  %v4696_v4 = vmul.f32 %v9785_v60, %v4695_v6 }
 0x519   : > { %v4685_v9 = vsel %vm523_vm3, %v12410_v1, 0.0  ;;  %v4727_v46 = vsel %vm523_vm3, %v12410_v1, -inf  ;;  %v4697_v15 = vadd.f32 %v9785_v60, %v4696_v4 }
 0x51a   : > { %v4686_v17 = vadd.f32 %v4685_v9, %v4684_v27  ;;  %v4728_v52 = vmax.f32 %v4720_v47, %v4727_v46  ;;  %v5186_v47 = vld [vmem:[#allocation3 + $0x2] sm:$0xff] }
 0x51b   : > { %v12416_v7 = vsel %vm4698_vm5, %v9785_v60, %v4697_v15  ;;  %9350 = vmatmul.msk.f32.vlgmr.msrb.gmra.mxu1 %vm523_vm3, %v5186_v47 }
 0x51c   : > { %v4687_v40 = vrot.slane %v4686_v17, 4  ;;  %v4730_v39 = vmax.f32 %v4726_v28, %v4728_v52  ;;  %14591 = vst [vmem:[#allocation13_spill] sm:$0xff] %v12416_v7  ;;  %v4942_v28 = vld [vmem:[#allocation3 + $0x9] sm:$0xff] }
 0x51d   : > { %v5187_v52 = vld [vmem:[#allocation3 + $0xa] sm:$0xff] }
 0x51e   : > { %v4688_v3 = vadd.f32 %v4687_v40, %v4686_v17  ;;  %v4731_v32 = vmax.f32 %v4729_v54, %v4730_v39  ;;  %v4923_v17 = vld [vmem:[#allocation3 + $0x8] sm:$0xff]  ;;  %v9367_v54 = vld [vmem:[%s14329_s3 + $0xc8] sm:$0xff]  ;;  %v9366_v39 = vld [vmem:[%s14329_s3 + $0xc0] sm:$0xff] }
 0x51f   : > { %v9385_v40 = vld [vmem:[%s14329_s3 + $0xd8] sm:$0xff]  ;;  %5415 = vmatpush.msrb.mxu2 %v9367_v54  ;;  %9333 = vmatmul.msk.f32.gmra.mxu0 %vm523_vm3, %v4923_v17 }
 0x520   : > { %v4689_v33 = vrot.slane %v4688_v3, 2  ;;  %v4732_v37 = vrot.slane %v4731_v32, 4 }
 0x521   : > { %5416 = vmatpush.msrb.mxu2 %v9366_v39 }
 0x522   : > { %v4690_v38 = vadd.f32 %v4689_v33, %v4688_v3  ;;  %v4733_v12 = vmax.f32 %v4731_v32, %v4732_v37 }
 0x523   : > { %9351 = vmatmul.msk.f32.gmra.mxu1 %vm523_vm3, %v5187_v52  ;;  %v14622_v52 = vld [vmem:[#allocation16_spill] sm:$0xff] }
 0x524   : > { %v4691_v29 = vrot.slane %v4690_v38, 1  ;;  %v4734_v62 = vrot.slane %v4733_v12, 2  ;;  %v14623_v54 = vmax.f32 %v14622_v52, 0.0 }
 0x526   : > { %v4692_v34 = vadd.f32 %v4691_v29, %v4690_v38  ;;  %v4735_v49 = vmax.f32 %v4733_v12, %v4734_v62 }
 0x528   : > { %v4700_v22 = vmul.f32 %v12416_v7, %v4692_v34  ;;  %v4736_v53 = vrot.slane %v4735_v49, 1 }
 0x52a   : > { %9305 = vmatmul.msk.f32.vlgmr.msrb.gmra.mxu3 %vm523_vm3, %v4700_v22  ;;  %v4737_v63 = vmax.f32 %v4735_v49, %v4736_v53  ;;  %v14592_v49 = vld [vmem:[#allocation27_spill] sm:$0xff] }
 0x52b   : > { %9307 = vmatpush.msk.msrb.mxu3 %vm696_vm1, %v4740_v50  ;;  %v14593_v53 = vmax.f32 %v14592_v49, 0.0 }
 0x532   : > { %9306 = vmatmul.msk.f32.vlgmr.msra.gmra.mxu3 %vm523_vm3, %v4737_v63 }
 0x533   : > { %9309 = vmatpush.msk.msra.mxu3 %vm696_vm1, %v4740_v50  ;;  %v14595_v50 = vld [vmem:[#allocation28_spill] sm:$0xff] }
 0x5ad   : > { %v4761_v45 = vpop.f32.mrf.mxu3 }
 0x5ae   : > { %v4764_v60 = vmax.f32 %v4761_v45, 0.0  ;;  %v14596_v45 = vmax.f32 %v14595_v50, 0.0  ;;  %v14637_v50 = vld [vmem:[#allocation15_spill] sm:$0xff] }
 0x5b5   : > { %v4785_v19 = vpop.f32.mrf.mxu3 }
 0x5b6   : > { %v4788_v0 = vmax.f32 %v4785_v19, 0.0 }
 0x5b8   : > { %9308 = vmatmul.msk.f32.vlgmr.msrb.gmra.mxu3 %vm491_vm0, %v4788_v0 }
 0x5b9   : > { %5022 = vmatpush.msrb.mxu3 %v9315_v61 }
 0x5bb   : > { %5023 = vmatpush.msrb.mxu3 %v9314_v8 }
 0x5c0   : > { %9310 = vmatmul.msk.f32.vlgmr.msra.gmra.mxu3 %vm491_vm0, %v4764_v60 }
 0x5c1   : > { %5563 = vmatpush.msra.mxu3 %v9385_v40 }
 0x5c8   : > { %9316 = vmatmul.msk.f32.vlgmr.msrb.gmra.mxu3 %vm523_vm3, %v4941_v18  ;;  %v14613_v18 = vld [vmem:[#allocation34_spill] sm:$0xff] }
 0x5d0   : > { %9317 = vmatmul.msk.f32.gmra.mxu3 %vm523_vm3, %v4942_v28 }
 0x63b   : > { %v4812_v43 = vpop.f32.mrf.mxu3 }
 0x643   : > { %v4835_v2 = vpop.f32.mrf.mxu3 }
 0x644   : > { %v4836_v20 = vadd.f32 %v4835_v2, %v4812_v43 }
 0x646   : > { %v9311_v16 = vmul.f32 -1.442695, %v4836_v20 }
 0x648   : > { %9786 = vpow2.f32 %v9311_v16 }
 0x64e   : > { %v9787_v51 = vpop.eup %9786 }
 0x64f   : > { %v4841_v42 = vadd.f32 1.0, %v9787_v51  ;;  %v14607_v51 = vld [vmem:[#allocation32_spill] sm:$0xff] }
 0x651   : > { %9788 = vrcp.f32 %v4841_v42  ;;  %v4853_v6 = vand.u32 2147483648, %v4841_v42  ;;  %v4851_v55 = vand.u32 2147483647, %v4841_v42  ;;  %vm4847_vm7 = vweird.f32 %v4841_v42 }
 0x653   : > { %v4854_v3 = vor.u32 1.1754944e-38, %v4853_v6  ;;  %vm4852_vm9 = vcmp.eq.f32.partialorder %v4851_v55, 8.507059e+37 }
 0x657   : > { %v9789_v23 = vpop.eup %9788 }
 0x658   : > { %v4843_v27 = vmul.f32 %v9789_v23, %v4841_v42  ;;  %vm4848_vm6 = vweird.f32 %v9789_v23  ;;  %v14608_v42 = vmax.f32 %v14607_v51, 0.0 }
 0x659   : > { %vm4849_vm8 = vmor %vm4847_vm7, %vm4848_vm6 }
 0x65a   : > { %v4844_v9 = vsub.f32 1.0, %v4843_v27 }
 0x65c   : > { %v4845_v46 = vmul.f32 %v9789_v23, %v4844_v9 }
 0x65e   : > { %v4846_v4 = vadd.f32 %v9789_v23, %v4845_v46  ;;  %v14619_v46 = vld [vmem:[#allocation18_spill] sm:$0xff] }
 0x65f   : > { %v14620_v55 = vmax.f32 %v14619_v46, 0.0 }
 0x660   : > { %v4850_v32 = vsel %vm4849_vm8, %v9789_v23, %v4846_v4  ;;  %v14616_v23 = vld [vmem:[#allocation35_spill] sm:$0xff]  ;;  %v14625_v4 = vld [vmem:[#allocation20_spill] sm:$0xff] }
 0x661   : > { %v4855_v33 = vsel %vm4852_vm9, %v4854_v3, %v4850_v32  ;;  %v14617_v27 = vmax.f32 %v14616_v23, 0.0  ;;  %v14626_v3 = vmax.f32 %v14625_v4, 0.0 }
 0x662   : > { %v4857_v37 = vperm.slane %v4855_v33, 0 }
 0x664   : > { %v4858_v15 = vmul.f32 %v4857_v37, %v12274_v5  ;;  %v4859_v38 = vmul.f32 %v4857_v37, %v12262_v31  ;;  %v4860_v12 = vmul.f32 %v4857_v37, %v12277_v35  ;;  %v4861_v29 = vmul.f32 %v4857_v37, %v12288_v14  ;;  %v14598_v5 = vld [vmem:[#allocation29_spill] sm:$0xff]  ;;  %v14601_v14 = vld [vmem:[#allocation30_spill] sm:$0xff] }
 0x665   : > { %v4862_v62 = vmul.f32 %v4857_v37, %v12300_v59  ;;  %v4863_v34 = vmul.f32 %v4857_v37, %v12310_v13  ;;  %v4864_v22 = vmul.f32 %v4857_v37, %v12320_v11  ;;  %v14599_v31 = vmax.f32 %v14598_v5, 0.0  ;;  %v14604_v11 = vld [vmem:[#allocation31_spill] sm:$0xff] }
 0x666   : > { %v12467_v63 = vadd.f32 %v4858_v15, %v14593_v53  ;;  %v12471_v19 = vadd.f32 %v4859_v38, %v14596_v45  ;;  %v4865_v35 = vmul.f32 %v4857_v37, %v12329_v21  ;;  %v14602_v59 = vmax.f32 %v14601_v14, 0.0 }
 0x667   : > { %v12475_v0 = vadd.f32 %v4860_v12, %v14599_v31  ;;  %v4866_v13 = vmul.f32 %v4857_v37, %v12338_v30  ;;  %v14605_v43 = vmax.f32 %v14604_v11, 0.0  ;;  %v4867_v20 = vmul.f32 %v4857_v37, %v12346_v48 }
 0x668   : > { %14594 = vst [vmem:[#allocation21_spill] sm:$0xff] %v12467_v63  ;;  %v12480_v60 = vadd.f32 %v4861_v29, %v14602_v59  ;;  %v4868_v16 = vmul.f32 %v4857_v37, %v12353_v10  ;;  %v12491_v61 = vadd.f32 %v4863_v34, %v14608_v42  ;;  %v14611_v21 = vmax.f32 %v14610_v41, 0.0  ;;  %v14634_v34 = vld [vmem:[#allocation22_spill] sm:$0xff] }
 0x669   : > { %14597 = vst [vmem:[#allocation47_spill] sm:$0xff] %v12471_v19  ;;  %v12485_v2 = vadd.f32 %v4862_v62, %v14605_v43  ;;  %v14389_v8 = vmax.f32 %v12467_v63, 0.0  ;;  %v14388_v30 = vmax.f32 %v12471_v19, 0.0  ;;  %v14387_v24 = vmax.f32 %v12475_v0, 0.0  ;;  %v6089_v19 = vld [vmem:[#allocation3 + $0xe2] sm:$0xff] }
 0x66a   : > { %14600 = vst [vmem:[#allocation50_spill] sm:$0xff] %v12475_v0  ;;  %v12495_v44 = vadd.f32 %v4864_v22, %v14611_v21  ;;  %v4869_v56 = vmul.f32 %v4857_v37, %v12358_v57  ;;  %v14614_v48 = vmax.f32 %v14613_v18, 0.0  ;;  %v14386_v10 = vmax.f32 %v12480_v60, 0.0  ;;  %v9384_v18 = vld [vmem:[%s14329_s3 + $0xd0] sm:$0xff] }
 0x66b   : > { %14603 = vst [vmem:[#allocation25_spill] sm:$0xff] %v12480_v60  ;;  %v4870_v47 = vmul.f32 %v4857_v37, %v12363_v58  ;;  %v12509_v9 = vadd.f32 %v4866_v13, %v14617_v27  ;;  %v14385_v6 = vmax.f32 %v12485_v2, 0.0  ;;  %v4871_v57 = vmul.f32 %v4857_v37, %v12372_v26  ;;  %5564 = vmatpush.msra.mxu3 %v9384_v18  ;;  %v9439_v18 = vld [vmem:[%s14329_s3 + $0x108] sm:$0xff] }
 0x66c   : > { %14606 = vst [vmem:[#allocation53_spill] sm:$0xff] %v12485_v2  ;;  %v12503_v36 = vadd.f32 %v4865_v35, %v14614_v48  ;;  %v12518_v28 = vadd.f32 %v4867_v20, %v14620_v55  ;;  %v14384_v17 = vmax.f32 %v12491_v61, 0.0  ;;  %v4872_v58 = vmul.f32 %v4857_v37, %v12383_v25  ;;  %v14628_v25 = vld [vmem:[#allocation14_spill] sm:$0xff]  ;;  %6007 = vmatpush.msra.mxu2 %v9439_v18 }
 0x66d   : > { %14609 = vst [vmem:[#allocation43_spill] sm:$0xff] %v12491_v61  ;;  %v12527_v40 = vadd.f32 %v4868_v16, %v14623_v54  ;;  %v14383_v39 = vmax.f32 %v12495_v44, 0.0  ;;  %v4873_v26 = vmul.f32 %v4857_v37, %v12410_v1  ;;  %v12536_v32 = vadd.f32 %v4869_v56, %v14626_v3  ;;  %v14631_v1 = vld [vmem:[#allocation17_spill] sm:$0xff]  ;;  %v6276_v61 = vld [vmem:[#allocation3 + $0x8] sm:$0xff] }
 0x66e   : > { %14612 = vst [vmem:[#allocation52_spill] sm:$0xff] %v12495_v44  ;;  %v14382_v33 = vmax.f32 %v12503_v36, 0.0  ;;  %v14629_v15 = vmax.f32 %v14628_v25, 0.0  ;;  %v14381_v12 = vmax.f32 %v12509_v9, 0.0  ;;  %v14632_v37 = vmax.f32 %v14631_v1, 0.0 }
 0x66f   : > { %14615 = vst [vmem:[#allocation26_spill] sm:$0xff] %v12503_v36  ;;  %v14380_v62 = vmax.f32 %v12518_v28, 0.0  ;;  %v14635_v22 = vmax.f32 %v14634_v34, 0.0  ;;  %v14379_v53 = vmax.f32 %v12527_v40, 0.0  ;;  %v14638_v45 = vmax.f32 %v14637_v50, 0.0  ;;  %v6275_v36 = vld [vmem:[#allocation3] sm:$0xff] }
 0x670   : > { %14618 = vst [vmem:[#allocation46_spill] sm:$0xff] %v12509_v9  ;;  %v12544_v38 = vadd.f32 %v4870_v47, %v14629_v15  ;;  %v12552_v29 = vadd.f32 %v4871_v57, %v14632_v37  ;;  %v14378_v31 = vmax.f32 %v12536_v32, 0.0  ;;  %v6292_v9 = vld [vmem:[#allocation5 + $0x90] sm:$0xff] }
 0x671   : > { %4906 = vst.msk [vmem:[#allocation3 + $0x19] sm:$0xff] %vm523_vm3, %v14389_v8  ;;  %v12560_v49 = vadd.f32 %v4872_v58, %v14635_v22  ;;  %v12568_v5 = vadd.f32 %v4873_v26, %v14638_v45 }
 0x672   : > { %14621 = vst [vmem:[#allocation19_spill] sm:$0xff] %v12518_v28  ;;  %v14377_v59 = vmax.f32 %v12544_v38, 0.0  ;;  %v14376_v11 = vmax.f32 %v12552_v29, 0.0 }
 0x673   : > { %4907 = vst.msk [vmem:[#allocation3 + $0x21] sm:$0xff] %vm523_vm3, %v14388_v30  ;;  %v14375_v43 = vmax.f32 %v12560_v49, 0.0  ;;  %v14374_v20 = vmax.f32 %v12568_v5, 0.0 }
 0x674   : > { %14624 = vst [vmem:[#allocation24_spill] sm:$0xff] %v12527_v40  ;;  %v6539_v40 = vld [vmem:[#allocation3 + $0x2] sm:$0xff] }
 0x675   : > { %4908 = vst.msk [vmem:[#allocation3 + $0x31] sm:$0xff] %vm523_vm3, %v14387_v24 }
 0x676   : > { %14627 = vst [vmem:[#allocation23_spill] sm:$0xff] %v12536_v32 }
 0x677   : > { %4909 = vst.msk [vmem:[#allocation3 + $0x39] sm:$0xff] %vm523_vm3, %v14386_v10 }
 0x678   : > { %14630 = vst [vmem:[#allocation44_spill] sm:$0xff] %v12544_v38  ;;  %v12574_v35 = vld [vmem:[#allocation3 + $0x19] sm:$0xff] }
 0x679   : > { %4910 = vst.msk [vmem:[#allocation3 + $0x49] sm:$0xff] %vm523_vm3, %v14385_v6  ;;  %v4924_v14 = vld [vmem:[#allocation3 + $0x18] sm:$0xff]  ;;  %9318 = vmatmul.msk.f32.gmra.mxu3 %vm523_vm3, %v12574_v35  ;;  %v12818_v6 = vpop.f32.mrf.mxu3 }
 0x67a   : > { %14633 = vst [vmem:[#allocation56_spill] sm:$0xff] %v12552_v29  ;;  %9334 = vmatmul.msk.f32.gmra.mxu0 %vm523_vm3, %v4924_v14  ;;  %v12583_v13 = vld [vmem:[#allocation3 + $0x1a] sm:$0xff]  ;;  %9368 = vmatmul.msk.f32.vlgmr.msrb.gmra.mxu2 %vm523_vm3, %v4924_v14  ;;  %v12617_v42 = vld [vmem:[#allocation3 + $0x22] sm:$0xff] }
 0x67b   : > { %4911 = vst.msk [vmem:[#allocation3 + $0x51] sm:$0xff] %vm523_vm3, %v14384_v17  ;;  %9352 = vmatmul.msk.f32.gmra.mxu1 %vm523_vm3, %v12583_v13  ;;  %v12612_v16 = vld [vmem:[#allocation3 + $0x21] sm:$0xff]  ;;  %v9403_v14 = vld [vmem:[%s14329_s3 + $0xe8] sm:$0xff]  ;;  %v12816_v17 = vpop.f32.mrf.mxu1 }
 0x67c   : > { %14636 = vst [vmem:[#allocation45_spill] sm:$0xff] %v12560_v49  ;;  %v4925_v51 = vld [vmem:[#allocation3 + $0x20] sm:$0xff]  ;;  %v12622_v41 = vld [vmem:[#allocation3 + $0x31] sm:$0xff]  ;;  %5711 = vmatpush.msra.mxu0 %v9403_v14 }
 0x67d   : > { %4912 = vst.msk [vmem:[#allocation3 + $0x61] sm:$0xff] %vm523_vm3, %v14383_v39  ;;  %v12624_v21 = vld [vmem:[#allocation3 + $0x30] sm:$0xff]  ;;  %v12814_v39 = vpop.f32.mrf.mxu0 }
 0x67e   : > { %14639 = vst [vmem:[#allocation37_spill] sm:$0xff] %v12568_v5  ;;  %v12630_v56 = vld [vmem:[#allocation3 + $0x32] sm:$0xff]  ;;  %v12647_v23 = vld [vmem:[#allocation3 + $0x3a] sm:$0xff] }
 0x67f   : > { %4913 = vst.msk [vmem:[#allocation3 + $0x69] sm:$0xff] %vm523_vm3, %v14382_v33  ;;  %v12639_v48 = vld [vmem:[#allocation3 + $0x39] sm:$0xff] }
 0x680   : > { %4914 = vst.msk [vmem:[#allocation3 + $0x79] sm:$0xff] %vm523_vm3, %v14381_v12  ;;  %v12641_v47 = vld [vmem:[#allocation3 + $0x38] sm:$0xff]  ;;  %v12653_v27 = vld [vmem:[#allocation3 + $0x49] sm:$0xff] }
 0x681   : > { %4915 = vst.msk [vmem:[#allocation3 + $0x81] sm:$0xff] %vm523_vm3, %v14380_v62  ;;  %9319 = vmatmul.msk.f32.gmra.mxu3 %vm523_vm3, %v12612_v16  ;;  %v12655_v57 = vld [vmem:[#allocation3 + $0x48] sm:$0xff] }
 0x682   : > { %4916 = vst.msk [vmem:[#allocation3 + $0x91] sm:$0xff] %vm523_vm3, %v14379_v53  ;;  %9335 = vmatmul.msk.f32.gmra.mxu0 %vm523_vm3, %v4925_v51  ;;  %9369 = vmatmul.msk.f32.gmra.mxu2 %vm523_vm3, %v4925_v51  ;;  %v12661_v46 = vld [vmem:[#allocation3 + $0x4a] sm:$0xff]  ;;  %v12675_v52 = vld [vmem:[#allocation3 + $0x52] sm:$0xff] }
 0x683   : > { %4917 = vst.msk [vmem:[#allocation3 + $0x99] sm:$0xff] %vm523_vm3, %v14378_v31  ;;  %9353 = vmatmul.msk.f32.gmra.mxu1 %vm523_vm3, %v12617_v42  ;;  %v12667_v55 = vld [vmem:[#allocation3 + $0x51] sm:$0xff]  ;;  %v9421_v51 = vld [vmem:[%s14329_s3 + $0xf8] sm:$0xff]  ;;  %v12832_v30 = vpop.f32.mrf.mxu1 }
 0x684   : > { %4918 = vst.msk [vmem:[#allocation3 + $0xa9] sm:$0xff] %vm523_vm3, %v14377_v59  ;;  %v12669_v58 = vld [vmem:[#allocation3 + $0x50] sm:$0xff]  ;;  %v12681_v54 = vld [vmem:[#allocation3 + $0x61] sm:$0xff]  ;;  %5859 = vmatpush.msra.mxu1 %v9421_v51 }
 0x685   : > { %4919 = vst.msk [vmem:[#allocation3 + $0xb1] sm:$0xff] %vm523_vm3, %v14376_v11  ;;  %v12683_v26 = vld [vmem:[#allocation3 + $0x60] sm:$0xff]  ;;  %v12830_v24 = vpop.f32.mrf.mxu0 }
 0x686   : > { %4920 = vst.msk [vmem:[#allocation3 + $0xc1] sm:$0xff] %vm523_vm3, %v14375_v43  ;;  %v12689_v4 = vld [vmem:[#allocation3 + $0x62] sm:$0xff]  ;;  %v12703_v15 = vld [vmem:[#allocation3 + $0x6a] sm:$0xff] }
 0x687   : > { %4921 = vst.msk [vmem:[#allocation3 + $0xc9] sm:$0xff] %vm523_vm3, %v14374_v20  ;;  %v12695_v3 = vld [vmem:[#allocation3 + $0x69] sm:$0xff]  ;;  %v12709_v1 = vld [vmem:[#allocation3 + $0x79] sm:$0xff] }
 0x688   : > { %v12697_v25 = vld [vmem:[#allocation3 + $0x68] sm:$0xff]  ;;  %v12711_v37 = vld [vmem:[#allocation3 + $0x78] sm:$0xff]  ;;  %v12725_v50 = vld [vmem:[#allocation3 + $0x80] sm:$0xff] }
 0x689   : > { %9320 = vmatmul.msk.f32.gmra.mxu3 %vm523_vm3, %v12622_v41  ;;  %v12717_v34 = vld [vmem:[#allocation3 + $0x7a] sm:$0xff]  ;;  %v12731_v45 = vld [vmem:[#allocation3 + $0x82] sm:$0xff]  ;;  %v9402_v20 = vld [vmem:[%s14329_s3 + $0xe0] sm:$0xff] }
 0x68a   : > { %9336 = vmatmul.msk.f32.gmra.mxu0 %vm523_vm3, %v12624_v21  ;;  %9370 = vmatmul.msk.f32.gmra.mxu2 %vm523_vm3, %v12624_v21  ;;  %v12723_v22 = vld [vmem:[#allocation3 + $0x81] sm:$0xff]  ;;  %v12752_v11 = vld [vmem:[#allocation3 + $0x91] sm:$0xff] }
 0x68b   : > { %9354 = vmatmul.msk.f32.gmra.mxu1 %vm523_vm3, %v12630_v56  ;;  %v9420_v43 = vld [vmem:[%s14329_s3 + $0xf0] sm:$0xff]  ;;  %5712 = vmatpush.msra.mxu0 %v9402_v20  ;;  %v12754_v59 = vld [vmem:[#allocation3 + $0x90] sm:$0xff]  ;;  %v12771_v51 = vld [vmem:[#allocation3 + $0x98] sm:$0xff] }
 0x68c   : > { %5860 = vmatpush.msra.mxu1 %v9420_v43  ;;  %v12760_v14 = vld [vmem:[#allocation3 + $0x92] sm:$0xff]  ;;  %v9457_v43 = vld [vmem:[%s14329_s3 + $0x118] sm:$0xff]  ;;  %v12777_v18 = vld [vmem:[#allocation3 + $0x9a] sm:$0xff] }
 0x68d   : > { %6155 = vmatpush.msrb.mxu3 %v9457_v43  ;;  %v12769_v20 = vld [vmem:[#allocation3 + $0x99] sm:$0xff]  ;;  %v9438_v43 = vld [vmem:[%s14329_s3 + $0x100] sm:$0xff]  ;;  %v12788_v53 = vld [vmem:[#allocation3 + $0xa8] sm:$0xff] }
 0x68e   : > { %v12786_v31 = vld [vmem:[#allocation3 + $0xa9] sm:$0xff]  ;;  %6008 = vmatpush.msra.mxu2 %v9438_v43  ;;  %v12800_v12 = vld [vmem:[#allocation3 + $0xb1] sm:$0xff]  ;;  %v12820_v10 = vld [vmem:[#allocation3 + $0xc0] sm:$0xff] }
 0x68f   : > { %v12794_v62 = vld [vmem:[#allocation3 + $0xaa] sm:$0xff]  ;;  %v12808_v43 = vld [vmem:[#allocation3 + $0xb2] sm:$0xff] }
 0x690   : > { %v12802_v33 = vld [vmem:[#allocation3 + $0xb0] sm:$0xff]  ;;  %v12834_v8 = vld [vmem:[#allocation3 + $0xc8] sm:$0xff] }
 0x691   : > { %9321 = vmatmul.msk.f32.gmra.mxu3 %vm523_vm3, %v12639_v48 }
 0x692   : > { %9337 = vmatmul.msk.f32.gmra.mxu0 %vm523_vm3, %v12641_v47  ;;  %9371 = vmatmul.msk.f32.gmra.mxu2 %vm523_vm3, %v12641_v47 }
 0x693   : > { %9355 = vmatmul.msk.f32.gmra.mxu1 %vm523_vm3, %v12647_v23 }
 0x699   : > { %9322 = vmatmul.msk.f32.gmra.mxu3 %vm523_vm3, %v12653_v27 }
 0x69a   : > { %9338 = vmatmul.msk.f32.gmra.mxu0 %vm523_vm3, %v12655_v57  ;;  %9372 = vmatmul.msk.f32.gmra.mxu2 %vm523_vm3, %v12655_v57 }
 0x69b   : > { %9356 = vmatmul.msk.f32.gmra.mxu1 %vm523_vm3, %v12661_v46 }
 0x6a1   : > { %9323 = vmatmul.msk.f32.gmra.mxu3 %vm523_vm3, %v12667_v55 }
 0x6a2   : > { %9339 = vmatmul.msk.f32.gmra.mxu0 %vm523_vm3, %v12669_v58  ;;  %9373 = vmatmul.msk.f32.gmra.mxu2 %vm523_vm3, %v12669_v58 }
 0x6a3   : > { %9357 = vmatmul.msk.f32.gmra.mxu1 %vm523_vm3, %v12675_v52 }
 0x6a9   : > { %9324 = vmatmul.msk.f32.gmra.mxu3 %vm523_vm3, %v12681_v54 }
 0x6aa   : > { %9340 = vmatmul.msk.f32.gmra.mxu0 %vm523_vm3, %v12683_v26  ;;  %9374 = vmatmul.msk.f32.gmra.mxu2 %vm523_vm3, %v12683_v26 }
 0x6ab   : > { %9358 = vmatmul.msk.f32.gmra.mxu1 %vm523_vm3, %v12689_v4 }
 0x6b1   : > { %9325 = vmatmul.msk.f32.gmra.mxu3 %vm523_vm3, %v12695_v3 }
 0x6b2   : > { %9341 = vmatmul.msk.f32.gmra.mxu0 %vm523_vm3, %v12697_v25  ;;  %9375 = vmatmul.msk.f32.gmra.mxu2 %vm523_vm3, %v12697_v25 }
 0x6b3   : > { %9359 = vmatmul.msk.f32.gmra.mxu1 %vm523_vm3, %v12703_v15 }
 0x6b9   : > { %9326 = vmatmul.msk.f32.gmra.mxu3 %vm523_vm3, %v12709_v1 }
 0x6ba   : > { %9342 = vmatmul.msk.f32.gmra.mxu0 %vm523_vm3, %v12711_v37  ;;  %9376 = vmatmul.msk.f32.gmra.mxu2 %vm523_vm3, %v12711_v37 }
 0x6bb   : > { %9360 = vmatmul.msk.f32.gmra.mxu1 %vm523_vm3, %v12717_v34 }
 0x6c1   : > { %9327 = vmatmul.msk.f32.gmra.mxu3 %vm523_vm3, %v12723_v22 }
 0x6c2   : > { %9343 = vmatmul.msk.f32.gmra.mxu0 %vm523_vm3, %v12725_v50  ;;  %9377 = vmatmul.msk.f32.gmra.mxu2 %vm523_vm3, %v12725_v50 }
 0x6c3   : > { %9361 = vmatmul.msk.f32.gmra.mxu1 %vm523_vm3, %v12731_v45 }
 0x6c9   : > { %9328 = vmatmul.msk.f32.gmra.mxu3 %vm523_vm3, %v12752_v11 }
 0x6ca   : > { %9344 = vmatmul.msk.f32.gmra.mxu0 %vm523_vm3, %v12754_v59  ;;  %9378 = vmatmul.msk.f32.gmra.mxu2 %vm523_vm3, %v12754_v59 }
 0x6cb   : > { %9362 = vmatmul.msk.f32.gmra.mxu1 %vm523_vm3, %v12760_v14 }
 0x6d1   : > { %9329 = vmatmul.msk.f32.gmra.mxu3 %vm523_vm3, %v12769_v20 }
 0x6d2   : > { %9345 = vmatmul.msk.f32.gmra.mxu0 %vm523_vm3, %v12771_v51  ;;  %9379 = vmatmul.msk.f32.gmra.mxu2 %vm523_vm3, %v12771_v51 }
 0x6d3   : > { %9363 = vmatmul.msk.f32.gmra.mxu1 %vm523_vm3, %v12777_v18 }
 0x6d9   : > { %9330 = vmatmul.msk.f32.gmra.mxu3 %vm523_vm3, %v12786_v31 }
 0x6da   : > { %9346 = vmatmul.msk.f32.gmra.mxu0 %vm523_vm3, %v12788_v53  ;;  %9380 = vmatmul.msk.f32.gmra.mxu2 %vm523_vm3, %v12788_v53 }
 0x6db   : > { %9364 = vmatmul.msk.f32.gmra.mxu1 %vm523_vm3, %v12794_v62 }
 0x6e1   : > { %9331 = vmatmul.msk.f32.gmra.mxu3 %vm523_vm3, %v12800_v12 }
 0x6e2   : > { %9347 = vmatmul.msk.f32.gmra.mxu0 %vm523_vm3, %v12802_v33  ;;  %9381 = vmatmul.msk.f32.gmra.mxu2 %vm523_vm3, %v12802_v33 }
 0x6e3   : > { %9365 = vmatmul.msk.f32.gmra.mxu1 %vm523_vm3, %v12808_v43 }
 0x6e9   : > { %9386 = vmatmul.msk.f32.vlgmr.msra.gmra.mxu3 %vm523_vm3, %v12574_v35  ;;  %v12844_v35 = vpop.f32.mrf.mxu3 }
 0x6ea   : > { %9404 = vmatmul.msk.f32.vlgmr.msra.gmra.mxu0 %vm523_vm3, %v12583_v13  ;;  %9382 = vmatmul.msk.f32.gmra.mxu2 %vm523_vm3, %v12820_v10 }
 0x6eb   : > { %9422 = vmatmul.msk.f32.vlgmr.msra.gmra.mxu1 %vm523_vm3, %v12624_v21 }
 0x6f1   : > { %9387 = vmatmul.msk.f32.gmra.mxu3 %vm523_vm3, %v12612_v16 }
 0x6f2   : > { %9405 = vmatmul.msk.f32.gmra.mxu0 %vm523_vm3, %v12617_v42  ;;  %9383 = vmatmul.msk.f32.gmra.mxu2 %vm523_vm3, %v12834_v8 }
 0x6f3   : > { %9423 = vmatmul.msk.f32.gmra.mxu1 %vm523_vm3, %v12641_v47 }
 0x6f7   : > { %v5144_v13 = vpop.f32.mrf.mxu0 }
 0x6f8   : > { %v5276_v21 = vpop.f32.mrf.mxu1 }
 0x6f9   : > { %9388 = vmatmul.msk.f32.gmra.mxu3 %vm523_vm3, %v12622_v41 }
 0x6fa   : > { %9406 = vmatmul.msk.f32.gmra.mxu0 %vm523_vm3, %v12630_v56  ;;  %9440 = vmatmul.msk.f32.vlgmr.msra.gmra.mxu2 %vm523_vm3, %v12622_v41 }
 0x6fb   : > { %9424 = vmatmul.msk.f32.gmra.mxu1 %vm523_vm3, %v12655_v57 }
 0x6fc   : > { %v5031_v16 = vpop.f32.mrf.mxu3 }
 0x6fd   : > { %v5145_v42 = vadd.f32 %v5144_v13, %v5031_v16  ;;  %v12854_v5 = vpop.f32.mrf.mxu2 }
 0x6ff   : > { %v5147_v47 = vpop.f32.mrf.mxu0  ;;  %v5320_v29 = vadd.f32 %v5276_v21, %v5145_v42 }
 0x700   : > { %v5279_v49 = vpop.f32.mrf.mxu1 }
 0x701   : > { %9389 = vmatmul.msk.f32.gmra.mxu3 %vm523_vm3, %v12639_v48 }
 0x702   : > { %9407 = vmatmul.msk.f32.gmra.mxu0 %vm523_vm3, %v12647_v23  ;;  %9441 = vmatmul.msk.f32.gmra.mxu2 %vm523_vm3, %v12639_v48  ;;  %v9456_v48 = vld [vmem:[%s14329_s3 + $0x110] sm:$0xff] }
 0x703   : > { %9425 = vmatmul.msk.f32.gmra.mxu1 %vm523_vm3, %v12669_v58  ;;  %6156 = vmatpush.msrb.mxu3 %v9456_v48 }
 0x704   : > { %v5034_v41 = vpop.f32.mrf.mxu3 }
 0x705   : > { %v5148_v57 = vadd.f32 %v5147_v47, %v5034_v41  ;;  %v12864_v13 = vpop.f32.mrf.mxu2 }
 0x707   : > { %v5150_v16 = vpop.f32.mrf.mxu0  ;;  %v5321_v38 = vadd.f32 %v5279_v49, %v5148_v57 }
 0x708   : > { %v5282_v32 = vpop.f32.mrf.mxu1 }
 0x709   : > { %9390 = vmatmul.msk.f32.gmra.mxu3 %vm523_vm3, %v12653_v27 }
 0x70a   : > { %9408 = vmatmul.msk.f32.gmra.mxu0 %vm523_vm3, %v12661_v46  ;;  %9442 = vmatmul.msk.f32.gmra.mxu2 %vm523_vm3, %v12653_v27 }
 0x70b   : > { %9426 = vmatmul.msk.f32.gmra.mxu1 %vm523_vm3, %v12683_v26 }
 0x70c   : > { %v5037_v58 = vpop.f32.mrf.mxu3 }
 0x70d   : > { %v5151_v49 = vadd.f32 %v5150_v16, %v5037_v58  ;;  %v5424_v21 = vpop.f32.mrf.mxu2 }
 0x70e   : > { %v12877_v42 = vadd.f32 %v5424_v21, %v5320_v29 }
 0x70f   : > { %v5322_v47 = vadd.f32 %v5282_v32, %v5151_v49  ;;  %v5153_v41 = vpop.f32.mrf.mxu0 }
 0x710   : > { %v5285_v26 = vpop.f32.mrf.mxu1 }
 0x711   : > { %9391 = vmatmul.msk.f32.gmra.mxu3 %vm523_vm3, %v12667_v55 }
 0x712   : > { %9409 = vmatmul.msk.f32.gmra.mxu0 %vm523_vm3, %v12675_v52  ;;  %9443 = vmatmul.msk.f32.gmra.mxu2 %vm523_vm3, %v12667_v55 }
 0x713   : > { %9427 = vmatmul.msk.f32.gmra.mxu1 %vm523_vm3, %v12697_v25 }
 0x714   : > { %v5040_v27 = vpop.f32.mrf.mxu3 }
 0x715   : > { %v5154_v57 = vadd.f32 %v5153_v41, %v5040_v27  ;;  %v5427_v16 = vpop.f32.mrf.mxu2 }
 0x716   : > { %v12887_v29 = vadd.f32 %v5427_v16, %v5321_v38 }
 0x717   : > { %v5323_v32 = vadd.f32 %v5285_v26, %v5154_v57  ;;  %v5156_v48 = vpop.f32.mrf.mxu0 }
 0x718   : > { %v5288_v55 = vpop.f32.mrf.mxu1 }
 0x719   : > { %9392 = vmatmul.msk.f32.gmra.mxu3 %vm523_vm3, %v12681_v54 }
 0x71a   : > { %9410 = vmatmul.msk.f32.gmra.mxu0 %vm523_vm3, %v12689_v4  ;;  %9444 = vmatmul.msk.f32.gmra.mxu2 %vm523_vm3, %v12681_v54 }
 0x71b   : > { %9428 = vmatmul.msk.f32.gmra.mxu1 %vm523_vm3, %v12711_v37 }
 0x71c   : > { %v5043_v25 = vpop.f32.mrf.mxu3 }
 0x71d   : > { %v5157_v58 = vadd.f32 %v5156_v48, %v5043_v25  ;;  %v5430_v49 = vpop.f32.mrf.mxu2 }
 0x71e   : > { %v12897_v38 = vadd.f32 %v5430_v49, %v5322_v47  ;;  %v5940_v49 = vld [vmem:[#allocation3 + $0xd9] sm:$0xff] }
 0x71f   : > { %v5324_v21 = vadd.f32 %v5288_v55, %v5157_v58  ;;  %v5159_v54 = vpop.f32.mrf.mxu0  ;;  %v5497_v55 = vld [vmem:[#allocation3 + $0xc9] sm:$0xff]  ;;  %v5139_v58 = vadd.f32 %v12814_v39, %v12818_v6 }
 0x720   : > { %v5291_v27 = vpop.f32.mrf.mxu1 }
 0x721   : > { %9393 = vmatmul.msk.f32.gmra.mxu3 %vm523_vm3, %v12695_v3 }
 0x722   : > { %9411 = vmatmul.msk.f32.gmra.mxu0 %vm523_vm3, %v12703_v15  ;;  %9445 = vmatmul.msk.f32.gmra.mxu2 %vm523_vm3, %v12695_v3 }
 0x723   : > { %9429 = vmatmul.msk.f32.gmra.mxu1 %vm523_vm3, %v12725_v50 }
 0x724   : > { %v5046_v37 = vpop.f32.mrf.mxu3 }
 0x725   : > { %v5160_v41 = vadd.f32 %v5159_v54, %v5046_v37  ;;  %v5433_v26 = vpop.f32.mrf.mxu2 }
 0x726   : > { %v12907_v47 = vadd.f32 %v5433_v26, %v5323_v32 }
 0x727   : > { %v5325_v57 = vadd.f32 %v5291_v27, %v5160_v41  ;;  %v5142_v41 = vadd.f32 %v12830_v24, %v12844_v35  ;;  %v5941_v27 = vld [vmem:[#allocation3 + $0xe1] sm:$0xff] }
 0x729   : > { %9394 = vmatmul.msk.f32.gmra.mxu3 %vm523_vm3, %v12709_v1 }
 0x72a   : > { %9412 = vmatmul.msk.f32.gmra.mxu0 %vm523_vm3, %v12717_v34  ;;  %9446 = vmatmul.msk.f32.gmra.mxu2 %vm523_vm3, %v12709_v1 }
 0x72b   : > { %9430 = vmatmul.msk.f32.gmra.mxu1 %vm523_vm3, %v12754_v59 }
 0x72c   : > { %v12917_v3 = vpop.f32.mrf.mxu3 }
 0x72d   : > { %v5436_v50 = vpop.f32.mrf.mxu2 }
 0x72e   : > { %v12919_v16 = vadd.f32 %v5436_v50, %v5324_v21  ;;  %v5318_v21 = vadd.f32 %v12816_v17, %v5139_v58 }
 0x730   : > { %v5466_v54 = vadd.f32 %v12854_v5, %v5318_v21  ;;  %v13009_v5 = vpop.f32.mrf.mxu0 }
 0x731   : > { %9395 = vmatmul.msk.f32.gmra.mxu3 %vm523_vm3, %v12723_v22 }
 0x732   : > { %9413 = vmatmul.msk.f32.gmra.mxu0 %vm523_vm3, %v12731_v45  ;;  %9447 = vmatmul.msk.f32.gmra.mxu2 %vm523_vm3, %v12723_v22 }
 0x733   : > { %9431 = vmatmul.msk.f32.gmra.mxu1 %vm523_vm3, %v12771_v51 }
 0x734   : > { %v12929_v59 = vpop.f32.mrf.mxu3 }
 0x735   : > { %v5439_v1 = vpop.f32.mrf.mxu2 }
 0x736   : > { %v12931_v32 = vadd.f32 %v5439_v1, %v5325_v57  ;;  %v5319_v57 = vadd.f32 %v12832_v30, %v5142_v41 }
 0x738   : > { %v5467_v6 = vadd.f32 %v12864_v13, %v5319_v57 }
 0x739   : > { %9396 = vmatmul.msk.f32.gmra.mxu3 %vm523_vm3, %v12752_v11 }
 0x73a   : > { %9414 = vmatmul.msk.f32.gmra.mxu0 %vm523_vm3, %v12760_v14  ;;  %9448 = vmatmul.msk.f32.gmra.mxu2 %vm523_vm3, %v12752_v11  ;;  %v5792_v11 = vld [vmem:[#allocation3 + $0xd8] sm:$0xff] }
 0x73b   : > { %9432 = vmatmul.msk.f32.gmra.mxu1 %vm523_vm3, %v12788_v53  ;;  %v6312_v53 = vld [vmem:[#allocation5 + $0xa8] sm:$0xff] }
 0x73c   : > { %v12941_v51 = vpop.f32.mrf.mxu3  ;;  %6375 = vmatpush.msrb.mxu0 %v6312_v53 }
 0x73d   : > { %v13015_v24 = vpop.f32.mrf.mxu2 }
 0x741   : > { %9397 = vmatmul.msk.f32.gmra.mxu3 %vm523_vm3, %v12769_v20 }
 0x742   : > { %9415 = vmatmul.msk.f32.gmra.mxu0 %vm523_vm3, %v12777_v18  ;;  %9449 = vmatmul.msk.f32.gmra.mxu2 %vm523_vm3, %v12769_v20  ;;  %v12973_v20 = vld [vmem:[#allocation3 + $0xc2] sm:$0xff] }
 0x743   : > { %9433 = vmatmul.msk.f32.gmra.mxu1 %vm523_vm3, %v12802_v33 }
 0x744   : > { %v12951_v22 = vpop.f32.mrf.mxu3 }
 0x745   : > { %v13026_v50 = vpop.f32.mrf.mxu2 }
 0x749   : > { %9398 = vmatmul.msk.f32.gmra.mxu3 %vm523_vm3, %v12786_v31 }
 0x74a   : > { %9416 = vmatmul.msk.f32.gmra.mxu0 %vm523_vm3, %v12794_v62  ;;  %9450 = vmatmul.msk.f32.gmra.mxu2 %vm523_vm3, %v12786_v31  ;;  %v5496_v31 = vld [vmem:[#allocation3 + $0xc1] sm:$0xff] }
 0x74b   : > { %9434 = vmatmul.msk.f32.gmra.mxu1 %vm523_vm3, %v12820_v10 }
 0x74c   : > { %v12961_v33 = vpop.f32.mrf.mxu3 }
 0x751   : > { %9399 = vmatmul.msk.f32.gmra.mxu3 %vm523_vm3, %v12800_v12 }
 0x752   : > { %9417 = vmatmul.msk.f32.gmra.mxu0 %vm523_vm3, %v12808_v43  ;;  %9451 = vmatmul.msk.f32.gmra.mxu2 %vm523_vm3, %v12800_v12  ;;  %v12982_v12 = vld [vmem:[#allocation3 + $0xca] sm:$0xff] }
 0x753   : > { %9435 = vmatmul.msk.f32.gmra.mxu1 %vm523_vm3, %v12834_v8  ;;  %v5793_v8 = vld [vmem:[#allocation3 + $0xe0] sm:$0xff] }
 0x754   : > { %v12971_v10 = vpop.f32.mrf.mxu3 }
 0x759   : > { %9400 = vmatmul.msk.f32.gmra.mxu3 %vm523_vm3, %v5496_v31 }
 0x75a   : > { %9418 = vmatmul.msk.f32.gmra.mxu0 %vm523_vm3, %v12973_v20  ;;  %9452 = vmatmul.msk.f32.gmra.mxu2 %vm523_vm3, %v5496_v31 }
 0x75b   : > { %9436 = vmatmul.msk.f32.gmra.mxu1 %vm523_vm3, %v5792_v11 }
 0x75c   : > { %v12980_v48 = vpop.f32.mrf.mxu3 }
 0x761   : > { %9401 = vmatmul.msk.f32.gmra.mxu3 %vm523_vm3, %v5497_v55 }
 0x762   : > { %9419 = vmatmul.msk.f32.gmra.mxu0 %vm523_vm3, %v12982_v12  ;;  %9453 = vmatmul.msk.f32.gmra.mxu2 %vm523_vm3, %v5497_v55 }
 0x763   : > { %9437 = vmatmul.msk.f32.gmra.mxu1 %vm523_vm3, %v5793_v8  ;;  %v13040_v8 = vpop.f32.mrf.mxu2 }
 0x764   : > { %v12989_v25 = vpop.f32.mrf.mxu3 }
 0x765   : > { %14640 = vst [vmem:[#allocation51_spill] sm:$0xff] %v12989_v25 }
 0x769   : > { %9458 = vmatmul.msk.f32.vlgmr.msrb.gmra.mxu3 %vm523_vm3, %v12630_v56  ;;  %v13011_v56 = vpop.f32.mrf.mxu1 }
 0x76a   : > { %9454 = vmatmul.msk.f32.gmra.mxu2 %vm523_vm3, %v5940_v49 }
 0x76b   : > { %v13051_v49 = vpop.f32.mrf.mxu2 }
 0x76c   : > { %v5566_v37 = vpop.f32.mrf.mxu3 }
 0x76d   : > { %v13000_v26 = vadd.f32 %v5566_v37, %v5466_v54 }
 0x771   : > { %9459 = vmatmul.msk.f32.gmra.mxu3 %vm523_vm3, %v12647_v23  ;;  %v13020_v23 = vpop.f32.mrf.mxu0  ;;  %v13024_v13 = vpop.f32.mrf.mxu1 }
 0x772   : > { %9455 = vmatmul.msk.f32.gmra.mxu2 %vm523_vm3, %v5941_v27 }
 0x774   : > { %v5569_v17 = vpop.f32.mrf.mxu3 }
 0x775   : > { %v13007_v39 = vadd.f32 %v5569_v17, %v5467_v6 }
 0x779   : > { %9460 = vmatmul.msk.f32.gmra.mxu3 %vm523_vm3, %v12661_v46  ;;  %v6311_v46 = vld [vmem:[#allocation5 + $0xa0] sm:$0xff]  ;;  %v13033_v11 = vpop.f32.mrf.mxu0  ;;  %v13035_v31 = vpop.f32.mrf.mxu1 }
 0x77a   : > { %6376 = vmatpush.msrb.mxu0 %v6311_v46 }
 0x77c   : > { %v5572_v30 = vpop.f32.mrf.mxu3 }
 0x77d   : > { %v13018_v35 = vadd.f32 %v5572_v30, %v12877_v42 }
 0x781   : > { %9461 = vmatmul.msk.f32.gmra.mxu3 %vm523_vm3, %v12675_v52  ;;  %v13049_v58 = vpop.f32.mrf.mxu1 }
 0x784   : > { %v5575_v1 = vpop.f32.mrf.mxu3 }
 0x785   : > { %v13029_v53 = vadd.f32 %v5575_v1, %v12887_v29  ;;  %v13044_v29 = vpop.f32.mrf.mxu0 }
 0x789   : > { %9462 = vmatmul.msk.f32.gmra.mxu3 %vm523_vm3, %v12689_v4 }
 0x78c   : > { %v5578_v42 = vpop.f32.mrf.mxu3 }
 0x78d   : > { %v13038_v52 = vadd.f32 %v5578_v42, %v12897_v38  ;;  %v13058_v54 = vpop.f32.mrf.mxu0  ;;  %v6705_v42 = vld [vmem:[#allocation5 + $0xc8] sm:$0xff] }
 0x78e   : > { %6768 = vmatpush.msra.mxu3 %v6705_v42 }
 0x791   : > { %9463 = vmatmul.msk.f32.gmra.mxu3 %vm523_vm3, %v12703_v15  ;;  %v13060_v15 = vpop.f32.mrf.mxu1 }
 0x794   : > { %v5581_v55 = vpop.f32.mrf.mxu3 }
 0x795   : > { %v13047_v4 = vadd.f32 %v5581_v55, %v12907_v47  ;;  %v13064_v47 = vpop.f32.mrf.mxu2  ;;  %v13069_v27 = vpop.f32.mrf.mxu0 }
 0x799   : > { %9464 = vmatmul.msk.f32.gmra.mxu3 %vm523_vm3, %v12717_v34  ;;  %v13073_v34 = vpop.f32.mrf.mxu1 }
 0x79c   : > { %v5584_v38 = vpop.f32.mrf.mxu3 }
 0x79d   : > { %v13056_v21 = vadd.f32 %v5584_v38, %v12919_v16  ;;  %v13075_v16 = vpop.f32.mrf.mxu2 }
 0x7a1   : > { %9465 = vmatmul.msk.f32.gmra.mxu3 %vm523_vm3, %v12731_v45  ;;  %v13081_v45 = vpop.f32.mrf.mxu0 }
 0x7a2   : > { %14641 = vst [vmem:[#allocation60_spill] sm:$0xff] %v13081_v45 }
 0x7a4   : > { %v5587_v37 = vpop.f32.mrf.mxu3 }
 0x7a5   : > { %v13067_v41 = vadd.f32 %v5587_v37, %v12931_v32  ;;  %v13085_v32 = vpop.f32.mrf.mxu1  ;;  %v13087_v17 = vpop.f32.mrf.mxu2  ;;  %v6293_v37 = vld [vmem:[#allocation5 + $0x98] sm:$0xff] }
 0x7a6   : > { %14642 = vst [vmem:[#allocation48_spill] sm:$0xff] %v13085_v32  ;;  %6488 = vmatpush.msrb.mxu1 %v6293_v37 }
 0x7a7   : > { %14643 = vst [vmem:[#allocation54_spill] sm:$0xff] %v13087_v17 }
 0x7a8   : > { %6489 = vmatpush.msrb.mxu1 %v6292_v9 }
 0x7a9   : > { %9466 = vmatmul.msk.f32.gmra.mxu3 %vm523_vm3, %v12760_v14  ;;  %v13091_v14 = vpop.f32.mrf.mxu0  ;;  %9491 = vmatmul.msk.f32.vlgmr.msrb.gmra.mxu1 %vm523_vm3, %v6275_v36  ;;  %v6088_v36 = vld [vmem:[#allocation3 + $0xda] sm:$0xff] }
 0x7aa   : > { %14644 = vst [vmem:[#allocation57_spill] sm:$0xff] %v13091_v14 }
 0x7ac   : > { %v13077_v57 = vpop.f32.mrf.mxu3 }
 0x7ad   : > { %v13095_v1 = vpop.f32.mrf.mxu1  ;;  %v13097_v46 = vpop.f32.mrf.mxu2 }
 0x7ae   : > { %14645 = vst [vmem:[#allocation36_spill] sm:$0xff] %v13095_v1 }
 0x7af   : > { %14646 = vst [vmem:[#allocation58_spill] sm:$0xff] %v13097_v46 }
 0x7b1   : > { %9467 = vmatmul.msk.f32.gmra.mxu3 %vm523_vm3, %v12777_v18  ;;  %v6557_v18 = vld [vmem:[#allocation5 + $0xb8] sm:$0xff]  ;;  %v5714_v38 = vpop.f32.mrf.mxu0  ;;  %9492 = vmatmul.msk.f32.gmra.mxu1 %vm523_vm3, %v6276_v61 }
 0x7b2   : > { %6620 = vmatpush.msrb.mxu2 %v6557_v18  ;;  %v6853_v18 = vld [vmem:[#allocation5 + $0xd8] sm:$0xff] }
 0x7b3   : > { %6916 = vmatpush.msra.mxu0 %v6853_v18 }
 0x7b4   : > { %v13083_v6 = vpop.f32.mrf.mxu3 }
 0x7b5   : > { %v5862_v28 = vpop.f32.mrf.mxu1  ;;  %v6010_v44 = vpop.f32.mrf.mxu2 }
 0x7b9   : > { %9468 = vmatmul.msk.f32.gmra.mxu3 %vm523_vm3, %v12794_v62  ;;  %v6556_v62 = vld [vmem:[#allocation5 + $0xb0] sm:$0xff]  ;;  %v5717_v37 = vpop.f32.mrf.mxu0 }
 0x7ba   : > { %6621 = vmatpush.msrb.mxu2 %v6556_v62  ;;  %v6540_v62 = vld [vmem:[#allocation3 + $0xa] sm:$0xff] }
 0x7bb   : > { %9507 = vmatmul.msk.f32.vlgmr.msrb.gmra.mxu2 %vm523_vm3, %v6539_v40 }
 0x7bc   : > { %v13093_v30 = vpop.f32.mrf.mxu3 }
 0x7bd   : > { %v5865_v40 = vpop.f32.mrf.mxu1  ;;  %v6013_v2 = vpop.f32.mrf.mxu2 }
 0x7c1   : > { %9469 = vmatmul.msk.f32.gmra.mxu3 %vm523_vm3, %v12808_v43  ;;  %v6294_v43 = vld [vmem:[#allocation3 + $0x1] sm:$0xff]  ;;  %v5720_v9 = vpop.f32.mrf.mxu0 }
 0x7c2   : > { %9475 = vmatmul.msk.f32.vlgmr.msrb.gmra.mxu0 %vm523_vm3, %v6294_v43  ;;  %v6704_v43 = vld [vmem:[#allocation5 + $0xc0] sm:$0xff] }
 0x7c3   : > { %9508 = vmatmul.msk.f32.gmra.mxu2 %vm523_vm3, %v6540_v62  ;;  %6769 = vmatpush.msra.mxu3 %v6704_v43  ;;  %v5762_v62 = vadd.f32 %v5714_v38, %v13000_v26 }
 0x7c4   : > { %v13101_v55 = vpop.f32.mrf.mxu3 }
 0x7c5   : > { %v6016_v0 = vpop.f32.mrf.mxu2  ;;  %v5910_v46 = vadd.f32 %v5862_v28, %v5762_v62  ;;  %v5764_v28 = vadd.f32 %v5720_v9, %v13018_v35 }
 0x7c7   : > { %v6058_v1 = vadd.f32 %v6010_v44, %v5910_v46 }
 0x7c9   : > { %9470 = vmatmul.msk.f32.gmra.mxu3 %vm523_vm3, %v12973_v20  ;;  %v6295_v20 = vld [vmem:[#allocation3 + $0x9] sm:$0xff]  ;;  %v5723_v63 = vpop.f32.mrf.mxu0 }
 0x7ca   : > { %9476 = vmatmul.msk.f32.gmra.mxu0 %vm523_vm3, %v6295_v20 }
 0x7cc   : > { %v13108_v42 = vpop.f32.mrf.mxu3 }
 0x7cd   : > { %v6019_v61 = vpop.f32.mrf.mxu2 }
 0x7d1   : > { %9471 = vmatmul.msk.f32.gmra.mxu3 %vm523_vm3, %v12982_v12  ;;  %v5868_v12 = vpop.f32.mrf.mxu1  ;;  %v5726_v25 = vpop.f32.mrf.mxu0 }
 0x7d2   : > { %v5912_v45 = vadd.f32 %v5868_v12, %v5764_v28 }
 0x7d4   : > { %v13112_v60 = vpop.f32.mrf.mxu3 }
 0x7d5   : > { %14647 = vst [vmem:[#allocation12_spill] sm:$0xff] %v13112_v60  ;;  %v6022_v26 = vpop.f32.mrf.mxu2 }
 0x7d9   : > { %9472 = vmatmul.msk.f32.gmra.mxu3 %vm523_vm3, %v6088_v36  ;;  %v5871_v20 = vpop.f32.mrf.mxu1  ;;  %v13127_v36 = vld [vmem:[%s14330_s4 + $0x1] ss:$0 sm:$0xff]  ;;  %v5729_v60 = vpop.f32.mrf.mxu0 }
 0x7dc   : > { %v13118_v18 = vpop.f32.mrf.mxu3 }
 0x7dd   : > { %14648 = vst [vmem:[#allocation55_spill] sm:$0xff] %v13118_v18  ;;  %v5763_v18 = vadd.f32 %v5717_v37, %v13007_v39 }
 0x7df   : > { %v5911_v17 = vadd.f32 %v5865_v40, %v5763_v18 }
 0x7e1   : > { %9473 = vmatmul.msk.f32.gmra.mxu3 %vm523_vm3, %v6089_v19  ;;  %v6059_v38 = vadd.f32 %v6013_v2, %v5911_v17  ;;  %v6025_v2 = vpop.f32.mrf.mxu2 }
 0x7e4   : > { %v13121_v7 = vpop.f32.mrf.mxu3 }
 0x7e5   : > { %14649 = vst [vmem:[#allocation61_spill] sm:$0xff] %v13121_v7  ;;  %v5874_v7 = vpop.f32.mrf.mxu1 }
 0x7e9   : > { %v6028_v28 = vpop.f32.mrf.mxu2 }
 0x7ec   : > { %v6158_v43 = vpop.f32.mrf.mxu3 }
 0x7ed   : > { %v6206_v14 = vadd.f32 %v6158_v43, %v6058_v1  ;;  %v5877_v40 = vpop.f32.mrf.mxu1 }
 0x7ef   : > { %v6227_v19 = vadd.f32 %v13127_v36, %v6206_v14  ;;  %v6060_v14 = vadd.f32 %v6016_v0, %v5912_v45  ;;  %v5732_v0 = vpop.f32.mrf.mxu0 }
 0x7f1   : > { %v6243_v32 = vmax.f32 %v6227_v19, 0.0 }
 0x7f3   : > { %6259 = vst.msk [vmem:[#allocation3 + $0x19] sm:$0xff] %vm523_vm3, %v6243_v32  ;;  %v5765_v32 = vadd.f32 %v5723_v63, %v13029_v53  ;;  %v5766_v53 = vadd.f32 %v5726_v25, %v13038_v52 }
 0x7f4   : > { %v6161_v44 = vpop.f32.mrf.mxu3 }
 0x7f5   : > { %v6207_v46 = vadd.f32 %v6161_v44, %v6059_v38  ;;  %v5913_v18 = vadd.f32 %v5871_v20, %v5765_v32  ;;  %v5880_v20 = vpop.f32.mrf.mxu1 }
 0x7f7   : > { %v6228_v62 = vadd.f32 %v13127_v36, %v6207_v46  ;;  %v6061_v38 = vadd.f32 %v6019_v61, %v5913_v18  ;;  %v5914_v46 = vadd.f32 %v5874_v7, %v5766_v53  ;;  %v5735_v52 = vpop.f32.mrf.mxu0  ;;  %v6031_v18 = vpop.f32.mrf.mxu2 }
 0x7f9   : > { %v6244_v39 = vmax.f32 %v6228_v62, 0.0 }
 0x7fa   : > { %v13134_v1 = vld [vmem:[#allocation3 + $0x19] sm:$0xff] }
 0x7fb   : > { %v6277_v37 = vld [vmem:[#allocation3 + $0x18] sm:$0xff]  ;;  %6260 = vst.msk [vmem:[#allocation3 + $0x21] sm:$0xff] %vm523_vm3, %v6244_v39  ;;  %9477 = vmatmul.msk.f32.gmra.mxu0 %vm523_vm3, %v13134_v1 }
 0x7fc   : > { %9493 = vmatmul.msk.f32.gmra.mxu1 %vm523_vm3, %v6277_v37  ;;  %9523 = vmatmul.msk.f32.vlgmr.msra.gmra.mxu3 %vm523_vm3, %v6277_v37  ;;  %v6164_v35 = vpop.f32.mrf.mxu3 }
 0x7fd   : > { %v6208_v17 = vadd.f32 %v6164_v35, %v6060_v14  ;;  %v6062_v14 = vadd.f32 %v6022_v26, %v5914_v46  ;;  %v6852_v35 = vld [vmem:[#allocation5 + $0xd0] sm:$0xff]  ;;  %v5767_v26 = vadd.f32 %v5729_v60, %v13047_v4  ;;  %v5768_v4 = vadd.f32 %v5732_v0, %v13056_v21 }
 0x7fe   : > { %6917 = vmatpush.msra.mxu0 %v6852_v35  ;;  %v5163_v46 = vadd.f32 %v13009_v5, %v12917_v3  ;;  %v5769_v0 = vadd.f32 %v5735_v52, %v13067_v41 }
 0x7ff   : > { %v6229_v9 = vadd.f32 %v13127_v36, %v6208_v17  ;;  %v5883_v17 = vpop.f32.mrf.mxu1  ;;  %v6034_v35 = vpop.f32.mrf.mxu2 }
 0x800   : > { %v5326_v5 = vadd.f32 %v13011_v56, %v5163_v46 }
 0x801   : > { %v6245_v12 = vmax.f32 %v6229_v9, 0.0 }
 0x802   : > { %v13143_v45 = vld [vmem:[#allocation3 + $0x21] sm:$0xff] }
 0x803   : > { %v6278_v43 = vld [vmem:[#allocation3 + $0x20] sm:$0xff]  ;;  %6261 = vst.msk [vmem:[#allocation3 + $0x31] sm:$0xff] %vm523_vm3, %v6245_v12  ;;  %9478 = vmatmul.msk.f32.gmra.mxu0 %vm523_vm3, %v13143_v45  ;;  %v5915_v12 = vadd.f32 %v5877_v40, %v5767_v26 }
 0x804   : > { %v13145_v19 = vld [vmem:[#allocation3 + $0x1a] sm:$0xff]  ;;  %9494 = vmatmul.msk.f32.gmra.mxu1 %vm523_vm3, %v6278_v43  ;;  %9524 = vmatmul.msk.f32.gmra.mxu3 %vm523_vm3, %v6278_v43  ;;  %v6167_v63 = vpop.f32.mrf.mxu3  ;;  %v13165_v25 = vld [vmem:[#allocation3 + $0x22] sm:$0xff] }
 0x805   : > { %9509 = vmatmul.msk.f32.gmra.mxu2 %vm523_vm3, %v13145_v19  ;;  %v6209_v44 = vadd.f32 %v6167_v63, %v6061_v38 }
 0x807   : > { %v6230_v61 = vadd.f32 %v13127_v36, %v6209_v44  ;;  %v6063_v44 = vadd.f32 %v6025_v2, %v5915_v12 }
 0x809   : > { %v6246_v62 = vmax.f32 %v6230_v61, 0.0  ;;  %v5738_v61 = vpop.f32.mrf.mxu0 }
 0x80a   : > { %v13156_v39 = vld [vmem:[#allocation3 + $0x31] sm:$0xff] }
 0x80b   : > { %v13158_v37 = vld [vmem:[#allocation3 + $0x30] sm:$0xff]  ;;  %6262 = vst.msk [vmem:[#allocation3 + $0x39] sm:$0xff] %vm523_vm3, %v6246_v62  ;;  %9479 = vmatmul.msk.f32.gmra.mxu0 %vm523_vm3, %v13156_v39  ;;  %v5886_v62 = vpop.f32.mrf.mxu1 }
 0x80c   : > { %9495 = vmatmul.msk.f32.gmra.mxu1 %vm523_vm3, %v13158_v37  ;;  %9525 = vmatmul.msk.f32.gmra.mxu3 %vm523_vm3, %v13158_v37  ;;  %v6170_v7 = vpop.f32.mrf.mxu3 }
 0x80d   : > { %9510 = vmatmul.msk.f32.gmra.mxu2 %vm523_vm3, %v13165_v25  ;;  %v6210_v32 = vadd.f32 %v6170_v7, %v6062_v14  ;;  %v5916_v14 = vadd.f32 %v5880_v20, %v5768_v4  ;;  %v5917_v4 = vadd.f32 %v5883_v17, %v5769_v0 }
 0x80f   : > { %v6231_v9 = vadd.f32 %v13127_v36, %v6210_v32  ;;  %v6065_v52 = vadd.f32 %v6031_v18, %v5917_v4 }
 0x811   : > { %v6247_v43 = vmax.f32 %v6231_v9, 0.0  ;;  %v6064_v9 = vadd.f32 %v6028_v28, %v5916_v14  ;;  %v5474_v28 = vadd.f32 %v13015_v24, %v5326_v5 }
 0x812   : > { %v13173_v38 = vld [vmem:[#allocation3 + $0x39] sm:$0xff] }
 0x813   : > { %v13175_v63 = vld [vmem:[#allocation3 + $0x38] sm:$0xff]  ;;  %6263 = vst.msk [vmem:[#allocation3 + $0x49] sm:$0xff] %vm523_vm3, %v6247_v43  ;;  %9480 = vmatmul.msk.f32.gmra.mxu0 %vm523_vm3, %v13173_v38  ;;  %v5741_v43 = vpop.f32.mrf.mxu0  ;;  %v5889_v41 = vpop.f32.mrf.mxu1 }
 0x814   : > { %v13177_v53 = vld [vmem:[#allocation3 + $0x32] sm:$0xff]  ;;  %9496 = vmatmul.msk.f32.gmra.mxu1 %vm523_vm3, %v13175_v63  ;;  %9526 = vmatmul.msk.f32.gmra.mxu3 %vm523_vm3, %v13175_v63  ;;  %v6173_v60 = vpop.f32.mrf.mxu3  ;;  %v13201_v21 = vld [vmem:[#allocation3 + $0x3a] sm:$0xff] }
 0x815   : > { %9511 = vmatmul.msk.f32.gmra.mxu2 %vm523_vm3, %v13177_v53  ;;  %v6211_v40 = vadd.f32 %v6173_v60, %v6063_v44  ;;  %v5166_v44 = vadd.f32 %v13020_v23, %v12929_v59  ;;  %v5622_v60 = vadd.f32 %v13077_v57, %v5474_v28  ;;  %v6037_v59 = vpop.f32.mrf.mxu2 }
 0x817   : > { %v6232_v2 = vadd.f32 %v13127_v36, %v6211_v40  ;;  %v5327_v23 = vadd.f32 %v13024_v13, %v5166_v44  ;;  %v5770_v57 = vadd.f32 %v5738_v61, %v5622_v60  ;;  %v5172_v60 = vadd.f32 %v13044_v29, %v12951_v22 }
 0x819   : > { %v6248_v7 = vmax.f32 %v6232_v2, 0.0  ;;  %v5475_v18 = vadd.f32 %v13026_v50, %v5327_v23  ;;  %v5329_v29 = vadd.f32 %v13049_v58, %v5172_v60 }
 0x81a   : > { %v13192_v26 = vld [vmem:[#allocation3 + $0x49] sm:$0xff] }
 0x81b   : > { %v13194_v32 = vld [vmem:[#allocation3 + $0x48] sm:$0xff]  ;;  %6264 = vst.msk [vmem:[#allocation3 + $0x51] sm:$0xff] %vm523_vm3, %v6248_v7  ;;  %9481 = vmatmul.msk.f32.gmra.mxu0 %vm523_vm3, %v13192_v26  ;;  %v5169_v7 = vadd.f32 %v13033_v11, %v12941_v51  ;;  %v5744_v0 = vpop.f32.mrf.mxu0 }
 0x81c   : > { %9497 = vmatmul.msk.f32.gmra.mxu1 %vm523_vm3, %v13194_v32  ;;  %9527 = vmatmul.msk.f32.gmra.mxu3 %vm523_vm3, %v13194_v32  ;;  %v6176_v3 = vpop.f32.mrf.mxu3 }
 0x81d   : > { %9512 = vmatmul.msk.f32.gmra.mxu2 %vm523_vm3, %v13201_v21  ;;  %v6212_v20 = vadd.f32 %v6176_v3, %v6064_v9  ;;  %v5623_v9 = vadd.f32 %v13083_v6, %v5475_v18  ;;  %v5918_v3 = vadd.f32 %v5886_v62, %v5770_v57  ;;  %v5328_v50 = vadd.f32 %v13035_v31, %v5169_v7  ;;  %v5892_v6 = vpop.f32.mrf.mxu1  ;;  %v6040_v62 = vpop.f32.mrf.mxu2 }
 0x81f   : > { %v6233_v12 = vadd.f32 %v13127_v36, %v6212_v20  ;;  %v5771_v11 = vadd.f32 %v5741_v43, %v5623_v9 }
 0x821   : > { %v6249_v40 = vmax.f32 %v6233_v12, 0.0  ;;  %v6066_v12 = vadd.f32 %v6034_v35, %v5918_v3  ;;  %v5476_v35 = vadd.f32 %v13040_v8, %v5328_v50 }
 0x822   : > { %v13214_v2 = vld [vmem:[#allocation3 + $0x51] sm:$0xff] }
 0x823   : > { %v13216_v14 = vld [vmem:[#allocation3 + $0x50] sm:$0xff]  ;;  %6265 = vst.msk [vmem:[#allocation3 + $0x61] sm:$0xff] %vm523_vm3, %v6249_v40  ;;  %9482 = vmatmul.msk.f32.gmra.mxu0 %vm523_vm3, %v13214_v2  ;;  %v5624_v4 = vadd.f32 %v13093_v30, %v5476_v35  ;;  %v5919_v40 = vadd.f32 %v5889_v41, %v5771_v11  ;;  %v5747_v22 = vpop.f32.mrf.mxu0 }
 0x824   : > { %v13218_v56 = vld [vmem:[#allocation3 + $0x4a] sm:$0xff]  ;;  %9498 = vmatmul.msk.f32.gmra.mxu1 %vm523_vm3, %v13216_v14  ;;  %9528 = vmatmul.msk.f32.gmra.mxu3 %vm523_vm3, %v13216_v14  ;;  %v6179_v24 = vpop.f32.mrf.mxu3  ;;  %v13244_v13 = vld [vmem:[#allocation3 + $0x52] sm:$0xff] }
 0x825   : > { %9513 = vmatmul.msk.f32.gmra.mxu2 %vm523_vm3, %v13218_v56  ;;  %v6213_v17 = vadd.f32 %v6179_v24, %v6065_v52  ;;  %v6067_v43 = vadd.f32 %v6037_v59, %v5919_v40  ;;  %v5772_v30 = vadd.f32 %v5744_v0, %v5624_v4  ;;  %v5477_v59 = vadd.f32 %v13051_v49, %v5329_v29  ;;  %v5895_v57 = vpop.f32.mrf.mxu1  ;;  %v6043_v18 = vpop.f32.mrf.mxu2 }
 0x827   : > { %v6234_v46 = vadd.f32 %v13127_v36, %v6213_v17  ;;  %v5625_v7 = vadd.f32 %v13101_v55, %v5477_v59  ;;  %v5920_v9 = vadd.f32 %v5892_v6, %v5772_v30  ;;  %v5178_v6 = vadd.f32 %v13069_v27, %v12971_v10  ;;  %v7149_v10 = vld [vmem:[#allocation5 + $0xf8] sm:$0xff]  ;;  %v7297_v27 = vld [vmem:[#allocation5 + $0x108] sm:$0xff] }
 0x828   : > { %7212 = vmatpush.msra.mxu2 %v7149_v10  ;;  %7360 = vmatpush.msrb.mxu3 %v7297_v27  ;;  %v14656_v10 = vld [vmem:[#allocation55_spill] sm:$0xff] }
 0x829   : > { %v6250_v5 = vmax.f32 %v6234_v46, 0.0  ;;  %v5175_v46 = vadd.f32 %v13058_v54, %v12961_v33  ;;  %v6068_v58 = vadd.f32 %v6040_v62, %v5920_v9  ;;  %v5773_v55 = vadd.f32 %v5747_v22, %v5625_v7 }
 0x82a   : > { %v13235_v20 = vld [vmem:[#allocation3 + $0x61] sm:$0xff] }
 0x82b   : > { %v13237_v28 = vld [vmem:[#allocation3 + $0x60] sm:$0xff]  ;;  %6266 = vst.msk [vmem:[#allocation3 + $0x69] sm:$0xff] %vm523_vm3, %v6250_v5  ;;  %9483 = vmatmul.msk.f32.gmra.mxu0 %vm523_vm3, %v13235_v20  ;;  %v5330_v54 = vadd.f32 %v13060_v15, %v5175_v46  ;;  %v5921_v35 = vadd.f32 %v5895_v57, %v5773_v55  ;;  %v14651_v57 = vld [vmem:[#allocation12_spill] sm:$0xff] }
 0x82c   : > { %9499 = vmatmul.msk.f32.gmra.mxu1 %vm523_vm3, %v13237_v28  ;;  %9529 = vmatmul.msk.f32.gmra.mxu3 %vm523_vm3, %v13237_v28  ;;  %v6182_v51 = vpop.f32.mrf.mxu3  ;;  %v7445_v55 = vld [vmem:[#allocation5 + $0x118] sm:$0xff] }
 0x82d   : > { %9514 = vmatmul.msk.f32.gmra.mxu2 %vm523_vm3, %v13244_v13  ;;  %v6214_v61 = vadd.f32 %v6182_v51, %v6066_v12  ;;  %v5750_v51 = vpop.f32.mrf.mxu0  ;;  %v5478_v50 = vadd.f32 %v13064_v47, %v5330_v54  ;;  %v6046_v60 = vpop.f32.mrf.mxu2  ;;  %v7000_v54 = vld [vmem:[#allocation5 + $0xe0] sm:$0xff]  ;;  %7508 = vmatpush.msrb.mxu0 %v7445_v55 }
 0x82f   : > { %v6235_v44 = vadd.f32 %v13127_v36, %v6214_v61  ;;  %v5898_v61 = vpop.f32.mrf.mxu1  ;;  %v5626_v62 = vadd.f32 %v13108_v42, %v5478_v50  ;;  %v5331_v42 = vadd.f32 %v13073_v34, %v5178_v6 }
 0x831   : > { %v6251_v52 = vmax.f32 %v6235_v44, 0.0 }
 0x832   : > { %v13256_v24 = vld [vmem:[#allocation3 + $0x69] sm:$0xff] }
 0x833   : > { %v13258_v23 = vld [vmem:[#allocation3 + $0x68] sm:$0xff]  ;;  %6267 = vst.msk [vmem:[#allocation3 + $0x79] sm:$0xff] %vm523_vm3, %v6251_v52  ;;  %9484 = vmatmul.msk.f32.gmra.mxu0 %vm523_vm3, %v13256_v24  ;;  %v6069_v52 = vadd.f32 %v6043_v18, %v5921_v35 }
 0x834   : > { %v13260_v31 = vld [vmem:[#allocation3 + $0x62] sm:$0xff]  ;;  %9500 = vmatmul.msk.f32.gmra.mxu1 %vm523_vm3, %v13258_v23  ;;  %9530 = vmatmul.msk.f32.gmra.mxu3 %vm523_vm3, %v13258_v23  ;;  %v6185_v8 = vpop.f32.mrf.mxu3  ;;  %v13286_v49 = vld [vmem:[#allocation3 + $0x6a] sm:$0xff] }
 0x835   : > { %9515 = vmatmul.msk.f32.gmra.mxu2 %vm523_vm3, %v13260_v31  ;;  %v6215_v41 = vadd.f32 %v6185_v8, %v6067_v43  ;;  %v5774_v43 = vadd.f32 %v5750_v51, %v5626_v62  ;;  %v5479_v8 = vadd.f32 %v13075_v16, %v5331_v42  ;;  %v5753_v30 = vpop.f32.mrf.mxu0  ;;  %v14652_v51 = vld [vmem:[#allocation48_spill] sm:$0xff] }
 0x837   : > { %v6236_v17 = vadd.f32 %v13127_v36, %v6215_v41  ;;  %v14650_v41 = vld [vmem:[#allocation60_spill] sm:$0xff]  ;;  %v5922_v18 = vadd.f32 %v5898_v61, %v5774_v43  ;;  %v5901_v34 = vpop.f32.mrf.mxu1  ;;  %v14653_v61 = vld [vmem:[#allocation54_spill] sm:$0xff] }
 0x838   : > { %v5181_v59 = vadd.f32 %v14650_v41, %v12980_v48  ;;  %v7001_v48 = vld [vmem:[#allocation5 + $0xe8] sm:$0xff] }
 0x839   : > { %v6252_v3 = vmax.f32 %v6236_v17, 0.0  ;;  %v5627_v17 = vadd.f32 %v14651_v57, %v5479_v8  ;;  %7064 = vmatpush.msra.mxu1 %v7001_v48  ;;  %v14657_v57 = vld [vmem:[#allocation36_spill] sm:$0xff] }
 0x83a   : > { %v13277_v5 = vld [vmem:[#allocation3 + $0x79] sm:$0xff]  ;;  %v5332_v50 = vadd.f32 %v14652_v51, %v5181_v59  ;;  %v7296_v51 = vld [vmem:[#allocation5 + $0x100] sm:$0xff] }
 0x83b   : > { %v13279_v12 = vld [vmem:[#allocation3 + $0x78] sm:$0xff]  ;;  %6268 = vst.msk [vmem:[#allocation3 + $0x81] sm:$0xff] %vm523_vm3, %v6252_v3  ;;  %9485 = vmatmul.msk.f32.gmra.mxu0 %vm523_vm3, %v13277_v5  ;;  %v6070_v3 = vadd.f32 %v6046_v60, %v5922_v18  ;;  %7065 = vmatpush.msra.mxu1 %v7000_v54  ;;  %v14655_v60 = vld [vmem:[#allocation57_spill] sm:$0xff] }
 0x83c   : > { %9501 = vmatmul.msk.f32.gmra.mxu1 %vm523_vm3, %v13279_v12  ;;  %9531 = vmatmul.msk.f32.gmra.mxu3 %vm523_vm3, %v13279_v12  ;;  %v6188_v33 = vpop.f32.mrf.mxu3  ;;  %v5480_v62 = vadd.f32 %v14653_v61, %v5332_v50  ;;  %v14659_v54 = vld [vmem:[#allocation61_spill] sm:$0xff] }
 0x83d   : > { %9516 = vmatmul.msk.f32.gmra.mxu2 %vm523_vm3, %v13286_v49  ;;  %v6216_v0 = vadd.f32 %v6188_v33, %v6068_v58  ;;  %v6049_v58 = vpop.f32.mrf.mxu2  ;;  %v5756_v43 = vpop.f32.mrf.mxu0  ;;  %7361 = vmatpush.msrb.mxu3 %v7296_v51 }
 0x83f   : > { %v6237_v11 = vadd.f32 %v13127_v36, %v6216_v0  ;;  %v7148_v0 = vld [vmem:[#allocation5 + $0xf0] sm:$0xff]  ;;  %v5904_v41 = vpop.f32.mrf.mxu1 }
 0x840   : > { %7213 = vmatpush.msra.mxu2 %v7148_v0 }
 0x841   : > { %v6253_v44 = vmax.f32 %v6237_v11, 0.0  ;;  %v5775_v11 = vadd.f32 %v5753_v30, %v5627_v17 }
 0x842   : > { %v13298_v4 = vld [vmem:[#allocation3 + $0x81] sm:$0xff] }
 0x843   : > { %v13300_v40 = vld [vmem:[#allocation3 + $0x80] sm:$0xff]  ;;  %6269 = vst.msk [vmem:[#allocation3 + $0x91] sm:$0xff] %vm523_vm3, %v6253_v44  ;;  %9486 = vmatmul.msk.f32.gmra.mxu0 %vm523_vm3, %v13298_v4  ;;  %v5923_v27 = vadd.f32 %v5901_v34, %v5775_v11 }
 0x844   : > { %v13302_v15 = vld [vmem:[#allocation3 + $0x7a] sm:$0xff]  ;;  %9502 = vmatmul.msk.f32.gmra.mxu1 %vm523_vm3, %v13300_v40  ;;  %9532 = vmatmul.msk.f32.gmra.mxu3 %vm523_vm3, %v13300_v40  ;;  %v6191_v47 = vpop.f32.mrf.mxu3  ;;  %v13328_v16 = vld [vmem:[#allocation3 + $0x82] sm:$0xff] }
 0x845   : > { %9517 = vmatmul.msk.f32.gmra.mxu2 %vm523_vm3, %v13302_v15  ;;  %v6217_v22 = vadd.f32 %v6191_v47, %v6069_v52  ;;  %v14654_v44 = vld [vmem:[#allocation51_spill] sm:$0xff]  ;;  %v5628_v47 = vadd.f32 %v14656_v10, %v5480_v62  ;;  %v6071_v30 = vadd.f32 %v6049_v58, %v5923_v27  ;;  %v6052_v34 = vpop.f32.mrf.mxu2  ;;  %v5759_v62 = vpop.f32.mrf.mxu0 }
 0x846   : > { %v5184_v52 = vadd.f32 %v14655_v60, %v14654_v44 }
 0x847   : > { %v6238_v29 = vadd.f32 %v13127_v36, %v6217_v22  ;;  %v5776_v18 = vadd.f32 %v5756_v43, %v5628_v47 }
 0x848   : > { %v5333_v17 = vadd.f32 %v14657_v57, %v5184_v52  ;;  %v5907_v52 = vpop.f32.mrf.mxu1 }
 0x849   : > { %v6254_v46 = vmax.f32 %v6238_v29, 0.0 }
 0x84a   : > { %v13319_v7 = vld [vmem:[#allocation3 + $0x91] sm:$0xff] }
 0x84b   : > { %v13321_v9 = vld [vmem:[#allocation3 + $0x90] sm:$0xff]  ;;  %6270 = vst.msk [vmem:[#allocation3 + $0x99] sm:$0xff] %vm523_vm3, %v6254_v46  ;;  %9487 = vmatmul.msk.f32.gmra.mxu0 %vm523_vm3, %v13319_v7 }
 0x84c   : > { %9503 = vmatmul.msk.f32.gmra.mxu1 %vm523_vm3, %v13321_v9  ;;  %9533 = vmatmul.msk.f32.gmra.mxu3 %vm523_vm3, %v13321_v9  ;;  %v6194_v33 = vpop.f32.mrf.mxu3 }
 0x84d   : > { %9518 = vmatmul.msk.f32.gmra.mxu2 %vm523_vm3, %v13328_v16  ;;  %v6218_v6 = vadd.f32 %v6194_v33, %v6070_v3  ;;  %v14658_v3 = vld [vmem:[#allocation58_spill] sm:$0xff]  ;;  %v5924_v33 = vadd.f32 %v5904_v41, %v5776_v18  ;;  %v6055_v47 = vpop.f32.mrf.mxu2 }
 0x84e   : > { %v5481_v48 = vadd.f32 %v14658_v3, %v5333_v17  ;;  %v13390_v17 = vpop.f32.mrf.mxu0 }
 0x84f   : > { %v6239_v35 = vadd.f32 %v13127_v36, %v6218_v6  ;;  %v6072_v6 = vadd.f32 %v6052_v34, %v5924_v33 }
 0x850   : > { %v5629_v55 = vadd.f32 %v14659_v54, %v5481_v48  ;;  %v13396_v48 = vpop.f32.mrf.mxu1 }
 0x851   : > { %v6255_v42 = vmax.f32 %v6239_v35, 0.0 }
 0x852   : > { %v13340_v22 = vld [vmem:[#allocation3 + $0x99] sm:$0xff]  ;;  %v5777_v44 = vadd.f32 %v5759_v62, %v5629_v55 }
 0x853   : > { %v13342_v8 = vld [vmem:[#allocation3 + $0x98] sm:$0xff]  ;;  %6271 = vst.msk [vmem:[#allocation3 + $0xa9] sm:$0xff] %vm523_vm3, %v6255_v42  ;;  %9488 = vmatmul.msk.f32.gmra.mxu0 %vm523_vm3, %v13340_v22 }
 0x854   : > { %v13344_v29 = vld [vmem:[#allocation3 + $0x92] sm:$0xff]  ;;  %9504 = vmatmul.msk.f32.gmra.mxu1 %vm523_vm3, %v13342_v8  ;;  %9534 = vmatmul.msk.f32.gmra.mxu3 %vm523_vm3, %v13342_v8  ;;  %v6197_v59 = vpop.f32.mrf.mxu3  ;;  %v13368_v61 = vld [vmem:[#allocation3 + $0x9a] sm:$0xff]  ;;  %v5925_v27 = vadd.f32 %v5907_v52, %v5777_v44 }
 0x855   : > { %9519 = vmatmul.msk.f32.gmra.mxu2 %vm523_vm3, %v13344_v29  ;;  %v6219_v46 = vadd.f32 %v6197_v59, %v6071_v30 }
 0x856   : > { %v6073_v59 = vadd.f32 %v6055_v47, %v5925_v27 }
 0x857   : > { %v6240_v58 = vadd.f32 %v13127_v36, %v6219_v46 }
 0x859   : > { %v6256_v0 = vmax.f32 %v6240_v58, 0.0 }
 0x85a   : > { %v13359_v50 = vld [vmem:[#allocation3 + $0xa9] sm:$0xff] }
 0x85b   : > { %v13361_v11 = vld [vmem:[#allocation3 + $0xa8] sm:$0xff]  ;;  %6272 = vst.msk [vmem:[#allocation3 + $0xb1] sm:$0xff] %vm523_vm3, %v6256_v0  ;;  %9489 = vmatmul.msk.f32.gmra.mxu0 %vm523_vm3, %v13359_v50 }
 0x85c   : > { %9505 = vmatmul.msk.f32.gmra.mxu1 %vm523_vm3, %v13361_v11  ;;  %9535 = vmatmul.msk.f32.gmra.mxu3 %vm523_vm3, %v13361_v11  ;;  %v6200_v35 = vpop.f32.mrf.mxu3 }
 0x85d   : > { %9520 = vmatmul.msk.f32.gmra.mxu2 %vm523_vm3, %v13368_v61  ;;  %v6220_v60 = vadd.f32 %v6200_v35, %v6072_v6 }
 0x85f   : > { %v6241_v10 = vadd.f32 %v13127_v36, %v6220_v60 }
 0x861   : > { %v6257_v42 = vmax.f32 %v6241_v10, 0.0 }
 0x862   : > { %v13375_v43 = vld [vmem:[#allocation3 + $0xb1] sm:$0xff] }
 0x863   : > { %v13377_v30 = vld [vmem:[#allocation3 + $0xb0] sm:$0xff]  ;;  %6273 = vst.msk [vmem:[#allocation3 + $0xc1] sm:$0xff] %vm523_vm3, %v6257_v42  ;;  %9490 = vmatmul.msk.f32.gmra.mxu0 %vm523_vm3, %v13375_v43 }
 0x864   : > { %v13379_v41 = vld [vmem:[#allocation3 + $0xaa] sm:$0xff]  ;;  %9506 = vmatmul.msk.f32.gmra.mxu1 %vm523_vm3, %v13377_v30  ;;  %9536 = vmatmul.msk.f32.gmra.mxu3 %vm523_vm3, %v13377_v30  ;;  %v6203_v57 = vpop.f32.mrf.mxu3  ;;  %v13398_v58 = vld [vmem:[#allocation3 + $0xb2] sm:$0xff] }
 0x865   : > { %9521 = vmatmul.msk.f32.gmra.mxu2 %vm523_vm3, %v13379_v41  ;;  %v6221_v18 = vadd.f32 %v6203_v57, %v6073_v59 }
 0x867   : > { %v6242_v46 = vadd.f32 %v13127_v36, %v6221_v18  ;;  %v13408_v36 = vpop.f32.mrf.mxu0 }
 0x869   : > { %v6258_v34 = vmax.f32 %v6242_v46, 0.0 }
 0x86a   : > { %v13393_v3 = vld [vmem:[#allocation3 + $0xc0] sm:$0xff] }
 0x86b   : > { %6274 = vst.msk [vmem:[#allocation3 + $0xc9] sm:$0xff] %vm523_vm3, %v6258_v34  ;;  %9539 = vmatmul.msk.f32.vlgmr.msra.gmra.mxu0 %vm523_vm3, %v13134_v1  ;;  %v13416_v1 = vpop.f32.mrf.mxu2 }
 0x86c   : > { %9555 = vmatmul.msk.f32.vlgmr.msra.gmra.mxu1 %vm523_vm3, %v13145_v19  ;;  %9537 = vmatmul.msk.f32.gmra.mxu3 %vm523_vm3, %v13393_v3  ;;  %v13422_v19 = vpop.f32.mrf.mxu1 }
 0x86d   : > { %9522 = vmatmul.msk.f32.gmra.mxu2 %vm523_vm3, %v13398_v58 }
 0x872   : > { %v13410_v33 = vld [vmem:[#allocation3 + $0xc8] sm:$0xff] }
 0x873   : > { %9540 = vmatmul.msk.f32.gmra.mxu0 %vm523_vm3, %v13143_v45  ;;  %v13432_v45 = vpop.f32.mrf.mxu2 }
 0x874   : > { %9556 = vmatmul.msk.f32.gmra.mxu1 %vm523_vm3, %v13165_v25  ;;  %9538 = vmatmul.msk.f32.gmra.mxu3 %vm523_vm3, %v13410_v33 }
 0x875   : > { %9571 = vmatmul.msk.f32.vlgmr.msra.gmra.mxu2 %vm523_vm3, %v13158_v37 }
 0x878   : > { %v6384_v54 = vpop.f32.mrf.mxu0 }
 0x879   : > { %v6497_v25 = vpop.f32.mrf.mxu1 }
 0x87a   : > { %v6498_v6 = vadd.f32 %v6497_v25, %v6384_v54 }
 0x87b   : > { %9541 = vmatmul.msk.f32.gmra.mxu0 %vm523_vm3, %v13156_v39 }
 0x87c   : > { %9557 = vmatmul.msk.f32.gmra.mxu1 %vm523_vm3, %v13177_v53  ;;  %9587 = vmatmul.msk.f32.vlgmr.msrb.gmra.mxu3 %vm523_vm3, %v13156_v39 }
 0x87d   : > { %9572 = vmatmul.msk.f32.gmra.mxu2 %vm523_vm3, %v13175_v63 }
 0x87f   : > { %v13434_v55 = vpop.f32.mrf.mxu3 }
 0x880   : > { %v6387_v37 = vpop.f32.mrf.mxu0 }
 0x881   : > { %v6500_v51 = vpop.f32.mrf.mxu1 }
 0x882   : > { %v6501_v10 = vadd.f32 %v6500_v51, %v6387_v37 }
 0x883   : > { %9542 = vmatmul.msk.f32.gmra.mxu0 %vm523_vm3, %v13173_v38 }
 0x884   : > { %9558 = vmatmul.msk.f32.gmra.mxu1 %vm523_vm3, %v13201_v21  ;;  %9588 = vmatmul.msk.f32.gmra.mxu3 %vm523_vm3, %v13173_v38 }
 0x885   : > { %9573 = vmatmul.msk.f32.gmra.mxu2 %vm523_vm3, %v13194_v32  ;;  %v7444_v32 = vld [vmem:[#allocation5 + $0x110] sm:$0xff] }
 0x886   : > { %7509 = vmatpush.msrb.mxu0 %v7444_v32 }
 0x887   : > { %v13444_v39 = vpop.f32.mrf.mxu3 }
 0x888   : > { %v6629_v63 = vpop.f32.mrf.mxu2  ;;  %v6390_v0 = vpop.f32.mrf.mxu0 }
 0x889   : > { %v6673_v38 = vadd.f32 %v6629_v63, %v6498_v6  ;;  %v6503_v52 = vpop.f32.mrf.mxu1 }
 0x88a   : > { %v6504_v59 = vadd.f32 %v6503_v52, %v6390_v0 }
 0x88b   : > { %9543 = vmatmul.msk.f32.gmra.mxu0 %vm523_vm3, %v13192_v26 }
 0x88c   : > { %9559 = vmatmul.msk.f32.gmra.mxu1 %vm523_vm3, %v13218_v56  ;;  %9589 = vmatmul.msk.f32.gmra.mxu3 %vm523_vm3, %v13192_v26 }
 0x88d   : > { %9574 = vmatmul.msk.f32.gmra.mxu2 %vm523_vm3, %v13216_v14 }
 0x88f   : > { %v6777_v35 = vpop.f32.mrf.mxu3 }
 0x890   : > { %v6632_v62 = vpop.f32.mrf.mxu2  ;;  %v13454_v44 = vadd.f32 %v6777_v35, %v6673_v38  ;;  %v6393_v60 = vpop.f32.mrf.mxu0 }
 0x891   : > { %v6674_v26 = vadd.f32 %v6632_v62, %v6501_v10 }
 0x893   : > { %9544 = vmatmul.msk.f32.gmra.mxu0 %vm523_vm3, %v13214_v2 }
 0x894   : > { %9560 = vmatmul.msk.f32.gmra.mxu1 %vm523_vm3, %v13244_v13  ;;  %9590 = vmatmul.msk.f32.gmra.mxu3 %vm523_vm3, %v13214_v2  ;;  %v6506_v2 = vpop.f32.mrf.mxu1 }
 0x895   : > { %9575 = vmatmul.msk.f32.gmra.mxu2 %vm523_vm3, %v13237_v28  ;;  %v6507_v54 = vadd.f32 %v6506_v2, %v6393_v60 }
 0x897   : > { %v6780_v47 = vpop.f32.mrf.mxu3 }
 0x898   : > { %v6635_v14 = vpop.f32.mrf.mxu2  ;;  %v13464_v27 = vadd.f32 %v6780_v47, %v6674_v26  ;;  %v6396_v42 = vpop.f32.mrf.mxu0  ;;  %v7293_v26 = vld [vmem:[#allocation3 + $0xd9] sm:$0xff] }
 0x899   : > { %v6675_v28 = vadd.f32 %v6635_v14, %v6504_v59 }
 0x89b   : > { %9545 = vmatmul.msk.f32.gmra.mxu0 %vm523_vm3, %v13235_v20 }
 0x89c   : > { %9561 = vmatmul.msk.f32.gmra.mxu1 %vm523_vm3, %v13260_v31  ;;  %9591 = vmatmul.msk.f32.gmra.mxu3 %vm523_vm3, %v13235_v20 }
 0x89d   : > { %9576 = vmatmul.msk.f32.gmra.mxu2 %vm523_vm3, %v13258_v23  ;;  %v6509_v23 = vpop.f32.mrf.mxu1 }
 0x89e   : > { %v6510_v51 = vadd.f32 %v6509_v23, %v6396_v42  ;;  %v7294_v42 = vld [vmem:[#allocation3 + $0xe1] sm:$0xff] }
 0x89f   : > { %v6783_v18 = vpop.f32.mrf.mxu3 }
 0x8a0   : > { %v6638_v57 = vpop.f32.mrf.mxu2  ;;  %v13474_v46 = vadd.f32 %v6783_v18, %v6675_v28  ;;  %v6399_v34 = vpop.f32.mrf.mxu0 }
 0x8a1   : > { %v6676_v20 = vadd.f32 %v6638_v57, %v6507_v54 }
 0x8a3   : > { %9546 = vmatmul.msk.f32.gmra.mxu0 %vm523_vm3, %v13256_v24 }
 0x8a4   : > { %9562 = vmatmul.msk.f32.gmra.mxu1 %vm523_vm3, %v13286_v49  ;;  %9592 = vmatmul.msk.f32.gmra.mxu3 %vm523_vm3, %v13256_v24 }
 0x8a5   : > { %9577 = vmatmul.msk.f32.gmra.mxu2 %vm523_vm3, %v13279_v12  ;;  %v6512_v38 = vpop.f32.mrf.mxu1 }
 0x8a6   : > { %v6513_v35 = vadd.f32 %v6512_v38, %v6399_v34 }
 0x8a7   : > { %v6786_v25 = vpop.f32.mrf.mxu3 }
 0x8a8   : > { %v13484_v37 = vadd.f32 %v6786_v25, %v6676_v20  ;;  %v13486_v63 = vpop.f32.mrf.mxu0  ;;  %v6641_v0 = vpop.f32.mrf.mxu2 }
 0x8a9   : > { %v6677_v24 = vadd.f32 %v6641_v0, %v6510_v51 }
 0x8ab   : > { %9547 = vmatmul.msk.f32.gmra.mxu0 %vm523_vm3, %v13277_v5 }
 0x8ac   : > { %9563 = vmatmul.msk.f32.gmra.mxu1 %vm523_vm3, %v13302_v15  ;;  %9593 = vmatmul.msk.f32.gmra.mxu3 %vm523_vm3, %v13277_v5 }
 0x8ad   : > { %9578 = vmatmul.msk.f32.gmra.mxu2 %vm523_vm3, %v13300_v40  ;;  %v13577_v47 = vpop.f32.mrf.mxu1 }
 0x8af   : > { %v6789_v12 = vpop.f32.mrf.mxu3 }
 0x8b0   : > { %v13496_v6 = vadd.f32 %v6789_v12, %v6677_v24  ;;  %v13498_v32 = vpop.f32.mrf.mxu0  ;;  %v6644_v62 = vpop.f32.mrf.mxu2 }
 0x8b1   : > { %v6678_v5 = vadd.f32 %v6644_v62, %v6513_v35 }
 0x8b3   : > { %9548 = vmatmul.msk.f32.gmra.mxu0 %vm523_vm3, %v13298_v4 }
 0x8b4   : > { %9564 = vmatmul.msk.f32.gmra.mxu1 %vm523_vm3, %v13328_v16  ;;  %9594 = vmatmul.msk.f32.gmra.mxu3 %vm523_vm3, %v13298_v4 }
 0x8b5   : > { %9579 = vmatmul.msk.f32.gmra.mxu2 %vm523_vm3, %v13321_v9 }
 0x8b7   : > { %v6792_v40 = vpop.f32.mrf.mxu3 }
 0x8b8   : > { %v13508_v60 = vadd.f32 %v6792_v40, %v6678_v5  ;;  %v13510_v52 = vpop.f32.mrf.mxu0  ;;  %v13579_v59 = vpop.f32.mrf.mxu2 }
 0x8ba   : > { %14660 = vst [vmem:[#allocation62_spill] sm:$0xff] %v13508_v60 }
 0x8bb   : > { %9549 = vmatmul.msk.f32.gmra.mxu0 %vm523_vm3, %v13319_v7 }
 0x8bc   : > { %9565 = vmatmul.msk.f32.gmra.mxu1 %vm523_vm3, %v13344_v29  ;;  %9595 = vmatmul.msk.f32.gmra.mxu3 %vm523_vm3, %v13319_v7 }
 0x8bd   : > { %9580 = vmatmul.msk.f32.gmra.mxu2 %vm523_vm3, %v13342_v8  ;;  %v6849_v8 = vld [vmem:[#allocation3 + $0xc1] sm:$0xff] }
 0x8bf   : > { %v13583_v2 = vpop.f32.mrf.mxu3 }
 0x8c0   : > { %v13520_v9 = vpop.f32.mrf.mxu0  ;;  %v13592_v57 = vpop.f32.mrf.mxu2 }
 0x8c3   : > { %9550 = vmatmul.msk.f32.gmra.mxu0 %vm523_vm3, %v13340_v22 }
 0x8c4   : > { %9566 = vmatmul.msk.f32.gmra.mxu1 %vm523_vm3, %v13368_v61  ;;  %9596 = vmatmul.msk.f32.gmra.mxu3 %vm523_vm3, %v13340_v22 }
 0x8c5   : > { %9581 = vmatmul.msk.f32.gmra.mxu2 %vm523_vm3, %v13361_v11  ;;  %v13552_v11 = vld [vmem:[#allocation3 + $0xc2] sm:$0xff] }
 0x8c7   : > { %v13594_v18 = vpop.f32.mrf.mxu3 }
 0x8c8   : > { %v13530_v4 = vpop.f32.mrf.mxu0  ;;  %v13602_v54 = vpop.f32.mrf.mxu2 }
 0x8cb   : > { %9551 = vmatmul.msk.f32.gmra.mxu0 %vm523_vm3, %v13359_v50 }
 0x8cc   : > { %9567 = vmatmul.msk.f32.gmra.mxu1 %vm523_vm3, %v13379_v41  ;;  %9597 = vmatmul.msk.f32.gmra.mxu3 %vm523_vm3, %v13359_v50 }
 0x8cd   : > { %9582 = vmatmul.msk.f32.gmra.mxu2 %vm523_vm3, %v13377_v30  ;;  %v7145_v30 = vld [vmem:[#allocation3 + $0xd8] sm:$0xff] }
 0x8cf   : > { %v13604_v20 = vpop.f32.mrf.mxu3 }
 0x8d0   : > { %v13540_v7 = vpop.f32.mrf.mxu0  ;;  %v13612_v25 = vpop.f32.mrf.mxu2 }
 0x8d3   : > { %9552 = vmatmul.msk.f32.gmra.mxu0 %vm523_vm3, %v13375_v43 }
 0x8d4   : > { %9568 = vmatmul.msk.f32.gmra.mxu1 %vm523_vm3, %v13398_v58  ;;  %9598 = vmatmul.msk.f32.gmra.mxu3 %vm523_vm3, %v13375_v43  ;;  %v13562_v43 = vld [vmem:[#allocation3 + $0xca] sm:$0xff] }
 0x8d5   : > { %9583 = vmatmul.msk.f32.gmra.mxu2 %vm523_vm3, %v13393_v3  ;;  %v6850_v3 = vld [vmem:[#allocation3 + $0xc9] sm:$0xff] }
 0x8d7   : > { %v13616_v51 = vpop.f32.mrf.mxu3 }
 0x8d8   : > { %v13550_v22 = vpop.f32.mrf.mxu0  ;;  %v13624_v12 = vpop.f32.mrf.mxu2 }
 0x8db   : > { %9553 = vmatmul.msk.f32.gmra.mxu0 %vm523_vm3, %v6849_v8 }
 0x8dc   : > { %9569 = vmatmul.msk.f32.gmra.mxu1 %vm523_vm3, %v13552_v11  ;;  %9599 = vmatmul.msk.f32.gmra.mxu3 %vm523_vm3, %v6849_v8 }
 0x8dd   : > { %9584 = vmatmul.msk.f32.gmra.mxu2 %vm523_vm3, %v13410_v33  ;;  %v7146_v33 = vld [vmem:[#allocation3 + $0xe0] sm:$0xff] }
 0x8e0   : > { %v13560_v50 = vpop.f32.mrf.mxu0  ;;  %v13636_v35 = vpop.f32.mrf.mxu2 }
 0x8e1   : > { %14661 = vst [vmem:[#allocation59_spill] sm:$0xff] %v13560_v50 }
 0x8e2   : > { %14664 = vst [vmem:[#allocation64_spill] sm:$0xff] %v13636_v35 }
 0x8e3   : > { %9554 = vmatmul.msk.f32.gmra.mxu0 %vm523_vm3, %v6850_v3 }
 0x8e4   : > { %9570 = vmatmul.msk.f32.gmra.mxu1 %vm523_vm3, %v13562_v43  ;;  %9600 = vmatmul.msk.f32.gmra.mxu3 %vm523_vm3, %v6850_v3 }
 0x8e5   : > { %9585 = vmatmul.msk.f32.gmra.mxu2 %vm523_vm3, %v7145_v30 }
 0x8e8   : > { %v13569_v10 = vpop.f32.mrf.mxu0 }
 0x8eb   : > { %9603 = vmatmul.msk.f32.vlgmr.msrb.gmra.mxu0 %vm523_vm3, %v13177_v53  ;;  %v13588_v53 = vpop.f32.mrf.mxu1 }
 0x8ec   : > { %9601 = vmatmul.msk.f32.gmra.mxu3 %vm523_vm3, %v7293_v26 }
 0x8ed   : > { %9586 = vmatmul.msk.f32.gmra.mxu2 %vm523_vm3, %v7146_v33 }
 0x8f0   : > { %v13575_v14 = vpop.f32.mrf.mxu0 }
 0x8f3   : > { %9604 = vmatmul.msk.f32.gmra.mxu0 %vm523_vm3, %v13201_v21  ;;  %v13600_v21 = vpop.f32.mrf.mxu1 }
 0x8f4   : > { %9602 = vmatmul.msk.f32.gmra.mxu3 %vm523_vm3, %v7294_v42 }
 0x8f8   : > { %v13586_v28 = vpop.f32.mrf.mxu0 }
 0x8fb   : > { %9605 = vmatmul.msk.f32.gmra.mxu0 %vm523_vm3, %v13218_v56  ;;  %v13610_v56 = vpop.f32.mrf.mxu1 }
 0x900   : > { %v13596_v34 = vpop.f32.mrf.mxu0 }
 0x903   : > { %9606 = vmatmul.msk.f32.gmra.mxu0 %vm523_vm3, %v13244_v13  ;;  %v13622_v24 = vpop.f32.mrf.mxu1 }
 0x908   : > { %v13606_v23 = vpop.f32.mrf.mxu0 }
 0x90b   : > { %9607 = vmatmul.msk.f32.gmra.mxu0 %vm523_vm3, %v13260_v31  ;;  %v13628_v31 = vpop.f32.mrf.mxu3  ;;  %v13632_v62 = vpop.f32.mrf.mxu1 }
 0x90c   : > { %14662 = vst [vmem:[#allocation68_spill] sm:$0xff] %v13628_v31 }
 0x910   : > { %v13614_v0 = vpop.f32.mrf.mxu0 }
 0x913   : > { %9608 = vmatmul.msk.f32.gmra.mxu0 %vm523_vm3, %v13286_v49  ;;  %v13638_v49 = vpop.f32.mrf.mxu3  ;;  %v13644_v40 = vpop.f32.mrf.mxu1 }
 0x914   : > { %14665 = vst [vmem:[#allocation65_spill] sm:$0xff] %v13638_v49 }
 0x918   : > { %v13620_v13 = vpop.f32.mrf.mxu0 }
 0x91b   : > { %9609 = vmatmul.msk.f32.gmra.mxu0 %vm523_vm3, %v13302_v15  ;;  %v13646_v15 = vpop.f32.mrf.mxu2  ;;  %v13648_v8 = vpop.f32.mrf.mxu3 }
 0x91c   : > { %14667 = vst [vmem:[#allocation63_spill] sm:$0xff] %v13646_v15 }
 0x91d   : > { %14668 = vst [vmem:[#allocation67_spill] sm:$0xff] %v13648_v8 }
 0x920   : > { %v13630_v38 = vpop.f32.mrf.mxu0 }
 0x921   : > { %14663 = vst [vmem:[#allocation40_spill] sm:$0xff] %v13630_v38 }
 0x923   : > { %9610 = vmatmul.msk.f32.gmra.mxu0 %vm523_vm3, %v13328_v16  ;;  %v13654_v16 = vpop.f32.mrf.mxu1  ;;  %v13656_v3 = vpop.f32.mrf.mxu2 }
 0x924   : > { %14670 = vst [vmem:[#allocation66_spill] sm:$0xff] %v13654_v16  ;;  %v13660_v26 = vpop.f32.mrf.mxu3  ;;  %v7442_v16 = vld [vmem:[#allocation3 + $0xe2] sm:$0xff] }
 0x925   : > { %14671 = vst [vmem:[#allocation41_spill] sm:$0xff] %v13656_v3 }
 0x926   : > { %14673 = vst [vmem:[#allocation38_spill] sm:$0xff] %v13660_v26 }
 0x928   : > { %v13640_v5 = vpop.f32.mrf.mxu0 }
 0x929   : > { %14666 = vst [vmem:[#allocation49_spill] sm:$0xff] %v13640_v5  ;;  %v7441_v5 = vld [vmem:[#allocation3 + $0xda] sm:$0xff] }
 0x92b   : > { %9611 = vmatmul.msk.f32.gmra.mxu0 %vm523_vm3, %v13344_v29  ;;  %v13666_v42 = vpop.f32.mrf.mxu1  ;;  %v13668_v8 = vpop.f32.mrf.mxu2 }
 0x930   : > { %v13650_v30 = vpop.f32.mrf.mxu0 }
 0x931   : > { %14669 = vst [vmem:[#allocation69_spill] sm:$0xff] %v13650_v30 }
 0x933   : > { %9612 = vmatmul.msk.f32.gmra.mxu0 %vm523_vm3, %v13368_v61  ;;  %v13672_v61 = vpop.f32.mrf.mxu3  ;;  %v13676_v3 = vpop.f32.mrf.mxu1 }
 0x934   : > { %v13680_v26 = vpop.f32.mrf.mxu2 }
 0x938   : > { %v13658_v33 = vpop.f32.mrf.mxu0 }
 0x939   : > { %14672 = vst [vmem:[#allocation71_spill] sm:$0xff] %v13658_v33 }
 0x93b   : > { %9613 = vmatmul.msk.f32.gmra.mxu0 %vm523_vm3, %v13379_v41  ;;  %v13682_v41 = vpop.f32.mrf.mxu3  ;;  %v13688_v33 = vpop.f32.mrf.mxu1 }
 0x940   : > { %v13664_v29 = vpop.f32.mrf.mxu0 }
 0x941   : > { %14674 = vst [vmem:[#allocation70_spill] sm:$0xff] %v13664_v29 }
 0x943   : > { %9614 = vmatmul.msk.f32.gmra.mxu0 %vm523_vm3, %v13398_v58  ;;  %v13690_v58 = vpop.f32.mrf.mxu2  ;;  %v13692_v49 = vpop.f32.mrf.mxu3 }
 0x944   : > { %14677 = vst [vmem:[#allocation27_spill] sm:$0xff] %v13692_v49  ;;  %v13700_v15 = vpop.f32.mrf.mxu1 }
 0x948   : > { %v13674_v30 = vpop.f32.mrf.mxu0 }
 0x949   : > { %14675 = vst [vmem:[#allocation39_spill] sm:$0xff] %v13674_v30 }
 0x94b   : > { %9615 = vmatmul.msk.f32.gmra.mxu0 %vm523_vm3, %v13552_v11  ;;  %v9621_v11 = vld [vmem:[%s14333_s7 + $0x18] sm:$0xff]  ;;  %v13706_v50 = vpop.f32.mrf.mxu3 }
 0x94c   : > { %7693 = vmatpush.msrb.mxu1 %v9621_v11  ;;  %7717 = vmatpush.msrb.mxu2 %v9621_v11  ;;  %14681 = vst [vmem:[#allocation31_spill] sm:$0xff] %v13706_v50 }
 0x950   : > { %v13684_v29 = vpop.f32.mrf.mxu0 }
 0x951   : > { %14676 = vst [vmem:[#allocation42_spill] sm:$0xff] %v13684_v29 }
 0x953   : > { %9616 = vmatmul.msk.f32.gmra.mxu0 %vm523_vm3, %v13562_v43  ;;  %v13702_v43 = vpop.f32.mrf.mxu2  ;;  %v13715_v60 = vpop.f32.mrf.mxu3 }
 0x954   : > { %14679 = vst [vmem:[#allocation29_spill] sm:$0xff] %v13702_v43 }
 0x955   : > { %14684 = vst [vmem:[#allocation34_spill] sm:$0xff] %v13715_v60 }
 0x958   : > { %v13694_v30 = vpop.f32.mrf.mxu0 }
 0x959   : > { %14678 = vst [vmem:[#allocation28_spill] sm:$0xff] %v13694_v30 }
 0x95b   : > { %9617 = vmatmul.msk.f32.gmra.mxu0 %vm523_vm3, %v7441_v5  ;;  %v13711_v5 = vpop.f32.mrf.mxu1  ;;  %v13713_v38 = vpop.f32.mrf.mxu2 }
 0x95c   : > { %14683 = vst [vmem:[#allocation33_spill] sm:$0xff] %v13713_v38 }
 0x960   : > { %v13704_v29 = vpop.f32.mrf.mxu0 }
 0x961   : > { %14680 = vst [vmem:[#allocation30_spill] sm:$0xff] %v13704_v29  ;;  %v13723_v29 = vpop.f32.mrf.mxu3 }
 0x962   : > { %14688 = vst [vmem:[#allocation20_spill] sm:$0xff] %v13723_v29 }
 0x963   : > { %9618 = vmatmul.msk.f32.gmra.mxu0 %vm523_vm3, %v7442_v16  ;;  %v13719_v11 = vpop.f32.mrf.mxu1  ;;  %v13721_v35 = vpop.f32.mrf.mxu2 }
 0x964   : > { %14686 = vst [vmem:[#allocation18_spill] sm:$0xff] %v13719_v11 }
 0x965   : > { %14687 = vst [vmem:[#allocation16_spill] sm:$0xff] %v13721_v35 }
 0x968   : > { %v13709_v30 = vpop.f32.mrf.mxu0 }
 0x969   : > { %14682 = vst [vmem:[#allocation32_spill] sm:$0xff] %v13709_v30  ;;  %v13731_v30 = vpop.f32.mrf.mxu3 }
 0x96a   : > { %14692 = vst [vmem:[#allocation15_spill] sm:$0xff] %v13731_v30 }
 0x96b   : > { %v13727_v50 = vpop.f32.mrf.mxu1  ;;  %v13729_v16 = vpop.f32.mrf.mxu2 }
 0x96c   : > { %14690 = vst [vmem:[#allocation17_spill] sm:$0xff] %v13727_v50 }
 0x96d   : > { %14691 = vst [vmem:[#allocation22_spill] sm:$0xff] %v13729_v16 }
 0x970   : > { %v13717_v31 = vpop.f32.mrf.mxu0 }
 0x971   : > { %14685 = vst [vmem:[#allocation35_spill] sm:$0xff] %v13717_v31  ;;  %v13741_v11 = vpop.f32.mrf.mxu3 }
 0x972   : > { %14696 = vst [vmem:[#allocation54_spill] sm:$0xff] %v13741_v11  ;;  %v9620_v11 = vld [vmem:[%s14333_s7 + $0x10] sm:$0xff] }
 0x973   : > { %v13735_v38 = vpop.f32.mrf.mxu1  ;;  %v13737_v60 = vpop.f32.mrf.mxu2  ;;  %7694 = vmatpush.msrb.mxu1 %v9620_v11  ;;  %7718 = vmatpush.msrb.mxu2 %v9620_v11 }
 0x974   : > { %14694 = vst [vmem:[#allocation12_spill] sm:$0xff] %v13735_v38 }
 0x975   : > { %14695 = vst [vmem:[#allocation48_spill] sm:$0xff] %v13737_v60 }
 0x978   : > { %v13725_v49 = vpop.f32.mrf.mxu0 }
 0x979   : > { %14689 = vst [vmem:[#allocation14_spill] sm:$0xff] %v13725_v49  ;;  %v13749_v50 = vpop.f32.mrf.mxu3 }
 0x97a   : > { %14700 = vst [vmem:[#allocation36_spill] sm:$0xff] %v13749_v50 }
 0x97b   : > { %v13745_v29 = vpop.f32.mrf.mxu1  ;;  %v13747_v49 = vpop.f32.mrf.mxu2 }
 0x97c   : > { %14698 = vst [vmem:[#allocation57_spill] sm:$0xff] %v13745_v29 }
 0x97d   : > { %14699 = vst [vmem:[#allocation55_spill] sm:$0xff] %v13747_v49 }
 0x980   : > { %v13733_v43 = vpop.f32.mrf.mxu0 }
 0x981   : > { %14693 = vst [vmem:[#allocation60_spill] sm:$0xff] %v13733_v43  ;;  %v13757_v38 = vpop.f32.mrf.mxu3 }
 0x982   : > { %14704 = vst [vmem:[#allocation73_spill] sm:$0xff] %v13757_v38  ;;  %v6492_v38 = vadd.f32 %v13396_v48, %v13390_v17  ;;  %v6519_v48 = vadd.f32 %v13588_v53, %v13498_v32 }
 0x983   : > { %v13753_v30 = vpop.f32.mrf.mxu1  ;;  %v13755_v43 = vpop.f32.mrf.mxu2 }
 0x984   : > { %14702 = vst [vmem:[#allocation61_spill] sm:$0xff] %v13753_v30 }
 0x985   : > { %14703 = vst [vmem:[#allocation72_spill] sm:$0xff] %v13755_v43  ;;  %v6495_v43 = vadd.f32 %v13422_v19, %v13408_v36  ;;  %v6516_v36 = vadd.f32 %v13577_v47, %v13486_v63  ;;  %v6528_v47 = vadd.f32 %v13622_v24, %v13530_v4  ;;  %v14710_v24 = vld [vmem:[#allocation29_spill] sm:$0xff] }
 0x988   : > { %v13739_v31 = vpop.f32.mrf.mxu0 }
 0x989   : > { %v13768_v50 = vpop.f32.mrf.mxu3 }
 0x98a   : > { %14708 = vst [vmem:[#allocation77_spill] sm:$0xff] %v13768_v50 }
 0x98b   : > { %v13764_v60 = vpop.f32.mrf.mxu1  ;;  %v13766_v49 = vpop.f32.mrf.mxu2 }
 0x98c   : > { %14706 = vst [vmem:[#allocation75_spill] sm:$0xff] %v13764_v60 }
 0x98d   : > { %14707 = vst [vmem:[#allocation76_spill] sm:$0xff] %v13766_v49  ;;  %v6671_v49 = vadd.f32 %v13416_v1, %v6492_v38  ;;  %v6969_v1 = vadd.f32 %v13586_v28, %v13454_v44 }
 0x98f   : > { %v7117_v28 = vadd.f32 %v13688_v33, %v6969_v1  ;;  %v14714_v33 = vld [vmem:[#allocation68_spill] sm:$0xff] }
 0x990   : > { %v13743_v35 = vpop.f32.mrf.mxu0 }
 0x991   : > { %14697 = vst [vmem:[#allocation51_spill] sm:$0xff] %v13743_v35  ;;  %v13784_v60 = vpop.f32.mrf.mxu3 }
 0x993   : > { %v13776_v30 = vpop.f32.mrf.mxu1  ;;  %v13778_v29 = vpop.f32.mrf.mxu2 }
 0x998   : > { %v13751_v16 = vpop.f32.mrf.mxu0 }
 0x999   : > { %14701 = vst [vmem:[#allocation58_spill] sm:$0xff] %v13751_v16 }
 0x9a0   : > { %v13762_v35 = vpop.f32.mrf.mxu0 }
 0x9a1   : > { %14705 = vst [vmem:[#allocation74_spill] sm:$0xff] %v13762_v35  ;;  %v6672_v35 = vadd.f32 %v13432_v45, %v6495_v43  ;;  %v6679_v45 = vadd.f32 %v13579_v59, %v6516_v36  ;;  %v13857_v36 = vld [vmem:[%s14332_s6 + $0x1] ss:$0 sm:$0xff] }
 0x9a3   : > { %v6820_v50 = vadd.f32 %v13444_v39, %v6672_v35  ;;  %v6522_v39 = vadd.f32 %v13600_v21, %v13510_v52  ;;  %v6827_v63 = vadd.f32 %v13583_v2, %v6679_v45  ;;  %v13815_v2 = vpop.f32.mrf.mxu2  ;;  %v13828_v21 = vpop.f32.mrf.mxu3  ;;  %v14723_v45 = vld [vmem:[#allocation66_spill] sm:$0xff] }
 0x9a5   : > { %v6968_v17 = vadd.f32 %v13575_v14, %v6820_v50  ;;  %v6525_v50 = vadd.f32 %v13610_v56, %v13520_v9  ;;  %v13808_v14 = vpop.f32.mrf.mxu1  ;;  %v6681_v44 = vadd.f32 %v13602_v54, %v6522_v39  ;;  %v6683_v54 = vadd.f32 %v13624_v12, %v6528_v47  ;;  %v14724_v39 = vld [vmem:[#allocation63_spill] sm:$0xff]  ;;  %v14727_v47 = vld [vmem:[#allocation16_spill] sm:$0xff] }
 0x9a7   : > { %v7116_v32 = vadd.f32 %v13676_v3, %v6968_v17  ;;  %v6682_v9 = vadd.f32 %v13612_v25, %v6525_v50  ;;  %v7265_v25 = vadd.f32 %v13690_v58, %v7117_v28  ;;  %v14719_v58 = vld [vmem:[#allocation31_spill] sm:$0xff]  ;;  %v14721_v17 = vld [vmem:[#allocation14_spill] sm:$0xff]  ;;  %v14725_v50 = vld [vmem:[#allocation17_spill] sm:$0xff] }
 0x9a8   : > { %v13770_v16 = vpop.f32.mrf.mxu0 }
 0x9a9   : > { %14709 = vst [vmem:[#allocation78_spill] sm:$0xff] %v13770_v16  ;;  %v6819_v16 = vadd.f32 %v13434_v55, %v6671_v49  ;;  %v6680_v55 = vadd.f32 %v13592_v57, %v6519_v48  ;;  %v7264_v53 = vadd.f32 %v13680_v26, %v7116_v32  ;;  %v6829_v57 = vadd.f32 %v13604_v20, %v6681_v44  ;;  %v14712_v49 = vld [vmem:[#allocation35_spill] sm:$0xff]  ;;  %v14715_v26 = vld [vmem:[#allocation18_spill] sm:$0xff] }
 0x9aa   : > { %v6830_v20 = vadd.f32 %v13616_v51, %v6682_v9  ;;  %v6831_v51 = vadd.f32 %v14714_v33, %v6683_v54  ;;  %v14728_v9 = vld [vmem:[#allocation34_spill] sm:$0xff]  ;;  %v14737_v33 = vld [vmem:[#allocation48_spill] sm:$0xff] }
 0x9ab   : > { %v6967_v19 = vadd.f32 %v13569_v10, %v6819_v16  ;;  %v6970_v10 = vadd.f32 %v13596_v34, %v13464_v27  ;;  %v6828_v52 = vadd.f32 %v13594_v18, %v6680_v55  ;;  %v6971_v27 = vadd.f32 %v13606_v23, %v13474_v46 }
 0x9ac   : > { %v6531_v18 = vadd.f32 %v13632_v62, %v13540_v7  ;;  %v6972_v34 = vadd.f32 %v13614_v0, %v13484_v37  ;;  %v7412_v46 = vadd.f32 %v13682_v41, %v7264_v53  ;;  %v6534_v7 = vadd.f32 %v13644_v40, %v13550_v22  ;;  %v14711_v62 = vld [vmem:[#allocation27_spill] sm:$0xff]  ;;  %v14716_v22 = vld [vmem:[#allocation62_spill] sm:$0xff]  ;;  %v14717_v40 = vld [vmem:[#allocation40_spill] sm:$0xff] }
 0x9ad   : > { %v7115_v59 = vadd.f32 %v13666_v42, %v6967_v19  ;;  %v7118_v56 = vadd.f32 %v13700_v15, %v6970_v10  ;;  %v6973_v37 = vadd.f32 %v13620_v13, %v13496_v6  ;;  %v7119_v0 = vadd.f32 %v13711_v5, %v6971_v27  ;;  %v14718_v6 = vld [vmem:[#allocation33_spill] sm:$0xff]  ;;  %v14720_v5 = vld [vmem:[#allocation32_spill] sm:$0xff]  ;;  %v14722_v19 = vld [vmem:[#allocation59_spill] sm:$0xff]  ;;  %v7106_v53 = vpop.f32.mrf.mxu1 }
 0x9ae   : > { %v7413_v35 = vadd.f32 %v14711_v62, %v7265_v25  ;;  %v7560_v15 = vadd.f32 %v14712_v49, %v7412_v46  ;;  %v7120_v42 = vadd.f32 %v14715_v26, %v6972_v34  ;;  %v6537_v1 = vadd.f32 %v14723_v45, %v14722_v19  ;;  %v14726_v10 = vld [vmem:[#allocation49_spill] sm:$0xff]  ;;  %v14732_v46 = vld [vmem:[#allocation22_spill] sm:$0xff]  ;;  %v14735_v49 = vld [vmem:[#allocation67_spill] sm:$0xff] }
 0x9af   : > { %v7263_v4 = vadd.f32 %v13668_v8, %v7115_v59  ;;  %v7266_v12 = vadd.f32 %v14710_v24, %v7118_v56  ;;  %v14713_v8 = vld [vmem:[#allocation64_spill] sm:$0xff]  ;;  %v7267_v13 = vadd.f32 %v14718_v6, %v7119_v0  ;;  %v6685_v55 = vadd.f32 %v14724_v39, %v6534_v7  ;;  %v14730_v34 = vld [vmem:[#allocation65_spill] sm:$0xff]  ;;  %v7254_v0 = vpop.f32.mrf.mxu2  ;;  %v14744_v45 = vld [vmem:[#allocation70_spill] sm:$0xff] }
 0x9b0   : > { %v13780_v11 = vpop.f32.mrf.mxu0  ;;  %v6684_v3 = vadd.f32 %v14713_v8, %v6531_v18  ;;  %v7561_v48 = vadd.f32 %v14721_v17, %v7413_v35  ;;  %v7121_v32 = vadd.f32 %v14725_v50, %v6973_v37  ;;  %v6975_v44 = vadd.f32 %v14726_v10, %v6827_v63  ;;  %v14729_v18 = vld [vmem:[#allocation60_spill] sm:$0xff]  ;;  %v14736_v8 = vld [vmem:[#allocation57_spill] sm:$0xff]  ;;  %v14745_v10 = vld [vmem:[#allocation58_spill] sm:$0xff] }
 0x9b1   : > { %v7411_v23 = vadd.f32 %v13672_v61, %v7263_v4  ;;  %v6974_v61 = vadd.f32 %v14717_v40, %v14716_v22  ;;  %v7414_v43 = vadd.f32 %v14719_v58, %v7266_v12  ;;  %v7268_v59 = vadd.f32 %v14727_v47, %v7120_v42  ;;  %v14731_v56 = vld [vmem:[#allocation12_spill] sm:$0xff]  ;;  %v14738_v42 = vld [vmem:[#allocation71_spill] sm:$0xff] }
 0x9b2   : > { %v7415_v28 = vadd.f32 %v14728_v9, %v7267_v13  ;;  %v13868_v27 = vadd.f32 %v13857_v36, %v7560_v15  ;;  %v6832_v54 = vadd.f32 %v14730_v34, %v6684_v3  ;;  %v7269_v7 = vadd.f32 %v14732_v46, %v7121_v32  ;;  %v14734_v63 = vld [vmem:[#allocation20_spill] sm:$0xff]  ;;  %v14739_v40 = vld [vmem:[#allocation15_spill] sm:$0xff] }
 0x9b3   : > { %v7559_v16 = vadd.f32 %v14720_v5, %v7411_v23  ;;  %v7562_v4 = vadd.f32 %v14729_v18, %v7414_v43  ;;  %v7122_v25 = vadd.f32 %v14731_v56, %v6974_v61  ;;  %v14733_v23 = vld [vmem:[#allocation69_spill] sm:$0xff]  ;;  %v7416_v24 = vadd.f32 %v14734_v63, %v7268_v59  ;;  %v14740_v58 = vld [vmem:[#allocation51_spill] sm:$0xff]  ;;  %v14747_v9 = vld [vmem:[#allocation72_spill] sm:$0xff] }
 0x9b4   : > { %v6976_v37 = vadd.f32 %v14733_v23, %v6828_v52  ;;  %v13880_v62 = vadd.f32 %v13857_v36, %v7561_v48  ;;  %v7563_v35 = vadd.f32 %v13739_v31, %v7415_v28  ;;  %v6833_v15 = vadd.f32 %v14735_v49, %v6685_v55  ;;  %v7402_v52 = vpop.f32.mrf.mxu3  ;;  %v14741_v31 = vld [vmem:[#allocation61_spill] sm:$0xff]  ;;  %v14743_v48 = vld [vmem:[#allocation54_spill] sm:$0xff]  ;;  %v14746_v47 = vld [vmem:[#allocation75_spill] sm:$0xff] }
 0x9b5   : > { %v13877_v12 = vadd.f32 %v13857_v36, %v7559_v16  ;;  %v7123_v3 = vadd.f32 %v14736_v8, %v6975_v44  ;;  %v7270_v26 = vadd.f32 %v14737_v33, %v7122_v25  ;;  %v6977_v22 = vadd.f32 %v14738_v42, %v6829_v57  ;;  %v14742_v16 = vld [vmem:[#allocation55_spill] sm:$0xff]  ;;  %v14751_v63 = vld [vmem:[#allocation76_spill] sm:$0xff]  ;;  %v7109_v33 = vpop.f32.mrf.mxu1 }
 0x9b6   : > { %v7417_v61 = vadd.f32 %v14739_v40, %v7269_v7  ;;  %v7597_v6 = vsel %vm523_vm3, %v13868_v27, 0.0  ;;  %v13891_v13 = vadd.f32 %v13857_v36, %v7562_v4  ;;  %v7564_v43 = vadd.f32 %v14740_v58, %v7416_v24  ;;  %v14748_v18 = vld [vmem:[#allocation39_spill] sm:$0xff]  ;;  %v14750_v7 = vld [vmem:[#allocation74_spill] sm:$0xff] }
 0x9b7   : > { %v7124_v5 = vadd.f32 %v14741_v31, %v6976_v37  ;;  %v7271_v17 = vadd.f32 %v14742_v16, %v7123_v3  ;;  %v7418_v19 = vadd.f32 %v14743_v48, %v7270_v26  ;;  %v6978_v39 = vadd.f32 %v14744_v45, %v6830_v20  ;;  %v14749_v20 = vld [vmem:[#allocation36_spill] sm:$0xff]  ;;  %v14753_v3 = vld [vmem:[#allocation73_spill] sm:$0xff] }
 0x9b8   : > { %v13800_v38 = vpop.f32.mrf.mxu0  ;;  %v7596_v55 = vsel %vm523_vm3, %v13877_v12, 0.0  ;;  %v7599_v50 = vsel %vm523_vm3, %v13880_v62, 0.0  ;;  %v13903_v32 = vadd.f32 %v13857_v36, %v7563_v35  ;;  %v7565_v44 = vadd.f32 %v14745_v10, %v7417_v61  ;;  %v14752_v35 = vld [vmem:[#allocation42_spill] sm:$0xff]  ;;  %v14756_v31 = vld [vmem:[#allocation77_spill] sm:$0xff] }
 0x9b9   : > { %v7125_v59 = vadd.f32 %v14746_v47, %v6977_v22  ;;  %v7272_v28 = vadd.f32 %v14747_v9, %v7124_v5  ;;  %v6979_v4 = vadd.f32 %v14748_v18, %v6831_v51  ;;  %v7598_v34 = vadd.f32 %v7597_v6, %v7596_v55  ;;  %v14754_v22 = vld [vmem:[#allocation78_spill] sm:$0xff]  ;;  %v14755_v6 = vld [vmem:[#allocation28_spill] sm:$0xff] }
 0x9ba   : > { %v7419_v56 = vadd.f32 %v14749_v20, %v7271_v17  ;;  %v7601_v25 = vsel %vm523_vm3, %v13891_v13, 0.0  ;;  %v13913_v46 = vadd.f32 %v13857_v36, %v7564_v43  ;;  %v7566_v23 = vadd.f32 %v14750_v7, %v7418_v19  ;;  %v7257_v43 = vpop.f32.mrf.mxu2  ;;  %v14757_v19 = vld [vmem:[#allocation41_spill] sm:$0xff] }
 0x9bb   : > { %v7126_v37 = vadd.f32 %v13776_v30, %v6978_v39  ;;  %v7273_v24 = vadd.f32 %v14751_v63, %v7125_v59  ;;  %v6980_v49 = vadd.f32 %v14752_v35, %v6832_v54  ;;  %v7600_v8 = vadd.f32 %v7599_v50, %v7598_v34  ;;  %v14758_v59 = vld [vmem:[#allocation38_spill] sm:$0xff] }
 0x9bc   : > { %v7420_v51 = vadd.f32 %v14753_v3, %v7272_v28  ;;  %v7603_v26 = vsel %vm523_vm3, %v13903_v32, 0.0  ;;  %v13923_v42 = vadd.f32 %v13857_v36, %v7565_v44  ;;  %v7567_v40 = vadd.f32 %v14754_v22, %v7419_v56 }
 0x9bd   : > { %v7127_v61 = vadd.f32 %v13808_v14, %v6979_v4  ;;  %v7274_v30 = vadd.f32 %v13778_v29, %v7126_v37  ;;  %v6981_v58 = vadd.f32 %v14755_v6, %v6833_v15  ;;  %v7602_v54 = vadd.f32 %v7601_v25, %v7600_v8  ;;  %v7405_v29 = vpop.f32.mrf.mxu3  ;;  %v14759_v4 = vld [vmem:[#allocation30_spill] sm:$0xff]  ;;  %v7675_v8 = vld [vmem:[#allocation7 + $0x4] sm:$0xf] }
 0x9be   : > { %v7421_v5 = vadd.f32 %v14756_v31, %v7273_v24  ;;  %v7605_v16 = vsel %vm523_vm3, %v13913_v46, 0.0  ;;  %v13933_v17 = vadd.f32 %v13857_v36, %v7566_v23  ;;  %v7568_v48 = vadd.f32 %v13780_v11, %v7420_v51  ;;  %v7112_v23 = vpop.f32.mrf.mxu1  ;;  %9626 = vmatpush.msk.msra.mxu2 %vm696_vm1, %v7675_v8  ;;  %9624 = vmatpush.msk.msra.mxu1 %vm696_vm1, %v7675_v8 }
 0x9bf   : > { %v6686_v45 = vadd.f32 %v14757_v19, %v6537_v1  ;;  %v7128_v39 = vadd.f32 %v7106_v53, %v6980_v49  ;;  %v7275_v14 = vadd.f32 %v13815_v2, %v7127_v61  ;;  %v7604_v55 = vadd.f32 %v7603_v26, %v7602_v54 }
 0x9c0   : > { %v13849_v41 = vpop.f32.mrf.mxu0  ;;  %v7422_v50 = vadd.f32 %v13784_v60, %v7274_v30  ;;  %v7607_v10 = vsel %vm523_vm3, %v13923_v42, 0.0  ;;  %v13942_v44 = vadd.f32 %v13857_v36, %v7567_v40  ;;  %v7569_v47 = vadd.f32 %v13800_v38, %v7421_v5 }
 0x9c1   : > { %v6834_v11 = vadd.f32 %v14758_v59, %v6686_v45  ;;  %v7129_v9 = vadd.f32 %v7109_v33, %v6981_v58  ;;  %v7276_v1 = vadd.f32 %v7254_v0, %v7128_v39  ;;  %v7606_v53 = vadd.f32 %v7605_v16, %v7604_v55 }
 0x9c2   : > { %v7423_v2 = vadd.f32 %v13828_v21, %v7275_v14  ;;  %v7609_v28 = vsel %vm523_vm3, %v13933_v17, 0.0  ;;  %v13950_v60 = vadd.f32 %v13857_v36, %v7568_v48  ;;  %v7570_v18 = vadd.f32 %v13849_v41, %v7422_v50  ;;  %v7260_v35 = vpop.f32.mrf.mxu2 }
 0x9c3   : > { %v6982_v34 = vadd.f32 %v14759_v4, %v6834_v11  ;;  %v7277_v20 = vadd.f32 %v7257_v43, %v7129_v9  ;;  %v7608_v56 = vadd.f32 %v7607_v10, %v7606_v53  ;;  %v7424_v38 = vadd.f32 %v7402_v52, %v7276_v1 }
 0x9c4   : > { %v7611_v25 = vsel %vm523_vm3, %v13942_v44, 0.0  ;;  %v13957_v0 = vadd.f32 %v13857_v36, %v7569_v47  ;;  %v7613_v63 = vsel %vm523_vm3, %v13950_v60, 0.0  ;;  %v13962_v41 = vadd.f32 %v13857_v36, %v7570_v18 }
 0x9c5   : > { %v7610_v7 = vadd.f32 %v7609_v28, %v7608_v56  ;;  %v7425_v37 = vadd.f32 %v7405_v29, %v7277_v20  ;;  %v7130_v3 = vadd.f32 %v7112_v23, %v6982_v34  ;;  %v7408_v26 = vpop.f32.mrf.mxu3  ;;  %v7638_v61 = vsel %vm523_vm3, %v13903_v32, -inf }
 0x9c6   : > { %v7615_v51 = vsel %vm523_vm3, %v13957_v0, 0.0  ;;  %v7617_v30 = vsel %vm523_vm3, %v13962_v41, 0.0  ;;  %v7634_v58 = vsel %vm523_vm3, %v13877_v12, -inf  ;;  %v7635_v43 = vsel %vm523_vm3, %v13868_v27, -inf }
 0x9c7   : > { %v7612_v49 = vadd.f32 %v7611_v25, %v7610_v7  ;;  %v7278_v40 = vadd.f32 %v7260_v35, %v7130_v3  ;;  %v7640_v5 = vsel %vm523_vm3, %v13913_v46, -inf  ;;  %v7636_v19 = vsel %vm523_vm3, %v13880_v62, -inf }
 0x9c8   : > { %v7547_v57 = vpop.f32.mrf.mxu0  ;;  %v7637_v45 = vsel %vm523_vm3, %v13891_v13, -inf  ;;  %v7639_v39 = vmax.f32 %v7634_v58, %v7638_v61  ;;  %v7642_v29 = vsel %vm523_vm3, %v13923_v42, -inf  ;;  %v7644_v55 = vsel %vm523_vm3, %v13933_v17, -inf }
 0x9c9   : > { %v7571_v21 = vadd.f32 %v7547_v57, %v7423_v2  ;;  %v7614_v22 = vadd.f32 %v7613_v63, %v7612_v49  ;;  %v7426_v31 = vadd.f32 %v7408_v26, %v7278_v40  ;;  %v7641_v10 = vmax.f32 %v7635_v43, %v7640_v5 }
 0x9ca   : > { %v7646_v47 = vsel %vm523_vm3, %v13942_v44, -inf  ;;  %v7650_v59 = vsel %vm523_vm3, %v13957_v0, -inf  ;;  %v7652_v1 = vsel %vm523_vm3, %v13962_v41, -inf  ;;  %v7643_v18 = vmax.f32 %v7636_v19, %v7642_v29 }
 0x9cb   : > { %v13967_v57 = vadd.f32 %v13857_v36, %v7571_v21  ;;  %v7616_v54 = vadd.f32 %v7615_v51, %v7614_v22  ;;  %v7645_v4 = vmax.f32 %v7637_v45, %v7644_v55  ;;  %v7647_v56 = vmax.f32 %v7639_v39, %v7646_v47  ;;  %v7892_v47 = vld [vmem:[#allocation9 + $0x10] sm:$0xff] }
 0x9cc   : > { %v7651_v7 = vmax.f32 %v7643_v18, %v7650_v59  ;;  %v8285_v18 = vld [vmem:[#allocation9 + $0x30] sm:$0xff]  ;;  %vm8723_vm1 = vcmask 27648  }
 0x9cd   : > { %v7619_v16 = vsel %vm523_vm3, %v13967_v57, 0.0  ;;  %v7618_v14 = vadd.f32 %v7617_v30, %v7616_v54  ;;  %v7653_v23 = vmax.f32 %v7645_v4, %v7652_v1  ;;  %v8286_v1 = vld [vmem:[#allocation9 + $0x38] sm:$0xff] }
 0x9ce   : > { %8349 = vmatpush.msra.mxu0 %v8286_v1 }
 0x9cf   : > { %v7620_v11 = vadd.f32 %v7619_v16, %v7618_v14  ;;  %v14760_v16 = vld [vmem:[#allocation13_spill] sm:$0xff] }
 0x9d0   : > { %v7550_v15 = vpop.f32.mrf.mxu0  ;;  %8350 = vmatpush.msra.mxu0 %v8285_v18 }
 0x9d1   : > { %v7572_v24 = vadd.f32 %v7550_v15, %v7424_v38  ;;  %v7648_v15 = vsel %vm523_vm3, %v13950_v60, -inf  ;;  %v7654_v38 = vsel %vm523_vm3, %v13967_v57, -inf }
 0x9d2   : > { %v7649_v34 = vmax.f32 %v7641_v10, %v7648_v15  ;;  %v7655_v49 = vmax.f32 %v7647_v56, %v7654_v38  ;;  %v7893_v10 = vld [vmem:[#allocation9 + $0x18] sm:$0xff]  ;;  %v8434_v56 = vld [vmem:[#allocation9 + $0x48] sm:$0xff]  ;;  %v14761_v38 = vmov 0.0  }
 0x9d3   : > { %v13976_v6 = vadd.f32 %v13857_v36, %v7572_v24  ;;  %558 = vst.msk [vmem:[#allocation4 + $0x10] sm:$0xf] %vm557_vm10, %v14761_v38 }
 0x9d4   : > { %561 = vst.msk [vmem:[#allocation4 + $0x28] sm:$0xf] %vm557_vm10, %v14761_v38 }
 0x9d5   : > { %v7621_v50 = vsel %vm523_vm3, %v13976_v6, 0.0  ;;  %v7656_v53 = vsel %vm523_vm3, %v13976_v6, -inf  ;;  %564 = vst.msk [vmem:[#allocation4 + $0x40] sm:$0xf] %vm557_vm10, %v14761_v38 }
 0x9d6   : > { %v7622_v20 = vadd.f32 %v7621_v50, %v7620_v11  ;;  %v8138_v50 = vld [vmem:[#allocation9 + $0x28] sm:$0xff]  ;;  %567 = vst.msk [vmem:[#allocation4 + $0x58] sm:$0xf] %vm557_vm10, %v14761_v38 }
 0x9d7   : > { %8201 = vmatpush.msra.mxu3 %v8138_v50  ;;  %570 = vst.msk [vmem:[#allocation4 + $0x70] sm:$0xf] %vm557_vm10, %v14761_v38 }
 0x9d8   : > { %v7553_v52 = vpop.f32.mrf.mxu0  ;;  %573 = vst.msk [vmem:[#allocation4 + $0x88] sm:$0xf] %vm557_vm10, %v14761_v38 }
 0x9d9   : > { %v7573_v33 = vadd.f32 %v7553_v52, %v7425_v37  ;;  %v7657_v37 = vmax.f32 %v7649_v34, %v7656_v53  ;;  %v7873_v53 = vld [vmem:[#allocation9] sm:$0xff]  ;;  %576 = vst.msk [vmem:[#allocation4 + $0xa0] sm:$0xf] %vm557_vm10, %v14761_v38 }
 0x9da   : > { %579 = vst.msk [vmem:[#allocation4 + $0xb8] sm:$0xf] %vm557_vm10, %v14761_v38 }
 0x9db   : > { %v13987_v48 = vadd.f32 %v13857_v36, %v7573_v33  ;;  %v7662_v51 = vmax.f32 %v7655_v49, %v7657_v37 }
 0x9dd   : > { %v7623_v2 = vsel %vm523_vm3, %v13987_v48, 0.0  ;;  %v7658_v25 = vsel %vm523_vm3, %v13987_v48, -inf }
 0x9de   : > { %v7624_v63 = vadd.f32 %v7623_v2, %v7622_v20  ;;  %v7659_v52 = vmax.f32 %v7651_v7, %v7658_v25 }
 0x9e0   : > { %v7556_v9 = vpop.f32.mrf.mxu0 }
 0x9e1   : > { %v7574_v28 = vadd.f32 %v7556_v9, %v7426_v31  ;;  %v7874_v9 = vld [vmem:[#allocation9 + $0x8] sm:$0xff] }
 0x9e3   : > { %v14016_v21 = vadd.f32 %v13857_v36, %v7574_v28  ;;  %v8137_v28 = vld [vmem:[#allocation9 + $0x20] sm:$0xff] }
 0x9e4   : > { %8202 = vmatpush.msra.mxu3 %v8137_v28 }
 0x9e5   : > { %v7625_v24 = vsel %vm523_vm3, %v14016_v21, 0.0  ;;  %v7660_v35 = vsel %vm523_vm3, %v14016_v21, -inf }
 0x9e6   : > { %v7626_v8 = vadd.f32 %v7625_v24, %v7624_v63  ;;  %v7661_v3 = vmax.f32 %v7653_v23, %v7660_v35 }
 0x9e8   : > { %v7627_v33 = vrot.slane %v7626_v8, 4  ;;  %v7663_v26 = vmax.f32 %v7659_v52, %v7661_v3 }
 0x9ea   : > { %v7628_v22 = vadd.f32 %v7627_v33, %v7626_v8  ;;  %v7664_v36 = vmax.f32 %v7662_v51, %v7663_v26 }
 0x9ec   : > { %v7629_v40 = vrot.slane %v7628_v22, 2  ;;  %v7665_v61 = vrot.slane %v7664_v36, 4 }
 0x9ee   : > { %v7630_v30 = vadd.f32 %v7629_v40, %v7628_v22  ;;  %v7666_v58 = vmax.f32 %v7664_v36, %v7665_v61 }
 0x9f0   : > { %v7631_v43 = vrot.slane %v7630_v30, 1  ;;  %v7667_v54 = vrot.slane %v7666_v58, 2 }
 0x9f2   : > { %v7632_v31 = vadd.f32 %v7631_v43, %v7630_v30  ;;  %v7668_v5 = vmax.f32 %v7666_v58, %v7667_v54  ;;  %v14762_v58 = vld [vmem:[#allocation21_spill] sm:$0xff] }
 0x9f3   : > { %v14763_v43 = vmax.f32 %v14762_v58, 0.0 }
 0x9f4   : > { %v7633_v19 = vmul.f32 %v7632_v31, %v14760_v16  ;;  %v7669_v45 = vrot.slane %v7668_v5, 1  ;;  %v14764_v31 = vld [vmem:[#allocation47_spill] sm:$0xff]  ;;  %v14766_v16 = vld [vmem:[#allocation50_spill] sm:$0xff] }
 0x9f6   : > { %9622 = vmatmul.msk.f32.vlgmr.msrb.gmra.mxu1 %vm523_vm3, %v7633_v19  ;;  %v7670_v39 = vmax.f32 %v7668_v5, %v7669_v45  ;;  %v14765_v5 = vmax.f32 %v14764_v31, 0.0 }
 0x9f7   : > { %7956 = vmatpush.msrb.mxu1 %v7893_v10 }
 0x9f8   : > { %9623 = vmatmul.msk.f32.vlgmr.msrb.gmra.mxu2 %vm523_vm3, %v7670_v39  ;;  %v14770_v39 = vld [vmem:[#allocation53_spill] sm:$0xff] }
 0x9f9   : > { %8069 = vmatpush.msrb.mxu2 %v7874_v9  ;;  %7957 = vmatpush.msrb.mxu1 %v7892_v47  ;;  %v14776_v9 = vld [vmem:[#allocation26_spill] sm:$0xff] }
 0x9fa   : > { %v14777_v1 = vmax.f32 %v14776_v9, 0.0 }
 0x9fb   : > { %8070 = vmatpush.msrb.mxu2 %v7873_v53 }
 0xa73   : > { %v7696_v14 = vpop.f32.mrf.mxu1 }
 0xa74   : > { %v7699_v29 = vmax.f32 %v7696_v14, 0.0 }
 0xa76   : > { %9627 = vmatmul.msk.f32.vlgmr.msra.gmra.mxu2 %vm491_vm0, %v7699_v29 }
 0xa7b   : > { %v7720_v55 = vpop.f32.mrf.mxu2 }
 0xa7c   : > { %v7723_v15 = vmax.f32 %v7720_v55, 0.0  ;;  %v14774_v55 = vld [vmem:[#allocation52_spill] sm:$0xff] }
 0xa7e   : > { %9625 = vmatmul.msk.f32.vlgmr.msra.gmra.mxu1 %vm491_vm0, %v7723_v15 }
 0xa7f   : > { %8497 = vmatpush.msra.mxu1 %v8434_v56 }
 0xaf9   : > { %v7770_v59 = vpop.f32.mrf.mxu2 }
 0xafb   : > { %v7747_v11 = vpop.f32.mrf.mxu1 }
 0xafc   : > { %v7771_v2 = vadd.f32 %v7770_v59, %v7747_v11 }
 0xafe   : > { %v9628_v4 = vmul.f32 -1.442695, %v7771_v2 }
 0xb00   : > { %9790 = vpow2.f32 %v9628_v4 }
 0xb06   : > { %v9791_v34 = vpop.eup %9790 }
 0xb07   : > { %v7776_v20 = vadd.f32 1.0, %v9791_v34 }
 0xb09   : > { %9792 = vrcp.f32 %v7776_v20  ;;  %v7788_v37 = vand.u32 2147483648, %v7776_v20  ;;  %v7786_v24 = vand.u32 2147483647, %v7776_v20  ;;  %vm7782_vm12 = vweird.f32 %v7776_v20 }
 0xb0b   : > { %v7789_v49 = vor.u32 1.1754944e-38, %v7788_v37  ;;  %vm7787_vm14 = vcmp.eq.f32.partialorder %v7786_v24, 8.507059e+37 }
 0xb0f   : > { %v9793_v25 = vpop.eup %9792 }
 0xb10   : > { %v7778_v7 = vmul.f32 %v9793_v25, %v7776_v20  ;;  %vm7783_vm11 = vweird.f32 %v9793_v25 }
 0xb11   : > { %vm7784_vm13 = vmor %vm7782_vm12, %vm7783_vm11 }
 0xb12   : > { %v7779_v23 = vsub.f32 1.0, %v7778_v7 }
 0xb14   : > { %v7780_v63 = vmul.f32 %v9793_v25, %v7779_v23 }
 0xb16   : > { %v7781_v35 = vadd.f32 %v9793_v25, %v7780_v63  ;;  %v14782_v63 = vld [vmem:[#allocation24_spill] sm:$0xff] }
 0xb18   : > { %v7785_v52 = vsel %vm7784_vm13, %v9793_v25, %v7781_v35  ;;  %v14778_v25 = vld [vmem:[#allocation46_spill] sm:$0xff] }
 0xb19   : > { %v7790_v8 = vsel %vm7787_vm14, %v7789_v49, %v7785_v52  ;;  %v14779_v7 = vmax.f32 %v14778_v25, 0.0  ;;  %v14784_v49 = vld [vmem:[#allocation23_spill] sm:$0xff] }
 0xb1a   : > { %v7792_v3 = vperm.slane %v7790_v8, 0 }
 0xb1c   : > { %v7793_v51 = vmul.f32 %v7792_v3, %v13877_v12  ;;  %v7794_v33 = vmul.f32 %v7792_v3, %v13868_v27  ;;  %v7795_v26 = vmul.f32 %v7792_v3, %v13880_v62  ;;  %v7796_v22 = vmul.f32 %v7792_v3, %v13891_v13  ;;  %v14768_v62 = vld [vmem:[#allocation25_spill] sm:$0xff] }
 0xb1d   : > { %v7797_v36 = vmul.f32 %v7792_v3, %v13903_v32  ;;  %v7798_v40 = vmul.f32 %v7792_v3, %v13913_v46  ;;  %v7799_v61 = vmul.f32 %v7792_v3, %v13923_v42  ;;  %v7800_v30 = vmul.f32 %v7792_v3, %v13933_v17  ;;  %v14772_v46 = vld [vmem:[#allocation43_spill] sm:$0xff] }
 0xb1e   : > { %v7809_v54 = vadd.f32 %v7793_v51, %v14763_v43  ;;  %v7810_v12 = vadd.f32 %v7794_v33, %v14765_v5  ;;  %v14767_v27 = vmax.f32 %v14766_v16, 0.0  ;;  %v14769_v45 = vmax.f32 %v14768_v62, 0.0  ;;  %v14786_v51 = vld [vmem:[#allocation44_spill] sm:$0xff] }
 0xb1f   : > { %v14771_v32 = vmax.f32 %v14770_v39, 0.0  ;;  %v14773_v29 = vmax.f32 %v14772_v46, 0.0  ;;  %v14775_v17 = vmax.f32 %v14774_v55, 0.0  ;;  %v7816_v53 = vadd.f32 %v7800_v30, %v14777_v1  ;;  %v14790_v30 = vld [vmem:[#allocation45_spill] sm:$0xff] }
 0xb20   : > { %v7811_v19 = vadd.f32 %v7795_v26, %v14767_v27  ;;  %v7812_v13 = vadd.f32 %v7796_v22, %v14769_v45  ;;  %v7825_v50 = vmax.f32 %v7809_v54, 0.0  ;;  %v7826_v10 = vmax.f32 %v7810_v12, 0.0 }
 0xb21   : > { %v7813_v14 = vadd.f32 %v7797_v36, %v14771_v32  ;;  %v7814_v42 = vadd.f32 %v7798_v40, %v14773_v29  ;;  %v7815_v15 = vadd.f32 %v7799_v61, %v14775_v17  ;;  %v7801_v2 = vmul.f32 %v7792_v3, %v13942_v44  ;;  %v14780_v44 = vld [vmem:[#allocation19_spill] sm:$0xff]  ;;  %v14788_v36 = vld [vmem:[#allocation56_spill] sm:$0xff] }
 0xb22   : > { %v7827_v47 = vmax.f32 %v7811_v19, 0.0  ;;  %v7828_v59 = vmax.f32 %v7812_v13, 0.0  ;;  %7841 = vst.msk [vmem:[#allocation4] sm:$0xff] %vm523_vm3, %v7825_v50  ;;  %v7802_v28 = vmul.f32 %v7792_v3, %v13950_v60  ;;  %v7803_v18 = vmul.f32 %v7792_v3, %v13957_v0 }
 0xb23   : > { %v7829_v11 = vmax.f32 %v7813_v14, 0.0  ;;  %v7804_v4 = vmul.f32 %v7792_v3, %v13962_v41  ;;  %7842 = vst.msk [vmem:[#allocation4 + $0x8] sm:$0xff] %vm523_vm3, %v7826_v10  ;;  %v7830_v34 = vmax.f32 %v7814_v42, 0.0  ;;  %v7831_v20 = vmax.f32 %v7815_v15, 0.0 }
 0xb24   : > { %v7805_v56 = vmul.f32 %v7792_v3, %v13967_v57  ;;  %v7806_v38 = vmul.f32 %v7792_v3, %v13976_v6  ;;  %7843 = vst.msk [vmem:[#allocation4 + $0x18] sm:$0xff] %vm523_vm3, %v7827_v47  ;;  %v7817_v23 = vadd.f32 %v7801_v2, %v14779_v7  ;;  %v14781_v37 = vmax.f32 %v14780_v44, 0.0 }
 0xb25   : > { %v14783_v0 = vmax.f32 %v14782_v63, 0.0  ;;  %v7807_v41 = vmul.f32 %v7792_v3, %v13987_v48  ;;  %7844 = vst.msk [vmem:[#allocation4 + $0x20] sm:$0xff] %vm523_vm3, %v7828_v59  ;;  %v7832_v35 = vmax.f32 %v7816_v53, 0.0  ;;  %v14785_v57 = vmax.f32 %v14784_v49, 0.0  ;;  %v8433_v53 = vld [vmem:[#allocation9 + $0x40] sm:$0xff] }
 0xb26   : > { %v7818_v60 = vadd.f32 %v7802_v28, %v14781_v37  ;;  %v7808_v6 = vmul.f32 %v7792_v3, %v14016_v21  ;;  %7845 = vst.msk [vmem:[#allocation4 + $0x30] sm:$0xff] %vm523_vm3, %v7829_v11  ;;  %v7833_v8 = vmax.f32 %v7817_v23, 0.0  ;;  %v14787_v33 = vmax.f32 %v14786_v51, 0.0  ;;  %v14792_v3 = vld [vmem:[#allocation37_spill] sm:$0xff]  ;;  %8498 = vmatpush.msra.mxu1 %v8433_v53 }
 0xb27   : > { %v7819_v24 = vadd.f32 %v7803_v18, %v14783_v0  ;;  %v7820_v52 = vadd.f32 %v7804_v4, %v14785_v57  ;;  %7846 = vst.msk [vmem:[#allocation4 + $0x38] sm:$0xff] %vm523_vm3, %v7830_v34  ;;  %v14789_v40 = vmax.f32 %v14788_v36, 0.0  ;;  %v14791_v58 = vmax.f32 %v14790_v30, 0.0  ;;  %v8603_v30 = vld [vmem:[%s14337_s11 + $0x18] sm:$0xff] }
 0xb28   : > { %v7821_v26 = vadd.f32 %v7805_v56, %v14787_v33  ;;  %v7834_v22 = vmax.f32 %v7818_v60, 0.0  ;;  %7847 = vst.msk [vmem:[#allocation4 + $0x48] sm:$0xff] %vm523_vm3, %v7831_v20  ;;  %v14793_v31 = vmax.f32 %v14792_v3, 0.0  ;;  %8669 = vmatpush.msra.mxu2 %v8603_v30 }
 0xb29   : > { %v7822_v48 = vadd.f32 %v7806_v38, %v14789_v40  ;;  %v7835_v61 = vmax.f32 %v7819_v24, 0.0  ;;  %v7823_v43 = vadd.f32 %v7807_v41, %v14791_v58  ;;  %v7857_v54 = vld [vmem:[#allocation4] sm:$0xff]  ;;  %7848 = vst.msk [vmem:[#allocation4 + $0x50] sm:$0xff] %vm523_vm3, %v7832_v35  ;;  %v7836_v21 = vmax.f32 %v7820_v52, 0.0 }
 0xb2a   : > { %v7824_v5 = vadd.f32 %v7808_v6, %v14793_v31  ;;  %v7875_v12 = vld [vmem:[#allocation4 + $0x1] sm:$0xff]  ;;  %9645 = vmatmul.msk.f32.vlgmr.msrb.gmra.mxu2 %vm523_vm3, %v7857_v54  ;;  %7849 = vst.msk [vmem:[#allocation4 + $0x60] sm:$0xff] %vm523_vm3, %v7833_v8  ;;  %v7837_v19 = vmax.f32 %v7821_v26, 0.0  ;;  %v7876_v32 = vld [vmem:[#allocation4 + $0x9] sm:$0xff] }
 0xb2b   : > { %v8120_v16 = vld [vmem:[#allocation4 + $0x2] sm:$0xff]  ;;  %9629 = vmatmul.msk.f32.vlgmr.msrb.gmra.mxu1 %vm523_vm3, %v7875_v12  ;;  %7850 = vst.msk [vmem:[#allocation4 + $0x68] sm:$0xff] %vm523_vm3, %v7834_v22  ;;  %v7838_v62 = vmax.f32 %v7822_v48, 0.0  ;;  %v7839_v45 = vmax.f32 %v7823_v43, 0.0  ;;  %v8121_v14 = vld [vmem:[#allocation4 + $0xa] sm:$0xff]  ;;  %v7859_v29 = vld [vmem:[#allocation4 + $0x18] sm:$0xff] }
 0xb2c   : > { %v8268_v27 = vld [vmem:[#allocation4 + $0x3] sm:$0xff]  ;;  %9661 = vmatmul.msk.f32.vlgmr.msra.gmra.mxu3 %vm523_vm3, %v8120_v16  ;;  %7851 = vst.msk [vmem:[#allocation4 + $0x78] sm:$0xff] %vm523_vm3, %v7835_v61  ;;  %v7840_v13 = vmax.f32 %v7824_v5, 0.0  ;;  %v8269_v46 = vld [vmem:[#allocation4 + $0xb] sm:$0xff]  ;;  %v7877_v42 = vld [vmem:[#allocation4 + $0x19] sm:$0xff] }
 0xb2d   : > { %9677 = vmatmul.msk.f32.vlgmr.msra.gmra.mxu0 %vm523_vm3, %v8268_v27  ;;  %7852 = vst.msk [vmem:[#allocation4 + $0x80] sm:$0xff] %vm523_vm3, %v7836_v21  ;;  %v7858_v39 = vld [vmem:[#allocation4 + $0x8] sm:$0xff]  ;;  %v8122_v55 = vld [vmem:[#allocation4 + $0x1a] sm:$0xff]  ;;  %v7861_v59 = vld [vmem:[#allocation4 + $0x30] sm:$0xff] }
 0xb2e   : > { %7853 = vst.msk [vmem:[#allocation4 + $0x90] sm:$0xff] %vm523_vm3, %v7837_v19  ;;  %v8270_v17 = vld [vmem:[#allocation4 + $0x1b] sm:$0xff]  ;;  %v8271_v47 = vld [vmem:[#allocation4 + $0x23] sm:$0xff]  ;;  %v7879_v11 = vld [vmem:[#allocation4 + $0x31] sm:$0xff] }
 0xb2f   : > { %7854 = vst.msk [vmem:[#allocation4 + $0x98] sm:$0xff] %vm523_vm3, %v7838_v62  ;;  %v7860_v15 = vld [vmem:[#allocation4 + $0x20] sm:$0xff]  ;;  %v8124_v9 = vld [vmem:[#allocation4 + $0x32] sm:$0xff]  ;;  %v7863_v34 = vld [vmem:[#allocation4 + $0x48] sm:$0xff] }
 0xb30   : > { %7855 = vst.msk [vmem:[#allocation4 + $0xa8] sm:$0xff] %vm523_vm3, %v7839_v45  ;;  %v7878_v50 = vld [vmem:[#allocation4 + $0x21] sm:$0xff]  ;;  %v8272_v1 = vld [vmem:[#allocation4 + $0x33] sm:$0xff]  ;;  %v7881_v20 = vld [vmem:[#allocation4 + $0x49] sm:$0xff] }
 0xb31   : > { %7856 = vst.msk [vmem:[#allocation4 + $0xb0] sm:$0xff] %vm523_vm3, %v7840_v13  ;;  %v8123_v10 = vld [vmem:[#allocation4 + $0x22] sm:$0xff]  ;;  %v7862_v2 = vld [vmem:[#allocation4 + $0x38] sm:$0xff]  ;;  %v8126_v56 = vld [vmem:[#allocation4 + $0x4a] sm:$0xff] }
 0xb32   : > { %9646 = vmatmul.msk.f32.gmra.mxu2 %vm523_vm3, %v7858_v39  ;;  %v7880_v28 = vld [vmem:[#allocation4 + $0x39] sm:$0xff]  ;;  %v8274_v38 = vld [vmem:[#allocation4 + $0x4b] sm:$0xff]  ;;  %v7883_v60 = vld [vmem:[#allocation4 + $0x61] sm:$0xff] }
 0xb33   : > { %9630 = vmatmul.msk.f32.gmra.mxu1 %vm523_vm3, %v7876_v32  ;;  %v8125_v18 = vld [vmem:[#allocation4 + $0x3a] sm:$0xff]  ;;  %v7864_v25 = vld [vmem:[#allocation4 + $0x50] sm:$0xff]  ;;  %v8128_v63 = vld [vmem:[#allocation4 + $0x62] sm:$0xff] }
 0xb34   : > { %9662 = vmatmul.msk.f32.gmra.mxu3 %vm523_vm3, %v8121_v14  ;;  %v8273_v4 = vld [vmem:[#allocation4 + $0x3b] sm:$0xff]  ;;  %v7882_v7 = vld [vmem:[#allocation4 + $0x51] sm:$0xff]  ;;  %v8276_v0 = vld [vmem:[#allocation4 + $0x63] sm:$0xff] }
 0xb35   : > { %9678 = vmatmul.msk.f32.gmra.mxu0 %vm523_vm3, %v8269_v46  ;;  %v8127_v23 = vld [vmem:[#allocation4 + $0x52] sm:$0xff]  ;;  %v7865_v37 = vld [vmem:[#allocation4 + $0x60] sm:$0xff]  ;;  %v7866_v24 = vld [vmem:[#allocation4 + $0x68] sm:$0xff] }
 0xb36   : > { %v8275_v44 = vld [vmem:[#allocation4 + $0x53] sm:$0xff]  ;;  %v7884_v41 = vld [vmem:[#allocation4 + $0x69] sm:$0xff]  ;;  %v8278_v8 = vld [vmem:[#allocation4 + $0x7b] sm:$0xff] }
 0xb37   : > { %v8129_v35 = vld [vmem:[#allocation4 + $0x6a] sm:$0xff]  ;;  %v7867_v57 = vld [vmem:[#allocation4 + $0x78] sm:$0xff]  ;;  %v7868_v51 = vld [vmem:[#allocation4 + $0x80] sm:$0xff] }
 0xb38   : > { %v8277_v49 = vld [vmem:[#allocation4 + $0x6b] sm:$0xff]  ;;  %v7885_v52 = vld [vmem:[#allocation4 + $0x79] sm:$0xff]  ;;  %v7886_v33 = vld [vmem:[#allocation4 + $0x81] sm:$0xff] }
 0xb39   : > { %v8130_v6 = vld [vmem:[#allocation4 + $0x7a] sm:$0xff]  ;;  %v8131_v26 = vld [vmem:[#allocation4 + $0x82] sm:$0xff]  ;;  %v7869_v36 = vld [vmem:[#allocation4 + $0x90] sm:$0xff] }
 0xb3a   : > { %9647 = vmatmul.msk.f32.gmra.mxu2 %vm523_vm3, %v7859_v29  ;;  %v8279_v22 = vld [vmem:[#allocation4 + $0x83] sm:$0xff]  ;;  %v7887_v40 = vld [vmem:[#allocation4 + $0x91] sm:$0xff]  ;;  %v7888_v43 = vld [vmem:[#allocation4 + $0x99] sm:$0xff] }
 0xb3b   : > { %9631 = vmatmul.msk.f32.gmra.mxu1 %vm523_vm3, %v7877_v42  ;;  %v8132_v48 = vld [vmem:[#allocation4 + $0x92] sm:$0xff]  ;;  %v8133_v54 = vld [vmem:[#allocation4 + $0x9a] sm:$0xff]  ;;  %v7871_v3 = vld [vmem:[#allocation4 + $0xa8] sm:$0xff] }
 0xb3c   : > { %9663 = vmatmul.msk.f32.gmra.mxu3 %vm523_vm3, %v8122_v55  ;;  %v8280_v61 = vld [vmem:[#allocation4 + $0x93] sm:$0xff]  ;;  %v8281_v21 = vld [vmem:[#allocation4 + $0x9b] sm:$0xff]  ;;  %v7889_v31 = vld [vmem:[#allocation4 + $0xa9] sm:$0xff] }
 0xb3d   : > { %9679 = vmatmul.msk.f32.gmra.mxu0 %vm523_vm3, %v8270_v17  ;;  %v7870_v58 = vld [vmem:[#allocation4 + $0x98] sm:$0xff]  ;;  %v8134_v5 = vld [vmem:[#allocation4 + $0xaa] sm:$0xff] }
 0xb3e   : > { %v8282_v12 = vld [vmem:[#allocation4 + $0xab] sm:$0xff]  ;;  %v8283_v62 = vld [vmem:[#allocation4 + $0xb3] sm:$0xff]  ;;  %v8418_v29 = vld [vmem:[#allocation4 + $0x1c] sm:$0xff] }
 0xb3f   : > { %v7872_v16 = vld [vmem:[#allocation4 + $0xb0] sm:$0xff]  ;;  %v8416_v13 = vld [vmem:[#allocation4 + $0x4] sm:$0xff] }
 0xb40   : > { %v7890_v27 = vld [vmem:[#allocation4 + $0xb1] sm:$0xff]  ;;  %v8419_v55 = vld [vmem:[#allocation4 + $0x24] sm:$0xff] }
 0xb41   : > { %v8135_v19 = vld [vmem:[#allocation4 + $0xb2] sm:$0xff] }
 0xb42   : > { %9648 = vmatmul.msk.f32.gmra.mxu2 %vm523_vm3, %v7860_v15  ;;  %v8602_v32 = vld [vmem:[%s14337_s11 + $0x10] sm:$0xff] }
 0xb43   : > { %9632 = vmatmul.msk.f32.gmra.mxu1 %vm523_vm3, %v7878_v50  ;;  %8670 = vmatpush.msra.mxu2 %v8602_v32  ;;  %v8417_v14 = vld [vmem:[#allocation4 + $0xc] sm:$0xff]  ;;  %v8420_v15 = vld [vmem:[#allocation4 + $0x34] sm:$0xff] }
 0xb44   : > { %9664 = vmatmul.msk.f32.gmra.mxu3 %vm523_vm3, %v8123_v10  ;;  %v8601_v10 = vld [vmem:[%s14337_s11 + $0x8] sm:$0xff] }
 0xb45   : > { %9680 = vmatmul.msk.f32.gmra.mxu0 %vm523_vm3, %v8271_v47  ;;  %8671 = vmatpush.msra.mxu2 %v8601_v10  ;;  %v8421_v47 = vld [vmem:[#allocation4 + $0x3c] sm:$0xff] }
 0xb4a   : > { %9649 = vmatmul.msk.f32.gmra.mxu2 %vm523_vm3, %v7861_v59 }
 0xb4b   : > { %9633 = vmatmul.msk.f32.gmra.mxu1 %vm523_vm3, %v7879_v11  ;;  %v8422_v11 = vld [vmem:[#allocation4 + $0x4c] sm:$0xff] }
 0xb4c   : > { %9665 = vmatmul.msk.f32.gmra.mxu3 %vm523_vm3, %v8124_v9 }
 0xb4d   : > { %9681 = vmatmul.msk.f32.gmra.mxu0 %vm523_vm3, %v8272_v1  ;;  %v8423_v1 = vld [vmem:[#allocation4 + $0x54] sm:$0xff] }
 0xb52   : > { %9650 = vmatmul.msk.f32.gmra.mxu2 %vm523_vm3, %v7862_v2  ;;  %v8424_v2 = vld [vmem:[#allocation4 + $0x64] sm:$0xff] }
 0xb53   : > { %9634 = vmatmul.msk.f32.gmra.mxu1 %vm523_vm3, %v7880_v28 }
 0xb54   : > { %9666 = vmatmul.msk.f32.gmra.mxu3 %vm523_vm3, %v8125_v18  ;;  %v8600_v18 = vld [vmem:[%s14337_s11] sm:$0xff] }
 0xb55   : > { %9682 = vmatmul.msk.f32.gmra.mxu0 %vm523_vm3, %v8273_v4  ;;  %8672 = vmatpush.msra.mxu2 %v8600_v18  ;;  %v8425_v4 = vld [vmem:[#allocation4 + $0x6c] sm:$0xff] }
 0xb5a   : > { %9651 = vmatmul.msk.f32.gmra.mxu2 %vm523_vm3, %v7863_v34 }
 0xb5b   : > { %9635 = vmatmul.msk.f32.gmra.mxu1 %vm523_vm3, %v7881_v20  ;;  %v8426_v20 = vld [vmem:[#allocation4 + $0x7c] sm:$0xff] }
 0xb5c   : > { %9667 = vmatmul.msk.f32.gmra.mxu3 %vm523_vm3, %v8126_v56 }
 0xb5d   : > { %9683 = vmatmul.msk.f32.gmra.mxu0 %vm523_vm3, %v8274_v38 }
 0xb62   : > { %9652 = vmatmul.msk.f32.gmra.mxu2 %vm523_vm3, %v7864_v25  ;;  %v8427_v25 = vld [vmem:[#allocation4 + $0x84] sm:$0xff] }
 0xb63   : > { %9636 = vmatmul.msk.f32.gmra.mxu1 %vm523_vm3, %v7882_v7 }
 0xb64   : > { %9668 = vmatmul.msk.f32.gmra.mxu3 %vm523_vm3, %v8127_v23 }
 0xb65   : > { %9684 = vmatmul.msk.f32.gmra.mxu0 %vm523_vm3, %v8275_v44 }
 0xb6a   : > { %9653 = vmatmul.msk.f32.gmra.mxu2 %vm523_vm3, %v7865_v37 }
 0xb6b   : > { %9637 = vmatmul.msk.f32.gmra.mxu1 %vm523_vm3, %v7883_v60  ;;  %v8428_v60 = vld [vmem:[#allocation4 + $0x94] sm:$0xff] }
 0xb6c   : > { %9669 = vmatmul.msk.f32.gmra.mxu3 %vm523_vm3, %v8128_v63 }
 0xb6d   : > { %9685 = vmatmul.msk.f32.gmra.mxu0 %vm523_vm3, %v8276_v0 }
 0xb72   : > { %9654 = vmatmul.msk.f32.gmra.mxu2 %vm523_vm3, %v7866_v24 }
 0xb73   : > { %9638 = vmatmul.msk.f32.gmra.mxu1 %vm523_vm3, %v7884_v41 }
 0xb74   : > { %9670 = vmatmul.msk.f32.gmra.mxu3 %vm523_vm3, %v8129_v35  ;;  %v8429_v35 = vld [vmem:[#allocation4 + $0x9c] sm:$0xff] }
 0xb75   : > { %9686 = vmatmul.msk.f32.gmra.mxu0 %vm523_vm3, %v8277_v49 }
 0xb7a   : > { %9655 = vmatmul.msk.f32.gmra.mxu2 %vm523_vm3, %v7867_v57 }
 0xb7b   : > { %9639 = vmatmul.msk.f32.gmra.mxu1 %vm523_vm3, %v7885_v52  ;;  %v8430_v52 = vld [vmem:[#allocation4 + $0xac] sm:$0xff] }
 0xb7c   : > { %9671 = vmatmul.msk.f32.gmra.mxu3 %vm523_vm3, %v8130_v6 }
 0xb7d   : > { %9687 = vmatmul.msk.f32.gmra.mxu0 %vm523_vm3, %v8278_v8 }
 0xb82   : > { %9656 = vmatmul.msk.f32.gmra.mxu2 %vm523_vm3, %v7868_v51 }
 0xb83   : > { %9640 = vmatmul.msk.f32.gmra.mxu1 %vm523_vm3, %v7886_v33 }
 0xb84   : > { %9672 = vmatmul.msk.f32.gmra.mxu3 %vm523_vm3, %v8131_v26 }
 0xb85   : > { %9688 = vmatmul.msk.f32.gmra.mxu0 %vm523_vm3, %v8279_v22  ;;  %v8431_v22 = vld [vmem:[#allocation4 + $0xb4] sm:$0xff] }
 0xb8a   : > { %9657 = vmatmul.msk.f32.gmra.mxu2 %vm523_vm3, %v7869_v36 }
 0xb8b   : > { %9641 = vmatmul.msk.f32.gmra.mxu1 %vm523_vm3, %v7887_v40 }
 0xb8c   : > { %9673 = vmatmul.msk.f32.gmra.mxu3 %vm523_vm3, %v8132_v48 }
 0xb8d   : > { %9689 = vmatmul.msk.f32.gmra.mxu0 %vm523_vm3, %v8280_v61 }
 0xb92   : > { %9658 = vmatmul.msk.f32.gmra.mxu2 %vm523_vm3, %v7870_v58  ;;  %v14233_v58 = vld [vmem:[%s14336_s10] ss:$0 sm:$0xff] }
 0xb93   : > { %9642 = vmatmul.msk.f32.gmra.mxu1 %vm523_vm3, %v7888_v43 }
 0xb94   : > { %9674 = vmatmul.msk.f32.gmra.mxu3 %vm523_vm3, %v8133_v54 }
 0xb95   : > { %9690 = vmatmul.msk.f32.gmra.mxu0 %vm523_vm3, %v8281_v21 }
 0xb9a   : > { %9659 = vmatmul.msk.f32.gmra.mxu2 %vm523_vm3, %v7871_v3 }
 0xb9b   : > { %9643 = vmatmul.msk.f32.gmra.mxu1 %vm523_vm3, %v7889_v31 }
 0xb9c   : > { %9675 = vmatmul.msk.f32.gmra.mxu3 %vm523_vm3, %v8134_v5 }
 0xb9d   : > { %9691 = vmatmul.msk.f32.gmra.mxu0 %vm523_vm3, %v8282_v12 }
 0xba2   : > { %9660 = vmatmul.msk.f32.gmra.mxu2 %vm523_vm3, %v7872_v16 }
 0xba3   : > { %9644 = vmatmul.msk.f32.gmra.mxu1 %vm523_vm3, %v7890_v27 }
 0xba4   : > { %9676 = vmatmul.msk.f32.gmra.mxu3 %vm523_vm3, %v8135_v19 }
 0xba5   : > { %9692 = vmatmul.msk.f32.gmra.mxu0 %vm523_vm3, %v8283_v62 }
 0xba8   : > { %v7959_v45 = vpop.f32.mrf.mxu1 }
 0xbaa   : > { %v8352_v23 = vpop.f32.mrf.mxu0 }
 0xbab   : > { %9693 = vmatmul.msk.f32.vlgmr.msra.gmra.mxu1 %vm523_vm3, %v8416_v13 }
 0xbad   : > { %v8072_v56 = vpop.f32.mrf.mxu2 }
 0xbae   : > { %v8073_v51 = vadd.f32 %v8072_v56, %v7959_v45 }
 0xbaf   : > { %v8204_v7 = vpop.f32.mrf.mxu3 }
 0xbb0   : > { %v14175_v39 = vpop.f32.mrf.mxu1  ;;  %v8252_v36 = vadd.f32 %v8204_v7, %v8073_v51 }
 0xbb2   : > { %v8355_v24 = vpop.f32.mrf.mxu0  ;;  %v8400_v30 = vadd.f32 %v8352_v23, %v8252_v36 }
 0xbb3   : > { %9694 = vmatmul.msk.f32.gmra.mxu1 %vm523_vm3, %v8417_v14 }
 0xbb5   : > { %v8075_v44 = vpop.f32.mrf.mxu2 }
 0xbb6   : > { %v8076_v61 = vadd.f32 %v8075_v44, %v14175_v39 }
 0xbb7   : > { %v8207_v63 = vpop.f32.mrf.mxu3 }
 0xbb8   : > { %v14181_v46 = vpop.f32.mrf.mxu1  ;;  %v8253_v21 = vadd.f32 %v8207_v63, %v8076_v61 }
 0xbba   : > { %v8358_v6 = vpop.f32.mrf.mxu0  ;;  %v8401_v27 = vadd.f32 %v8355_v24, %v8253_v21 }
 0xbbb   : > { %9695 = vmatmul.msk.f32.gmra.mxu1 %vm523_vm3, %v8418_v29 }
 0xbbd   : > { %v8078_v41 = vpop.f32.mrf.mxu2 }
 0xbbe   : > { %v8079_v12 = vadd.f32 %v8078_v41, %v14181_v46 }
 0xbbf   : > { %v8210_v49 = vpop.f32.mrf.mxu3 }
 0xbc0   : > { %v14184_v42 = vpop.f32.mrf.mxu1  ;;  %v8254_v13 = vadd.f32 %v8210_v49, %v8079_v12 }
 0xbc2   : > { %v8361_v40 = vpop.f32.mrf.mxu0 }
 0xbc3   : > { %9696 = vmatmul.msk.f32.gmra.mxu1 %vm523_vm3, %v8419_v55  ;;  %v8402_v55 = vadd.f32 %v8358_v6, %v8254_v13 }
 0xbc5   : > { %v8081_v8 = vpop.f32.mrf.mxu2 }
 0xbc6   : > { %v8082_v29 = vadd.f32 %v8081_v8, %v14184_v42 }
 0xbc7   : > { %v8213_v26 = vpop.f32.mrf.mxu3 }
 0xbc8   : > { %v14187_v17 = vpop.f32.mrf.mxu1 }
 0xbca   : > { %v8364_v16 = vpop.f32.mrf.mxu0 }
 0xbcb   : > { %9697 = vmatmul.msk.f32.gmra.mxu1 %vm523_vm3, %v8420_v15 }
 0xbcd   : > { %v8084_v48 = vpop.f32.mrf.mxu2 }
 0xbce   : > { %v8085_v18 = vadd.f32 %v8084_v48, %v14187_v17 }
 0xbcf   : > { %v8216_v31 = vpop.f32.mrf.mxu3 }
 0xbd0   : > { %v14190_v50 = vpop.f32.mrf.mxu1  ;;  %v8256_v42 = vadd.f32 %v8216_v31, %v8085_v18 }
 0xbd2   : > { %v8367_v10 = vpop.f32.mrf.mxu0  ;;  %v8404_v24 = vadd.f32 %v8364_v16, %v8256_v42 }
 0xbd3   : > { %9698 = vmatmul.msk.f32.gmra.mxu1 %vm523_vm3, %v8421_v47 }
 0xbd5   : > { %v8087_v19 = vpop.f32.mrf.mxu2 }
 0xbd6   : > { %v8088_v63 = vadd.f32 %v8087_v19, %v14190_v50 }
 0xbd7   : > { %v8219_v14 = vpop.f32.mrf.mxu3 }
 0xbd8   : > { %v14196_v59 = vpop.f32.mrf.mxu1  ;;  %v8257_v49 = vadd.f32 %v8219_v14, %v8088_v63 }
 0xbda   : > { %v8370_v7 = vpop.f32.mrf.mxu0 }
 0xbdb   : > { %9699 = vmatmul.msk.f32.gmra.mxu1 %vm523_vm3, %v8422_v11  ;;  %v8255_v11 = vadd.f32 %v8213_v26, %v8082_v29 }
 0xbdd   : > { %v8090_v47 = vpop.f32.mrf.mxu2 }
 0xbde   : > { %v8091_v26 = vadd.f32 %v8090_v47, %v14196_v59 }
 0xbe0   : > { %v14199_v9 = vpop.f32.mrf.mxu1 }
 0xbe2   : > { %v8373_v6 = vpop.f32.mrf.mxu0 }
 0xbe3   : > { %9700 = vmatmul.msk.f32.gmra.mxu1 %vm523_vm3, %v8423_v1 }
 0xbe5   : > { %v8093_v44 = vpop.f32.mrf.mxu2 }
 0xbe8   : > { %v14202_v53 = vpop.f32.mrf.mxu1 }
 0xbeb   : > { %9701 = vmatmul.msk.f32.gmra.mxu1 %vm523_vm3, %v8424_v2 }
 0xbed   : > { %v8096_v51 = vpop.f32.mrf.mxu2 }
 0xbee   : > { %v8097_v19 = vadd.f32 %v8096_v51, %v14202_v53 }
 0xbf0   : > { %v14205_v28 = vpop.f32.mrf.mxu1 }
 0xbf3   : > { %9702 = vmatmul.msk.f32.gmra.mxu1 %vm523_vm3, %v8425_v4  ;;  %v8403_v4 = vadd.f32 %v8361_v40, %v8255_v11 }
 0xbf8   : > { %v14211_v34 = vpop.f32.mrf.mxu1 }
 0xbfb   : > { %9703 = vmatmul.msk.f32.gmra.mxu1 %vm523_vm3, %v8426_v20  ;;  %v8222_v20 = vpop.f32.mrf.mxu3 }
 0xbfc   : > { %v8258_v50 = vadd.f32 %v8222_v20, %v8091_v26 }
 0xbfe   : > { %v8406_v21 = vadd.f32 %v8370_v7, %v8258_v50 }
 0xc00   : > { %v14214_v38 = vpop.f32.mrf.mxu1 }
 0xc03   : > { %9704 = vmatmul.msk.f32.gmra.mxu1 %vm523_vm3, %v8427_v25  ;;  %v8225_v17 = vpop.f32.mrf.mxu3 }
 0xc08   : > { %v14217_v37 = vpop.f32.mrf.mxu1 }
 0xc0b   : > { %9705 = vmatmul.msk.f32.gmra.mxu1 %vm523_vm3, %v8428_v60  ;;  %v8228_v61 = vpop.f32.mrf.mxu3 }
 0xc10   : > { %v14220_v0 = vpop.f32.mrf.mxu1 }
 0xc13   : > { %9706 = vmatmul.msk.f32.gmra.mxu1 %vm523_vm3, %v8429_v35 }
 0xc18   : > { %v14223_v57 = vpop.f32.mrf.mxu1 }
 0xc1b   : > { %9707 = vmatmul.msk.f32.gmra.mxu1 %vm523_vm3, %v8430_v52 }
 0xc20   : > { %v14226_v33 = vpop.f32.mrf.mxu1 }
 0xc23   : > { %9708 = vmatmul.msk.f32.gmra.mxu1 %vm523_vm3, %v8431_v22  ;;  %v8405_v22 = vadd.f32 %v8367_v10, %v8257_v49 }
 0xc28   : > { %v8500_v43 = vpop.f32.mrf.mxu1 }
 0xc29   : > { %v8548_v54 = vadd.f32 %v8500_v43, %v8400_v30  ;;  %v8094_v43 = vadd.f32 %v8093_v44, %v14199_v9 }
 0xc2b   : > { %v8568_v3 = vadd.f32 %v14233_v58, %v8548_v54  ;;  %v8376_v54 = vpop.f32.mrf.mxu0  ;;  %v8259_v59 = vadd.f32 %v8225_v17, %v8094_v43 }
 0xc2d   : > { %v8584_v5 = vmax.f32 %v8568_v3, 0.0  ;;  %v8099_v3 = vpop.f32.mrf.mxu2 }
 0xc2f   : > { %9709 = vmatmul.msk.f32.vlgmr.msra.gmra.mxu2 %vm8608_vm15, %v8584_v5 }
 0xc30   : > { %v8503_v62 = vpop.f32.mrf.mxu1 }
 0xc31   : > { %v8549_v45 = vadd.f32 %v8503_v62, %v8401_v27  ;;  %v8231_v27 = vpop.f32.mrf.mxu3  ;;  %v8407_v62 = vadd.f32 %v8373_v6, %v8259_v59 }
 0xc33   : > { %v8569_v39 = vadd.f32 %v14233_v58, %v8549_v45  ;;  %v8379_v13 = vpop.f32.mrf.mxu0 }
 0xc35   : > { %v8585_v32 = vmax.f32 %v8569_v39, 0.0  ;;  %v8102_v39 = vpop.f32.mrf.mxu2 }
 0xc37   : > { %9710 = vmatmul.msk.f32.gmra.mxu2 %vm8608_vm15, %v8585_v32  ;;  %v8260_v32 = vadd.f32 %v8228_v61, %v8097_v19 }
 0xc38   : > { %v8506_v15 = vpop.f32.mrf.mxu1 }
 0xc39   : > { %v8550_v46 = vadd.f32 %v8506_v15, %v8402_v55  ;;  %v8100_v55 = vadd.f32 %v8099_v3, %v14205_v28  ;;  %v8408_v15 = vadd.f32 %v8376_v54, %v8260_v32  ;;  %v8234_v10 = vpop.f32.mrf.mxu3 }
 0xc3b   : > { %v8570_v1 = vadd.f32 %v14233_v58, %v8550_v46  ;;  %v8261_v53 = vadd.f32 %v8231_v27, %v8100_v55  ;;  %v8382_v11 = vpop.f32.mrf.mxu0 }
 0xc3d   : > { %v8586_v2 = vmax.f32 %v8570_v1, 0.0  ;;  %v8409_v20 = vadd.f32 %v8379_v13, %v8261_v53 }
 0xc3f   : > { %9711 = vmatmul.msk.f32.gmra.mxu2 %vm8608_vm15, %v8586_v2  ;;  %v8105_v2 = vpop.f32.mrf.mxu2 }
 0xc40   : > { %v8509_v56 = vpop.f32.mrf.mxu1  ;;  %v8106_v63 = vadd.f32 %v8105_v2, %v14214_v38  ;;  %v9783_v2 = vld [vmem:[%s14338_s12] ss:$0 sm:$0xff] }
 0xc41   : > { %v8551_v25 = vadd.f32 %v8509_v56, %v8403_v4  ;;  %v8103_v4 = vadd.f32 %v8102_v39, %v14211_v34  ;;  %v8237_v28 = vpop.f32.mrf.mxu3 }
 0xc42   : > { %v8263_v34 = vadd.f32 %v8237_v28, %v8106_v63 }
 0xc43   : > { %v8571_v23 = vadd.f32 %v14233_v58, %v8551_v25  ;;  %v8262_v42 = vadd.f32 %v8234_v10, %v8103_v4 }
 0xc45   : > { %v8587_v60 = vmax.f32 %v8571_v23, 0.0  ;;  %v8385_v23 = vpop.f32.mrf.mxu0 }
 0xc46   : > { %v8411_v51 = vadd.f32 %v8385_v23, %v8263_v34 }
 0xc47   : > { %9712 = vmatmul.msk.f32.gmra.mxu2 %vm8608_vm15, %v8587_v60  ;;  %v8108_v60 = vpop.f32.mrf.mxu2 }
 0xc48   : > { %v8512_v41 = vpop.f32.mrf.mxu1 }
 0xc49   : > { %v8552_v35 = vadd.f32 %v8512_v41, %v8404_v24  ;;  %v8410_v24 = vadd.f32 %v8382_v11, %v8262_v42  ;;  %v8240_v49 = vpop.f32.mrf.mxu3 }
 0xc4b   : > { %v8572_v52 = vadd.f32 %v14233_v58, %v8552_v35 }
 0xc4d   : > { %v8588_v8 = vmax.f32 %v8572_v52, 0.0  ;;  %v8388_v6 = vpop.f32.mrf.mxu0 }
 0xc4f   : > { %9713 = vmatmul.msk.f32.gmra.mxu2 %vm8608_vm15, %v8588_v8  ;;  %v8109_v8 = vadd.f32 %v8108_v60, %v14217_v37  ;;  %v8111_v26 = vpop.f32.mrf.mxu2 }
 0xc50   : > { %v8515_v36 = vpop.f32.mrf.mxu1  ;;  %v8112_v61 = vadd.f32 %v8111_v26, %v14220_v0 }
 0xc51   : > { %v8553_v40 = vadd.f32 %v8515_v36, %v8405_v22  ;;  %v8264_v38 = vadd.f32 %v8240_v49, %v8109_v8 }
 0xc53   : > { %v8573_v48 = vadd.f32 %v14233_v58, %v8553_v40 }
 0xc55   : > { %v8589_v30 = vmax.f32 %v8573_v48, 0.0  ;;  %v8243_v48 = vpop.f32.mrf.mxu3 }
 0xc56   : > { %v8265_v3 = vadd.f32 %v8243_v48, %v8112_v61 }
 0xc57   : > { %9714 = vmatmul.msk.f32.gmra.mxu2 %vm8608_vm15, %v8589_v30  ;;  %v8412_v30 = vadd.f32 %v8388_v6, %v8264_v38  ;;  %v8114_v37 = vpop.f32.mrf.mxu2 }
 0xc58   : > { %v8518_v31 = vpop.f32.mrf.mxu1  ;;  %v8115_v59 = vadd.f32 %v8114_v37, %v14223_v57 }
 0xc59   : > { %v8554_v5 = vadd.f32 %v8518_v31, %v8406_v21  ;;  %v8391_v21 = vpop.f32.mrf.mxu0 }
 0xc5b   : > { %v8574_v12 = vadd.f32 %v14233_v58, %v8554_v5 }
 0xc5d   : > { %v8590_v16 = vmax.f32 %v8574_v12, 0.0  ;;  %v8413_v12 = vadd.f32 %v8391_v21, %v8265_v3 }
 0xc5f   : > { %9715 = vmatmul.msk.f32.gmra.mxu2 %vm8608_vm15, %v8590_v16  ;;  %v8246_v16 = vpop.f32.mrf.mxu3  ;;  %v8117_v13 = vpop.f32.mrf.mxu2 }
 0xc60   : > { %v8521_v45 = vpop.f32.mrf.mxu1  ;;  %v8266_v0 = vadd.f32 %v8246_v16, %v8115_v59  ;;  %v8118_v39 = vadd.f32 %v8117_v13, %v14226_v33 }
 0xc61   : > { %v8555_v9 = vadd.f32 %v8521_v45, %v8407_v62  ;;  %v8394_v45 = vpop.f32.mrf.mxu0 }
 0xc62   : > { %v8414_v32 = vadd.f32 %v8394_v45, %v8266_v0 }
 0xc63   : > { %v8575_v14 = vadd.f32 %v14233_v58, %v8555_v9 }
 0xc65   : > { %v8591_v29 = vmax.f32 %v8575_v14, 0.0 }
 0xc67   : > { %9716 = vmatmul.msk.f32.gmra.mxu2 %vm8608_vm15, %v8591_v29  ;;  %v8249_v29 = vpop.f32.mrf.mxu3 }
 0xc68   : > { %v8524_v46 = vpop.f32.mrf.mxu1  ;;  %v8267_v55 = vadd.f32 %v8249_v29, %v8118_v39 }
 0xc69   : > { %v8556_v47 = vadd.f32 %v8524_v46, %v8408_v15  ;;  %v8397_v46 = vpop.f32.mrf.mxu0 }
 0xc6b   : > { %v8576_v1 = vadd.f32 %v14233_v58, %v8556_v47  ;;  %v8415_v47 = vadd.f32 %v8397_v46, %v8267_v55 }
 0xc6d   : > { %v8592_v18 = vmax.f32 %v8576_v1, 0.0 }
 0xc6f   : > { %9717 = vmatmul.msk.f32.gmra.mxu2 %vm8608_vm15, %v8592_v18 }
 0xc70   : > { %v8527_v56 = vpop.f32.mrf.mxu1 }
 0xc71   : > { %v8557_v25 = vadd.f32 %v8527_v56, %v8409_v20 }
 0xc73   : > { %v8577_v7 = vadd.f32 %v14233_v58, %v8557_v25 }
 0xc75   : > { %v8593_v44 = vmax.f32 %v8577_v7, 0.0 }
 0xc77   : > { %9718 = vmatmul.msk.f32.gmra.mxu2 %vm8608_vm15, %v8593_v44 }
 0xc78   : > { %v8530_v41 = vpop.f32.mrf.mxu1 }
 0xc79   : > { %v8558_v35 = vadd.f32 %v8530_v41, %v8410_v24 }
 0xc7b   : > { %v8578_v17 = vadd.f32 %v14233_v58, %v8558_v35 }
 0xc7d   : > { %v8594_v52 = vmax.f32 %v8578_v17, 0.0 }
 0xc7f   : > { %9719 = vmatmul.msk.f32.gmra.mxu2 %vm8608_vm15, %v8594_v52 }
 0xc80   : > { %v8533_v22 = vpop.f32.mrf.mxu1 }
 0xc81   : > { %v8559_v36 = vadd.f32 %v8533_v22, %v8411_v51 }
 0xc83   : > { %v8579_v40 = vadd.f32 %v14233_v58, %v8559_v36 }
 0xc85   : > { %v8595_v50 = vmax.f32 %v8579_v40, 0.0 }
 0xc87   : > { %9720 = vmatmul.msk.f32.gmra.mxu2 %vm8608_vm15, %v8595_v50 }
 0xc88   : > { %v8536_v43 = vpop.f32.mrf.mxu1 }
 0xc89   : > { %v8560_v54 = vadd.f32 %v8536_v43, %v8412_v30 }
 0xc8b   : > { %v8580_v31 = vadd.f32 %v14233_v58, %v8560_v54 }
 0xc8d   : > { %v8596_v5 = vmax.f32 %v8580_v31, 0.0 }
 0xc8f   : > { %9721 = vmatmul.msk.f32.gmra.mxu2 %vm8608_vm15, %v8596_v5 }
 0xc90   : > { %v8539_v27 = vpop.f32.mrf.mxu1 }
 0xc91   : > { %v8561_v19 = vadd.f32 %v8539_v27, %v8413_v12 }
 0xc93   : > { %v8581_v62 = vadd.f32 %v14233_v58, %v8561_v19 }
 0xc95   : > { %v8597_v9 = vmax.f32 %v8581_v62, 0.0 }
 0xc97   : > { %9722 = vmatmul.msk.f32.gmra.mxu2 %vm8608_vm15, %v8597_v9 }
 0xc98   : > { %v8542_v14 = vpop.f32.mrf.mxu1 }
 0xc99   : > { %v8562_v57 = vadd.f32 %v8542_v14, %v8414_v32 }
 0xc9b   : > { %v8582_v15 = vadd.f32 %v14233_v58, %v8562_v57 }
 0xc9d   : > { %v8598_v10 = vmax.f32 %v8582_v15, 0.0 }
 0xc9f   : > { %9723 = vmatmul.msk.f32.gmra.mxu2 %vm8608_vm15, %v8598_v10 }
 0xca0   : > { %v8545_v53 = vpop.f32.mrf.mxu1 }
 0xca1   : > { %v8563_v11 = vadd.f32 %v8545_v53, %v8415_v47 }
 0xca3   : > { %v8583_v1 = vadd.f32 %v14233_v58, %v8563_v11 }
 0xca5   : > { %v8599_v33 = vmax.f32 %v8583_v1, 0.0 }
 0xca7   : > { %9724 = vmatmul.msk.f32.gmra.mxu2 %vm8608_vm15, %v8599_v33 }
 0xcb2   : > { %v8674_v18 = vpop.f32.mrf.mxu2 }
 0xcb3   : > { %v8675_v58 = vadd.f32 %v9783_v2, %v8674_v18 }
 0xcb5   : > { %8722 = vst.msk [vmem:[%s14289_s19] sm:$0xff] %vm491_vm0, %v8675_v58 }
 0xcba   : > { %v8677_v4 = vpop.f32.mrf.mxu2 }
 0xcbb   : > { %v8678_v20 = vadd.f32 %v9783_v2, %v8677_v4 }
 0xcbd   : > { %8724 = vst.msk [vmem:[%s14289_s19 + $0x8] sm:$0xf] %vm8723_vm1, %v8678_v20 }
 0xcc2   : > { %v8680_v56 = vpop.f32.mrf.mxu2 }
 0xcc3   : > { %v8681_v25 = vadd.f32 %v9783_v2, %v8680_v56 }
 0xcc5   : > { %8725 = vst.msk [vmem:[%s14289_s19 + $0x10] sm:$0xff] %vm491_vm0, %v8681_v25 }
 0xcca   : > { %v8683_v28 = vpop.f32.mrf.mxu2 }
 0xccb   : > { %v8684_v42 = vadd.f32 %v9783_v2, %v8683_v28 }
 0xccd   : > { %8726 = vst.msk [vmem:[%s14289_s19 + $0x18] sm:$0xf] %vm8723_vm1, %v8684_v42 }
 0xcd2   : > { %v8686_v7 = vpop.f32.mrf.mxu2 }
 0xcd3   : > { %v8687_v23 = vadd.f32 %v9783_v2, %v8686_v7 }
 0xcd5   : > { %8727 = vst.msk [vmem:[%s14289_s19 + $0x20] sm:$0xff] %vm491_vm0, %v8687_v23 }
 0xcda   : > { %v8689_v44 = vpop.f32.mrf.mxu2 }
 0xcdb   : > { %v8690_v60 = vadd.f32 %v9783_v2, %v8689_v44 }
 0xcdd   : > { %8728 = vst.msk [vmem:[%s14289_s19 + $0x28] sm:$0xf] %vm8723_vm1, %v8690_v60 }
 0xce2   : > { %v8692_v63 = vpop.f32.mrf.mxu2 }
 0xce3   : > { %v8693_v24 = vadd.f32 %v9783_v2, %v8692_v63 }
 0xce5   : > { %8729 = vst.msk [vmem:[%s14289_s19 + $0x30] sm:$0xff] %vm491_vm0, %v8693_v24 }
 0xcea   : > { %v8695_v41 = vpop.f32.mrf.mxu2 }
 0xceb   : > { %v8696_v35 = vadd.f32 %v9783_v2, %v8695_v41 }
 0xced   : > { %8730 = vst.msk [vmem:[%s14289_s19 + $0x38] sm:$0xf] %vm8723_vm1, %v8696_v35 }
 0xcf2   : > { %v8698_v34 = vpop.f32.mrf.mxu2 }
 0xcf3   : > { %v8699_v17 = vadd.f32 %v9783_v2, %v8698_v34 }
 0xcf5   : > { %8731 = vst.msk [vmem:[%s14289_s19 + $0x40] sm:$0xff] %vm491_vm0, %v8699_v17 }
 0xcfa   : > { %v8701_v49 = vpop.f32.mrf.mxu2 }
 0xcfb   : > { %v8702_v52 = vadd.f32 %v9783_v2, %v8701_v49 }
 0xcfd   : > { %8732 = vst.msk [vmem:[%s14289_s19 + $0x48] sm:$0xf] %vm8723_vm1, %v8702_v52 }
 0xd02   : > { %v8704_v6 = vpop.f32.mrf.mxu2 }
 0xd03   : > { %v8705_v8 = vadd.f32 %v9783_v2, %v8704_v6 }
 0xd05   : > { %8733 = vst.msk [vmem:[%s14289_s19 + $0x50] sm:$0xff] %vm491_vm0, %v8705_v8 }
 0xd0a   : > { %v8707_v51 = vpop.f32.mrf.mxu2 }
 0xd0b   : > { %v8708_v26 = vadd.f32 %v9783_v2, %v8707_v51 }
 0xd0d   : > { %8734 = vst.msk [vmem:[%s14289_s19 + $0x58] sm:$0xf] %vm8723_vm1, %v8708_v26 }
 0xd12   : > { %v8710_v22 = vpop.f32.mrf.mxu2 }
 0xd13   : > { %v8711_v36 = vadd.f32 %v9783_v2, %v8710_v22 }
 0xd15   : > { %8735 = vst.msk [vmem:[%s14289_s19 + $0x60] sm:$0xff] %vm491_vm0, %v8711_v36 }
 0xd1a   : > { %v8713_v38 = vpop.f32.mrf.mxu2 }
 0xd1b   : > { %v8714_v40 = vadd.f32 %v9783_v2, %v8713_v38 }
 0xd1d   : > { %8736 = vst.msk [vmem:[%s14289_s19 + $0x68] sm:$0xf] %vm8723_vm1, %v8714_v40 }
 0xd22   : > { %v8716_v50 = vpop.f32.mrf.mxu2 }
 0xd23   : > { %v8717_v48 = vadd.f32 %v9783_v2, %v8716_v50 }
 0xd25   : > { %8737 = vst.msk [vmem:[%s14289_s19 + $0x70] sm:$0xff] %vm491_vm0, %v8717_v48 }
 0xd2a   : > { %v8719_v61 = vpop.f32.mrf.mxu2 }
 0xd2b   : > { %v8720_v30 = vadd.f32 %v9783_v2, %v8719_v61 }
 0xd2d   : > { %8738 = vst.msk [vmem:[%s14289_s19 + $0x78] sm:$0xf] %vm8723_vm1, %v8720_v30 }
 0xd2e PF: > { %s25_s25 = sadd.s32 1, %s9898_s25  }
 0xd2f   : > { %p22_p7 = scmp.ge.s32.totalorder %s25_s25, 4  }
 0xd31   :  { %24 = sbr.rel (!%p22_p7) target bundleno = 4 (0x4), region = 169 }
 0xd36   :  { %8760 = vsyncpa [#allocation6], 1 }
 0xd37   :  { %8762 = vsyncpa [#allocation6 + $0x1], 1 }
 0xd38   :  { %8763 = vsyncpa [#allocation8], 1 }

</bundles_post_ra>
